<compile_context>
chip_gen: v7x
topology: tpu7x:2x2x1
jax: 0.10.0
libtpu: 0.0.40
codegen_flags: <defaults>
</compile_context>

<pallas_src>
import functools
import math

import jax
import jax.numpy as jnp
from jax.experimental import pallas as pl
from jax.experimental.pallas import tpu as pltpu

MXU_DTYPE = jnp.bfloat16        # matmul operand dtype; accumulation is f32


# ----------------------------------------------------------------------------
# In-kernel helpers (operate on VMEM-resident values)
# ----------------------------------------------------------------------------

def _ln(x, g, b, eps=1e-5):
    """LayerNorm over the last axis (nn.LayerNorm default eps), f32."""
    mu = jnp.mean(x, axis=-1, keepdims=True)
    var = jnp.mean(jnp.square(x - mu), axis=-1, keepdims=True)
    return (x - mu) * jax.lax.rsqrt(var + eps) * g + b


def _mha(xq, xkv, wqkv_ref, bqkv_ref, wo_ref, *, heads, bs, Sq, Sk):
    """Multi-head attention on a whole-batch slab.

    xq : (bs*Sq, dm) f32  pre-normed query-side input
    xkv: (bs*Sk, dm) f32  key/value-side input
    wqkv_ref: (1, 3*heads, dm, dk) bf16  per-head Q,K,V weights (head-stacked:
              no non-128-aligned lane slicing of a fused QKV output needed)
    bqkv_ref: (1, 3*heads, 1, dk) f32
    wo_ref  : (1, heads, dk, dm) bf16   per-head rows of the output projection
              (accumulated per head -> no lane-dim concat of head outputs)
    Returns (bs*Sq, dm) f32 (output-projection bias not included).
    """
    dm = xq.shape[-1]
    dk = dm // heads
    scale = 1.0 / math.sqrt(dk)
    xq_m = xq.astype(MXU_DTYPE)
    xkv_m = xkv.astype(MXU_DTYPE)
    out = jnp.zeros((bs * Sq, dm), jnp.float32)
    for h in range(heads):                       # heads is small and static
        q = (jnp.dot(xq_m, wqkv_ref[0, h],
                     preferred_element_type=jnp.float32)
             + bqkv_ref[0, h]).reshape(bs, Sq, dk)
        k = (jnp.dot(xkv_m, wqkv_ref[0, heads + h],
                     preferred_element_type=jnp.float32)
             + bqkv_ref[0, heads + h]).reshape(bs, Sk, dk)
        v = (jnp.dot(xkv_m, wqkv_ref[0, 2 * heads + h],
                     preferred_element_type=jnp.float32)
             + bqkv_ref[0, 2 * heads + h]).reshape(bs, Sk, dk)
        s = jnp.einsum('bqd,bkd->bqk', q.astype(MXU_DTYPE), k.astype(MXU_DTYPE),
                       preferred_element_type=jnp.float32) * scale
        s = s - jnp.max(s, axis=-1, keepdims=True)
        p = jnp.exp(s)
        p = p / jnp.sum(p, axis=-1, keepdims=True)      # exact softmax denom
        o = jnp.einsum('bqk,bkd->bqd', p.astype(MXU_DTYPE), v.astype(MXU_DTYPE),
                       preferred_element_type=jnp.float32)
        out = out + jnp.dot(o.reshape(bs * Sq, dk).astype(MXU_DTYPE),
                            wo_ref[0, h], preferred_element_type=jnp.float32)
    return out


# ----------------------------------------------------------------------------
# Encoder / Decoder kernels (whole stack fused; grid = (n_layers,))
# ----------------------------------------------------------------------------

def _encoder_kernel(src_ref, ln_ref, wqkv_ref, bqkv_ref, wo_ref, bo_ref,
                    w1_ref, b1_ref, w2_ref, b2_ref, fnorm_ref,
                    out_ref, x_sc, *, heads, bs, S):
    l = pl.program_id(0)

    @pl.when(l == 0)
    def _():
        x_sc[...] = src_ref[...]

    x = x_sc[...]                                # (bs*S, dm) residual stream
    ln = ln_ref[0]                               # (4, dm): [g1, b1, g2, b2]

    # --- pre-norm self-attention ---
    x2 = _ln(x, ln[0:1, :], ln[1:2, :])
    x = x + _mha(x2, x2, wqkv_ref, bqkv_ref, wo_ref,
                 heads=heads, bs=bs, Sq=S, Sk=S) + bo_ref[0]

    # --- pre-norm feed-forward ---
    x2 = _ln(x, ln[2:3, :], ln[3:4, :])
    h = jnp.maximum(
        jnp.dot(x2.astype(MXU_DTYPE), w1_ref[0],
                preferred_element_type=jnp.float32) + b1_ref[0], 0.0)
    x = x + jnp.dot(h.astype(MXU_DTYPE), w2_ref[0],
                    preferred_element_type=jnp.float32) + b2_ref[0]

    x_sc[...] = x

    @pl.when(l == pl.num_programs(0) - 1)        # attention_layer_norm == True
    def _():
        fn = fnorm_ref[...]
        out_ref[...] = _ln(x, fn[0:1, :], fn[1:2, :])


def _decoder_kernel(trg_ref, enc_ref, ln_ref,
                    swqkv_ref, sbqkv_ref, swo_ref, sbo_ref,
                    cwqkv_ref, cbqkv_ref, cwo_ref, cbo_ref,
                    w1_ref, b1_ref, w2_ref, b2_ref, fnorm_ref,
                    out_ref, x_sc, *, heads, bs, S):
    l = pl.program_id(0)

    @pl.when(l == 0)
    def _():
        x_sc[...] = trg_ref[...]

    x = x_sc[...]                                # (bs*S, dm)
    e = enc_ref[...]                             # (bs*S, dm) encoder output
    ln = ln_ref[0]                               # (6, dm)

    # --- pre-norm self-attention (no mask: trg_mask defaults to None) ---
    x2 = _ln(x, ln[0:1, :], ln[1:2, :])
    x = x + _mha(x2, x2, swqkv_ref, sbqkv_ref, swo_ref,
                 heads=heads, bs=bs, Sq=S, Sk=S) + sbo_ref[0]

    # --- pre-norm cross-attention (K/V from encoder output) ---
    x2 = _ln(x, ln[2:3, :], ln[3:4, :])
    x = x + _mha(x2, e, cwqkv_ref, cbqkv_ref, cwo_ref,
                 heads=heads, bs=bs, Sq=S, Sk=S) + cbo_ref[0]

    # --- pre-norm feed-forward ---
    x2 = _ln(x, ln[4:5, :], ln[5:6, :])
    h = jnp.maximum(
        jnp.dot(x2.astype(MXU_DTYPE), w1_ref[0],
                preferred_element_type=jnp.float32) + b1_ref[0], 0.0)
    x = x + jnp.dot(h.astype(MXU_DTYPE), w2_ref[0],
                    preferred_element_type=jnp.float32) + b2_ref[0]

    x_sc[...] = x

    @pl.when(l == pl.num_programs(0) - 1)
    def _():
        fn = fnorm_ref[...]
        out_ref[...] = _ln(x, fn[0:1, :], fn[1:2, :])


def _layer_spec(arr):
    """BlockSpec for a per-layer-stacked parameter (one layer per grid step)."""
    nd = arr.ndim
    return pl.BlockSpec((1,) + arr.shape[1:], lambda l: (l,) + (0,) * (nd - 1))


def _const_spec(arr):
    """BlockSpec for a grid-invariant array (DMA'd once, then VMEM-resident)."""
    nd = arr.ndim
    return pl.BlockSpec(arr.shape, lambda l: (0,) * nd)


def encoder_forward(p, src2, heads, bs, S):
    dm = src2.shape[-1]
    n_layers = p["w1"].shape[0]
    return pl.pallas_call(
        functools.partial(_encoder_kernel, heads=heads, bs=bs, S=S),
        grid=(n_layers,),
        in_specs=[
            _const_spec(src2),
            _layer_spec(p["ln"]),
            _layer_spec(p["wqkv"]), _layer_spec(p["bqkv"]),
            _layer_spec(p["wo"]), _layer_spec(p["bo"]),
            _layer_spec(p["w1"]), _layer_spec(p["b1"]),
            _layer_spec(p["w2"]), _layer_spec(p["b2"]),
            _const_spec(p["norm"]),
        ],
        out_specs=pl.BlockSpec((bs * S, dm), lambda l: (0, 0)),
        out_shape=jax.ShapeDtypeStruct((bs * S, dm), jnp.float32),
        scratch_shapes=[pltpu.VMEM((bs * S, dm), jnp.float32)],
        compiler_params=pltpu.CompilerParams(
            dimension_semantics=("arbitrary",)),
    )(src2, p["ln"], p["wqkv"], p["bqkv"], p["wo"], p["bo"],
      p["w1"], p["b1"], p["w2"], p["b2"], p["norm"])


def decoder_forward(p, trg2, e2, heads, bs, S):
    dm = trg2.shape[-1]
    n_layers = p["w1"].shape[0]
    return pl.pallas_call(
        functools.partial(_decoder_kernel, heads=heads, bs=bs, S=S),
        grid=(n_layers,),
        in_specs=[
            _const_spec(trg2), _const_spec(e2),
            _layer_spec(p["ln"]),
            _layer_spec(p["swqkv"]), _layer_spec(p["sbqkv"]),
            _layer_spec(p["swo"]), _layer_spec(p["sbo"]),
            _layer_spec(p["cwqkv"]), _layer_spec(p["cbqkv"]),
            _layer_spec(p["cwo"]), _layer_spec(p["cbo"]),
            _layer_spec(p["w1"]), _layer_spec(p["b1"]),
            _layer_spec(p["w2"]), _layer_spec(p["b2"]),
            _const_spec(p["norm"]),
        ],
        out_specs=pl.BlockSpec((bs * S, dm), lambda l: (0, 0)),
        out_shape=jax.ShapeDtypeStruct((bs * S, dm), jnp.float32),
        scratch_shapes=[pltpu.VMEM((bs * S, dm), jnp.float32)],
        compiler_params=pltpu.CompilerParams(
            dimension_semantics=("arbitrary",)),
    )(trg2, e2, p["ln"],
      p["swqkv"], p["sbqkv"], p["swo"], p["sbo"],
      p["cwqkv"], p["cbqkv"], p["cwo"], p["cbo"],
      p["w1"], p["b1"], p["w2"], p["b2"], p["norm"])


# ----------------------------------------------------------------------------
# Fused customized_CNN kernel: conv(3,1)+maxpool(2,1)+ReLU, twice
# ----------------------------------------------------------------------------

def _pool_relu(c, Hin, W):
    """MaxPool2d(kernel=(2,1), stride=(2,1), padding=(1,0)) over the H axis of
    an (Hin*W, C) row-blocked layout, followed by ReLU.  Interior windows are
    reduced with one reshape-based pairwise max (no per-window concat chain)."""
    C = c.shape[-1]
    pieces = [c[0:W, :]]                              # window 0: rows {pad, 0}
    n_pairs = (Hin - 1) // 2
    if n_pairs > 0:
        mid = c[W:(1 + 2 * n_pairs) * W, :].reshape(n_pairs, 2 * W, C)
        pieces.append(
            jnp.maximum(mid[:, :W, :], mid[:, W:, :]).reshape(n_pairs * W, C))
    if (Hin - 1) % 2 == 1:                            # trailing window (even H)
        pieces.append(c[(Hin - 1) * W:Hin * W, :])
    pooled = jnp.concatenate(pieces, axis=0) if len(pieces) > 1 else pieces[0]
    return jnp.maximum(pooled, 0.0), (Hin + 2) // 2


def _cnn_kernel(x_ref, w1_ref, b1_ref, w2_ref, b2_ref, o_ref, *, H, W):
    """One batch element.  Activations use an (h*W + w, channel) layout so the
    H-direction conv taps are W-row shifts, pooling windows are static row
    blocks, and both convs are im2col matmuls (MXU, not per-tap VPU work)."""
    x = x_ref[0]                                      # (H*W, 1)
    zc = jnp.zeros((W, 1), jnp.float32)

    # stage 1: Conv2d(1, C1, (3,1), pad (1,0)) as an im2col matmul (K = 3)
    xm = jnp.concatenate([zc, x[:-W, :]], axis=0)     # row h-1 (zero padded)
    xp = jnp.concatenate([x[W:, :], zc], axis=0)      # row h+1
    cols1 = jnp.concatenate([xm, x, xp], axis=1)      # (H*W, 3), tap-major
    c1 = jnp.dot(cols1.astype(MXU_DTYPE), w1_ref[...],
                 preferred_element_type=jnp.float32) + b1_ref[...]
    p1, H1 = _pool_relu(c1, H, W)                     # (H1*W, C1)

    # stage 2: Conv2d(C1, C2, (3,1), pad (1,0)) as an im2col matmul (K = 3*C1)
    C1 = p1.shape[-1]
    z2 = jnp.zeros((W, C1), jnp.float32)
    pm = jnp.concatenate([z2, p1[:-W, :]], axis=0)
    pp = jnp.concatenate([p1[W:, :], z2], axis=0)
    cols2 = jnp.concatenate([pm, p1, pp], axis=1)     # (H1*W, 3*C1), tap-major
    c2 = jnp.dot(cols2.astype(MXU_DTYPE), w2_ref[...],
                 preferred_element_type=jnp.float32) + b2_ref[...]
    p2, _ = _pool_relu(c2, H1, W)                     # (H2*W, C2)

    # Lane-dense store, no in-kernel transpose; the output-head w1 rows are
    # pre-permuted at init to match this (h, w, c) flatten order.
    o_ref[0] = p2


def cnn_forward(p, xcol, H, W):
    bs = xcol.shape[0]
    C1 = p["w1"].shape[1]
    C2 = p["w2"].shape[1]
    H2 = ((H + 2) // 2 + 2) // 2
    return pl.pallas_call(
        functools.partial(_cnn_kernel, H=H, W=W),
        grid=(bs,),
        in_specs=[
            pl.BlockSpec((1, H * W, 1), lambda b: (b, 0, 0)),
            pl.BlockSpec((3, C1), lambda b: (0, 0)),
            pl.BlockSpec((1, C1), lambda b: (0, 0)),
            pl.BlockSpec((3 * C1, C2), lambda b: (0, 0)),
            pl.BlockSpec((1, C2), lambda b: (0, 0)),
        ],
        out_specs=pl.BlockSpec((1, H2 * W, C2), lambda b: (b, 0, 0)),
        out_shape=jax.ShapeDtypeStruct((bs, H2 * W, C2), jnp.float32),
        compiler_params=pltpu.CompilerParams(dimension_semantics=("parallel",)),
    )(xcol, p["w1"], p["b1"], p["w2"], p["b2"])


# ----------------------------------------------------------------------------
# Output head: Linear -> ReLU -> Linear, de-tiled (whole w1 resident),
# batch-parallel grid (uses both TensorCores on v7x).
# ----------------------------------------------------------------------------

def _head_kernel(x_ref, w1_ref, b1_ref, w2_ref, b2_ref, o_ref):
    x = x_ref[0]                                      # (1, D)
    h = jnp.maximum(
        jnp.dot(x.astype(MXU_DTYPE), w1_ref[...],
                preferred_element_type=jnp.float32) + b1_ref[...], 0.0)
    o_ref[0] = jnp.dot(h.astype(MXU_DTYPE), w2_ref[...],
                       preferred_element_type=jnp.float32) + b2_ref[...]


def output_head(p, flat):
    bs, D = flat.shape
    nh = p["w1"].shape[1]
    out = pl.pallas_call(
        _head_kernel,
        grid=(bs,),
        in_specs=[
            pl.BlockSpec((1, 1, D), lambda b: (b, 0, 0)),
            pl.BlockSpec((D, nh), lambda b: (0, 0)),   # constant index: w1 DMA'd once
            pl.BlockSpec((1, nh), lambda b: (0, 0)),
            pl.BlockSpec((nh, 1), lambda b: (0, 0)),
            pl.BlockSpec((1, 1), lambda b: (0, 0)),
        ],
        out_specs=pl.BlockSpec((1, 1, 1), lambda b: (b, 0, 0)),
        out_shape=jax.ShapeDtypeStruct((bs, 1, 1), jnp.float32),
        compiler_params=pltpu.CompilerParams(dimension_semantics=("parallel",)),
    )(flat.reshape(bs, 1, D), p["w1"], p["b1"], p["w2"], p["b2"])
    return out.reshape(bs, 1)


# ----------------------------------------------------------------------------
# Full forward pass (4 pallas_calls; all inter-kernel reshapes are free
# row-major reinterpretations done by XLA)
# ----------------------------------------------------------------------------

def transformer_forward(params, src, trg, heads):
    bs, S, dm = src.shape
    e2 = encoder_forward(params["encoder"], src.reshape(bs * S, dm), heads, bs, S)
    d2 = decoder_forward(params["decoder"], trg.reshape(bs * S, dm), e2, heads, bs, S)
    # add_seq_cnn == True: unsqueeze(1) -> NCHW (bs,1,S,dm); the CNN kernel
    # consumes each image as an (h*W + w, 1) column (free reinterpretation).
    cnn_out = cnn_forward(params["cnn"], d2.reshape(bs, S * dm, 1), H=S, W=dm)
    flat = cnn_out.reshape(bs, -1)        # (h, w, c)-ordered; head w1 pre-permuted
    return output_head(params["out"], flat)


# ----------------------------------------------------------------------------
# Deterministic parameter init (per-layer weights stacked on axis 0,
# attention weights stacked per head; matmul weights stored in bf16)
# ----------------------------------------------------------------------------

def _linear_init(key, shape_w, shape_b, w_scale=0.05, b_scale=0.01):
    kw, kb = jax.random.split(key)
    return (w_scale * jax.random.normal(kw, shape_w, jnp.float32),
            b_scale * jax.random.normal(kb, shape_b, jnp.float32))


def _attn_params(key, n_layers, d_model, heads):
    """Per-head-stacked MHA weights so the kernel never lane-slices."""
    dk = d_model // heads
    kq, kk, kv, ko = jax.random.split(key, 4)
    wq, bq = _linear_init(kq, (n_layers, d_model, d_model), (n_layers, 1, d_model))
    wk, bk = _linear_init(kk, (n_layers, d_model, d_model), (n_layers, 1, d_model))
    wv, bv = _linear_init(kv, (n_layers, d_model, d_model), (n_layers, 1, d_model))
    wo, bo = _linear_init(ko, (n_layers, d_model, d_model), (n_layers, 1, d_model))

    def split_w(w):      # (L, dm, dm) -> (L, heads, dm, dk)
        return w.reshape(n_layers, d_model, heads, dk).transpose(0, 2, 1, 3)

    def split_b(b):      # (L, 1, dm) -> (L, heads, 1, dk)
        return b.reshape(n_layers, 1, heads, dk).transpose(0, 2, 1, 3)

    wqkv = jnp.concatenate([split_w(wq), split_w(wk), split_w(wv)],
                           axis=1).astype(MXU_DTYPE)          # (L, 3*heads, dm, dk)
    bqkv = jnp.concatenate([split_b(bq), split_b(bk), split_b(bv)], axis=1)
    wo_h = wo.reshape(n_layers, heads, dk, d_model).astype(MXU_DTYPE)
    return {"wqkv": wqkv, "bqkv": bqkv, "wo": wo_h, "bo": bo}


def _ff_params(key, n_layers, d_model, d_ff):
    k1, k2 = jax.random.split(key)
    w1, b1 = _linear_init(k1, (n_layers, d_model, d_ff), (n_layers, 1, d_ff))
    w2, b2 = _linear_init(k2, (n_layers, d_ff, d_model), (n_layers, 1, d_model))
    return {"w1": w1.astype(MXU_DTYPE), "b1": b1,
            "w2": w2.astype(MXU_DTYPE), "b2": b2}


def _ln_stack(n_layers, d, pairs):
    row = jnp.concatenate([jnp.ones((1, d)), jnp.zeros((1, d))] * pairs, axis=0)
    return jnp.tile(row[None], (n_layers, 1, 1)).astype(jnp.float32)


def init_params(key, d_model, n_layers, heads, d_ff, seq_len):
    ks = jax.random.split(key, 6)

    # ---- encoder ----
    encoder = {"ln": _ln_stack(n_layers, d_model, 2),
               "norm": jnp.stack([jnp.ones(d_model), jnp.zeros(d_model)]
                                 ).astype(jnp.float32)}
    encoder.update(_attn_params(ks[0], n_layers, d_model, heads))
    encoder.update(_ff_params(ks[1], n_layers, d_model, d_ff))

    # ---- decoder ----
    dec_self = _attn_params(ks[2], n_layers, d_model, heads)
    dec_cross = _attn_params(ks[3], n_layers, d_model, heads)
    decoder = {"ln": _ln_stack(n_layers, d_model, 3),
               "norm": jnp.stack([jnp.ones(d_model), jnp.zeros(d_model)]
                                 ).astype(jnp.float32),
               "swqkv": dec_self["wqkv"], "sbqkv": dec_self["bqkv"],
               "swo": dec_self["wo"], "sbo": dec_self["bo"],
               "cwqkv": dec_cross["wqkv"], "cbqkv": dec_cross["bqkv"],
               "cwo": dec_cross["wo"], "cbo": dec_cross["bo"]}
    decoder.update(_ff_params(ks[4], n_layers, d_model, d_ff))

    # ---- customized_CNN: PyTorch Conv2d weights rearranged to matmul layout ----
    kc1, kc2, k1w, k1b, k2w, k2b = jax.random.split(ks[5], 6)
    C1, C2 = 32, 64
    conv1 = 0.05 * jax.random.normal(kc1, (C1, 1, 3, 1), jnp.float32)   # (Cout,Cin,kh,kw)
    conv2 = 0.05 * jax.random.normal(kc2, (C2, C1, 3, 1), jnp.float32)
    cnn = {
        "w1": conv1[:, 0, :, 0].T.astype(MXU_DTYPE),                    # (3, C1) [tap, co]
        "b1": jnp.zeros((1, C1), jnp.float32),
        "w2": conv2[:, :, :, 0].transpose(2, 1, 0).reshape(3 * C1, C2)  # (3*Cin, Cout)
                .astype(MXU_DTYPE),
        "b2": jnp.zeros((1, C2), jnp.float32),
    }

    # ---- OutputFeedForward (output_FF_layers = [64, 1]) ----
    H2 = ((seq_len + 2) // 2 + 2) // 2
    flat_dim = C2 * H2 * d_model
    nh = 64
    # PyTorch flattens the CNN output channel-major (c, h, w); our CNN kernel
    # emits (h*w, c), so permute w1's rows once here instead of transposing the
    # activation inside the kernel (keeps the CNN store lane-dense).
    w1_torch = 0.05 * jax.random.normal(k1w, (flat_dim, nh), jnp.float32)
    w1 = w1_torch.reshape(C2, H2 * d_model, nh).transpose(1, 0, 2).reshape(flat_dim, nh)
    out = {
        "w1": w1.astype(MXU_DTYPE),
        "b1": 0.01 * jax.random.normal(k1b, (1, nh), jnp.float32),
        "w2": (0.05 * jax.random.normal(k2w, (nh, 1), jnp.float32)).astype(MXU_DTYPE),
        "b2": 0.01 * jax.random.normal(k2b, (1, 1), jnp.float32),
    }
    return {"encoder": encoder, "decoder": decoder, "cnn": cnn, "out": out}


# ----------------------------------------------------------------------------
# Main
# ----------------------------------------------------------------------------

if __name__ == "__main__":
    BS, SEQ, D_MODEL, N_LAYERS, HEADS, D_FF = 2, 8, 32, 2, 4, 64

    key = jax.random.PRNGKey(0)
    kp, ksrc, ktrg = jax.random.split(key, 3)
    params = init_params(kp, D_MODEL, N_LAYERS, HEADS, D_FF, SEQ)

    # n_feature_dim == d_model (input already projected to model width)
    src = jax.random.normal(ksrc, (BS, SEQ, D_MODEL), jnp.float32)
    trg = jax.random.normal(ktrg, (BS, SEQ, D_MODEL), jnp.float32)

    fwd = jax.jit(functools.partial(transformer_forward, heads=HEADS))
    out = jax.block_until_ready(fwd(params, src, trg))

    assert out.shape == (BS, 1), out.shape
    assert bool(jnp.all(jnp.isfinite(out)))
    print("KERNEL_OK")
</pallas_src>

<mosaic_0001>
module attributes {stable_mosaic.version = 11 : i64} {
  func.func @_encoder_kernel(%arg0: i32, %arg1: memref<16x32xf32, #tpu.memory_space<vmem>>, %arg2: memref<1x4x32xf32, #tpu.memory_space<vmem>>, %arg3: memref<1x12x32x8xbf16, #tpu.memory_space<vmem>>, %arg4: memref<1x12x1x8xf32, #tpu.memory_space<vmem>>, %arg5: memref<1x4x8x32xbf16, #tpu.memory_space<vmem>>, %arg6: memref<1x1x32xf32, #tpu.memory_space<vmem>>, %arg7: memref<1x32x64xbf16, #tpu.memory_space<vmem>>, %arg8: memref<1x1x64xf32, #tpu.memory_space<vmem>>, %arg9: memref<1x64x32xbf16, #tpu.memory_space<vmem>>, %arg10: memref<1x1x32xf32, #tpu.memory_space<vmem>>, %arg11: memref<2x32xf32, #tpu.memory_space<vmem>>, %arg12: memref<16x32xf32, #tpu.memory_space<vmem>>, %arg13: memref<16x32xf32, #tpu.memory_space<vmem>>) attributes {dimension_semantics = [#tpu.dimension_semantics<arbitrary>], iteration_bounds = array<i64: 2>, scalar_prefetch = 0 : i64, scratch_operands = 1 : i64, tpu.core_type = #tpu.core_type<tc>, window_params = [{pipeline_mode = #tpu.pipeline_mode<synchronous>, transform_indices = @transform_0, window_bounds = array<i64: 16, 32>}, {transform_indices = @transform_1, window_bounds = array<i64: 1, 4, 32>}, {transform_indices = @transform_2, window_bounds = array<i64: 1, 12, 32, 8>}, {transform_indices = @transform_3, window_bounds = array<i64: 1, 12, 1, 8>}, {transform_indices = @transform_4, window_bounds = array<i64: 1, 4, 8, 32>}, {transform_indices = @transform_5, window_bounds = array<i64: 1, 1, 32>}, {transform_indices = @transform_6, window_bounds = array<i64: 1, 32, 64>}, {transform_indices = @transform_7, window_bounds = array<i64: 1, 1, 64>}, {transform_indices = @transform_8, window_bounds = array<i64: 1, 64, 32>}, {transform_indices = @transform_9, window_bounds = array<i64: 1, 1, 32>}, {pipeline_mode = #tpu.pipeline_mode<synchronous>, transform_indices = @transform_10, window_bounds = array<i64: 2, 32>}, {pipeline_mode = #tpu.pipeline_mode<synchronous>, transform_indices = @transform_11, window_bounds = array<i64: 16, 32>}]} {
    %c0_i32 = arith.constant 0 : i32
    %0 = arith.cmpi eq, %arg0, %c0_i32 : i32
    %1 = arith.extui %0 : i1 to i32
    %c0_i32_0 = arith.constant 0 : i32
    %2 = arith.cmpi ne, %1, %c0_i32_0 : i32
    scf.if %2 {
      %c0_173 = arith.constant 0 : index
      %c0_174 = arith.constant 0 : index
      %273 = vector.load %arg1[%c0_173, %c0_174] : memref<16x32xf32, #tpu.memory_space<vmem>>, vector<16x32xf32>
      %c0_175 = arith.constant 0 : index
      %c0_176 = arith.constant 0 : index
      %274 = vector.load %arg13[%c0_175, %c0_176] : memref<16x32xf32, #tpu.memory_space<vmem>>, vector<16x32xf32>
      tpu.vector_store %arg13[%c0_175, %c0_176], %273 {strides = array<i32>} : memref<16x32xf32, #tpu.memory_space<vmem>>, vector<16x32xf32>,
    } else {
    }
    %c0 = arith.constant 0 : index
    %c0_1 = arith.constant 0 : index
    %3 = vector.load %arg13[%c0, %c0_1] : memref<16x32xf32, #tpu.memory_space<vmem>>, vector<16x32xf32>
    %c0_2 = arith.constant 0 : index
    %c0_3 = arith.constant 0 : index
    %c0_4 = arith.constant 0 : index
    %4 = vector.load %arg2[%c0_2, %c0_3, %c0_4] : memref<1x4x32xf32, #tpu.memory_space<vmem>>, vector<1x4x32xf32>
    %5 = vector.shape_cast %4 : vector<1x4x32xf32> to vector<4x32xf32>
    %6 = vector.extract_strided_slice %5 {offsets = [0, 0], sizes = [1, 32], strides = [1, 1]} : vector<4x32xf32> to vector<1x32xf32>
    %7 = vector.extract_strided_slice %5 {offsets = [1, 0], sizes = [1, 32], strides = [1, 1]} : vector<4x32xf32> to vector<1x32xf32>
    %cst = arith.constant dense<0.000000e+00> : vector<16xf32>
    %8 = vector.multi_reduction <add>, %3, %cst [1] : vector<16x32xf32> to vector<16xf32>
    %9 = vector.shape_cast %8 : vector<16xf32> to vector<16x1xf32>
    %cst_5 = arith.constant 3.200000e+01 : f32
    %10 = vector.broadcast %cst_5 : f32 to vector<16x1xf32>
    %11 = arith.divf %9, %10 : vector<16x1xf32>
    %12 = vector.broadcast %11 : vector<16x1xf32> to vector<16x32xf32>
    %13 = arith.subf %3, %12 : vector<16x32xf32>
    %14 = arith.mulf %13, %13 : vector<16x32xf32>
    %cst_6 = arith.constant dense<0.000000e+00> : vector<16xf32>
    %15 = vector.multi_reduction <add>, %14, %cst_6 [1] : vector<16x32xf32> to vector<16xf32>
    %16 = vector.shape_cast %15 : vector<16xf32> to vector<16x1xf32>
    %cst_7 = arith.constant 3.200000e+01 : f32
    %17 = vector.broadcast %cst_7 : f32 to vector<16x1xf32>
    %18 = arith.divf %16, %17 : vector<16x1xf32>
    %19 = vector.broadcast %11 : vector<16x1xf32> to vector<16x32xf32>
    %20 = arith.subf %3, %19 : vector<16x32xf32>
    %cst_8 = arith.constant 9.99999974E-6 : f32
    %21 = vector.broadcast %cst_8 : f32 to vector<16x1xf32>
    %22 = arith.addf %18, %21 : vector<16x1xf32>
    %23 = math.rsqrt %22 : vector<16x1xf32>
    %24 = vector.broadcast %23 : vector<16x1xf32> to vector<16x32xf32>
    %25 = arith.mulf %20, %24 : vector<16x32xf32>
    %26 = vector.broadcast %6 : vector<1x32xf32> to vector<16x32xf32>
    %27 = arith.mulf %25, %26 : vector<16x32xf32>
    %28 = vector.broadcast %7 : vector<1x32xf32> to vector<16x32xf32>
    %29 = arith.addf %27, %28 : vector<16x32xf32>
    %30 = arith.truncf %29 : vector<16x32xf32> to vector<16x32xbf16>
    %31 = arith.truncf %29 : vector<16x32xf32> to vector<16x32xbf16>
    %cst_9 = arith.constant 0.000000e+00 : f32
    %32 = vector.broadcast %cst_9 : f32 to vector<16x32xf32>
    %c0_10 = arith.constant 0 : index
    %c0_11 = arith.constant 0 : index
    %c0_12 = arith.constant 0 : index
    %c0_13 = arith.constant 0 : index
    %33 = vector.load %arg3[%c0_10, %c0_11, %c0_12, %c0_13] : memref<1x12x32x8xbf16, #tpu.memory_space<vmem>>, vector<1x1x32x8xbf16>
    %34 = vector.shape_cast %33 : vector<1x1x32x8xbf16> to vector<32x8xbf16>
    %cst_14 = arith.constant dense<0.000000e+00> : vector<16x8xf32>
    %35 = tpu.matmul %30, %34, %cst_14 {dimension_numbers = #tpu.dot_dimension_numbers<[1], [0], [0], [1], [0, 0, 1, 1], [], []>} : vector<16x32xbf16>, vector<32x8xbf16>, vector<16x8xf32> -> vector<16x8xf32>
    %c0_15 = arith.constant 0 : index
    %c0_16 = arith.constant 0 : index
    %c0_17 = arith.constant 0 : index
    %c0_18 = arith.constant 0 : index
    %36 = vector.load %arg4[%c0_15, %c0_16, %c0_17, %c0_18] : memref<1x12x1x8xf32, #tpu.memory_space<vmem>>, vector<1x1x1x8xf32>
    %37 = vector.shape_cast %36 : vector<1x1x1x8xf32> to vector<1x8xf32>
    %38 = vector.broadcast %37 : vector<1x8xf32> to vector<16x8xf32>
    %39 = arith.addf %35, %38 : vector<16x8xf32>
    %40 = vector.shape_cast %39 : vector<16x8xf32> to vector<2x8x8xf32>
    %c0_19 = arith.constant 0 : index
    %c4 = arith.constant 4 : index
    %c0_20 = arith.constant 0 : index
    %c0_21 = arith.constant 0 : index
    %41 = vector.load %arg3[%c0_19, %c4, %c0_20, %c0_21] : memref<1x12x32x8xbf16, #tpu.memory_space<vmem>>, vector<1x1x32x8xbf16>
    %42 = vector.shape_cast %41 : vector<1x1x32x8xbf16> to vector<32x8xbf16>
    %cst_22 = arith.constant dense<0.000000e+00> : vector<16x8xf32>
    %43 = tpu.matmul %31, %42, %cst_22 {dimension_numbers = #tpu.dot_dimension_numbers<[1], [0], [0], [1], [0, 0, 1, 1], [], []>} : vector<16x32xbf16>, vector<32x8xbf16>, vector<16x8xf32> -> vector<16x8xf32>
    %c0_23 = arith.constant 0 : index
    %c4_24 = arith.constant 4 : index
    %c0_25 = arith.constant 0 : index
    %c0_26 = arith.constant 0 : index
    %44 = vector.load %arg4[%c0_23, %c4_24, %c0_25, %c0_26] : memref<1x12x1x8xf32, #tpu.memory_space<vmem>>, vector<1x1x1x8xf32>
    %45 = vector.shape_cast %44 : vector<1x1x1x8xf32> to vector<1x8xf32>
    %46 = vector.broadcast %45 : vector<1x8xf32> to vector<16x8xf32>
    %47 = arith.addf %43, %46 : vector<16x8xf32>
    %48 = vector.shape_cast %47 : vector<16x8xf32> to vector<2x8x8xf32>
    %c0_27 = arith.constant 0 : index
    %c8 = arith.constant 8 : index
    %c0_28 = arith.constant 0 : index
    %c0_29 = arith.constant 0 : index
    %49 = vector.load %arg3[%c0_27, %c8, %c0_28, %c0_29] : memref<1x12x32x8xbf16, #tpu.memory_space<vmem>>, vector<1x1x32x8xbf16>
    %50 = vector.shape_cast %49 : vector<1x1x32x8xbf16> to vector<32x8xbf16>
    %cst_30 = arith.constant dense<0.000000e+00> : vector<16x8xf32>
    %51 = tpu.matmul %31, %50, %cst_30 {dimension_numbers = #tpu.dot_dimension_numbers<[1], [0], [0], [1], [0, 0, 1, 1], [], []>} : vector<16x32xbf16>, vector<32x8xbf16>, vector<16x8xf32> -> vector<16x8xf32>
    %c0_31 = arith.constant 0 : index
    %c8_32 = arith.constant 8 : index
    %c0_33 = arith.constant 0 : index
    %c0_34 = arith.constant 0 : index
    %52 = vector.load %arg4[%c0_31, %c8_32, %c0_33, %c0_34] : memref<1x12x1x8xf32, #tpu.memory_space<vmem>>, vector<1x1x1x8xf32>
    %53 = vector.shape_cast %52 : vector<1x1x1x8xf32> to vector<1x8xf32>
    %54 = vector.broadcast %53 : vector<1x8xf32> to vector<16x8xf32>
    %55 = arith.addf %51, %54 : vector<16x8xf32>
    %56 = vector.shape_cast %55 : vector<16x8xf32> to vector<2x8x8xf32>
    %57 = arith.truncf %40 : vector<2x8x8xf32> to vector<2x8x8xbf16>
    %58 = arith.truncf %48 : vector<2x8x8xf32> to vector<2x8x8xbf16>
    "tpu.trace_start"() <{level = 10 : i32, message = "bqd,bkd->bqk"}> : () -> ()
    %cst_35 = arith.constant dense<0.000000e+00> : vector<2x8x8xf32>
    %59 = tpu.matmul %57, %58, %cst_35 {dimension_numbers = #tpu.dot_dimension_numbers<[2], [2], [1], [1], [0, 0, 0, 1, 1, 1], [0], [0]>} : vector<2x8x8xbf16>, vector<2x8x8xbf16>, vector<2x8x8xf32> -> vector<2x8x8xf32>
    "tpu.trace_stop"() : () -> ()
    %cst_36 = arith.constant 0.353553385 : f32
    %60 = vector.broadcast %cst_36 : f32 to vector<2x8x8xf32>
    %61 = arith.mulf %59, %60 : vector<2x8x8xf32>
    %cst_37 = arith.constant dense<0xFF800000> : vector<2x8xf32>
    %62 = vector.multi_reduction <maximumf>, %61, %cst_37 [2] : vector<2x8x8xf32> to vector<2x8xf32>
    %63 = vector.shape_cast %62 : vector<2x8xf32> to vector<2x8x1xf32>
    %64 = vector.broadcast %63 : vector<2x8x1xf32> to vector<2x8x8xf32>
    %65 = arith.subf %61, %64 : vector<2x8x8xf32>
    %66 = math.exp %65 : vector<2x8x8xf32>
    %cst_38 = arith.constant dense<0.000000e+00> : vector<2x8xf32>
    %67 = vector.multi_reduction <add>, %66, %cst_38 [2] : vector<2x8x8xf32> to vector<2x8xf32>
    %68 = vector.shape_cast %67 : vector<2x8xf32> to vector<2x8x1xf32>
    %69 = vector.broadcast %68 : vector<2x8x1xf32> to vector<2x8x8xf32>
    %70 = arith.divf %66, %69 : vector<2x8x8xf32>
    %71 = arith.truncf %70 : vector<2x8x8xf32> to vector<2x8x8xbf16>
    %72 = arith.truncf %56 : vector<2x8x8xf32> to vector<2x8x8xbf16>
    "tpu.trace_start"() <{level = 10 : i32, message = "bqk,bkd->bqd"}> : () -> ()
    %cst_39 = arith.constant dense<0.000000e+00> : vector<2x8x8xf32>
    %73 = tpu.matmul %71, %72, %cst_39 {dimension_numbers = #tpu.dot_dimension_numbers<[2], [1], [1], [2], [0, 0, 0, 1, 1, 2], [0], [0]>} : vector<2x8x8xbf16>, vector<2x8x8xbf16>, vector<2x8x8xf32> -> vector<2x8x8xf32>
    "tpu.trace_stop"() : () -> ()
    %74 = vector.shape_cast %73 : vector<2x8x8xf32> to vector<16x8xf32>
    %75 = arith.truncf %74 : vector<16x8xf32> to vector<16x8xbf16>
    %c0_40 = arith.constant 0 : index
    %c0_41 = arith.constant 0 : index
    %c0_42 = arith.constant 0 : index
    %c0_43 = arith.constant 0 : index
    %76 = vector.load %arg5[%c0_40, %c0_41, %c0_42, %c0_43] : memref<1x4x8x32xbf16, #tpu.memory_space<vmem>>, vector<1x1x8x32xbf16>
    %77 = vector.shape_cast %76 : vector<1x1x8x32xbf16> to vector<8x32xbf16>
    %cst_44 = arith.constant dense<0.000000e+00> : vector<16x32xf32>
    %78 = tpu.matmul %75, %77, %cst_44 {dimension_numbers = #tpu.dot_dimension_numbers<[1], [0], [0], [1], [0, 0, 1, 1], [], []>} : vector<16x8xbf16>, vector<8x32xbf16>, vector<16x32xf32> -> vector<16x32xf32>
    %79 = arith.addf %32, %78 : vector<16x32xf32>
    %c0_45 = arith.constant 0 : index
    %c1 = arith.constant 1 : index
    %c0_46 = arith.constant 0 : index
    %c0_47 = arith.constant 0 : index
    %80 = vector.load %arg3[%c0_45, %c1, %c0_46, %c0_47] : memref<1x12x32x8xbf16, #tpu.memory_space<vmem>>, vector<1x1x32x8xbf16>
    %81 = vector.shape_cast %80 : vector<1x1x32x8xbf16> to vector<32x8xbf16>
    %cst_48 = arith.constant dense<0.000000e+00> : vector<16x8xf32>
    %82 = tpu.matmul %30, %81, %cst_48 {dimension_numbers = #tpu.dot_dimension_numbers<[1], [0], [0], [1], [0, 0, 1, 1], [], []>} : vector<16x32xbf16>, vector<32x8xbf16>, vector<16x8xf32> -> vector<16x8xf32>
    %c0_49 = arith.constant 0 : index
    %c1_50 = arith.constant 1 : index
    %c0_51 = arith.constant 0 : index
    %c0_52 = arith.constant 0 : index
    %83 = vector.load %arg4[%c0_49, %c1_50, %c0_51, %c0_52] : memref<1x12x1x8xf32, #tpu.memory_space<vmem>>, vector<1x1x1x8xf32>
    %84 = vector.shape_cast %83 : vector<1x1x1x8xf32> to vector<1x8xf32>
    %85 = vector.broadcast %84 : vector<1x8xf32> to vector<16x8xf32>
    %86 = arith.addf %82, %85 : vector<16x8xf32>
    %87 = vector.shape_cast %86 : vector<16x8xf32> to vector<2x8x8xf32>
    %c0_53 = arith.constant 0 : index
    %c5 = arith.constant 5 : index
    %c0_54 = arith.constant 0 : index
    %c0_55 = arith.constant 0 : index
    %88 = vector.load %arg3[%c0_53, %c5, %c0_54, %c0_55] : memref<1x12x32x8xbf16, #tpu.memory_space<vmem>>, vector<1x1x32x8xbf16>
    %89 = vector.shape_cast %88 : vector<1x1x32x8xbf16> to vector<32x8xbf16>
    %cst_56 = arith.constant dense<0.000000e+00> : vector<16x8xf32>
    %90 = tpu.matmul %31, %89, %cst_56 {dimension_numbers = #tpu.dot_dimension_numbers<[1], [0], [0], [1], [0, 0, 1, 1], [], []>} : vector<16x32xbf16>, vector<32x8xbf16>, vector<16x8xf32> -> vector<16x8xf32>
    %c0_57 = arith.constant 0 : index
    %c5_58 = arith.constant 5 : index
    %c0_59 = arith.constant 0 : index
    %c0_60 = arith.constant 0 : index
    %91 = vector.load %arg4[%c0_57, %c5_58, %c0_59, %c0_60] : memref<1x12x1x8xf32, #tpu.memory_space<vmem>>, vector<1x1x1x8xf32>
    %92 = vector.shape_cast %91 : vector<1x1x1x8xf32> to vector<1x8xf32>
    %93 = vector.broadcast %92 : vector<1x8xf32> to vector<16x8xf32>
    %94 = arith.addf %90, %93 : vector<16x8xf32>
    %95 = vector.shape_cast %94 : vector<16x8xf32> to vector<2x8x8xf32>
    %c0_61 = arith.constant 0 : index
    %c9 = arith.constant 9 : index
    %c0_62 = arith.constant 0 : index
    %c0_63 = arith.constant 0 : index
    %96 = vector.load %arg3[%c0_61, %c9, %c0_62, %c0_63] : memref<1x12x32x8xbf16, #tpu.memory_space<vmem>>, vector<1x1x32x8xbf16>
    %97 = vector.shape_cast %96 : vector<1x1x32x8xbf16> to vector<32x8xbf16>
    %cst_64 = arith.constant dense<0.000000e+00> : vector<16x8xf32>
    %98 = tpu.matmul %31, %97, %cst_64 {dimension_numbers = #tpu.dot_dimension_numbers<[1], [0], [0], [1], [0, 0, 1, 1], [], []>} : vector<16x32xbf16>, vector<32x8xbf16>, vector<16x8xf32> -> vector<16x8xf32>
    %c0_65 = arith.constant 0 : index
    %c9_66 = arith.constant 9 : index
    %c0_67 = arith.constant 0 : index
    %c0_68 = arith.constant 0 : index
    %99 = vector.load %arg4[%c0_65, %c9_66, %c0_67, %c0_68] : memref<1x12x1x8xf32, #tpu.memory_space<vmem>>, vector<1x1x1x8xf32>
    %100 = vector.shape_cast %99 : vector<1x1x1x8xf32> to vector<1x8xf32>
    %101 = vector.broadcast %100 : vector<1x8xf32> to vector<16x8xf32>
    %102 = arith.addf %98, %101 : vector<16x8xf32>
    %103 = vector.shape_cast %102 : vector<16x8xf32> to vector<2x8x8xf32>
    %104 = arith.truncf %87 : vector<2x8x8xf32> to vector<2x8x8xbf16>
    %105 = arith.truncf %95 : vector<2x8x8xf32> to vector<2x8x8xbf16>
    "tpu.trace_start"() <{level = 10 : i32, message = "bqd,bkd->bqk"}> : () -> ()
    %cst_69 = arith.constant dense<0.000000e+00> : vector<2x8x8xf32>
    %106 = tpu.matmul %104, %105, %cst_69 {dimension_numbers = #tpu.dot_dimension_numbers<[2], [2], [1], [1], [0, 0, 0, 1, 1, 1], [0], [0]>} : vector<2x8x8xbf16>, vector<2x8x8xbf16>, vector<2x8x8xf32> -> vector<2x8x8xf32>
    "tpu.trace_stop"() : () -> ()
    %cst_70 = arith.constant 0.353553385 : f32
    %107 = vector.broadcast %cst_70 : f32 to vector<2x8x8xf32>
    %108 = arith.mulf %106, %107 : vector<2x8x8xf32>
    %cst_71 = arith.constant dense<0xFF800000> : vector<2x8xf32>
    %109 = vector.multi_reduction <maximumf>, %108, %cst_71 [2] : vector<2x8x8xf32> to vector<2x8xf32>
    %110 = vector.shape_cast %109 : vector<2x8xf32> to vector<2x8x1xf32>
    %111 = vector.broadcast %110 : vector<2x8x1xf32> to vector<2x8x8xf32>
    %112 = arith.subf %108, %111 : vector<2x8x8xf32>
    %113 = math.exp %112 : vector<2x8x8xf32>
    %cst_72 = arith.constant dense<0.000000e+00> : vector<2x8xf32>
    %114 = vector.multi_reduction <add>, %113, %cst_72 [2] : vector<2x8x8xf32> to vector<2x8xf32>
    %115 = vector.shape_cast %114 : vector<2x8xf32> to vector<2x8x1xf32>
    %116 = vector.broadcast %115 : vector<2x8x1xf32> to vector<2x8x8xf32>
    %117 = arith.divf %113, %116 : vector<2x8x8xf32>
    %118 = arith.truncf %117 : vector<2x8x8xf32> to vector<2x8x8xbf16>
    %119 = arith.truncf %103 : vector<2x8x8xf32> to vector<2x8x8xbf16>
    "tpu.trace_start"() <{level = 10 : i32, message = "bqk,bkd->bqd"}> : () -> ()
    %cst_73 = arith.constant dense<0.000000e+00> : vector<2x8x8xf32>
    %120 = tpu.matmul %118, %119, %cst_73 {dimension_numbers = #tpu.dot_dimension_numbers<[2], [1], [1], [2], [0, 0, 0, 1, 1, 2], [0], [0]>} : vector<2x8x8xbf16>, vector<2x8x8xbf16>, vector<2x8x8xf32> -> vector<2x8x8xf32>
    "tpu.trace_stop"() : () -> ()
    %121 = vector.shape_cast %120 : vector<2x8x8xf32> to vector<16x8xf32>
    %122 = arith.truncf %121 : vector<16x8xf32> to vector<16x8xbf16>
    %c0_74 = arith.constant 0 : index
    %c1_75 = arith.constant 1 : index
    %c0_76 = arith.constant 0 : index
    %c0_77 = arith.constant 0 : index
    %123 = vector.load %arg5[%c0_74, %c1_75, %c0_76, %c0_77] : memref<1x4x8x32xbf16, #tpu.memory_space<vmem>>, vector<1x1x8x32xbf16>
    %124 = vector.shape_cast %123 : vector<1x1x8x32xbf16> to vector<8x32xbf16>
    %cst_78 = arith.constant dense<0.000000e+00> : vector<16x32xf32>
    %125 = tpu.matmul %122, %124, %cst_78 {dimension_numbers = #tpu.dot_dimension_numbers<[1], [0], [0], [1], [0, 0, 1, 1], [], []>} : vector<16x8xbf16>, vector<8x32xbf16>, vector<16x32xf32> -> vector<16x32xf32>
    %126 = arith.addf %79, %125 : vector<16x32xf32>
    %c0_79 = arith.constant 0 : index
    %c2 = arith.constant 2 : index
    %c0_80 = arith.constant 0 : index
    %c0_81 = arith.constant 0 : index
    %127 = vector.load %arg3[%c0_79, %c2, %c0_80, %c0_81] : memref<1x12x32x8xbf16, #tpu.memory_space<vmem>>, vector<1x1x32x8xbf16>
    %128 = vector.shape_cast %127 : vector<1x1x32x8xbf16> to vector<32x8xbf16>
    %cst_82 = arith.constant dense<0.000000e+00> : vector<16x8xf32>
    %129 = tpu.matmul %30, %128, %cst_82 {dimension_numbers = #tpu.dot_dimension_numbers<[1], [0], [0], [1], [0, 0, 1, 1], [], []>} : vector<16x32xbf16>, vector<32x8xbf16>, vector<16x8xf32> -> vector<16x8xf32>
    %c0_83 = arith.constant 0 : index
    %c2_84 = arith.constant 2 : index
    %c0_85 = arith.constant 0 : index
    %c0_86 = arith.constant 0 : index
    %130 = vector.load %arg4[%c0_83, %c2_84, %c0_85, %c0_86] : memref<1x12x1x8xf32, #tpu.memory_space<vmem>>, vector<1x1x1x8xf32>
    %131 = vector.shape_cast %130 : vector<1x1x1x8xf32> to vector<1x8xf32>
    %132 = vector.broadcast %131 : vector<1x8xf32> to vector<16x8xf32>
    %133 = arith.addf %129, %132 : vector<16x8xf32>
    %134 = vector.shape_cast %133 : vector<16x8xf32> to vector<2x8x8xf32>
    %c0_87 = arith.constant 0 : index
    %c6 = arith.constant 6 : index
    %c0_88 = arith.constant 0 : index
    %c0_89 = arith.constant 0 : index
    %135 = vector.load %arg3[%c0_87, %c6, %c0_88, %c0_89] : memref<1x12x32x8xbf16, #tpu.memory_space<vmem>>, vector<1x1x32x8xbf16>
    %136 = vector.shape_cast %135 : vector<1x1x32x8xbf16> to vector<32x8xbf16>
    %cst_90 = arith.constant dense<0.000000e+00> : vector<16x8xf32>
    %137 = tpu.matmul %31, %136, %cst_90 {dimension_numbers = #tpu.dot_dimension_numbers<[1], [0], [0], [1], [0, 0, 1, 1], [], []>} : vector<16x32xbf16>, vector<32x8xbf16>, vector<16x8xf32> -> vector<16x8xf32>
    %c0_91 = arith.constant 0 : index
    %c6_92 = arith.constant 6 : index
    %c0_93 = arith.constant 0 : index
    %c0_94 = arith.constant 0 : index
    %138 = vector.load %arg4[%c0_91, %c6_92, %c0_93, %c0_94] : memref<1x12x1x8xf32, #tpu.memory_space<vmem>>, vector<1x1x1x8xf32>
    %139 = vector.shape_cast %138 : vector<1x1x1x8xf32> to vector<1x8xf32>
    %140 = vector.broadcast %139 : vector<1x8xf32> to vector<16x8xf32>
    %141 = arith.addf %137, %140 : vector<16x8xf32>
    %142 = vector.shape_cast %141 : vector<16x8xf32> to vector<2x8x8xf32>
    %c0_95 = arith.constant 0 : index
    %c10 = arith.constant 10 : index
    %c0_96 = arith.constant 0 : index
    %c0_97 = arith.constant 0 : index
    %143 = vector.load %arg3[%c0_95, %c10, %c0_96, %c0_97] : memref<1x12x32x8xbf16, #tpu.memory_space<vmem>>, vector<1x1x32x8xbf16>
    %144 = vector.shape_cast %143 : vector<1x1x32x8xbf16> to vector<32x8xbf16>
    %cst_98 = arith.constant dense<0.000000e+00> : vector<16x8xf32>
    %145 = tpu.matmul %31, %144, %cst_98 {dimension_numbers = #tpu.dot_dimension_numbers<[1], [0], [0], [1], [0, 0, 1, 1], [], []>} : vector<16x32xbf16>, vector<32x8xbf16>, vector<16x8xf32> -> vector<16x8xf32>
    %c0_99 = arith.constant 0 : index
    %c10_100 = arith.constant 10 : index
    %c0_101 = arith.constant 0 : index
    %c0_102 = arith.constant 0 : index
    %146 = vector.load %arg4[%c0_99, %c10_100, %c0_101, %c0_102] : memref<1x12x1x8xf32, #tpu.memory_space<vmem>>, vector<1x1x1x8xf32>
    %147 = vector.shape_cast %146 : vector<1x1x1x8xf32> to vector<1x8xf32>
    %148 = vector.broadcast %147 : vector<1x8xf32> to vector<16x8xf32>
    %149 = arith.addf %145, %148 : vector<16x8xf32>
    %150 = vector.shape_cast %149 : vector<16x8xf32> to vector<2x8x8xf32>
    %151 = arith.truncf %134 : vector<2x8x8xf32> to vector<2x8x8xbf16>
    %152 = arith.truncf %142 : vector<2x8x8xf32> to vector<2x8x8xbf16>
    "tpu.trace_start"() <{level = 10 : i32, message = "bqd,bkd->bqk"}> : () -> ()
    %cst_103 = arith.constant dense<0.000000e+00> : vector<2x8x8xf32>
    %153 = tpu.matmul %151, %152, %cst_103 {dimension_numbers = #tpu.dot_dimension_numbers<[2], [2], [1], [1], [0, 0, 0, 1, 1, 1], [0], [0]>} : vector<2x8x8xbf16>, vector<2x8x8xbf16>, vector<2x8x8xf32> -> vector<2x8x8xf32>
    "tpu.trace_stop"() : () -> ()
    %cst_104 = arith.constant 0.353553385 : f32
    %154 = vector.broadcast %cst_104 : f32 to vector<2x8x8xf32>
    %155 = arith.mulf %153, %154 : vector<2x8x8xf32>
    %cst_105 = arith.constant dense<0xFF800000> : vector<2x8xf32>
    %156 = vector.multi_reduction <maximumf>, %155, %cst_105 [2] : vector<2x8x8xf32> to vector<2x8xf32>
    %157 = vector.shape_cast %156 : vector<2x8xf32> to vector<2x8x1xf32>
    %158 = vector.broadcast %157 : vector<2x8x1xf32> to vector<2x8x8xf32>
    %159 = arith.subf %155, %158 : vector<2x8x8xf32>
    %160 = math.exp %159 : vector<2x8x8xf32>
    %cst_106 = arith.constant dense<0.000000e+00> : vector<2x8xf32>
    %161 = vector.multi_reduction <add>, %160, %cst_106 [2] : vector<2x8x8xf32> to vector<2x8xf32>
    %162 = vector.shape_cast %161 : vector<2x8xf32> to vector<2x8x1xf32>
    %163 = vector.broadcast %162 : vector<2x8x1xf32> to vector<2x8x8xf32>
    %164 = arith.divf %160, %163 : vector<2x8x8xf32>
    %165 = arith.truncf %164 : vector<2x8x8xf32> to vector<2x8x8xbf16>
    %166 = arith.truncf %150 : vector<2x8x8xf32> to vector<2x8x8xbf16>
    "tpu.trace_start"() <{level = 10 : i32, message = "bqk,bkd->bqd"}> : () -> ()
    %cst_107 = arith.constant dense<0.000000e+00> : vector<2x8x8xf32>
    %167 = tpu.matmul %165, %166, %cst_107 {dimension_numbers = #tpu.dot_dimension_numbers<[2], [1], [1], [2], [0, 0, 0, 1, 1, 2], [0], [0]>} : vector<2x8x8xbf16>, vector<2x8x8xbf16>, vector<2x8x8xf32> -> vector<2x8x8xf32>
    "tpu.trace_stop"() : () -> ()
    %168 = vector.shape_cast %167 : vector<2x8x8xf32> to vector<16x8xf32>
    %169 = arith.truncf %168 : vector<16x8xf32> to vector<16x8xbf16>
    %c0_108 = arith.constant 0 : index
    %c2_109 = arith.constant 2 : index
    %c0_110 = arith.constant 0 : index
    %c0_111 = arith.constant 0 : index
    %170 = vector.load %arg5[%c0_108, %c2_109, %c0_110, %c0_111] : memref<1x4x8x32xbf16, #tpu.memory_space<vmem>>, vector<1x1x8x32xbf16>
    %171 = vector.shape_cast %170 : vector<1x1x8x32xbf16> to vector<8x32xbf16>
    %cst_112 = arith.constant dense<0.000000e+00> : vector<16x32xf32>
    %172 = tpu.matmul %169, %171, %cst_112 {dimension_numbers = #tpu.dot_dimension_numbers<[1], [0], [0], [1], [0, 0, 1, 1], [], []>} : vector<16x8xbf16>, vector<8x32xbf16>, vector<16x32xf32> -> vector<16x32xf32>
    %173 = arith.addf %126, %172 : vector<16x32xf32>
    %c0_113 = arith.constant 0 : index
    %c3 = arith.constant 3 : index
    %c0_114 = arith.constant 0 : index
    %c0_115 = arith.constant 0 : index
    %174 = vector.load %arg3[%c0_113, %c3, %c0_114, %c0_115] : memref<1x12x32x8xbf16, #tpu.memory_space<vmem>>, vector<1x1x32x8xbf16>
    %175 = vector.shape_cast %174 : vector<1x1x32x8xbf16> to vector<32x8xbf16>
    %cst_116 = arith.constant dense<0.000000e+00> : vector<16x8xf32>
    %176 = tpu.matmul %30, %175, %cst_116 {dimension_numbers = #tpu.dot_dimension_numbers<[1], [0], [0], [1], [0, 0, 1, 1], [], []>} : vector<16x32xbf16>, vector<32x8xbf16>, vector<16x8xf32> -> vector<16x8xf32>
    %c0_117 = arith.constant 0 : index
    %c3_118 = arith.constant 3 : index
    %c0_119 = arith.constant 0 : index
    %c0_120 = arith.constant 0 : index
    %177 = vector.load %arg4[%c0_117, %c3_118, %c0_119, %c0_120] : memref<1x12x1x8xf32, #tpu.memory_space<vmem>>, vector<1x1x1x8xf32>
    %178 = vector.shape_cast %177 : vector<1x1x1x8xf32> to vector<1x8xf32>
    %179 = vector.broadcast %178 : vector<1x8xf32> to vector<16x8xf32>
    %180 = arith.addf %176, %179 : vector<16x8xf32>
    %181 = vector.shape_cast %180 : vector<16x8xf32> to vector<2x8x8xf32>
    %c0_121 = arith.constant 0 : index
    %c7 = arith.constant 7 : index
    %c0_122 = arith.constant 0 : index
    %c0_123 = arith.constant 0 : index
    %182 = vector.load %arg3[%c0_121, %c7, %c0_122, %c0_123] : memref<1x12x32x8xbf16, #tpu.memory_space<vmem>>, vector<1x1x32x8xbf16>
    %183 = vector.shape_cast %182 : vector<1x1x32x8xbf16> to vector<32x8xbf16>
    %cst_124 = arith.constant dense<0.000000e+00> : vector<16x8xf32>
    %184 = tpu.matmul %31, %183, %cst_124 {dimension_numbers = #tpu.dot_dimension_numbers<[1], [0], [0], [1], [0, 0, 1, 1], [], []>} : vector<16x32xbf16>, vector<32x8xbf16>, vector<16x8xf32> -> vector<16x8xf32>
    %c0_125 = arith.constant 0 : index
    %c7_126 = arith.constant 7 : index
    %c0_127 = arith.constant 0 : index
    %c0_128 = arith.constant 0 : index
    %185 = vector.load %arg4[%c0_125, %c7_126, %c0_127, %c0_128] : memref<1x12x1x8xf32, #tpu.memory_space<vmem>>, vector<1x1x1x8xf32>
    %186 = vector.shape_cast %185 : vector<1x1x1x8xf32> to vector<1x8xf32>
    %187 = vector.broadcast %186 : vector<1x8xf32> to vector<16x8xf32>
    %188 = arith.addf %184, %187 : vector<16x8xf32>
    %189 = vector.shape_cast %188 : vector<16x8xf32> to vector<2x8x8xf32>
    %c0_129 = arith.constant 0 : index
    %c11 = arith.constant 11 : index
    %c0_130 = arith.constant 0 : index
    %c0_131 = arith.constant 0 : index
    %190 = vector.load %arg3[%c0_129, %c11, %c0_130, %c0_131] : memref<1x12x32x8xbf16, #tpu.memory_space<vmem>>, vector<1x1x32x8xbf16>
    %191 = vector.shape_cast %190 : vector<1x1x32x8xbf16> to vector<32x8xbf16>
    %cst_132 = arith.constant dense<0.000000e+00> : vector<16x8xf32>
    %192 = tpu.matmul %31, %191, %cst_132 {dimension_numbers = #tpu.dot_dimension_numbers<[1], [0], [0], [1], [0, 0, 1, 1], [], []>} : vector<16x32xbf16>, vector<32x8xbf16>, vector<16x8xf32> -> vector<16x8xf32>
    %c0_133 = arith.constant 0 : index
    %c11_134 = arith.constant 11 : index
    %c0_135 = arith.constant 0 : index
    %c0_136 = arith.constant 0 : index
    %193 = vector.load %arg4[%c0_133, %c11_134, %c0_135, %c0_136] : memref<1x12x1x8xf32, #tpu.memory_space<vmem>>, vector<1x1x1x8xf32>
    %194 = vector.shape_cast %193 : vector<1x1x1x8xf32> to vector<1x8xf32>
    %195 = vector.broadcast %194 : vector<1x8xf32> to vector<16x8xf32>
    %196 = arith.addf %192, %195 : vector<16x8xf32>
    %197 = vector.shape_cast %196 : vector<16x8xf32> to vector<2x8x8xf32>
    %198 = arith.truncf %181 : vector<2x8x8xf32> to vector<2x8x8xbf16>
    %199 = arith.truncf %189 : vector<2x8x8xf32> to vector<2x8x8xbf16>
    "tpu.trace_start"() <{level = 10 : i32, message = "bqd,bkd->bqk"}> : () -> ()
    %cst_137 = arith.constant dense<0.000000e+00> : vector<2x8x8xf32>
    %200 = tpu.matmul %198, %199, %cst_137 {dimension_numbers = #tpu.dot_dimension_numbers<[2], [2], [1], [1], [0, 0, 0, 1, 1, 1], [0], [0]>} : vector<2x8x8xbf16>, vector<2x8x8xbf16>, vector<2x8x8xf32> -> vector<2x8x8xf32>
    "tpu.trace_stop"() : () -> ()
    %cst_138 = arith.constant 0.353553385 : f32
    %201 = vector.broadcast %cst_138 : f32 to vector<2x8x8xf32>
    %202 = arith.mulf %200, %201 : vector<2x8x8xf32>
    %cst_139 = arith.constant dense<0xFF800000> : vector<2x8xf32>
    %203 = vector.multi_reduction <maximumf>, %202, %cst_139 [2] : vector<2x8x8xf32> to vector<2x8xf32>
    %204 = vector.shape_cast %203 : vector<2x8xf32> to vector<2x8x1xf32>
    %205 = vector.broadcast %204 : vector<2x8x1xf32> to vector<2x8x8xf32>
    %206 = arith.subf %202, %205 : vector<2x8x8xf32>
    %207 = math.exp %206 : vector<2x8x8xf32>
    %cst_140 = arith.constant dense<0.000000e+00> : vector<2x8xf32>
    %208 = vector.multi_reduction <add>, %207, %cst_140 [2] : vector<2x8x8xf32> to vector<2x8xf32>
    %209 = vector.shape_cast %208 : vector<2x8xf32> to vector<2x8x1xf32>
    %210 = vector.broadcast %209 : vector<2x8x1xf32> to vector<2x8x8xf32>
    %211 = arith.divf %207, %210 : vector<2x8x8xf32>
    %212 = arith.truncf %211 : vector<2x8x8xf32> to vector<2x8x8xbf16>
    %213 = arith.truncf %197 : vector<2x8x8xf32> to vector<2x8x8xbf16>
    "tpu.trace_start"() <{level = 10 : i32, message = "bqk,bkd->bqd"}> : () -> ()
    %cst_141 = arith.constant dense<0.000000e+00> : vector<2x8x8xf32>
    %214 = tpu.matmul %212, %213, %cst_141 {dimension_numbers = #tpu.dot_dimension_numbers<[2], [1], [1], [2], [0, 0, 0, 1, 1, 2], [0], [0]>} : vector<2x8x8xbf16>, vector<2x8x8xbf16>, vector<2x8x8xf32> -> vector<2x8x8xf32>
    "tpu.trace_stop"() : () -> ()
    %215 = vector.shape_cast %214 : vector<2x8x8xf32> to vector<16x8xf32>
    %216 = arith.truncf %215 : vector<16x8xf32> to vector<16x8xbf16>
    %c0_142 = arith.constant 0 : index
    %c3_143 = arith.constant 3 : index
    %c0_144 = arith.constant 0 : index
    %c0_145 = arith.constant 0 : index
    %217 = vector.load %arg5[%c0_142, %c3_143, %c0_144, %c0_145] : memref<1x4x8x32xbf16, #tpu.memory_space<vmem>>, vector<1x1x8x32xbf16>
    %218 = vector.shape_cast %217 : vector<1x1x8x32xbf16> to vector<8x32xbf16>
    %cst_146 = arith.constant dense<0.000000e+00> : vector<16x32xf32>
    %219 = tpu.matmul %216, %218, %cst_146 {dimension_numbers = #tpu.dot_dimension_numbers<[1], [0], [0], [1], [0, 0, 1, 1], [], []>} : vector<16x8xbf16>, vector<8x32xbf16>, vector<16x32xf32> -> vector<16x32xf32>
    %220 = arith.addf %173, %219 : vector<16x32xf32>
    %221 = arith.addf %3, %220 : vector<16x32xf32>
    %c0_147 = arith.constant 0 : index
    %c0_148 = arith.constant 0 : index
    %c0_149 = arith.constant 0 : index
    %222 = vector.load %arg6[%c0_147, %c0_148, %c0_149] : memref<1x1x32xf32, #tpu.memory_space<vmem>>, vector<1x1x32xf32>
    %223 = vector.shape_cast %222 : vector<1x1x32xf32> to vector<1x32xf32>
    %224 = vector.broadcast %223 : vector<1x32xf32> to vector<16x32xf32>
    %225 = arith.addf %221, %224 : vector<16x32xf32>
    %226 = vector.extract_strided_slice %5 {offsets = [2, 0], sizes = [1, 32], strides = [1, 1]} : vector<4x32xf32> to vector<1x32xf32>
    %227 = vector.extract_strided_slice %5 {offsets = [3, 0], sizes = [1, 32], strides = [1, 1]} : vector<4x32xf32> to vector<1x32xf32>
    %cst_150 = arith.constant dense<0.000000e+00> : vector<16xf32>
    %228 = vector.multi_reduction <add>, %225, %cst_150 [1] : vector<16x32xf32> to vector<16xf32>
    %229 = vector.shape_cast %228 : vector<16xf32> to vector<16x1xf32>
    %cst_151 = arith.constant 3.200000e+01 : f32
    %230 = vector.broadcast %cst_151 : f32 to vector<16x1xf32>
    %231 = arith.divf %229, %230 : vector<16x1xf32>
    %232 = vector.broadcast %231 : vector<16x1xf32> to vector<16x32xf32>
    %233 = arith.subf %225, %232 : vector<16x32xf32>
    %234 = arith.mulf %233, %233 : vector<16x32xf32>
    %cst_152 = arith.constant dense<0.000000e+00> : vector<16xf32>
    %235 = vector.multi_reduction <add>, %234, %cst_152 [1] : vector<16x32xf32> to vector<16xf32>
    %236 = vector.shape_cast %235 : vector<16xf32> to vector<16x1xf32>
    %cst_153 = arith.constant 3.200000e+01 : f32
    %237 = vector.broadcast %cst_153 : f32 to vector<16x1xf32>
    %238 = arith.divf %236, %237 : vector<16x1xf32>
    %239 = vector.broadcast %231 : vector<16x1xf32> to vector<16x32xf32>
    %240 = arith.subf %225, %239 : vector<16x32xf32>
    %cst_154 = arith.constant 9.99999974E-6 : f32
    %241 = vector.broadcast %cst_154 : f32 to vector<16x1xf32>
    %242 = arith.addf %238, %241 : vector<16x1xf32>
    %243 = math.rsqrt %242 : vector<16x1xf32>
    %244 = vector.broadcast %243 : vector<16x1xf32> to vector<16x32xf32>
    %245 = arith.mulf %240, %244 : vector<16x32xf32>
    %246 = vector.broadcast %226 : vector<1x32xf32> to vector<16x32xf32>
    %247 = arith.mulf %245, %246 : vector<16x32xf32>
    %248 = vector.broadcast %227 : vector<1x32xf32> to vector<16x32xf32>
    %249 = arith.addf %247, %248 : vector<16x32xf32>
    %250 = arith.truncf %249 : vector<16x32xf32> to vector<16x32xbf16>
    %c0_155 = arith.constant 0 : index
    %c0_156 = arith.constant 0 : index
    %c0_157 = arith.constant 0 : index
    %251 = vector.load %arg7[%c0_155, %c0_156, %c0_157] : memref<1x32x64xbf16, #tpu.memory_space<vmem>>, vector<1x32x64xbf16>
    %252 = vector.shape_cast %251 : vector<1x32x64xbf16> to vector<32x64xbf16>
    %cst_158 = arith.constant dense<0.000000e+00> : vector<16x64xf32>
    %253 = tpu.matmul %250, %252, %cst_158 {dimension_numbers = #tpu.dot_dimension_numbers<[1], [0], [0], [1], [0, 0, 1, 1], [], []>} : vector<16x32xbf16>, vector<32x64xbf16>, vector<16x64xf32> -> vector<16x64xf32>
    %c0_159 = arith.constant 0 : index
    %c0_160 = arith.constant 0 : index
    %c0_161 = arith.constant 0 : index
    %254 = vector.load %arg8[%c0_159, %c0_160, %c0_161] : memref<1x1x64xf32, #tpu.memory_space<vmem>>, vector<1x1x64xf32>
    %255 = vector.shape_cast %254 : vector<1x1x64xf32> to vector<1x64xf32>
    %256 = vector.broadcast %255 : vector<1x64xf32> to vector<16x64xf32>
    %257 = arith.addf %253, %256 : vector<16x64xf32>
    %cst_162 = arith.constant 0.000000e+00 : f32
    %258 = vector.broadcast %cst_162 : f32 to vector<16x64xf32>
    %259 = arith.maximumf %257, %258 : vector<16x64xf32>
    %260 = arith.truncf %259 : vector<16x64xf32> to vector<16x64xbf16>
    %c0_163 = arith.constant 0 : index
    %c0_164 = arith.constant 0 : index
    %c0_165 = arith.constant 0 : index
    %261 = vector.load %arg9[%c0_163, %c0_164, %c0_165] : memref<1x64x32xbf16, #tpu.memory_space<vmem>>, vector<1x64x32xbf16>
    %262 = vector.shape_cast %261 : vector<1x64x32xbf16> to vector<64x32xbf16>
    %cst_166 = arith.constant dense<0.000000e+00> : vector<16x32xf32>
    %263 = tpu.matmul %260, %262, %cst_166 {dimension_numbers = #tpu.dot_dimension_numbers<[1], [0], [0], [1], [0, 0, 1, 1], [], []>} : vector<16x64xbf16>, vector<64x32xbf16>, vector<16x32xf32> -> vector<16x32xf32>
    %264 = arith.addf %225, %263 : vector<16x32xf32>
    %c0_167 = arith.constant 0 : index
    %c0_168 = arith.constant 0 : index
    %c0_169 = arith.constant 0 : index
    %265 = vector.load %arg10[%c0_167, %c0_168, %c0_169] : memref<1x1x32xf32, #tpu.memory_space<vmem>>, vector<1x1x32xf32>
    %266 = vector.shape_cast %265 : vector<1x1x32xf32> to vector<1x32xf32>
    %267 = vector.broadcast %266 : vector<1x32xf32> to vector<16x32xf32>
    %268 = arith.addf %264, %267 : vector<16x32xf32>
    %c0_170 = arith.constant 0 : index
    %c0_171 = arith.constant 0 : index
    %269 = vector.load %arg13[%c0_170, %c0_171] : memref<16x32xf32, #tpu.memory_space<vmem>>, vector<16x32xf32>
    tpu.vector_store %arg13[%c0_170, %c0_171], %268 {strides = array<i32>} : memref<16x32xf32, #tpu.memory_space<vmem>>, vector<16x32xf32>,
    %c1_i32 = arith.constant 1 : i32
    %270 = arith.cmpi eq, %arg0, %c1_i32 : i32
    %271 = arith.extui %270 : i1 to i32
    %c0_i32_172 = arith.constant 0 : i32
    %272 = arith.cmpi ne, %271, %c0_i32_172 : i32
    scf.if %272 {
      %c0_173 = arith.constant 0 : index
      %c0_174 = arith.constant 0 : index
      %273 = vector.load %arg11[%c0_173, %c0_174] : memref<2x32xf32, #tpu.memory_space<vmem>>, vector<2x32xf32>
      %274 = vector.extract_strided_slice %273 {offsets = [0, 0], sizes = [1, 32], strides = [1, 1]} : vector<2x32xf32> to vector<1x32xf32>
      %275 = vector.extract_strided_slice %273 {offsets = [1, 0], sizes = [1, 32], strides = [1, 1]} : vector<2x32xf32> to vector<1x32xf32>
      %cst_175 = arith.constant dense<0.000000e+00> : vector<16xf32>
      %276 = vector.multi_reduction <add>, %268, %cst_175 [1] : vector<16x32xf32> to vector<16xf32>
      %277 = vector.shape_cast %276 : vector<16xf32> to vector<16x1xf32>
      %cst_176 = arith.constant 3.200000e+01 : f32
      %278 = vector.broadcast %cst_176 : f32 to vector<16x1xf32>
      %279 = arith.divf %277, %278 : vector<16x1xf32>
      %280 = vector.broadcast %279 : vector<16x1xf32> to vector<16x32xf32>
      %281 = arith.subf %268, %280 : vector<16x32xf32>
      %282 = arith.mulf %281, %281 : vector<16x32xf32>
      %cst_177 = arith.constant dense<0.000000e+00> : vector<16xf32>
      %283 = vector.multi_reduction <add>, %282, %cst_177 [1] : vector<16x32xf32> to vector<16xf32>
      %284 = vector.shape_cast %283 : vector<16xf32> to vector<16x1xf32>
      %cst_178 = arith.constant 3.200000e+01 : f32
      %285 = vector.broadcast %cst_178 : f32 to vector<16x1xf32>
      %286 = arith.divf %284, %285 : vector<16x1xf32>
      %287 = vector.broadcast %279 : vector<16x1xf32> to vector<16x32xf32>
      %288 = arith.subf %268, %287 : vector<16x32xf32>
      %cst_179 = arith.constant 9.99999974E-6 : f32
      %289 = vector.broadcast %cst_179 : f32 to vector<16x1xf32>
      %290 = arith.addf %286, %289 : vector<16x1xf32>
      %291 = math.rsqrt %290 : vector<16x1xf32>
      %292 = vector.broadcast %291 : vector<16x1xf32> to vector<16x32xf32>
      %293 = arith.mulf %288, %292 : vector<16x32xf32>
      %294 = vector.broadcast %274 : vector<1x32xf32> to vector<16x32xf32>
      %295 = arith.mulf %293, %294 : vector<16x32xf32>
      %296 = vector.broadcast %275 : vector<1x32xf32> to vector<16x32xf32>
      %297 = arith.addf %295, %296 : vector<16x32xf32>
      %c0_180 = arith.constant 0 : index
      %c0_181 = arith.constant 0 : index
      %298 = vector.load %arg12[%c0_180, %c0_181] : memref<16x32xf32, #tpu.memory_space<vmem>>, vector<16x32xf32>
      tpu.vector_store %arg12[%c0_180, %c0_181], %297 {strides = array<i32>} : memref<16x32xf32, #tpu.memory_space<vmem>>, vector<16x32xf32>,
    } else {
    }
    return
  }
  func.func @transform_0(%arg0: i32) -> (i32, i32) {
    %c0_i32 = arith.constant 0 : i32
    %c0_i32_0 = arith.constant 0 : i32
    %c0_i32_1 = arith.constant 0 : i32
    return %c0_i32, %c0_i32_0 : i32, i32
  }
  func.func @transform_1(%arg0: i32) -> (i32, i32, i32) {
    %c0_i32 = arith.constant 0 : i32
    %c0_i32_0 = arith.constant 0 : i32
    %c0_i32_1 = arith.constant 0 : i32
    return %arg0, %c0_i32, %c0_i32_0 : i32, i32, i32
  }
  func.func @transform_2(%arg0: i32) -> (i32, i32, i32, i32) {
    %c0_i32 = arith.constant 0 : i32
    %c0_i32_0 = arith.constant 0 : i32
    %c0_i32_1 = arith.constant 0 : i32
    %c0_i32_2 = arith.constant 0 : i32
    return %arg0, %c0_i32, %c0_i32_0, %c0_i32_1 : i32, i32, i32, i32
  }
  func.func @transform_3(%arg0: i32) -> (i32, i32, i32, i32) {
    %c0_i32 = arith.constant 0 : i32
    %c0_i32_0 = arith.constant 0 : i32
    %c0_i32_1 = arith.constant 0 : i32
    %c0_i32_2 = arith.constant 0 : i32
    return %arg0, %c0_i32, %c0_i32_0, %c0_i32_1 : i32, i32, i32, i32
  }
  func.func @transform_4(%arg0: i32) -> (i32, i32, i32, i32) {
    %c0_i32 = arith.constant 0 : i32
    %c0_i32_0 = arith.constant 0 : i32
    %c0_i32_1 = arith.constant 0 : i32
    %c0_i32_2 = arith.constant 0 : i32
    return %arg0, %c0_i32, %c0_i32_0, %c0_i32_1 : i32, i32, i32, i32
  }
  func.func @transform_5(%arg0: i32) -> (i32, i32, i32) {
    %c0_i32 = arith.constant 0 : i32
    %c0_i32_0 = arith.constant 0 : i32
    %c0_i32_1 = arith.constant 0 : i32
    return %arg0, %c0_i32, %c0_i32_0 : i32, i32, i32
  }
  func.func @transform_6(%arg0: i32) -> (i32, i32, i32) {
    %c0_i32 = arith.constant 0 : i32
    %c0_i32_0 = arith.constant 0 : i32
    %c0_i32_1 = arith.constant 0 : i32
    return %arg0, %c0_i32, %c0_i32_0 : i32, i32, i32
  }
  func.func @transform_7(%arg0: i32) -> (i32, i32, i32) {
    %c0_i32 = arith.constant 0 : i32
    %c0_i32_0 = arith.constant 0 : i32
    %c0_i32_1 = arith.constant 0 : i32
    return %arg0, %c0_i32, %c0_i32_0 : i32, i32, i32
  }
  func.func @transform_8(%arg0: i32) -> (i32, i32, i32) {
    %c0_i32 = arith.constant 0 : i32
    %c0_i32_0 = arith.constant 0 : i32
    %c0_i32_1 = arith.constant 0 : i32
    return %arg0, %c0_i32, %c0_i32_0 : i32, i32, i32
  }
  func.func @transform_9(%arg0: i32) -> (i32, i32, i32) {
    %c0_i32 = arith.constant 0 : i32
    %c0_i32_0 = arith.constant 0 : i32
    %c0_i32_1 = arith.constant 0 : i32
    return %arg0, %c0_i32, %c0_i32_0 : i32, i32, i32
  }
  func.func @transform_10(%arg0: i32) -> (i32, i32) {
    %c0_i32 = arith.constant 0 : i32
    %c0_i32_0 = arith.constant 0 : i32
    %c0_i32_1 = arith.constant 0 : i32
    return %c0_i32, %c0_i32_0 : i32, i32
  }
  func.func @transform_11(%arg0: i32) -> (i32, i32) {
    %c0_i32 = arith.constant 0 : i32
    %c0_i32_0 = arith.constant 0 : i32
    %c0_i32_1 = arith.constant 0 : i32
    return %c0_i32, %c0_i32_0 : i32, i32
  }
}

module attributes {stable_mosaic.version = 11 : i64} {
  func.func @_decoder_kernel(%arg0: i32, %arg1: memref<16x32xf32, #tpu.memory_space<vmem>>, %arg2: memref<16x32xf32, #tpu.memory_space<vmem>>, %arg3: memref<1x6x32xf32, #tpu.memory_space<vmem>>, %arg4: memref<1x12x32x8xbf16, #tpu.memory_space<vmem>>, %arg5: memref<1x12x1x8xf32, #tpu.memory_space<vmem>>, %arg6: memref<1x4x8x32xbf16, #tpu.memory_space<vmem>>, %arg7: memref<1x1x32xf32, #tpu.memory_space<vmem>>, %arg8: memref<1x12x32x8xbf16, #tpu.memory_space<vmem>>, %arg9: memref<1x12x1x8xf32, #tpu.memory_space<vmem>>, %arg10: memref<1x4x8x32xbf16, #tpu.memory_space<vmem>>, %arg11: memref<1x1x32xf32, #tpu.memory_space<vmem>>, %arg12: memref<1x32x64xbf16, #tpu.memory_space<vmem>>, %arg13: memref<1x1x64xf32, #tpu.memory_space<vmem>>, %arg14: memref<1x64x32xbf16, #tpu.memory_space<vmem>>, %arg15: memref<1x1x32xf32, #tpu.memory_space<vmem>>, %arg16: memref<2x32xf32, #tpu.memory_space<vmem>>, %arg17: memref<16x32xf32, #tpu.memory_space<vmem>>, %arg18: memref<16x32xf32, #tpu.memory_space<vmem>>) attributes {dimension_semantics = [#tpu.dimension_semantics<arbitrary>], iteration_bounds = array<i64: 2>, scalar_prefetch = 0 : i64, scratch_operands = 1 : i64, tpu.core_type = #tpu.core_type<tc>, window_params = [{pipeline_mode = #tpu.pipeline_mode<synchronous>, transform_indices = @transform_0, window_bounds = array<i64: 16, 32>}, {pipeline_mode = #tpu.pipeline_mode<synchronous>, transform_indices = @transform_1, window_bounds = array<i64: 16, 32>}, {transform_indices = @transform_2, window_bounds = array<i64: 1, 6, 32>}, {transform_indices = @transform_3, window_bounds = array<i64: 1, 12, 32, 8>}, {transform_indices = @transform_4, window_bounds = array<i64: 1, 12, 1, 8>}, {transform_indices = @transform_5, window_bounds = array<i64: 1, 4, 8, 32>}, {transform_indices = @transform_6, window_bounds = array<i64: 1, 1, 32>}, {transform_indices = @transform_7, window_bounds = array<i64: 1, 12, 32, 8>}, {transform_indices = @transform_8, window_bounds = array<i64: 1, 12, 1, 8>}, {transform_indices = @transform_9, window_bounds = array<i64: 1, 4, 8, 32>}, {transform_indices = @transform_10, window_bounds = array<i64: 1, 1, 32>}, {transform_indices = @transform_11, window_bounds = array<i64: 1, 32, 64>}, {transform_indices = @transform_12, window_bounds = array<i64: 1, 1, 64>}, {transform_indices = @transform_13, window_bounds = array<i64: 1, 64, 32>}, {transform_indices = @transform_14, window_bounds = array<i64: 1, 1, 32>}, {pipeline_mode = #tpu.pipeline_mode<synchronous>, transform_indices = @transform_15, window_bounds = array<i64: 2, 32>}, {pipeline_mode = #tpu.pipeline_mode<synchronous>, transform_indices = @transform_16, window_bounds = array<i64: 16, 32>}]} {
    %c0_i32 = arith.constant 0 : i32
    %0 = arith.cmpi eq, %arg0, %c0_i32 : i32
    %1 = arith.extui %0 : i1 to i32
    %c0_i32_0 = arith.constant 0 : i32
    %2 = arith.cmpi ne, %1, %c0_i32_0 : i32
    scf.if %2 {
      %c0_332 = arith.constant 0 : index
      %c0_333 = arith.constant 0 : index
      %494 = vector.load %arg1[%c0_332, %c0_333] : memref<16x32xf32, #tpu.memory_space<vmem>>, vector<16x32xf32>
      %c0_334 = arith.constant 0 : index
      %c0_335 = arith.constant 0 : index
      %495 = vector.load %arg18[%c0_334, %c0_335] : memref<16x32xf32, #tpu.memory_space<vmem>>, vector<16x32xf32>
      tpu.vector_store %arg18[%c0_334, %c0_335], %494 {strides = array<i32>} : memref<16x32xf32, #tpu.memory_space<vmem>>, vector<16x32xf32>,
    } else {
    }
    %c0 = arith.constant 0 : index
    %c0_1 = arith.constant 0 : index
    %3 = vector.load %arg18[%c0, %c0_1] : memref<16x32xf32, #tpu.memory_space<vmem>>, vector<16x32xf32>
    %c0_2 = arith.constant 0 : index
    %c0_3 = arith.constant 0 : index
    %4 = vector.load %arg2[%c0_2, %c0_3] : memref<16x32xf32, #tpu.memory_space<vmem>>, vector<16x32xf32>
    %c0_4 = arith.constant 0 : index
    %c0_5 = arith.constant 0 : index
    %c0_6 = arith.constant 0 : index
    %5 = vector.load %arg3[%c0_4, %c0_5, %c0_6] : memref<1x6x32xf32, #tpu.memory_space<vmem>>, vector<1x6x32xf32>
    %6 = vector.shape_cast %5 : vector<1x6x32xf32> to vector<6x32xf32>
    %7 = vector.extract_strided_slice %6 {offsets = [0, 0], sizes = [1, 32], strides = [1, 1]} : vector<6x32xf32> to vector<1x32xf32>
    %8 = vector.extract_strided_slice %6 {offsets = [1, 0], sizes = [1, 32], strides = [1, 1]} : vector<6x32xf32> to vector<1x32xf32>
    %cst = arith.constant dense<0.000000e+00> : vector<16xf32>
    %9 = vector.multi_reduction <add>, %3, %cst [1] : vector<16x32xf32> to vector<16xf32>
    %10 = vector.shape_cast %9 : vector<16xf32> to vector<16x1xf32>
    %cst_7 = arith.constant 3.200000e+01 : f32
    %11 = vector.broadcast %cst_7 : f32 to vector<16x1xf32>
    %12 = arith.divf %10, %11 : vector<16x1xf32>
    %13 = vector.broadcast %12 : vector<16x1xf32> to vector<16x32xf32>
    %14 = arith.subf %3, %13 : vector<16x32xf32>
    %15 = arith.mulf %14, %14 : vector<16x32xf32>
    %cst_8 = arith.constant dense<0.000000e+00> : vector<16xf32>
    %16 = vector.multi_reduction <add>, %15, %cst_8 [1] : vector<16x32xf32> to vector<16xf32>
    %17 = vector.shape_cast %16 : vector<16xf32> to vector<16x1xf32>
    %cst_9 = arith.constant 3.200000e+01 : f32
    %18 = vector.broadcast %cst_9 : f32 to vector<16x1xf32>
    %19 = arith.divf %17, %18 : vector<16x1xf32>
    %20 = vector.broadcast %12 : vector<16x1xf32> to vector<16x32xf32>
    %21 = arith.subf %3, %20 : vector<16x32xf32>
    %cst_10 = arith.constant 9.99999974E-6 : f32
    %22 = vector.broadcast %cst_10 : f32 to vector<16x1xf32>
    %23 = arith.addf %19, %22 : vector<16x1xf32>
    %24 = math.rsqrt %23 : vector<16x1xf32>
    %25 = vector.broadcast %24 : vector<16x1xf32> to vector<16x32xf32>
    %26 = arith.mulf %21, %25 : vector<16x32xf32>
    %27 = vector.broadcast %7 : vector<1x32xf32> to vector<16x32xf32>
    %28 = arith.mulf %26, %27 : vector<16x32xf32>
    %29 = vector.broadcast %8 : vector<1x32xf32> to vector<16x32xf32>
    %30 = arith.addf %28, %29 : vector<16x32xf32>
    %31 = arith.truncf %30 : vector<16x32xf32> to vector<16x32xbf16>
    %32 = arith.truncf %30 : vector<16x32xf32> to vector<16x32xbf16>
    %cst_11 = arith.constant 0.000000e+00 : f32
    %33 = vector.broadcast %cst_11 : f32 to vector<16x32xf32>
    %c0_12 = arith.constant 0 : index
    %c0_13 = arith.constant 0 : index
    %c0_14 = arith.constant 0 : index
    %c0_15 = arith.constant 0 : index
    %34 = vector.load %arg4[%c0_12, %c0_13, %c0_14, %c0_15] : memref<1x12x32x8xbf16, #tpu.memory_space<vmem>>, vector<1x1x32x8xbf16>
    %35 = vector.shape_cast %34 : vector<1x1x32x8xbf16> to vector<32x8xbf16>
    %cst_16 = arith.constant dense<0.000000e+00> : vector<16x8xf32>
    %36 = tpu.matmul %31, %35, %cst_16 {dimension_numbers = #tpu.dot_dimension_numbers<[1], [0], [0], [1], [0, 0, 1, 1], [], []>} : vector<16x32xbf16>, vector<32x8xbf16>, vector<16x8xf32> -> vector<16x8xf32>
    %c0_17 = arith.constant 0 : index
    %c0_18 = arith.constant 0 : index
    %c0_19 = arith.constant 0 : index
    %c0_20 = arith.constant 0 : index
    %37 = vector.load %arg5[%c0_17, %c0_18, %c0_19, %c0_20] : memref<1x12x1x8xf32, #tpu.memory_space<vmem>>, vector<1x1x1x8xf32>
    %38 = vector.shape_cast %37 : vector<1x1x1x8xf32> to vector<1x8xf32>
    %39 = vector.broadcast %38 : vector<1x8xf32> to vector<16x8xf32>
    %40 = arith.addf %36, %39 : vector<16x8xf32>
    %41 = vector.shape_cast %40 : vector<16x8xf32> to vector<2x8x8xf32>
    %c0_21 = arith.constant 0 : index
    %c4 = arith.constant 4 : index
    %c0_22 = arith.constant 0 : index
    %c0_23 = arith.constant 0 : index
    %42 = vector.load %arg4[%c0_21, %c4, %c0_22, %c0_23] : memref<1x12x32x8xbf16, #tpu.memory_space<vmem>>, vector<1x1x32x8xbf16>
    %43 = vector.shape_cast %42 : vector<1x1x32x8xbf16> to vector<32x8xbf16>
    %cst_24 = arith.constant dense<0.000000e+00> : vector<16x8xf32>
    %44 = tpu.matmul %32, %43, %cst_24 {dimension_numbers = #tpu.dot_dimension_numbers<[1], [0], [0], [1], [0, 0, 1, 1], [], []>} : vector<16x32xbf16>, vector<32x8xbf16>, vector<16x8xf32> -> vector<16x8xf32>
    %c0_25 = arith.constant 0 : index
    %c4_26 = arith.constant 4 : index
    %c0_27 = arith.constant 0 : index
    %c0_28 = arith.constant 0 : index
    %45 = vector.load %arg5[%c0_25, %c4_26, %c0_27, %c0_28] : memref<1x12x1x8xf32, #tpu.memory_space<vmem>>, vector<1x1x1x8xf32>
    %46 = vector.shape_cast %45 : vector<1x1x1x8xf32> to vector<1x8xf32>
    %47 = vector.broadcast %46 : vector<1x8xf32> to vector<16x8xf32>
    %48 = arith.addf %44, %47 : vector<16x8xf32>
    %49 = vector.shape_cast %48 : vector<16x8xf32> to vector<2x8x8xf32>
    %c0_29 = arith.constant 0 : index
    %c8 = arith.constant 8 : index
    %c0_30 = arith.constant 0 : index
    %c0_31 = arith.constant 0 : index
    %50 = vector.load %arg4[%c0_29, %c8, %c0_30, %c0_31] : memref<1x12x32x8xbf16, #tpu.memory_space<vmem>>, vector<1x1x32x8xbf16>
    %51 = vector.shape_cast %50 : vector<1x1x32x8xbf16> to vector<32x8xbf16>
    %cst_32 = arith.constant dense<0.000000e+00> : vector<16x8xf32>
    %52 = tpu.matmul %32, %51, %cst_32 {dimension_numbers = #tpu.dot_dimension_numbers<[1], [0], [0], [1], [0, 0, 1, 1], [], []>} : vector<16x32xbf16>, vector<32x8xbf16>, vector<16x8xf32> -> vector<16x8xf32>
    %c0_33 = arith.constant 0 : index
    %c8_34 = arith.constant 8 : index
    %c0_35 = arith.constant 0 : index
    %c0_36 = arith.constant 0 : index
    %53 = vector.load %arg5[%c0_33, %c8_34, %c0_35, %c0_36] : memref<1x12x1x8xf32, #tpu.memory_space<vmem>>, vector<1x1x1x8xf32>
    %54 = vector.shape_cast %53 : vector<1x1x1x8xf32> to vector<1x8xf32>
    %55 = vector.broadcast %54 : vector<1x8xf32> to vector<16x8xf32>
    %56 = arith.addf %52, %55 : vector<16x8xf32>
    %57 = vector.shape_cast %56 : vector<16x8xf32> to vector<2x8x8xf32>
    %58 = arith.truncf %41 : vector<2x8x8xf32> to vector<2x8x8xbf16>
    %59 = arith.truncf %49 : vector<2x8x8xf32> to vector<2x8x8xbf16>
    "tpu.trace_start"() <{level = 10 : i32, message = "bqd,bkd->bqk"}> : () -> ()
    %cst_37 = arith.constant dense<0.000000e+00> : vector<2x8x8xf32>
    %60 = tpu.matmul %58, %59, %cst_37 {dimension_numbers = #tpu.dot_dimension_numbers<[2], [2], [1], [1], [0, 0, 0, 1, 1, 1], [0], [0]>} : vector<2x8x8xbf16>, vector<2x8x8xbf16>, vector<2x8x8xf32> -> vector<2x8x8xf32>
    "tpu.trace_stop"() : () -> ()
    %cst_38 = arith.constant 0.353553385 : f32
    %61 = vector.broadcast %cst_38 : f32 to vector<2x8x8xf32>
    %62 = arith.mulf %60, %61 : vector<2x8x8xf32>
    %cst_39 = arith.constant dense<0xFF800000> : vector<2x8xf32>
    %63 = vector.multi_reduction <maximumf>, %62, %cst_39 [2] : vector<2x8x8xf32> to vector<2x8xf32>
    %64 = vector.shape_cast %63 : vector<2x8xf32> to vector<2x8x1xf32>
    %65 = vector.broadcast %64 : vector<2x8x1xf32> to vector<2x8x8xf32>
    %66 = arith.subf %62, %65 : vector<2x8x8xf32>
    %67 = math.exp %66 : vector<2x8x8xf32>
    %cst_40 = arith.constant dense<0.000000e+00> : vector<2x8xf32>
    %68 = vector.multi_reduction <add>, %67, %cst_40 [2] : vector<2x8x8xf32> to vector<2x8xf32>
    %69 = vector.shape_cast %68 : vector<2x8xf32> to vector<2x8x1xf32>
    %70 = vector.broadcast %69 : vector<2x8x1xf32> to vector<2x8x8xf32>
    %71 = arith.divf %67, %70 : vector<2x8x8xf32>
    %72 = arith.truncf %71 : vector<2x8x8xf32> to vector<2x8x8xbf16>
    %73 = arith.truncf %57 : vector<2x8x8xf32> to vector<2x8x8xbf16>
    "tpu.trace_start"() <{level = 10 : i32, message = "bqk,bkd->bqd"}> : () -> ()
    %cst_41 = arith.constant dense<0.000000e+00> : vector<2x8x8xf32>
    %74 = tpu.matmul %72, %73, %cst_41 {dimension_numbers = #tpu.dot_dimension_numbers<[2], [1], [1], [2], [0, 0, 0, 1, 1, 2], [0], [0]>} : vector<2x8x8xbf16>, vector<2x8x8xbf16>, vector<2x8x8xf32> -> vector<2x8x8xf32>
    "tpu.trace_stop"() : () -> ()
    %75 = vector.shape_cast %74 : vector<2x8x8xf32> to vector<16x8xf32>
    %76 = arith.truncf %75 : vector<16x8xf32> to vector<16x8xbf16>
    %c0_42 = arith.constant 0 : index
    %c0_43 = arith.constant 0 : index
    %c0_44 = arith.constant 0 : index
    %c0_45 = arith.constant 0 : index
    %77 = vector.load %arg6[%c0_42, %c0_43, %c0_44, %c0_45] : memref<1x4x8x32xbf16, #tpu.memory_space<vmem>>, vector<1x1x8x32xbf16>
    %78 = vector.shape_cast %77 : vector<1x1x8x32xbf16> to vector<8x32xbf16>
    %cst_46 = arith.constant dense<0.000000e+00> : vector<16x32xf32>
    %79 = tpu.matmul %76, %78, %cst_46 {dimension_numbers = #tpu.dot_dimension_numbers<[1], [0], [0], [1], [0, 0, 1, 1], [], []>} : vector<16x8xbf16>, vector<8x32xbf16>, vector<16x32xf32> -> vector<16x32xf32>
    %80 = arith.addf %33, %79 : vector<16x32xf32>
    %c0_47 = arith.constant 0 : index
    %c1 = arith.constant 1 : index
    %c0_48 = arith.constant 0 : index
    %c0_49 = arith.constant 0 : index
    %81 = vector.load %arg4[%c0_47, %c1, %c0_48, %c0_49] : memref<1x12x32x8xbf16, #tpu.memory_space<vmem>>, vector<1x1x32x8xbf16>
    %82 = vector.shape_cast %81 : vector<1x1x32x8xbf16> to vector<32x8xbf16>
    %cst_50 = arith.constant dense<0.000000e+00> : vector<16x8xf32>
    %83 = tpu.matmul %31, %82, %cst_50 {dimension_numbers = #tpu.dot_dimension_numbers<[1], [0], [0], [1], [0, 0, 1, 1], [], []>} : vector<16x32xbf16>, vector<32x8xbf16>, vector<16x8xf32> -> vector<16x8xf32>
    %c0_51 = arith.constant 0 : index
    %c1_52 = arith.constant 1 : index
    %c0_53 = arith.constant 0 : index
    %c0_54 = arith.constant 0 : index
    %84 = vector.load %arg5[%c0_51, %c1_52, %c0_53, %c0_54] : memref<1x12x1x8xf32, #tpu.memory_space<vmem>>, vector<1x1x1x8xf32>
    %85 = vector.shape_cast %84 : vector<1x1x1x8xf32> to vector<1x8xf32>
    %86 = vector.broadcast %85 : vector<1x8xf32> to vector<16x8xf32>
    %87 = arith.addf %83, %86 : vector<16x8xf32>
    %88 = vector.shape_cast %87 : vector<16x8xf32> to vector<2x8x8xf32>
    %c0_55 = arith.constant 0 : index
    %c5 = arith.constant 5 : index
    %c0_56 = arith.constant 0 : index
    %c0_57 = arith.constant 0 : index
    %89 = vector.load %arg4[%c0_55, %c5, %c0_56, %c0_57] : memref<1x12x32x8xbf16, #tpu.memory_space<vmem>>, vector<1x1x32x8xbf16>
    %90 = vector.shape_cast %89 : vector<1x1x32x8xbf16> to vector<32x8xbf16>
    %cst_58 = arith.constant dense<0.000000e+00> : vector<16x8xf32>
    %91 = tpu.matmul %32, %90, %cst_58 {dimension_numbers = #tpu.dot_dimension_numbers<[1], [0], [0], [1], [0, 0, 1, 1], [], []>} : vector<16x32xbf16>, vector<32x8xbf16>, vector<16x8xf32> -> vector<16x8xf32>
    %c0_59 = arith.constant 0 : index
    %c5_60 = arith.constant 5 : index
    %c0_61 = arith.constant 0 : index
    %c0_62 = arith.constant 0 : index
    %92 = vector.load %arg5[%c0_59, %c5_60, %c0_61, %c0_62] : memref<1x12x1x8xf32, #tpu.memory_space<vmem>>, vector<1x1x1x8xf32>
    %93 = vector.shape_cast %92 : vector<1x1x1x8xf32> to vector<1x8xf32>
    %94 = vector.broadcast %93 : vector<1x8xf32> to vector<16x8xf32>
    %95 = arith.addf %91, %94 : vector<16x8xf32>
    %96 = vector.shape_cast %95 : vector<16x8xf32> to vector<2x8x8xf32>
    %c0_63 = arith.constant 0 : index
    %c9 = arith.constant 9 : index
    %c0_64 = arith.constant 0 : index
    %c0_65 = arith.constant 0 : index
    %97 = vector.load %arg4[%c0_63, %c9, %c0_64, %c0_65] : memref<1x12x32x8xbf16, #tpu.memory_space<vmem>>, vector<1x1x32x8xbf16>
    %98 = vector.shape_cast %97 : vector<1x1x32x8xbf16> to vector<32x8xbf16>
    %cst_66 = arith.constant dense<0.000000e+00> : vector<16x8xf32>
    %99 = tpu.matmul %32, %98, %cst_66 {dimension_numbers = #tpu.dot_dimension_numbers<[1], [0], [0], [1], [0, 0, 1, 1], [], []>} : vector<16x32xbf16>, vector<32x8xbf16>, vector<16x8xf32> -> vector<16x8xf32>
    %c0_67 = arith.constant 0 : index
    %c9_68 = arith.constant 9 : index
    %c0_69 = arith.constant 0 : index
    %c0_70 = arith.constant 0 : index
    %100 = vector.load %arg5[%c0_67, %c9_68, %c0_69, %c0_70] : memref<1x12x1x8xf32, #tpu.memory_space<vmem>>, vector<1x1x1x8xf32>
    %101 = vector.shape_cast %100 : vector<1x1x1x8xf32> to vector<1x8xf32>
    %102 = vector.broadcast %101 : vector<1x8xf32> to vector<16x8xf32>
    %103 = arith.addf %99, %102 : vector<16x8xf32>
    %104 = vector.shape_cast %103 : vector<16x8xf32> to vector<2x8x8xf32>
    %105 = arith.truncf %88 : vector<2x8x8xf32> to vector<2x8x8xbf16>
    %106 = arith.truncf %96 : vector<2x8x8xf32> to vector<2x8x8xbf16>
    "tpu.trace_start"() <{level = 10 : i32, message = "bqd,bkd->bqk"}> : () -> ()
    %cst_71 = arith.constant dense<0.000000e+00> : vector<2x8x8xf32>
    %107 = tpu.matmul %105, %106, %cst_71 {dimension_numbers = #tpu.dot_dimension_numbers<[2], [2], [1], [1], [0, 0, 0, 1, 1, 1], [0], [0]>} : vector<2x8x8xbf16>, vector<2x8x8xbf16>, vector<2x8x8xf32> -> vector<2x8x8xf32>
    "tpu.trace_stop"() : () -> ()
    %cst_72 = arith.constant 0.353553385 : f32
    %108 = vector.broadcast %cst_72 : f32 to vector<2x8x8xf32>
    %109 = arith.mulf %107, %108 : vector<2x8x8xf32>
    %cst_73 = arith.constant dense<0xFF800000> : vector<2x8xf32>
    %110 = vector.multi_reduction <maximumf>, %109, %cst_73 [2] : vector<2x8x8xf32> to vector<2x8xf32>
    %111 = vector.shape_cast %110 : vector<2x8xf32> to vector<2x8x1xf32>
    %112 = vector.broadcast %111 : vector<2x8x1xf32> to vector<2x8x8xf32>
    %113 = arith.subf %109, %112 : vector<2x8x8xf32>
    %114 = math.exp %113 : vector<2x8x8xf32>
    %cst_74 = arith.constant dense<0.000000e+00> : vector<2x8xf32>
    %115 = vector.multi_reduction <add>, %114, %cst_74 [2] : vector<2x8x8xf32> to vector<2x8xf32>
    %116 = vector.shape_cast %115 : vector<2x8xf32> to vector<2x8x1xf32>
    %117 = vector.broadcast %116 : vector<2x8x1xf32> to vector<2x8x8xf32>
    %118 = arith.divf %114, %117 : vector<2x8x8xf32>
    %119 = arith.truncf %118 : vector<2x8x8xf32> to vector<2x8x8xbf16>
    %120 = arith.truncf %104 : vector<2x8x8xf32> to vector<2x8x8xbf16>
    "tpu.trace_start"() <{level = 10 : i32, message = "bqk,bkd->bqd"}> : () -> ()
    %cst_75 = arith.constant dense<0.000000e+00> : vector<2x8x8xf32>
    %121 = tpu.matmul %119, %120, %cst_75 {dimension_numbers = #tpu.dot_dimension_numbers<[2], [1], [1], [2], [0, 0, 0, 1, 1, 2], [0], [0]>} : vector<2x8x8xbf16>, vector<2x8x8xbf16>, vector<2x8x8xf32> -> vector<2x8x8xf32>
    "tpu.trace_stop"() : () -> ()
    %122 = vector.shape_cast %121 : vector<2x8x8xf32> to vector<16x8xf32>
    %123 = arith.truncf %122 : vector<16x8xf32> to vector<16x8xbf16>
    %c0_76 = arith.constant 0 : index
    %c1_77 = arith.constant 1 : index
    %c0_78 = arith.constant 0 : index
    %c0_79 = arith.constant 0 : index
    %124 = vector.load %arg6[%c0_76, %c1_77, %c0_78, %c0_79] : memref<1x4x8x32xbf16, #tpu.memory_space<vmem>>, vector<1x1x8x32xbf16>
    %125 = vector.shape_cast %124 : vector<1x1x8x32xbf16> to vector<8x32xbf16>
    %cst_80 = arith.constant dense<0.000000e+00> : vector<16x32xf32>
    %126 = tpu.matmul %123, %125, %cst_80 {dimension_numbers = #tpu.dot_dimension_numbers<[1], [0], [0], [1], [0, 0, 1, 1], [], []>} : vector<16x8xbf16>, vector<8x32xbf16>, vector<16x32xf32> -> vector<16x32xf32>
    %127 = arith.addf %80, %126 : vector<16x32xf32>
    %c0_81 = arith.constant 0 : index
    %c2 = arith.constant 2 : index
    %c0_82 = arith.constant 0 : index
    %c0_83 = arith.constant 0 : index
    %128 = vector.load %arg4[%c0_81, %c2, %c0_82, %c0_83] : memref<1x12x32x8xbf16, #tpu.memory_space<vmem>>, vector<1x1x32x8xbf16>
    %129 = vector.shape_cast %128 : vector<1x1x32x8xbf16> to vector<32x8xbf16>
    %cst_84 = arith.constant dense<0.000000e+00> : vector<16x8xf32>
    %130 = tpu.matmul %31, %129, %cst_84 {dimension_numbers = #tpu.dot_dimension_numbers<[1], [0], [0], [1], [0, 0, 1, 1], [], []>} : vector<16x32xbf16>, vector<32x8xbf16>, vector<16x8xf32> -> vector<16x8xf32>
    %c0_85 = arith.constant 0 : index
    %c2_86 = arith.constant 2 : index
    %c0_87 = arith.constant 0 : index
    %c0_88 = arith.constant 0 : index
    %131 = vector.load %arg5[%c0_85, %c2_86, %c0_87, %c0_88] : memref<1x12x1x8xf32, #tpu.memory_space<vmem>>, vector<1x1x1x8xf32>
    %132 = vector.shape_cast %131 : vector<1x1x1x8xf32> to vector<1x8xf32>
    %133 = vector.broadcast %132 : vector<1x8xf32> to vector<16x8xf32>
    %134 = arith.addf %130, %133 : vector<16x8xf32>
    %135 = vector.shape_cast %134 : vector<16x8xf32> to vector<2x8x8xf32>
    %c0_89 = arith.constant 0 : index
    %c6 = arith.constant 6 : index
    %c0_90 = arith.constant 0 : index
    %c0_91 = arith.constant 0 : index
    %136 = vector.load %arg4[%c0_89, %c6, %c0_90, %c0_91] : memref<1x12x32x8xbf16, #tpu.memory_space<vmem>>, vector<1x1x32x8xbf16>
    %137 = vector.shape_cast %136 : vector<1x1x32x8xbf16> to vector<32x8xbf16>
    %cst_92 = arith.constant dense<0.000000e+00> : vector<16x8xf32>
    %138 = tpu.matmul %32, %137, %cst_92 {dimension_numbers = #tpu.dot_dimension_numbers<[1], [0], [0], [1], [0, 0, 1, 1], [], []>} : vector<16x32xbf16>, vector<32x8xbf16>, vector<16x8xf32> -> vector<16x8xf32>
    %c0_93 = arith.constant 0 : index
    %c6_94 = arith.constant 6 : index
    %c0_95 = arith.constant 0 : index
    %c0_96 = arith.constant 0 : index
    %139 = vector.load %arg5[%c0_93, %c6_94, %c0_95, %c0_96] : memref<1x12x1x8xf32, #tpu.memory_space<vmem>>, vector<1x1x1x8xf32>
    %140 = vector.shape_cast %139 : vector<1x1x1x8xf32> to vector<1x8xf32>
    %141 = vector.broadcast %140 : vector<1x8xf32> to vector<16x8xf32>
    %142 = arith.addf %138, %141 : vector<16x8xf32>
    %143 = vector.shape_cast %142 : vector<16x8xf32> to vector<2x8x8xf32>
    %c0_97 = arith.constant 0 : index
    %c10 = arith.constant 10 : index
    %c0_98 = arith.constant 0 : index
    %c0_99 = arith.constant 0 : index
    %144 = vector.load %arg4[%c0_97, %c10, %c0_98, %c0_99] : memref<1x12x32x8xbf16, #tpu.memory_space<vmem>>, vector<1x1x32x8xbf16>
    %145 = vector.shape_cast %144 : vector<1x1x32x8xbf16> to vector<32x8xbf16>
    %cst_100 = arith.constant dense<0.000000e+00> : vector<16x8xf32>
    %146 = tpu.matmul %32, %145, %cst_100 {dimension_numbers = #tpu.dot_dimension_numbers<[1], [0], [0], [1], [0, 0, 1, 1], [], []>} : vector<16x32xbf16>, vector<32x8xbf16>, vector<16x8xf32> -> vector<16x8xf32>
    %c0_101 = arith.constant 0 : index
    %c10_102 = arith.constant 10 : index
    %c0_103 = arith.constant 0 : index
    %c0_104 = arith.constant 0 : index
    %147 = vector.load %arg5[%c0_101, %c10_102, %c0_103, %c0_104] : memref<1x12x1x8xf32, #tpu.memory_space<vmem>>, vector<1x1x1x8xf32>
    %148 = vector.shape_cast %147 : vector<1x1x1x8xf32> to vector<1x8xf32>
    %149 = vector.broadcast %148 : vector<1x8xf32> to vector<16x8xf32>
    %150 = arith.addf %146, %149 : vector<16x8xf32>
    %151 = vector.shape_cast %150 : vector<16x8xf32> to vector<2x8x8xf32>
    %152 = arith.truncf %135 : vector<2x8x8xf32> to vector<2x8x8xbf16>
    %153 = arith.truncf %143 : vector<2x8x8xf32> to vector<2x8x8xbf16>
    "tpu.trace_start"() <{level = 10 : i32, message = "bqd,bkd->bqk"}> : () -> ()
    %cst_105 = arith.constant dense<0.000000e+00> : vector<2x8x8xf32>
    %154 = tpu.matmul %152, %153, %cst_105 {dimension_numbers = #tpu.dot_dimension_numbers<[2], [2], [1], [1], [0, 0, 0, 1, 1, 1], [0], [0]>} : vector<2x8x8xbf16>, vector<2x8x8xbf16>, vector<2x8x8xf32> -> vector<2x8x8xf32>
    "tpu.trace_stop"() : () -> ()
    %cst_106 = arith.constant 0.353553385 : f32
    %155 = vector.broadcast %cst_106 : f32 to vector<2x8x8xf32>
    %156 = arith.mulf %154, %155 : vector<2x8x8xf32>
    %cst_107 = arith.constant dense<0xFF800000> : vector<2x8xf32>
    %157 = vector.multi_reduction <maximumf>, %156, %cst_107 [2] : vector<2x8x8xf32> to vector<2x8xf32>
    %158 = vector.shape_cast %157 : vector<2x8xf32> to vector<2x8x1xf32>
    %159 = vector.broadcast %158 : vector<2x8x1xf32> to vector<2x8x8xf32>
    %160 = arith.subf %156, %159 : vector<2x8x8xf32>
    %161 = math.exp %160 : vector<2x8x8xf32>
    %cst_108 = arith.constant dense<0.000000e+00> : vector<2x8xf32>
    %162 = vector.multi_reduction <add>, %161, %cst_108 [2] : vector<2x8x8xf32> to vector<2x8xf32>
    %163 = vector.shape_cast %162 : vector<2x8xf32> to vector<2x8x1xf32>
    %164 = vector.broadcast %163 : vector<2x8x1xf32> to vector<2x8x8xf32>
    %165 = arith.divf %161, %164 : vector<2x8x8xf32>
    %166 = arith.truncf %165 : vector<2x8x8xf32> to vector<2x8x8xbf16>
    %167 = arith.truncf %151 : vector<2x8x8xf32> to vector<2x8x8xbf16>
    "tpu.trace_start"() <{level = 10 : i32, message = "bqk,bkd->bqd"}> : () -> ()
    %cst_109 = arith.constant dense<0.000000e+00> : vector<2x8x8xf32>
    %168 = tpu.matmul %166, %167, %cst_109 {dimension_numbers = #tpu.dot_dimension_numbers<[2], [1], [1], [2], [0, 0, 0, 1, 1, 2], [0], [0]>} : vector<2x8x8xbf16>, vector<2x8x8xbf16>, vector<2x8x8xf32> -> vector<2x8x8xf32>
    "tpu.trace_stop"() : () -> ()
    %169 = vector.shape_cast %168 : vector<2x8x8xf32> to vector<16x8xf32>
    %170 = arith.truncf %169 : vector<16x8xf32> to vector<16x8xbf16>
    %c0_110 = arith.constant 0 : index
    %c2_111 = arith.constant 2 : index
    %c0_112 = arith.constant 0 : index
    %c0_113 = arith.constant 0 : index
    %171 = vector.load %arg6[%c0_110, %c2_111, %c0_112, %c0_113] : memref<1x4x8x32xbf16, #tpu.memory_space<vmem>>, vector<1x1x8x32xbf16>
    %172 = vector.shape_cast %171 : vector<1x1x8x32xbf16> to vector<8x32xbf16>
    %cst_114 = arith.constant dense<0.000000e+00> : vector<16x32xf32>
    %173 = tpu.matmul %170, %172, %cst_114 {dimension_numbers = #tpu.dot_dimension_numbers<[1], [0], [0], [1], [0, 0, 1, 1], [], []>} : vector<16x8xbf16>, vector<8x32xbf16>, vector<16x32xf32> -> vector<16x32xf32>
    %174 = arith.addf %127, %173 : vector<16x32xf32>
    %c0_115 = arith.constant 0 : index
    %c3 = arith.constant 3 : index
    %c0_116 = arith.constant 0 : index
    %c0_117 = arith.constant 0 : index
    %175 = vector.load %arg4[%c0_115, %c3, %c0_116, %c0_117] : memref<1x12x32x8xbf16, #tpu.memory_space<vmem>>, vector<1x1x32x8xbf16>
    %176 = vector.shape_cast %175 : vector<1x1x32x8xbf16> to vector<32x8xbf16>
    %cst_118 = arith.constant dense<0.000000e+00> : vector<16x8xf32>
    %177 = tpu.matmul %31, %176, %cst_118 {dimension_numbers = #tpu.dot_dimension_numbers<[1], [0], [0], [1], [0, 0, 1, 1], [], []>} : vector<16x32xbf16>, vector<32x8xbf16>, vector<16x8xf32> -> vector<16x8xf32>
    %c0_119 = arith.constant 0 : index
    %c3_120 = arith.constant 3 : index
    %c0_121 = arith.constant 0 : index
    %c0_122 = arith.constant 0 : index
    %178 = vector.load %arg5[%c0_119, %c3_120, %c0_121, %c0_122] : memref<1x12x1x8xf32, #tpu.memory_space<vmem>>, vector<1x1x1x8xf32>
    %179 = vector.shape_cast %178 : vector<1x1x1x8xf32> to vector<1x8xf32>
    %180 = vector.broadcast %179 : vector<1x8xf32> to vector<16x8xf32>
    %181 = arith.addf %177, %180 : vector<16x8xf32>
    %182 = vector.shape_cast %181 : vector<16x8xf32> to vector<2x8x8xf32>
    %c0_123 = arith.constant 0 : index
    %c7 = arith.constant 7 : index
    %c0_124 = arith.constant 0 : index
    %c0_125 = arith.constant 0 : index
    %183 = vector.load %arg4[%c0_123, %c7, %c0_124, %c0_125] : memref<1x12x32x8xbf16, #tpu.memory_space<vmem>>, vector<1x1x32x8xbf16>
    %184 = vector.shape_cast %183 : vector<1x1x32x8xbf16> to vector<32x8xbf16>
    %cst_126 = arith.constant dense<0.000000e+00> : vector<16x8xf32>
    %185 = tpu.matmul %32, %184, %cst_126 {dimension_numbers = #tpu.dot_dimension_numbers<[1], [0], [0], [1], [0, 0, 1, 1], [], []>} : vector<16x32xbf16>, vector<32x8xbf16>, vector<16x8xf32> -> vector<16x8xf32>
    %c0_127 = arith.constant 0 : index
    %c7_128 = arith.constant 7 : index
    %c0_129 = arith.constant 0 : index
    %c0_130 = arith.constant 0 : index
    %186 = vector.load %arg5[%c0_127, %c7_128, %c0_129, %c0_130] : memref<1x12x1x8xf32, #tpu.memory_space<vmem>>, vector<1x1x1x8xf32>
    %187 = vector.shape_cast %186 : vector<1x1x1x8xf32> to vector<1x8xf32>
    %188 = vector.broadcast %187 : vector<1x8xf32> to vector<16x8xf32>
    %189 = arith.addf %185, %188 : vector<16x8xf32>
    %190 = vector.shape_cast %189 : vector<16x8xf32> to vector<2x8x8xf32>
    %c0_131 = arith.constant 0 : index
    %c11 = arith.constant 11 : index
    %c0_132 = arith.constant 0 : index
    %c0_133 = arith.constant 0 : index
    %191 = vector.load %arg4[%c0_131, %c11, %c0_132, %c0_133] : memref<1x12x32x8xbf16, #tpu.memory_space<vmem>>, vector<1x1x32x8xbf16>
    %192 = vector.shape_cast %191 : vector<1x1x32x8xbf16> to vector<32x8xbf16>
    %cst_134 = arith.constant dense<0.000000e+00> : vector<16x8xf32>
    %193 = tpu.matmul %32, %192, %cst_134 {dimension_numbers = #tpu.dot_dimension_numbers<[1], [0], [0], [1], [0, 0, 1, 1], [], []>} : vector<16x32xbf16>, vector<32x8xbf16>, vector<16x8xf32> -> vector<16x8xf32>
    %c0_135 = arith.constant 0 : index
    %c11_136 = arith.constant 11 : index
    %c0_137 = arith.constant 0 : index
    %c0_138 = arith.constant 0 : index
    %194 = vector.load %arg5[%c0_135, %c11_136, %c0_137, %c0_138] : memref<1x12x1x8xf32, #tpu.memory_space<vmem>>, vector<1x1x1x8xf32>
    %195 = vector.shape_cast %194 : vector<1x1x1x8xf32> to vector<1x8xf32>
    %196 = vector.broadcast %195 : vector<1x8xf32> to vector<16x8xf32>
    %197 = arith.addf %193, %196 : vector<16x8xf32>
    %198 = vector.shape_cast %197 : vector<16x8xf32> to vector<2x8x8xf32>
    %199 = arith.truncf %182 : vector<2x8x8xf32> to vector<2x8x8xbf16>
    %200 = arith.truncf %190 : vector<2x8x8xf32> to vector<2x8x8xbf16>
    "tpu.trace_start"() <{level = 10 : i32, message = "bqd,bkd->bqk"}> : () -> ()
    %cst_139 = arith.constant dense<0.000000e+00> : vector<2x8x8xf32>
    %201 = tpu.matmul %199, %200, %cst_139 {dimension_numbers = #tpu.dot_dimension_numbers<[2], [2], [1], [1], [0, 0, 0, 1, 1, 1], [0], [0]>} : vector<2x8x8xbf16>, vector<2x8x8xbf16>, vector<2x8x8xf32> -> vector<2x8x8xf32>
    "tpu.trace_stop"() : () -> ()
    %cst_140 = arith.constant 0.353553385 : f32
    %202 = vector.broadcast %cst_140 : f32 to vector<2x8x8xf32>
    %203 = arith.mulf %201, %202 : vector<2x8x8xf32>
    %cst_141 = arith.constant dense<0xFF800000> : vector<2x8xf32>
    %204 = vector.multi_reduction <maximumf>, %203, %cst_141 [2] : vector<2x8x8xf32> to vector<2x8xf32>
    %205 = vector.shape_cast %204 : vector<2x8xf32> to vector<2x8x1xf32>
    %206 = vector.broadcast %205 : vector<2x8x1xf32> to vector<2x8x8xf32>
    %207 = arith.subf %203, %206 : vector<2x8x8xf32>
    %208 = math.exp %207 : vector<2x8x8xf32>
    %cst_142 = arith.constant dense<0.000000e+00> : vector<2x8xf32>
    %209 = vector.multi_reduction <add>, %208, %cst_142 [2] : vector<2x8x8xf32> to vector<2x8xf32>
    %210 = vector.shape_cast %209 : vector<2x8xf32> to vector<2x8x1xf32>
    %211 = vector.broadcast %210 : vector<2x8x1xf32> to vector<2x8x8xf32>
    %212 = arith.divf %208, %211 : vector<2x8x8xf32>
    %213 = arith.truncf %212 : vector<2x8x8xf32> to vector<2x8x8xbf16>
    %214 = arith.truncf %198 : vector<2x8x8xf32> to vector<2x8x8xbf16>
    "tpu.trace_start"() <{level = 10 : i32, message = "bqk,bkd->bqd"}> : () -> ()
    %cst_143 = arith.constant dense<0.000000e+00> : vector<2x8x8xf32>
    %215 = tpu.matmul %213, %214, %cst_143 {dimension_numbers = #tpu.dot_dimension_numbers<[2], [1], [1], [2], [0, 0, 0, 1, 1, 2], [0], [0]>} : vector<2x8x8xbf16>, vector<2x8x8xbf16>, vector<2x8x8xf32> -> vector<2x8x8xf32>
    "tpu.trace_stop"() : () -> ()
    %216 = vector.shape_cast %215 : vector<2x8x8xf32> to vector<16x8xf32>
    %217 = arith.truncf %216 : vector<16x8xf32> to vector<16x8xbf16>
    %c0_144 = arith.constant 0 : index
    %c3_145 = arith.constant 3 : index
    %c0_146 = arith.constant 0 : index
    %c0_147 = arith.constant 0 : index
    %218 = vector.load %arg6[%c0_144, %c3_145, %c0_146, %c0_147] : memref<1x4x8x32xbf16, #tpu.memory_space<vmem>>, vector<1x1x8x32xbf16>
    %219 = vector.shape_cast %218 : vector<1x1x8x32xbf16> to vector<8x32xbf16>
    %cst_148 = arith.constant dense<0.000000e+00> : vector<16x32xf32>
    %220 = tpu.matmul %217, %219, %cst_148 {dimension_numbers = #tpu.dot_dimension_numbers<[1], [0], [0], [1], [0, 0, 1, 1], [], []>} : vector<16x8xbf16>, vector<8x32xbf16>, vector<16x32xf32> -> vector<16x32xf32>
    %221 = arith.addf %174, %220 : vector<16x32xf32>
    %222 = arith.addf %3, %221 : vector<16x32xf32>
    %c0_149 = arith.constant 0 : index
    %c0_150 = arith.constant 0 : index
    %c0_151 = arith.constant 0 : index
    %223 = vector.load %arg7[%c0_149, %c0_150, %c0_151] : memref<1x1x32xf32, #tpu.memory_space<vmem>>, vector<1x1x32xf32>
    %224 = vector.shape_cast %223 : vector<1x1x32xf32> to vector<1x32xf32>
    %225 = vector.broadcast %224 : vector<1x32xf32> to vector<16x32xf32>
    %226 = arith.addf %222, %225 : vector<16x32xf32>
    %227 = vector.extract_strided_slice %6 {offsets = [2, 0], sizes = [1, 32], strides = [1, 1]} : vector<6x32xf32> to vector<1x32xf32>
    %228 = vector.extract_strided_slice %6 {offsets = [3, 0], sizes = [1, 32], strides = [1, 1]} : vector<6x32xf32> to vector<1x32xf32>
    %cst_152 = arith.constant dense<0.000000e+00> : vector<16xf32>
    %229 = vector.multi_reduction <add>, %226, %cst_152 [1] : vector<16x32xf32> to vector<16xf32>
    %230 = vector.shape_cast %229 : vector<16xf32> to vector<16x1xf32>
    %cst_153 = arith.constant 3.200000e+01 : f32
    %231 = vector.broadcast %cst_153 : f32 to vector<16x1xf32>
    %232 = arith.divf %230, %231 : vector<16x1xf32>
    %233 = vector.broadcast %232 : vector<16x1xf32> to vector<16x32xf32>
    %234 = arith.subf %226, %233 : vector<16x32xf32>
    %235 = arith.mulf %234, %234 : vector<16x32xf32>
    %cst_154 = arith.constant dense<0.000000e+00> : vector<16xf32>
    %236 = vector.multi_reduction <add>, %235, %cst_154 [1] : vector<16x32xf32> to vector<16xf32>
    %237 = vector.shape_cast %236 : vector<16xf32> to vector<16x1xf32>
    %cst_155 = arith.constant 3.200000e+01 : f32
    %238 = vector.broadcast %cst_155 : f32 to vector<16x1xf32>
    %239 = arith.divf %237, %238 : vector<16x1xf32>
    %240 = vector.broadcast %232 : vector<16x1xf32> to vector<16x32xf32>
    %241 = arith.subf %226, %240 : vector<16x32xf32>
    %cst_156 = arith.constant 9.99999974E-6 : f32
    %242 = vector.broadcast %cst_156 : f32 to vector<16x1xf32>
    %243 = arith.addf %239, %242 : vector<16x1xf32>
    %244 = math.rsqrt %243 : vector<16x1xf32>
    %245 = vector.broadcast %244 : vector<16x1xf32> to vector<16x32xf32>
    %246 = arith.mulf %241, %245 : vector<16x32xf32>
    %247 = vector.broadcast %227 : vector<1x32xf32> to vector<16x32xf32>
    %248 = arith.mulf %246, %247 : vector<16x32xf32>
    %249 = vector.broadcast %228 : vector<1x32xf32> to vector<16x32xf32>
    %250 = arith.addf %248, %249 : vector<16x32xf32>
    %251 = arith.truncf %250 : vector<16x32xf32> to vector<16x32xbf16>
    %252 = arith.truncf %4 : vector<16x32xf32> to vector<16x32xbf16>
    %cst_157 = arith.constant 0.000000e+00 : f32
    %253 = vector.broadcast %cst_157 : f32 to vector<16x32xf32>
    %c0_158 = arith.constant 0 : index
    %c0_159 = arith.constant 0 : index
    %c0_160 = arith.constant 0 : index
    %c0_161 = arith.constant 0 : index
    %254 = vector.load %arg8[%c0_158, %c0_159, %c0_160, %c0_161] : memref<1x12x32x8xbf16, #tpu.memory_space<vmem>>, vector<1x1x32x8xbf16>
    %255 = vector.shape_cast %254 : vector<1x1x32x8xbf16> to vector<32x8xbf16>
    %cst_162 = arith.constant dense<0.000000e+00> : vector<16x8xf32>
    %256 = tpu.matmul %251, %255, %cst_162 {dimension_numbers = #tpu.dot_dimension_numbers<[1], [0], [0], [1], [0, 0, 1, 1], [], []>} : vector<16x32xbf16>, vector<32x8xbf16>, vector<16x8xf32> -> vector<16x8xf32>
    %c0_163 = arith.constant 0 : index
    %c0_164 = arith.constant 0 : index
    %c0_165 = arith.constant 0 : index
    %c0_166 = arith.constant 0 : index
    %257 = vector.load %arg9[%c0_163, %c0_164, %c0_165, %c0_166] : memref<1x12x1x8xf32, #tpu.memory_space<vmem>>, vector<1x1x1x8xf32>
    %258 = vector.shape_cast %257 : vector<1x1x1x8xf32> to vector<1x8xf32>
    %259 = vector.broadcast %258 : vector<1x8xf32> to vector<16x8xf32>
    %260 = arith.addf %256, %259 : vector<16x8xf32>
    %261 = vector.shape_cast %260 : vector<16x8xf32> to vector<2x8x8xf32>
    %c0_167 = arith.constant 0 : index
    %c4_168 = arith.constant 4 : index
    %c0_169 = arith.constant 0 : index
    %c0_170 = arith.constant 0 : index
    %262 = vector.load %arg8[%c0_167, %c4_168, %c0_169, %c0_170] : memref<1x12x32x8xbf16, #tpu.memory_space<vmem>>, vector<1x1x32x8xbf16>
    %263 = vector.shape_cast %262 : vector<1x1x32x8xbf16> to vector<32x8xbf16>
    %cst_171 = arith.constant dense<0.000000e+00> : vector<16x8xf32>
    %264 = tpu.matmul %252, %263, %cst_171 {dimension_numbers = #tpu.dot_dimension_numbers<[1], [0], [0], [1], [0, 0, 1, 1], [], []>} : vector<16x32xbf16>, vector<32x8xbf16>, vector<16x8xf32> -> vector<16x8xf32>
    %c0_172 = arith.constant 0 : index
    %c4_173 = arith.constant 4 : index
    %c0_174 = arith.constant 0 : index
    %c0_175 = arith.constant 0 : index
    %265 = vector.load %arg9[%c0_172, %c4_173, %c0_174, %c0_175] : memref<1x12x1x8xf32, #tpu.memory_space<vmem>>, vector<1x1x1x8xf32>
    %266 = vector.shape_cast %265 : vector<1x1x1x8xf32> to vector<1x8xf32>
    %267 = vector.broadcast %266 : vector<1x8xf32> to vector<16x8xf32>
    %268 = arith.addf %264, %267 : vector<16x8xf32>
    %269 = vector.shape_cast %268 : vector<16x8xf32> to vector<2x8x8xf32>
    %c0_176 = arith.constant 0 : index
    %c8_177 = arith.constant 8 : index
    %c0_178 = arith.constant 0 : index
    %c0_179 = arith.constant 0 : index
    %270 = vector.load %arg8[%c0_176, %c8_177, %c0_178, %c0_179] : memref<1x12x32x8xbf16, #tpu.memory_space<vmem>>, vector<1x1x32x8xbf16>
    %271 = vector.shape_cast %270 : vector<1x1x32x8xbf16> to vector<32x8xbf16>
    %cst_180 = arith.constant dense<0.000000e+00> : vector<16x8xf32>
    %272 = tpu.matmul %252, %271, %cst_180 {dimension_numbers = #tpu.dot_dimension_numbers<[1], [0], [0], [1], [0, 0, 1, 1], [], []>} : vector<16x32xbf16>, vector<32x8xbf16>, vector<16x8xf32> -> vector<16x8xf32>
    %c0_181 = arith.constant 0 : index
    %c8_182 = arith.constant 8 : index
    %c0_183 = arith.constant 0 : index
    %c0_184 = arith.constant 0 : index
    %273 = vector.load %arg9[%c0_181, %c8_182, %c0_183, %c0_184] : memref<1x12x1x8xf32, #tpu.memory_space<vmem>>, vector<1x1x1x8xf32>
    %274 = vector.shape_cast %273 : vector<1x1x1x8xf32> to vector<1x8xf32>
    %275 = vector.broadcast %274 : vector<1x8xf32> to vector<16x8xf32>
    %276 = arith.addf %272, %275 : vector<16x8xf32>
    %277 = vector.shape_cast %276 : vector<16x8xf32> to vector<2x8x8xf32>
    %278 = arith.truncf %261 : vector<2x8x8xf32> to vector<2x8x8xbf16>
    %279 = arith.truncf %269 : vector<2x8x8xf32> to vector<2x8x8xbf16>
    "tpu.trace_start"() <{level = 10 : i32, message = "bqd,bkd->bqk"}> : () -> ()
    %cst_185 = arith.constant dense<0.000000e+00> : vector<2x8x8xf32>
    %280 = tpu.matmul %278, %279, %cst_185 {dimension_numbers = #tpu.dot_dimension_numbers<[2], [2], [1], [1], [0, 0, 0, 1, 1, 1], [0], [0]>} : vector<2x8x8xbf16>, vector<2x8x8xbf16>, vector<2x8x8xf32> -> vector<2x8x8xf32>
    "tpu.trace_stop"() : () -> ()
    %cst_186 = arith.constant 0.353553385 : f32
    %281 = vector.broadcast %cst_186 : f32 to vector<2x8x8xf32>
    %282 = arith.mulf %280, %281 : vector<2x8x8xf32>
    %cst_187 = arith.constant dense<0xFF800000> : vector<2x8xf32>
    %283 = vector.multi_reduction <maximumf>, %282, %cst_187 [2] : vector<2x8x8xf32> to vector<2x8xf32>
    %284 = vector.shape_cast %283 : vector<2x8xf32> to vector<2x8x1xf32>
    %285 = vector.broadcast %284 : vector<2x8x1xf32> to vector<2x8x8xf32>
    %286 = arith.subf %282, %285 : vector<2x8x8xf32>
    %287 = math.exp %286 : vector<2x8x8xf32>
    %cst_188 = arith.constant dense<0.000000e+00> : vector<2x8xf32>
    %288 = vector.multi_reduction <add>, %287, %cst_188 [2] : vector<2x8x8xf32> to vector<2x8xf32>
    %289 = vector.shape_cast %288 : vector<2x8xf32> to vector<2x8x1xf32>
    %290 = vector.broadcast %289 : vector<2x8x1xf32> to vector<2x8x8xf32>
    %291 = arith.divf %287, %290 : vector<2x8x8xf32>
    %292 = arith.truncf %291 : vector<2x8x8xf32> to vector<2x8x8xbf16>
    %293 = arith.truncf %277 : vector<2x8x8xf32> to vector<2x8x8xbf16>
    "tpu.trace_start"() <{level = 10 : i32, message = "bqk,bkd->bqd"}> : () -> ()
    %cst_189 = arith.constant dense<0.000000e+00> : vector<2x8x8xf32>
    %294 = tpu.matmul %292, %293, %cst_189 {dimension_numbers = #tpu.dot_dimension_numbers<[2], [1], [1], [2], [0, 0, 0, 1, 1, 2], [0], [0]>} : vector<2x8x8xbf16>, vector<2x8x8xbf16>, vector<2x8x8xf32> -> vector<2x8x8xf32>
    "tpu.trace_stop"() : () -> ()
    %295 = vector.shape_cast %294 : vector<2x8x8xf32> to vector<16x8xf32>
    %296 = arith.truncf %295 : vector<16x8xf32> to vector<16x8xbf16>
    %c0_190 = arith.constant 0 : index
    %c0_191 = arith.constant 0 : index
    %c0_192 = arith.constant 0 : index
    %c0_193 = arith.constant 0 : index
    %297 = vector.load %arg10[%c0_190, %c0_191, %c0_192, %c0_193] : memref<1x4x8x32xbf16, #tpu.memory_space<vmem>>, vector<1x1x8x32xbf16>
    %298 = vector.shape_cast %297 : vector<1x1x8x32xbf16> to vector<8x32xbf16>
    %cst_194 = arith.constant dense<0.000000e+00> : vector<16x32xf32>
    %299 = tpu.matmul %296, %298, %cst_194 {dimension_numbers = #tpu.dot_dimension_numbers<[1], [0], [0], [1], [0, 0, 1, 1], [], []>} : vector<16x8xbf16>, vector<8x32xbf16>, vector<16x32xf32> -> vector<16x32xf32>
    %300 = arith.addf %253, %299 : vector<16x32xf32>
    %c0_195 = arith.constant 0 : index
    %c1_196 = arith.constant 1 : index
    %c0_197 = arith.constant 0 : index
    %c0_198 = arith.constant 0 : index
    %301 = vector.load %arg8[%c0_195, %c1_196, %c0_197, %c0_198] : memref<1x12x32x8xbf16, #tpu.memory_space<vmem>>, vector<1x1x32x8xbf16>
    %302 = vector.shape_cast %301 : vector<1x1x32x8xbf16> to vector<32x8xbf16>
    %cst_199 = arith.constant dense<0.000000e+00> : vector<16x8xf32>
    %303 = tpu.matmul %251, %302, %cst_199 {dimension_numbers = #tpu.dot_dimension_numbers<[1], [0], [0], [1], [0, 0, 1, 1], [], []>} : vector<16x32xbf16>, vector<32x8xbf16>, vector<16x8xf32> -> vector<16x8xf32>
    %c0_200 = arith.constant 0 : index
    %c1_201 = arith.constant 1 : index
    %c0_202 = arith.constant 0 : index
    %c0_203 = arith.constant 0 : index
    %304 = vector.load %arg9[%c0_200, %c1_201, %c0_202, %c0_203] : memref<1x12x1x8xf32, #tpu.memory_space<vmem>>, vector<1x1x1x8xf32>
    %305 = vector.shape_cast %304 : vector<1x1x1x8xf32> to vector<1x8xf32>
    %306 = vector.broadcast %305 : vector<1x8xf32> to vector<16x8xf32>
    %307 = arith.addf %303, %306 : vector<16x8xf32>
    %308 = vector.shape_cast %307 : vector<16x8xf32> to vector<2x8x8xf32>
    %c0_204 = arith.constant 0 : index
    %c5_205 = arith.constant 5 : index
    %c0_206 = arith.constant 0 : index
    %c0_207 = arith.constant 0 : index
    %309 = vector.load %arg8[%c0_204, %c5_205, %c0_206, %c0_207] : memref<1x12x32x8xbf16, #tpu.memory_space<vmem>>, vector<1x1x32x8xbf16>
    %310 = vector.shape_cast %309 : vector<1x1x32x8xbf16> to vector<32x8xbf16>
    %cst_208 = arith.constant dense<0.000000e+00> : vector<16x8xf32>
    %311 = tpu.matmul %252, %310, %cst_208 {dimension_numbers = #tpu.dot_dimension_numbers<[1], [0], [0], [1], [0, 0, 1, 1], [], []>} : vector<16x32xbf16>, vector<32x8xbf16>, vector<16x8xf32> -> vector<16x8xf32>
    %c0_209 = arith.constant 0 : index
    %c5_210 = arith.constant 5 : index
    %c0_211 = arith.constant 0 : index
    %c0_212 = arith.constant 0 : index
    %312 = vector.load %arg9[%c0_209, %c5_210, %c0_211, %c0_212] : memref<1x12x1x8xf32, #tpu.memory_space<vmem>>, vector<1x1x1x8xf32>
    %313 = vector.shape_cast %312 : vector<1x1x1x8xf32> to vector<1x8xf32>
    %314 = vector.broadcast %313 : vector<1x8xf32> to vector<16x8xf32>
    %315 = arith.addf %311, %314 : vector<16x8xf32>
    %316 = vector.shape_cast %315 : vector<16x8xf32> to vector<2x8x8xf32>
    %c0_213 = arith.constant 0 : index
    %c9_214 = arith.constant 9 : index
    %c0_215 = arith.constant 0 : index
    %c0_216 = arith.constant 0 : index
    %317 = vector.load %arg8[%c0_213, %c9_214, %c0_215, %c0_216] : memref<1x12x32x8xbf16, #tpu.memory_space<vmem>>, vector<1x1x32x8xbf16>
    %318 = vector.shape_cast %317 : vector<1x1x32x8xbf16> to vector<32x8xbf16>
    %cst_217 = arith.constant dense<0.000000e+00> : vector<16x8xf32>
    %319 = tpu.matmul %252, %318, %cst_217 {dimension_numbers = #tpu.dot_dimension_numbers<[1], [0], [0], [1], [0, 0, 1, 1], [], []>} : vector<16x32xbf16>, vector<32x8xbf16>, vector<16x8xf32> -> vector<16x8xf32>
    %c0_218 = arith.constant 0 : index
    %c9_219 = arith.constant 9 : index
    %c0_220 = arith.constant 0 : index
    %c0_221 = arith.constant 0 : index
    %320 = vector.load %arg9[%c0_218, %c9_219, %c0_220, %c0_221] : memref<1x12x1x8xf32, #tpu.memory_space<vmem>>, vector<1x1x1x8xf32>
    %321 = vector.shape_cast %320 : vector<1x1x1x8xf32> to vector<1x8xf32>
    %322 = vector.broadcast %321 : vector<1x8xf32> to vector<16x8xf32>
    %323 = arith.addf %319, %322 : vector<16x8xf32>
    %324 = vector.shape_cast %323 : vector<16x8xf32> to vector<2x8x8xf32>
    %325 = arith.truncf %308 : vector<2x8x8xf32> to vector<2x8x8xbf16>
    %326 = arith.truncf %316 : vector<2x8x8xf32> to vector<2x8x8xbf16>
    "tpu.trace_start"() <{level = 10 : i32, message = "bqd,bkd->bqk"}> : () -> ()
    %cst_222 = arith.constant dense<0.000000e+00> : vector<2x8x8xf32>
    %327 = tpu.matmul %325, %326, %cst_222 {dimension_numbers = #tpu.dot_dimension_numbers<[2], [2], [1], [1], [0, 0, 0, 1, 1, 1], [0], [0]>} : vector<2x8x8xbf16>, vector<2x8x8xbf16>, vector<2x8x8xf32> -> vector<2x8x8xf32>
    "tpu.trace_stop"() : () -> ()
    %cst_223 = arith.constant 0.353553385 : f32
    %328 = vector.broadcast %cst_223 : f32 to vector<2x8x8xf32>
    %329 = arith.mulf %327, %328 : vector<2x8x8xf32>
    %cst_224 = arith.constant dense<0xFF800000> : vector<2x8xf32>
    %330 = vector.multi_reduction <maximumf>, %329, %cst_224 [2] : vector<2x8x8xf32> to vector<2x8xf32>
    %331 = vector.shape_cast %330 : vector<2x8xf32> to vector<2x8x1xf32>
    %332 = vector.broadcast %331 : vector<2x8x1xf32> to vector<2x8x8xf32>
    %333 = arith.subf %329, %332 : vector<2x8x8xf32>
    %334 = math.exp %333 : vector<2x8x8xf32>
    %cst_225 = arith.constant dense<0.000000e+00> : vector<2x8xf32>
    %335 = vector.multi_reduction <add>, %334, %cst_225 [2] : vector<2x8x8xf32> to vector<2x8xf32>
    %336 = vector.shape_cast %335 : vector<2x8xf32> to vector<2x8x1xf32>
    %337 = vector.broadcast %336 : vector<2x8x1xf32> to vector<2x8x8xf32>
    %338 = arith.divf %334, %337 : vector<2x8x8xf32>
    %339 = arith.truncf %338 : vector<2x8x8xf32> to vector<2x8x8xbf16>
    %340 = arith.truncf %324 : vector<2x8x8xf32> to vector<2x8x8xbf16>
    "tpu.trace_start"() <{level = 10 : i32, message = "bqk,bkd->bqd"}> : () -> ()
    %cst_226 = arith.constant dense<0.000000e+00> : vector<2x8x8xf32>
    %341 = tpu.matmul %339, %340, %cst_226 {dimension_numbers = #tpu.dot_dimension_numbers<[2], [1], [1], [2], [0, 0, 0, 1, 1, 2], [0], [0]>} : vector<2x8x8xbf16>, vector<2x8x8xbf16>, vector<2x8x8xf32> -> vector<2x8x8xf32>
    "tpu.trace_stop"() : () -> ()
    %342 = vector.shape_cast %341 : vector<2x8x8xf32> to vector<16x8xf32>
    %343 = arith.truncf %342 : vector<16x8xf32> to vector<16x8xbf16>
    %c0_227 = arith.constant 0 : index
    %c1_228 = arith.constant 1 : index
    %c0_229 = arith.constant 0 : index
    %c0_230 = arith.constant 0 : index
    %344 = vector.load %arg10[%c0_227, %c1_228, %c0_229, %c0_230] : memref<1x4x8x32xbf16, #tpu.memory_space<vmem>>, vector<1x1x8x32xbf16>
    %345 = vector.shape_cast %344 : vector<1x1x8x32xbf16> to vector<8x32xbf16>
    %cst_231 = arith.constant dense<0.000000e+00> : vector<16x32xf32>
    %346 = tpu.matmul %343, %345, %cst_231 {dimension_numbers = #tpu.dot_dimension_numbers<[1], [0], [0], [1], [0, 0, 1, 1], [], []>} : vector<16x8xbf16>, vector<8x32xbf16>, vector<16x32xf32> -> vector<16x32xf32>
    %347 = arith.addf %300, %346 : vector<16x32xf32>
    %c0_232 = arith.constant 0 : index
    %c2_233 = arith.constant 2 : index
    %c0_234 = arith.constant 0 : index
    %c0_235 = arith.constant 0 : index
    %348 = vector.load %arg8[%c0_232, %c2_233, %c0_234, %c0_235] : memref<1x12x32x8xbf16, #tpu.memory_space<vmem>>, vector<1x1x32x8xbf16>
    %349 = vector.shape_cast %348 : vector<1x1x32x8xbf16> to vector<32x8xbf16>
    %cst_236 = arith.constant dense<0.000000e+00> : vector<16x8xf32>
    %350 = tpu.matmul %251, %349, %cst_236 {dimension_numbers = #tpu.dot_dimension_numbers<[1], [0], [0], [1], [0, 0, 1, 1], [], []>} : vector<16x32xbf16>, vector<32x8xbf16>, vector<16x8xf32> -> vector<16x8xf32>
    %c0_237 = arith.constant 0 : index
    %c2_238 = arith.constant 2 : index
    %c0_239 = arith.constant 0 : index
    %c0_240 = arith.constant 0 : index
    %351 = vector.load %arg9[%c0_237, %c2_238, %c0_239, %c0_240] : memref<1x12x1x8xf32, #tpu.memory_space<vmem>>, vector<1x1x1x8xf32>
    %352 = vector.shape_cast %351 : vector<1x1x1x8xf32> to vector<1x8xf32>
    %353 = vector.broadcast %352 : vector<1x8xf32> to vector<16x8xf32>
    %354 = arith.addf %350, %353 : vector<16x8xf32>
    %355 = vector.shape_cast %354 : vector<16x8xf32> to vector<2x8x8xf32>
    %c0_241 = arith.constant 0 : index
    %c6_242 = arith.constant 6 : index
    %c0_243 = arith.constant 0 : index
    %c0_244 = arith.constant 0 : index
    %356 = vector.load %arg8[%c0_241, %c6_242, %c0_243, %c0_244] : memref<1x12x32x8xbf16, #tpu.memory_space<vmem>>, vector<1x1x32x8xbf16>
    %357 = vector.shape_cast %356 : vector<1x1x32x8xbf16> to vector<32x8xbf16>
    %cst_245 = arith.constant dense<0.000000e+00> : vector<16x8xf32>
    %358 = tpu.matmul %252, %357, %cst_245 {dimension_numbers = #tpu.dot_dimension_numbers<[1], [0], [0], [1], [0, 0, 1, 1], [], []>} : vector<16x32xbf16>, vector<32x8xbf16>, vector<16x8xf32> -> vector<16x8xf32>
    %c0_246 = arith.constant 0 : index
    %c6_247 = arith.constant 6 : index
    %c0_248 = arith.constant 0 : index
    %c0_249 = arith.constant 0 : index
    %359 = vector.load %arg9[%c0_246, %c6_247, %c0_248, %c0_249] : memref<1x12x1x8xf32, #tpu.memory_space<vmem>>, vector<1x1x1x8xf32>
    %360 = vector.shape_cast %359 : vector<1x1x1x8xf32> to vector<1x8xf32>
    %361 = vector.broadcast %360 : vector<1x8xf32> to vector<16x8xf32>
    %362 = arith.addf %358, %361 : vector<16x8xf32>
    %363 = vector.shape_cast %362 : vector<16x8xf32> to vector<2x8x8xf32>
    %c0_250 = arith.constant 0 : index
    %c10_251 = arith.constant 10 : index
    %c0_252 = arith.constant 0 : index
    %c0_253 = arith.constant 0 : index
    %364 = vector.load %arg8[%c0_250, %c10_251, %c0_252, %c0_253] : memref<1x12x32x8xbf16, #tpu.memory_space<vmem>>, vector<1x1x32x8xbf16>
    %365 = vector.shape_cast %364 : vector<1x1x32x8xbf16> to vector<32x8xbf16>
    %cst_254 = arith.constant dense<0.000000e+00> : vector<16x8xf32>
    %366 = tpu.matmul %252, %365, %cst_254 {dimension_numbers = #tpu.dot_dimension_numbers<[1], [0], [0], [1], [0, 0, 1, 1], [], []>} : vector<16x32xbf16>, vector<32x8xbf16>, vector<16x8xf32> -> vector<16x8xf32>
    %c0_255 = arith.constant 0 : index
    %c10_256 = arith.constant 10 : index
    %c0_257 = arith.constant 0 : index
    %c0_258 = arith.constant 0 : index
    %367 = vector.load %arg9[%c0_255, %c10_256, %c0_257, %c0_258] : memref<1x12x1x8xf32, #tpu.memory_space<vmem>>, vector<1x1x1x8xf32>
    %368 = vector.shape_cast %367 : vector<1x1x1x8xf32> to vector<1x8xf32>
    %369 = vector.broadcast %368 : vector<1x8xf32> to vector<16x8xf32>
    %370 = arith.addf %366, %369 : vector<16x8xf32>
    %371 = vector.shape_cast %370 : vector<16x8xf32> to vector<2x8x8xf32>
    %372 = arith.truncf %355 : vector<2x8x8xf32> to vector<2x8x8xbf16>
    %373 = arith.truncf %363 : vector<2x8x8xf32> to vector<2x8x8xbf16>
    "tpu.trace_start"() <{level = 10 : i32, message = "bqd,bkd->bqk"}> : () -> ()
    %cst_259 = arith.constant dense<0.000000e+00> : vector<2x8x8xf32>
    %374 = tpu.matmul %372, %373, %cst_259 {dimension_numbers = #tpu.dot_dimension_numbers<[2], [2], [1], [1], [0, 0, 0, 1, 1, 1], [0], [0]>} : vector<2x8x8xbf16>, vector<2x8x8xbf16>, vector<2x8x8xf32> -> vector<2x8x8xf32>
    "tpu.trace_stop"() : () -> ()
    %cst_260 = arith.constant 0.353553385 : f32
    %375 = vector.broadcast %cst_260 : f32 to vector<2x8x8xf32>
    %376 = arith.mulf %374, %375 : vector<2x8x8xf32>
    %cst_261 = arith.constant dense<0xFF800000> : vector<2x8xf32>
    %377 = vector.multi_reduction <maximumf>, %376, %cst_261 [2] : vector<2x8x8xf32> to vector<2x8xf32>
    %378 = vector.shape_cast %377 : vector<2x8xf32> to vector<2x8x1xf32>
    %379 = vector.broadcast %378 : vector<2x8x1xf32> to vector<2x8x8xf32>
    %380 = arith.subf %376, %379 : vector<2x8x8xf32>
    %381 = math.exp %380 : vector<2x8x8xf32>
    %cst_262 = arith.constant dense<0.000000e+00> : vector<2x8xf32>
    %382 = vector.multi_reduction <add>, %381, %cst_262 [2] : vector<2x8x8xf32> to vector<2x8xf32>
    %383 = vector.shape_cast %382 : vector<2x8xf32> to vector<2x8x1xf32>
    %384 = vector.broadcast %383 : vector<2x8x1xf32> to vector<2x8x8xf32>
    %385 = arith.divf %381, %384 : vector<2x8x8xf32>
    %386 = arith.truncf %385 : vector<2x8x8xf32> to vector<2x8x8xbf16>
    %387 = arith.truncf %371 : vector<2x8x8xf32> to vector<2x8x8xbf16>
    "tpu.trace_start"() <{level = 10 : i32, message = "bqk,bkd->bqd"}> : () -> ()
    %cst_263 = arith.constant dense<0.000000e+00> : vector<2x8x8xf32>
    %388 = tpu.matmul %386, %387, %cst_263 {dimension_numbers = #tpu.dot_dimension_numbers<[2], [1], [1], [2], [0, 0, 0, 1, 1, 2], [0], [0]>} : vector<2x8x8xbf16>, vector<2x8x8xbf16>, vector<2x8x8xf32> -> vector<2x8x8xf32>
    "tpu.trace_stop"() : () -> ()
    %389 = vector.shape_cast %388 : vector<2x8x8xf32> to vector<16x8xf32>
    %390 = arith.truncf %389 : vector<16x8xf32> to vector<16x8xbf16>
    %c0_264 = arith.constant 0 : index
    %c2_265 = arith.constant 2 : index
    %c0_266 = arith.constant 0 : index
    %c0_267 = arith.constant 0 : index
    %391 = vector.load %arg10[%c0_264, %c2_265, %c0_266, %c0_267] : memref<1x4x8x32xbf16, #tpu.memory_space<vmem>>, vector<1x1x8x32xbf16>
    %392 = vector.shape_cast %391 : vector<1x1x8x32xbf16> to vector<8x32xbf16>
    %cst_268 = arith.constant dense<0.000000e+00> : vector<16x32xf32>
    %393 = tpu.matmul %390, %392, %cst_268 {dimension_numbers = #tpu.dot_dimension_numbers<[1], [0], [0], [1], [0, 0, 1, 1], [], []>} : vector<16x8xbf16>, vector<8x32xbf16>, vector<16x32xf32> -> vector<16x32xf32>
    %394 = arith.addf %347, %393 : vector<16x32xf32>
    %c0_269 = arith.constant 0 : index
    %c3_270 = arith.constant 3 : index
    %c0_271 = arith.constant 0 : index
    %c0_272 = arith.constant 0 : index
    %395 = vector.load %arg8[%c0_269, %c3_270, %c0_271, %c0_272] : memref<1x12x32x8xbf16, #tpu.memory_space<vmem>>, vector<1x1x32x8xbf16>
    %396 = vector.shape_cast %395 : vector<1x1x32x8xbf16> to vector<32x8xbf16>
    %cst_273 = arith.constant dense<0.000000e+00> : vector<16x8xf32>
    %397 = tpu.matmul %251, %396, %cst_273 {dimension_numbers = #tpu.dot_dimension_numbers<[1], [0], [0], [1], [0, 0, 1, 1], [], []>} : vector<16x32xbf16>, vector<32x8xbf16>, vector<16x8xf32> -> vector<16x8xf32>
    %c0_274 = arith.constant 0 : index
    %c3_275 = arith.constant 3 : index
    %c0_276 = arith.constant 0 : index
    %c0_277 = arith.constant 0 : index
    %398 = vector.load %arg9[%c0_274, %c3_275, %c0_276, %c0_277] : memref<1x12x1x8xf32, #tpu.memory_space<vmem>>, vector<1x1x1x8xf32>
    %399 = vector.shape_cast %398 : vector<1x1x1x8xf32> to vector<1x8xf32>
    %400 = vector.broadcast %399 : vector<1x8xf32> to vector<16x8xf32>
    %401 = arith.addf %397, %400 : vector<16x8xf32>
    %402 = vector.shape_cast %401 : vector<16x8xf32> to vector<2x8x8xf32>
    %c0_278 = arith.constant 0 : index
    %c7_279 = arith.constant 7 : index
    %c0_280 = arith.constant 0 : index
    %c0_281 = arith.constant 0 : index
    %403 = vector.load %arg8[%c0_278, %c7_279, %c0_280, %c0_281] : memref<1x12x32x8xbf16, #tpu.memory_space<vmem>>, vector<1x1x32x8xbf16>
    %404 = vector.shape_cast %403 : vector<1x1x32x8xbf16> to vector<32x8xbf16>
    %cst_282 = arith.constant dense<0.000000e+00> : vector<16x8xf32>
    %405 = tpu.matmul %252, %404, %cst_282 {dimension_numbers = #tpu.dot_dimension_numbers<[1], [0], [0], [1], [0, 0, 1, 1], [], []>} : vector<16x32xbf16>, vector<32x8xbf16>, vector<16x8xf32> -> vector<16x8xf32>
    %c0_283 = arith.constant 0 : index
    %c7_284 = arith.constant 7 : index
    %c0_285 = arith.constant 0 : index
    %c0_286 = arith.constant 0 : index
    %406 = vector.load %arg9[%c0_283, %c7_284, %c0_285, %c0_286] : memref<1x12x1x8xf32, #tpu.memory_space<vmem>>, vector<1x1x1x8xf32>
    %407 = vector.shape_cast %406 : vector<1x1x1x8xf32> to vector<1x8xf32>
    %408 = vector.broadcast %407 : vector<1x8xf32> to vector<16x8xf32>
    %409 = arith.addf %405, %408 : vector<16x8xf32>
    %410 = vector.shape_cast %409 : vector<16x8xf32> to vector<2x8x8xf32>
    %c0_287 = arith.constant 0 : index
    %c11_288 = arith.constant 11 : index
    %c0_289 = arith.constant 0 : index
    %c0_290 = arith.constant 0 : index
    %411 = vector.load %arg8[%c0_287, %c11_288, %c0_289, %c0_290] : memref<1x12x32x8xbf16, #tpu.memory_space<vmem>>, vector<1x1x32x8xbf16>
    %412 = vector.shape_cast %411 : vector<1x1x32x8xbf16> to vector<32x8xbf16>
    %cst_291 = arith.constant dense<0.000000e+00> : vector<16x8xf32>
    %413 = tpu.matmul %252, %412, %cst_291 {dimension_numbers = #tpu.dot_dimension_numbers<[1], [0], [0], [1], [0, 0, 1, 1], [], []>} : vector<16x32xbf16>, vector<32x8xbf16>, vector<16x8xf32> -> vector<16x8xf32>
    %c0_292 = arith.constant 0 : index
    %c11_293 = arith.constant 11 : index
    %c0_294 = arith.constant 0 : index
    %c0_295 = arith.constant 0 : index
    %414 = vector.load %arg9[%c0_292, %c11_293, %c0_294, %c0_295] : memref<1x12x1x8xf32, #tpu.memory_space<vmem>>, vector<1x1x1x8xf32>
    %415 = vector.shape_cast %414 : vector<1x1x1x8xf32> to vector<1x8xf32>
    %416 = vector.broadcast %415 : vector<1x8xf32> to vector<16x8xf32>
    %417 = arith.addf %413, %416 : vector<16x8xf32>
    %418 = vector.shape_cast %417 : vector<16x8xf32> to vector<2x8x8xf32>
    %419 = arith.truncf %402 : vector<2x8x8xf32> to vector<2x8x8xbf16>
    %420 = arith.truncf %410 : vector<2x8x8xf32> to vector<2x8x8xbf16>
    "tpu.trace_start"() <{level = 10 : i32, message = "bqd,bkd->bqk"}> : () -> ()
    %cst_296 = arith.constant dense<0.000000e+00> : vector<2x8x8xf32>
    %421 = tpu.matmul %419, %420, %cst_296 {dimension_numbers = #tpu.dot_dimension_numbers<[2], [2], [1], [1], [0, 0, 0, 1, 1, 1], [0], [0]>} : vector<2x8x8xbf16>, vector<2x8x8xbf16>, vector<2x8x8xf32> -> vector<2x8x8xf32>
    "tpu.trace_stop"() : () -> ()
    %cst_297 = arith.constant 0.353553385 : f32
    %422 = vector.broadcast %cst_297 : f32 to vector<2x8x8xf32>
    %423 = arith.mulf %421, %422 : vector<2x8x8xf32>
    %cst_298 = arith.constant dense<0xFF800000> : vector<2x8xf32>
    %424 = vector.multi_reduction <maximumf>, %423, %cst_298 [2] : vector<2x8x8xf32> to vector<2x8xf32>
    %425 = vector.shape_cast %424 : vector<2x8xf32> to vector<2x8x1xf32>
    %426 = vector.broadcast %425 : vector<2x8x1xf32> to vector<2x8x8xf32>
    %427 = arith.subf %423, %426 : vector<2x8x8xf32>
    %428 = math.exp %427 : vector<2x8x8xf32>
    %cst_299 = arith.constant dense<0.000000e+00> : vector<2x8xf32>
    %429 = vector.multi_reduction <add>, %428, %cst_299 [2] : vector<2x8x8xf32> to vector<2x8xf32>
    %430 = vector.shape_cast %429 : vector<2x8xf32> to vector<2x8x1xf32>
    %431 = vector.broadcast %430 : vector<2x8x1xf32> to vector<2x8x8xf32>
    %432 = arith.divf %428, %431 : vector<2x8x8xf32>
    %433 = arith.truncf %432 : vector<2x8x8xf32> to vector<2x8x8xbf16>
    %434 = arith.truncf %418 : vector<2x8x8xf32> to vector<2x8x8xbf16>
    "tpu.trace_start"() <{level = 10 : i32, message = "bqk,bkd->bqd"}> : () -> ()
    %cst_300 = arith.constant dense<0.000000e+00> : vector<2x8x8xf32>
    %435 = tpu.matmul %433, %434, %cst_300 {dimension_numbers = #tpu.dot_dimension_numbers<[2], [1], [1], [2], [0, 0, 0, 1, 1, 2], [0], [0]>} : vector<2x8x8xbf16>, vector<2x8x8xbf16>, vector<2x8x8xf32> -> vector<2x8x8xf32>
    "tpu.trace_stop"() : () -> ()
    %436 = vector.shape_cast %435 : vector<2x8x8xf32> to vector<16x8xf32>
    %437 = arith.truncf %436 : vector<16x8xf32> to vector<16x8xbf16>
    %c0_301 = arith.constant 0 : index
    %c3_302 = arith.constant 3 : index
    %c0_303 = arith.constant 0 : index
    %c0_304 = arith.constant 0 : index
    %438 = vector.load %arg10[%c0_301, %c3_302, %c0_303, %c0_304] : memref<1x4x8x32xbf16, #tpu.memory_space<vmem>>, vector<1x1x8x32xbf16>
    %439 = vector.shape_cast %438 : vector<1x1x8x32xbf16> to vector<8x32xbf16>
    %cst_305 = arith.constant dense<0.000000e+00> : vector<16x32xf32>
    %440 = tpu.matmul %437, %439, %cst_305 {dimension_numbers = #tpu.dot_dimension_numbers<[1], [0], [0], [1], [0, 0, 1, 1], [], []>} : vector<16x8xbf16>, vector<8x32xbf16>, vector<16x32xf32> -> vector<16x32xf32>
    %441 = arith.addf %394, %440 : vector<16x32xf32>
    %442 = arith.addf %226, %441 : vector<16x32xf32>
    %c0_306 = arith.constant 0 : index
    %c0_307 = arith.constant 0 : index
    %c0_308 = arith.constant 0 : index
    %443 = vector.load %arg11[%c0_306, %c0_307, %c0_308] : memref<1x1x32xf32, #tpu.memory_space<vmem>>, vector<1x1x32xf32>
    %444 = vector.shape_cast %443 : vector<1x1x32xf32> to vector<1x32xf32>
    %445 = vector.broadcast %444 : vector<1x32xf32> to vector<16x32xf32>
    %446 = arith.addf %442, %445 : vector<16x32xf32>
    %447 = vector.extract_strided_slice %6 {offsets = [4, 0], sizes = [1, 32], strides = [1, 1]} : vector<6x32xf32> to vector<1x32xf32>
    %448 = vector.extract_strided_slice %6 {offsets = [5, 0], sizes = [1, 32], strides = [1, 1]} : vector<6x32xf32> to vector<1x32xf32>
    %cst_309 = arith.constant dense<0.000000e+00> : vector<16xf32>
    %449 = vector.multi_reduction <add>, %446, %cst_309 [1] : vector<16x32xf32> to vector<16xf32>
    %450 = vector.shape_cast %449 : vector<16xf32> to vector<16x1xf32>
    %cst_310 = arith.constant 3.200000e+01 : f32
    %451 = vector.broadcast %cst_310 : f32 to vector<16x1xf32>
    %452 = arith.divf %450, %451 : vector<16x1xf32>
    %453 = vector.broadcast %452 : vector<16x1xf32> to vector<16x32xf32>
    %454 = arith.subf %446, %453 : vector<16x32xf32>
    %455 = arith.mulf %454, %454 : vector<16x32xf32>
    %cst_311 = arith.constant dense<0.000000e+00> : vector<16xf32>
    %456 = vector.multi_reduction <add>, %455, %cst_311 [1] : vector<16x32xf32> to vector<16xf32>
    %457 = vector.shape_cast %456 : vector<16xf32> to vector<16x1xf32>
    %cst_312 = arith.constant 3.200000e+01 : f32
    %458 = vector.broadcast %cst_312 : f32 to vector<16x1xf32>
    %459 = arith.divf %457, %458 : vector<16x1xf32>
    %460 = vector.broadcast %452 : vector<16x1xf32> to vector<16x32xf32>
    %461 = arith.subf %446, %460 : vector<16x32xf32>
    %cst_313 = arith.constant 9.99999974E-6 : f32
    %462 = vector.broadcast %cst_313 : f32 to vector<16x1xf32>
    %463 = arith.addf %459, %462 : vector<16x1xf32>
    %464 = math.rsqrt %463 : vector<16x1xf32>
    %465 = vector.broadcast %464 : vector<16x1xf32> to vector<16x32xf32>
    %466 = arith.mulf %461, %465 : vector<16x32xf32>
    %467 = vector.broadcast %447 : vector<1x32xf32> to vector<16x32xf32>
    %468 = arith.mulf %466, %467 : vector<16x32xf32>
    %469 = vector.broadcast %448 : vector<1x32xf32> to vector<16x32xf32>
    %470 = arith.addf %468, %469 : vector<16x32xf32>
    %471 = arith.truncf %470 : vector<16x32xf32> to vector<16x32xbf16>
    %c0_314 = arith.constant 0 : index
    %c0_315 = arith.constant 0 : index
    %c0_316 = arith.constant 0 : index
    %472 = vector.load %arg12[%c0_314, %c0_315, %c0_316] : memref<1x32x64xbf16, #tpu.memory_space<vmem>>, vector<1x32x64xbf16>
    %473 = vector.shape_cast %472 : vector<1x32x64xbf16> to vector<32x64xbf16>
    %cst_317 = arith.constant dense<0.000000e+00> : vector<16x64xf32>
    %474 = tpu.matmul %471, %473, %cst_317 {dimension_numbers = #tpu.dot_dimension_numbers<[1], [0], [0], [1], [0, 0, 1, 1], [], []>} : vector<16x32xbf16>, vector<32x64xbf16>, vector<16x64xf32> -> vector<16x64xf32>
    %c0_318 = arith.constant 0 : index
    %c0_319 = arith.constant 0 : index
    %c0_320 = arith.constant 0 : index
    %475 = vector.load %arg13[%c0_318, %c0_319, %c0_320] : memref<1x1x64xf32, #tpu.memory_space<vmem>>, vector<1x1x64xf32>
    %476 = vector.shape_cast %475 : vector<1x1x64xf32> to vector<1x64xf32>
    %477 = vector.broadcast %476 : vector<1x64xf32> to vector<16x64xf32>
    %478 = arith.addf %474, %477 : vector<16x64xf32>
    %cst_321 = arith.constant 0.000000e+00 : f32
    %479 = vector.broadcast %cst_321 : f32 to vector<16x64xf32>
    %480 = arith.maximumf %478, %479 : vector<16x64xf32>
    %481 = arith.truncf %480 : vector<16x64xf32> to vector<16x64xbf16>
    %c0_322 = arith.constant 0 : index
    %c0_323 = arith.constant 0 : index
    %c0_324 = arith.constant 0 : index
    %482 = vector.load %arg14[%c0_322, %c0_323, %c0_324] : memref<1x64x32xbf16, #tpu.memory_space<vmem>>, vector<1x64x32xbf16>
    %483 = vector.shape_cast %482 : vector<1x64x32xbf16> to vector<64x32xbf16>
    %cst_325 = arith.constant dense<0.000000e+00> : vector<16x32xf32>
    %484 = tpu.matmul %481, %483, %cst_325 {dimension_numbers = #tpu.dot_dimension_numbers<[1], [0], [0], [1], [0, 0, 1, 1], [], []>} : vector<16x64xbf16>, vector<64x32xbf16>, vector<16x32xf32> -> vector<16x32xf32>
    %485 = arith.addf %446, %484 : vector<16x32xf32>
    %c0_326 = arith.constant 0 : index
    %c0_327 = arith.constant 0 : index
    %c0_328 = arith.constant 0 : index
    %486 = vector.load %arg15[%c0_326, %c0_327, %c0_328] : memref<1x1x32xf32, #tpu.memory_space<vmem>>, vector<1x1x32xf32>
    %487 = vector.shape_cast %486 : vector<1x1x32xf32> to vector<1x32xf32>
    %488 = vector.broadcast %487 : vector<1x32xf32> to vector<16x32xf32>
    %489 = arith.addf %485, %488 : vector<16x32xf32>
    %c0_329 = arith.constant 0 : index
    %c0_330 = arith.constant 0 : index
    %490 = vector.load %arg18[%c0_329, %c0_330] : memref<16x32xf32, #tpu.memory_space<vmem>>, vector<16x32xf32>
    tpu.vector_store %arg18[%c0_329, %c0_330], %489 {strides = array<i32>} : memref<16x32xf32, #tpu.memory_space<vmem>>, vector<16x32xf32>,
    %c1_i32 = arith.constant 1 : i32
    %491 = arith.cmpi eq, %arg0, %c1_i32 : i32
    %492 = arith.extui %491 : i1 to i32
    %c0_i32_331 = arith.constant 0 : i32
    %493 = arith.cmpi ne, %492, %c0_i32_331 : i32
    scf.if %493 {
      %c0_332 = arith.constant 0 : index
      %c0_333 = arith.constant 0 : index
      %494 = vector.load %arg16[%c0_332, %c0_333] : memref<2x32xf32, #tpu.memory_space<vmem>>, vector<2x32xf32>
      %495 = vector.extract_strided_slice %494 {offsets = [0, 0], sizes = [1, 32], strides = [1, 1]} : vector<2x32xf32> to vector<1x32xf32>
      %496 = vector.extract_strided_slice %494 {offsets = [1, 0], sizes = [1, 32], strides = [1, 1]} : vector<2x32xf32> to vector<1x32xf32>
      %cst_334 = arith.constant dense<0.000000e+00> : vector<16xf32>
      %497 = vector.multi_reduction <add>, %489, %cst_334 [1] : vector<16x32xf32> to vector<16xf32>
      %498 = vector.shape_cast %497 : vector<16xf32> to vector<16x1xf32>
      %cst_335 = arith.constant 3.200000e+01 : f32
      %499 = vector.broadcast %cst_335 : f32 to vector<16x1xf32>
      %500 = arith.divf %498, %499 : vector<16x1xf32>
      %501 = vector.broadcast %500 : vector<16x1xf32> to vector<16x32xf32>
      %502 = arith.subf %489, %501 : vector<16x32xf32>
      %503 = arith.mulf %502, %502 : vector<16x32xf32>
      %cst_336 = arith.constant dense<0.000000e+00> : vector<16xf32>
      %504 = vector.multi_reduction <add>, %503, %cst_336 [1] : vector<16x32xf32> to vector<16xf32>
      %505 = vector.shape_cast %504 : vector<16xf32> to vector<16x1xf32>
      %cst_337 = arith.constant 3.200000e+01 : f32
      %506 = vector.broadcast %cst_337 : f32 to vector<16x1xf32>
      %507 = arith.divf %505, %506 : vector<16x1xf32>
      %508 = vector.broadcast %500 : vector<16x1xf32> to vector<16x32xf32>
      %509 = arith.subf %489, %508 : vector<16x32xf32>
      %cst_338 = arith.constant 9.99999974E-6 : f32
      %510 = vector.broadcast %cst_338 : f32 to vector<16x1xf32>
      %511 = arith.addf %507, %510 : vector<16x1xf32>
      %512 = math.rsqrt %511 : vector<16x1xf32>
      %513 = vector.broadcast %512 : vector<16x1xf32> to vector<16x32xf32>
      %514 = arith.mulf %509, %513 : vector<16x32xf32>
      %515 = vector.broadcast %495 : vector<1x32xf32> to vector<16x32xf32>
      %516 = arith.mulf %514, %515 : vector<16x32xf32>
      %517 = vector.broadcast %496 : vector<1x32xf32> to vector<16x32xf32>
      %518 = arith.addf %516, %517 : vector<16x32xf32>
      %c0_339 = arith.constant 0 : index
      %c0_340 = arith.constant 0 : index
      %519 = vector.load %arg17[%c0_339, %c0_340] : memref<16x32xf32, #tpu.memory_space<vmem>>, vector<16x32xf32>
      tpu.vector_store %arg17[%c0_339, %c0_340], %518 {strides = array<i32>} : memref<16x32xf32, #tpu.memory_space<vmem>>, vector<16x32xf32>,
    } else {
    }
    return
  }
  func.func @transform_0(%arg0: i32) -> (i32, i32) {
    %c0_i32 = arith.constant 0 : i32
    %c0_i32_0 = arith.constant 0 : i32
    %c0_i32_1 = arith.constant 0 : i32
    return %c0_i32, %c0_i32_0 : i32, i32
  }
  func.func @transform_1(%arg0: i32) -> (i32, i32) {
    %c0_i32 = arith.constant 0 : i32
    %c0_i32_0 = arith.constant 0 : i32
    %c0_i32_1 = arith.constant 0 : i32
    return %c0_i32, %c0_i32_0 : i32, i32
  }
  func.func @transform_2(%arg0: i32) -> (i32, i32, i32) {
    %c0_i32 = arith.constant 0 : i32
    %c0_i32_0 = arith.constant 0 : i32
    %c0_i32_1 = arith.constant 0 : i32
    return %arg0, %c0_i32, %c0_i32_0 : i32, i32, i32
  }
  func.func @transform_3(%arg0: i32) -> (i32, i32, i32, i32) {
    %c0_i32 = arith.constant 0 : i32
    %c0_i32_0 = arith.constant 0 : i32
    %c0_i32_1 = arith.constant 0 : i32
    %c0_i32_2 = arith.constant 0 : i32
    return %arg0, %c0_i32, %c0_i32_0, %c0_i32_1 : i32, i32, i32, i32
  }
  func.func @transform_4(%arg0: i32) -> (i32, i32, i32, i32) {
    %c0_i32 = arith.constant 0 : i32
    %c0_i32_0 = arith.constant 0 : i32
    %c0_i32_1 = arith.constant 0 : i32
    %c0_i32_2 = arith.constant 0 : i32
    return %arg0, %c0_i32, %c0_i32_0, %c0_i32_1 : i32, i32, i32, i32
  }
  func.func @transform_5(%arg0: i32) -> (i32, i32, i32, i32) {
    %c0_i32 = arith.constant 0 : i32
    %c0_i32_0 = arith.constant 0 : i32
    %c0_i32_1 = arith.constant 0 : i32
    %c0_i32_2 = arith.constant 0 : i32
    return %arg0, %c0_i32, %c0_i32_0, %c0_i32_1 : i32, i32, i32, i32
  }
  func.func @transform_6(%arg0: i32) -> (i32, i32, i32) {
    %c0_i32 = arith.constant 0 : i32
    %c0_i32_0 = arith.constant 0 : i32
    %c0_i32_1 = arith.constant 0 : i32
    return %arg0, %c0_i32, %c0_i32_0 : i32, i32, i32
  }
  func.func @transform_7(%arg0: i32) -> (i32, i32, i32, i32) {
    %c0_i32 = arith.constant 0 : i32
    %c0_i32_0 = arith.constant 0 : i32
    %c0_i32_1 = arith.constant 0 : i32
    %c0_i32_2 = arith.constant 0 : i32
    return %arg0, %c0_i32, %c0_i32_0, %c0_i32_1 : i32, i32, i32, i32
  }
  func.func @transform_8(%arg0: i32) -> (i32, i32, i32, i32) {
    %c0_i32 = arith.constant 0 : i32
    %c0_i32_0 = arith.constant 0 : i32
    %c0_i32_1 = arith.constant 0 : i32
    %c0_i32_2 = arith.constant 0 : i32
    return %arg0, %c0_i32, %c0_i32_0, %c0_i32_1 : i32, i32, i32, i32
  }
  func.func @transform_9(%arg0: i32) -> (i32, i32, i32, i32) {
    %c0_i32 = arith.constant 0 : i32
    %c0_i32_0 = arith.constant 0 : i32
    %c0_i32_1 = arith.constant 0 : i32
    %c0_i32_2 = arith.constant 0 : i32
    return %arg0, %c0_i32, %c0_i32_0, %c0_i32_1 : i32, i32, i32, i32
  }
  func.func @transform_10(%arg0: i32) -> (i32, i32, i32) {
    %c0_i32 = arith.constant 0 : i32
    %c0_i32_0 = arith.constant 0 : i32
    %c0_i32_1 = arith.constant 0 : i32
    return %arg0, %c0_i32, %c0_i32_0 : i32, i32, i32
  }
  func.func @transform_11(%arg0: i32) -> (i32, i32, i32) {
    %c0_i32 = arith.constant 0 : i32
    %c0_i32_0 = arith.constant 0 : i32
    %c0_i32_1 = arith.constant 0 : i32
    return %arg0, %c0_i32, %c0_i32_0 : i32, i32, i32
  }
  func.func @transform_12(%arg0: i32) -> (i32, i32, i32) {
    %c0_i32 = arith.constant 0 : i32
    %c0_i32_0 = arith.constant 0 : i32
    %c0_i32_1 = arith.constant 0 : i32
    return %arg0, %c0_i32, %c0_i32_0 : i32, i32, i32
  }
  func.func @transform_13(%arg0: i32) -> (i32, i32, i32) {
    %c0_i32 = arith.constant 0 : i32
    %c0_i32_0 = arith.constant 0 : i32
    %c0_i32_1 = arith.constant 0 : i32
    return %arg0, %c0_i32, %c0_i32_0 : i32, i32, i32
  }
  func.func @transform_14(%arg0: i32) -> (i32, i32, i32) {
    %c0_i32 = arith.constant 0 : i32
    %c0_i32_0 = arith.constant 0 : i32
    %c0_i32_1 = arith.constant 0 : i32
    return %arg0, %c0_i32, %c0_i32_0 : i32, i32, i32
  }
  func.func @transform_15(%arg0: i32) -> (i32, i32) {
    %c0_i32 = arith.constant 0 : i32
    %c0_i32_0 = arith.constant 0 : i32
    %c0_i32_1 = arith.constant 0 : i32
    return %c0_i32, %c0_i32_0 : i32, i32
  }
  func.func @transform_16(%arg0: i32) -> (i32, i32) {
    %c0_i32 = arith.constant 0 : i32
    %c0_i32_0 = arith.constant 0 : i32
    %c0_i32_1 = arith.constant 0 : i32
    return %c0_i32, %c0_i32_0 : i32, i32
  }
}

module attributes {stable_mosaic.version = 11 : i64} {
  func.func @_cnn_kernel(%arg0: i32, %arg1: memref<1x256x1xf32, #tpu.memory_space<vmem>>, %arg2: memref<3x32xbf16, #tpu.memory_space<vmem>>, %arg3: memref<1x32xf32, #tpu.memory_space<vmem>>, %arg4: memref<96x64xbf16, #tpu.memory_space<vmem>>, %arg5: memref<1x64xf32, #tpu.memory_space<vmem>>, %arg6: memref<1x96x64xf32, #tpu.memory_space<vmem>>) attributes {dimension_semantics = [#tpu.dimension_semantics<parallel>], iteration_bounds = array<i64: 2>, scalar_prefetch = 0 : i64, scratch_operands = 0 : i64, tpu.core_type = #tpu.core_type<tc>, window_params = [{transform_indices = @transform_0, window_bounds = array<i64: 1, 256, 1>}, {pipeline_mode = #tpu.pipeline_mode<synchronous>, transform_indices = @transform_1, window_bounds = array<i64: 3, 32>}, {pipeline_mode = #tpu.pipeline_mode<synchronous>, transform_indices = @transform_2, window_bounds = array<i64: 1, 32>}, {pipeline_mode = #tpu.pipeline_mode<synchronous>, transform_indices = @transform_3, window_bounds = array<i64: 96, 64>}, {pipeline_mode = #tpu.pipeline_mode<synchronous>, transform_indices = @transform_4, window_bounds = array<i64: 1, 64>}, {transform_indices = @transform_5, window_bounds = array<i64: 1, 96, 64>}]} {
    %c0 = arith.constant 0 : index
    %c0_0 = arith.constant 0 : index
    %c0_1 = arith.constant 0 : index
    %0 = vector.load %arg1[%c0, %c0_0, %c0_1] : memref<1x256x1xf32, #tpu.memory_space<vmem>>, vector<1x256x1xf32>
    %1 = vector.shape_cast %0 : vector<1x256x1xf32> to vector<256x1xf32>
    %cst = arith.constant 0.000000e+00 : f32
    %2 = vector.broadcast %cst : f32 to vector<32x1xf32>
    %3 = vector.extract_strided_slice %1 {offsets = [0, 0], sizes = [224, 1], strides = [1, 1]} : vector<256x1xf32> to vector<224x1xf32>
    %4 = tpu.concatenate %2, %3 in 0 : vector<32x1xf32>, vector<224x1xf32> -> vector<256x1xf32>
    %5 = vector.extract_strided_slice %1 {offsets = [32, 0], sizes = [224, 1], strides = [1, 1]} : vector<256x1xf32> to vector<224x1xf32>
    %6 = tpu.concatenate %5, %2 in 0 : vector<224x1xf32>, vector<32x1xf32> -> vector<256x1xf32>
    %7 = tpu.concatenate %4, %1, %6 in 1 : vector<256x1xf32>, vector<256x1xf32>, vector<256x1xf32> -> vector<256x3xf32>
    %8 = arith.truncf %7 : vector<256x3xf32> to vector<256x3xbf16>
    %c0_2 = arith.constant 0 : index
    %c0_3 = arith.constant 0 : index
    %9 = vector.load %arg2[%c0_2, %c0_3] : memref<3x32xbf16, #tpu.memory_space<vmem>>, vector<3x32xbf16>
    %cst_4 = arith.constant dense<0.000000e+00> : vector<256x32xf32>
    %10 = tpu.matmul %8, %9, %cst_4 {dimension_numbers = #tpu.dot_dimension_numbers<[1], [0], [0], [1], [0, 0, 1, 1], [], []>} : vector<256x3xbf16>, vector<3x32xbf16>, vector<256x32xf32> -> vector<256x32xf32>
    %c0_5 = arith.constant 0 : index
    %c0_6 = arith.constant 0 : index
    %11 = vector.load %arg3[%c0_5, %c0_6] : memref<1x32xf32, #tpu.memory_space<vmem>>, vector<1x32xf32>
    %12 = vector.broadcast %11 : vector<1x32xf32> to vector<256x32xf32>
    %13 = arith.addf %10, %12 : vector<256x32xf32>
    %14 = vector.extract_strided_slice %13 {offsets = [0, 0], sizes = [32, 32], strides = [1, 1]} : vector<256x32xf32> to vector<32x32xf32>
    %15 = vector.extract_strided_slice %13 {offsets = [32, 0], sizes = [192, 32], strides = [1, 1]} : vector<256x32xf32> to vector<192x32xf32>
    %16 = vector.shape_cast %15 : vector<192x32xf32> to vector<3x64x32xf32>
    %17 = vector.extract_strided_slice %16 {offsets = [0, 0, 0], sizes = [3, 32, 32], strides = [1, 1, 1]} : vector<3x64x32xf32> to vector<3x32x32xf32>
    %18 = vector.extract_strided_slice %16 {offsets = [0, 32, 0], sizes = [3, 32, 32], strides = [1, 1, 1]} : vector<3x64x32xf32> to vector<3x32x32xf32>
    %19 = arith.maximumf %17, %18 : vector<3x32x32xf32>
    %20 = vector.shape_cast %19 : vector<3x32x32xf32> to vector<96x32xf32>
    %21 = vector.extract_strided_slice %13 {offsets = [224, 0], sizes = [32, 32], strides = [1, 1]} : vector<256x32xf32> to vector<32x32xf32>
    %22 = tpu.concatenate %14, %20, %21 in 0 : vector<32x32xf32>, vector<96x32xf32>, vector<32x32xf32> -> vector<160x32xf32>
    %cst_7 = arith.constant 0.000000e+00 : f32
    %23 = vector.broadcast %cst_7 : f32 to vector<160x32xf32>
    %24 = arith.maximumf %22, %23 : vector<160x32xf32>
    %cst_8 = arith.constant 0.000000e+00 : f32
    %25 = vector.broadcast %cst_8 : f32 to vector<32x32xf32>
    %26 = vector.extract_strided_slice %24 {offsets = [0, 0], sizes = [128, 32], strides = [1, 1]} : vector<160x32xf32> to vector<128x32xf32>
    %27 = tpu.concatenate %25, %26 in 0 : vector<32x32xf32>, vector<128x32xf32> -> vector<160x32xf32>
    %28 = vector.extract_strided_slice %24 {offsets = [32, 0], sizes = [128, 32], strides = [1, 1]} : vector<160x32xf32> to vector<128x32xf32>
    %29 = tpu.concatenate %28, %25 in 0 : vector<128x32xf32>, vector<32x32xf32> -> vector<160x32xf32>
    %30 = tpu.concatenate %27, %24, %29 in 1 : vector<160x32xf32>, vector<160x32xf32>, vector<160x32xf32> -> vector<160x96xf32>
    %31 = arith.truncf %30 : vector<160x96xf32> to vector<160x96xbf16>
    %c0_9 = arith.constant 0 : index
    %c0_10 = arith.constant 0 : index
    %32 = vector.load %arg4[%c0_9, %c0_10] : memref<96x64xbf16, #tpu.memory_space<vmem>>, vector<96x64xbf16>
    %cst_11 = arith.constant dense<0.000000e+00> : vector<160x64xf32>
    %33 = tpu.matmul %31, %32, %cst_11 {dimension_numbers = #tpu.dot_dimension_numbers<[1], [0], [0], [1], [0, 0, 1, 1], [], []>} : vector<160x96xbf16>, vector<96x64xbf16>, vector<160x64xf32> -> vector<160x64xf32>
    %c0_12 = arith.constant 0 : index
    %c0_13 = arith.constant 0 : index
    %34 = vector.load %arg5[%c0_12, %c0_13] : memref<1x64xf32, #tpu.memory_space<vmem>>, vector<1x64xf32>
    %35 = vector.broadcast %34 : vector<1x64xf32> to vector<160x64xf32>
    %36 = arith.addf %33, %35 : vector<160x64xf32>
    %37 = vector.extract_strided_slice %36 {offsets = [0, 0], sizes = [32, 64], strides = [1, 1]} : vector<160x64xf32> to vector<32x64xf32>
    %38 = vector.extract_strided_slice %36 {offsets = [32, 0], sizes = [128, 64], strides = [1, 1]} : vector<160x64xf32> to vector<128x64xf32>
    %39 = vector.shape_cast %38 : vector<128x64xf32> to vector<2x64x64xf32>
    %40 = vector.extract_strided_slice %39 {offsets = [0, 0, 0], sizes = [2, 32, 64], strides = [1, 1, 1]} : vector<2x64x64xf32> to vector<2x32x64xf32>
    %41 = vector.extract_strided_slice %39 {offsets = [0, 32, 0], sizes = [2, 32, 64], strides = [1, 1, 1]} : vector<2x64x64xf32> to vector<2x32x64xf32>
    %42 = arith.maximumf %40, %41 : vector<2x32x64xf32>
    %43 = vector.shape_cast %42 : vector<2x32x64xf32> to vector<64x64xf32>
    %44 = tpu.concatenate %37, %43 in 0 : vector<32x64xf32>, vector<64x64xf32> -> vector<96x64xf32>
    %cst_14 = arith.constant 0.000000e+00 : f32
    %45 = vector.broadcast %cst_14 : f32 to vector<96x64xf32>
    %46 = arith.maximumf %44, %45 : vector<96x64xf32>
    %c0_15 = arith.constant 0 : index
    %c0_16 = arith.constant 0 : index
    %c0_17 = arith.constant 0 : index
    %47 = vector.load %arg6[%c0_15, %c0_16, %c0_17] : memref<1x96x64xf32, #tpu.memory_space<vmem>>, vector<1x96x64xf32>
    %48 = vector.shape_cast %47 : vector<1x96x64xf32> to vector<96x64xf32>
    %49 = vector.shape_cast %46 : vector<96x64xf32> to vector<1x96x64xf32>
    tpu.vector_store %arg6[%c0_15, %c0_16, %c0_17], %49 {strides = array<i32>} : memref<1x96x64xf32, #tpu.memory_space<vmem>>, vector<1x96x64xf32>,
    return
  }
  func.func @transform_0(%arg0: i32) -> (i32, i32, i32) {
    %c0_i32 = arith.constant 0 : i32
    %c0_i32_0 = arith.constant 0 : i32
    %c0_i32_1 = arith.constant 0 : i32
    return %arg0, %c0_i32, %c0_i32_0 : i32, i32, i32
  }
  func.func @transform_1(%arg0: i32) -> (i32, i32) {
    %c0_i32 = arith.constant 0 : i32
    %c0_i32_0 = arith.constant 0 : i32
    %c0_i32_1 = arith.constant 0 : i32
    return %c0_i32, %c0_i32_0 : i32, i32
  }
  func.func @transform_2(%arg0: i32) -> (i32, i32) {
    %c0_i32 = arith.constant 0 : i32
    %c0_i32_0 = arith.constant 0 : i32
    %c0_i32_1 = arith.constant 0 : i32
    return %c0_i32, %c0_i32_0 : i32, i32
  }
  func.func @transform_3(%arg0: i32) -> (i32, i32) {
    %c0_i32 = arith.constant 0 : i32
    %c0_i32_0 = arith.constant 0 : i32
    %c0_i32_1 = arith.constant 0 : i32
    return %c0_i32, %c0_i32_0 : i32, i32
  }
  func.func @transform_4(%arg0: i32) -> (i32, i32) {
    %c0_i32 = arith.constant 0 : i32
    %c0_i32_0 = arith.constant 0 : i32
    %c0_i32_1 = arith.constant 0 : i32
    return %c0_i32, %c0_i32_0 : i32, i32
  }
  func.func @transform_5(%arg0: i32) -> (i32, i32, i32) {
    %c0_i32 = arith.constant 0 : i32
    %c0_i32_0 = arith.constant 0 : i32
    %c0_i32_1 = arith.constant 0 : i32
    return %arg0, %c0_i32, %c0_i32_0 : i32, i32, i32
  }
}

module attributes {stable_mosaic.version = 11 : i64} {
  func.func @_head_kernel(%arg0: i32, %arg1: memref<1x1x6144xf32, #tpu.memory_space<vmem>>, %arg2: memref<6144x64xbf16, #tpu.memory_space<vmem>>, %arg3: memref<1x64xf32, #tpu.memory_space<vmem>>, %arg4: memref<64x1xbf16, #tpu.memory_space<vmem>>, %arg5: memref<1x1xf32, #tpu.memory_space<vmem>>, %arg6: memref<1x1x1xf32, #tpu.memory_space<vmem>>) attributes {dimension_semantics = [#tpu.dimension_semantics<parallel>], iteration_bounds = array<i64: 2>, scalar_prefetch = 0 : i64, scratch_operands = 0 : i64, tpu.core_type = #tpu.core_type<tc>, window_params = [{transform_indices = @transform_0, window_bounds = array<i64: 1, 1, 6144>}, {pipeline_mode = #tpu.pipeline_mode<synchronous>, transform_indices = @transform_1, window_bounds = array<i64: 6144, 64>}, {pipeline_mode = #tpu.pipeline_mode<synchronous>, transform_indices = @transform_2, window_bounds = array<i64: 1, 64>}, {pipeline_mode = #tpu.pipeline_mode<synchronous>, transform_indices = @transform_3, window_bounds = array<i64: 64, 1>}, {pipeline_mode = #tpu.pipeline_mode<synchronous>, transform_indices = @transform_4, window_bounds = array<i64: 1, 1>}, {transform_indices = @transform_5, window_bounds = array<i64: 1, 1, 1>}]} {
    %c0 = arith.constant 0 : index
    %c0_0 = arith.constant 0 : index
    %c0_1 = arith.constant 0 : index
    %0 = vector.load %arg1[%c0, %c0_0, %c0_1] : memref<1x1x6144xf32, #tpu.memory_space<vmem>>, vector<1x1x6144xf32>
    %1 = vector.shape_cast %0 : vector<1x1x6144xf32> to vector<1x6144xf32>
    %2 = arith.truncf %1 : vector<1x6144xf32> to vector<1x6144xbf16>
    %c0_2 = arith.constant 0 : index
    %c0_3 = arith.constant 0 : index
    %3 = vector.load %arg2[%c0_2, %c0_3] : memref<6144x64xbf16, #tpu.memory_space<vmem>>, vector<6144x64xbf16>
    %cst = arith.constant dense<0.000000e+00> : vector<1x64xf32>
    %4 = tpu.matmul %2, %3, %cst {dimension_numbers = #tpu.dot_dimension_numbers<[1], [0], [0], [1], [0, 0, 1, 1], [], []>} : vector<1x6144xbf16>, vector<6144x64xbf16>, vector<1x64xf32> -> vector<1x64xf32>
    %c0_4 = arith.constant 0 : index
    %c0_5 = arith.constant 0 : index
    %5 = vector.load %arg3[%c0_4, %c0_5] : memref<1x64xf32, #tpu.memory_space<vmem>>, vector<1x64xf32>
    %6 = arith.addf %4, %5 : vector<1x64xf32>
    %cst_6 = arith.constant 0.000000e+00 : f32
    %7 = vector.broadcast %cst_6 : f32 to vector<1x64xf32>
    %8 = arith.maximumf %6, %7 : vector<1x64xf32>
    %9 = arith.truncf %8 : vector<1x64xf32> to vector<1x64xbf16>
    %c0_7 = arith.constant 0 : index
    %c0_8 = arith.constant 0 : index
    %10 = vector.load %arg4[%c0_7, %c0_8] : memref<64x1xbf16, #tpu.memory_space<vmem>>, vector<64x1xbf16>
    %cst_9 = arith.constant dense<0.000000e+00> : vector<1x1xf32>
    %11 = tpu.matmul %9, %10, %cst_9 {dimension_numbers = #tpu.dot_dimension_numbers<[1], [0], [0], [1], [0, 0, 1, 1], [], []>} : vector<1x64xbf16>, vector<64x1xbf16>, vector<1x1xf32> -> vector<1x1xf32>
    %c0_10 = arith.constant 0 : index
    %c0_11 = arith.constant 0 : index
    %12 = vector.load %arg5[%c0_10, %c0_11] : memref<1x1xf32, #tpu.memory_space<vmem>>, vector<1x1xf32>
    %13 = arith.addf %11, %12 : vector<1x1xf32>
    %c0_12 = arith.constant 0 : index
    %c0_13 = arith.constant 0 : index
    %c0_14 = arith.constant 0 : index
    %14 = vector.load %arg6[%c0_12, %c0_13, %c0_14] : memref<1x1x1xf32, #tpu.memory_space<vmem>>, vector<1x1x1xf32>
    %15 = vector.shape_cast %14 : vector<1x1x1xf32> to vector<1x1xf32>
    %16 = vector.shape_cast %13 : vector<1x1xf32> to vector<1x1x1xf32>
    tpu.vector_store %arg6[%c0_12, %c0_13, %c0_14], %16 {strides = array<i32>} : memref<1x1x1xf32, #tpu.memory_space<vmem>>, vector<1x1x1xf32>,
    return
  }
  func.func @transform_0(%arg0: i32) -> (i32, i32, i32) {
    %c0_i32 = arith.constant 0 : i32
    %c0_i32_0 = arith.constant 0 : i32
    %c0_i32_1 = arith.constant 0 : i32
    return %arg0, %c0_i32, %c0_i32_0 : i32, i32, i32
  }
  func.func @transform_1(%arg0: i32) -> (i32, i32) {
    %c0_i32 = arith.constant 0 : i32
    %c0_i32_0 = arith.constant 0 : i32
    %c0_i32_1 = arith.constant 0 : i32
    return %c0_i32, %c0_i32_0 : i32, i32
  }
  func.func @transform_2(%arg0: i32) -> (i32, i32) {
    %c0_i32 = arith.constant 0 : i32
    %c0_i32_0 = arith.constant 0 : i32
    %c0_i32_1 = arith.constant 0 : i32
    return %c0_i32, %c0_i32_0 : i32, i32
  }
  func.func @transform_3(%arg0: i32) -> (i32, i32) {
    %c0_i32 = arith.constant 0 : i32
    %c0_i32_0 = arith.constant 0 : i32
    %c0_i32_1 = arith.constant 0 : i32
    return %c0_i32, %c0_i32_0 : i32, i32
  }
  func.func @transform_4(%arg0: i32) -> (i32, i32) {
    %c0_i32 = arith.constant 0 : i32
    %c0_i32_0 = arith.constant 0 : i32
    %c0_i32_1 = arith.constant 0 : i32
    return %c0_i32, %c0_i32_0 : i32, i32
  }
  func.func @transform_5(%arg0: i32) -> (i32, i32, i32) {
    %c0_i32 = arith.constant 0 : i32
    %c0_i32_0 = arith.constant 0 : i32
    %c0_i32_1 = arith.constant 0 : i32
    return %arg0, %c0_i32, %c0_i32_0 : i32, i32, i32
  }
}

</mosaic_0001>

<bundles_post_ra>
// kernel: transformer_forward.6
= control target key start
LH: loop header
LB: loop body
LE: loop exit
PB: predicated region body
PF: predicated region fallthrough
CT: control target
= control target key end

     0   :  { %s1731_s18 = smov 0   ;;  %s2265_s0 = inlined_call_operand.vmem [shape: f32[2,256,1], index: 0, kind: input, shape index: {}]   ;;  %s2266_s1 = inlined_call_operand.vmem [shape: bf16[3,32], index: 1, kind: input, shape index: {}]   ;;  %s2267_s2 = inlined_call_operand.vmem [shape: f32[1,32], index: 2, kind: input, shape index: {}]   ;;  %s2268_s3 = inlined_call_operand.vmem [shape: bf16[96,64], index: 3, kind: input, shape index: {}]   ;;  %s2269_s4 = inlined_call_operand.vmem [shape: f32[1,64], index: 4, kind: input, shape index: {}]   ;;  %s2270_s5 = inlined_call_operand.vmem [shape: f32[2,96,64], index: 5, kind: output, shape index: {}]  }
   0x1 LB: > { %s1282_s19 = sadd.s32 4294967295, %s1693_s18   ;;  %p1286_p0 = scmp.ge.s32.totalorder %s1693_s18, 1  ;;  %s1693_s18 = sphi %s1731_s18, %s15_s18  }
   0x2   : > { %p187_p1 = scmp.lt.s32.totalorder %s1693_s18, 3 }
   0x4   : > { %p188_p2 = pnand %p1286_p0, %p187_p1 }
   0x5   : > { %p215_p3 = scmp.lt.s32.totalorder (!%p188_p2), %s1282_s19, 1  ;;  %vm613_vm0 = vcmask (!%p188_p2), 1040384   ;;  %v556_v0 = vld [vmem:[%s2266_s1] sm:$0x3] (!%p188_p2)  ;;  %vm614_vm1 = vcmask (!%p188_p2), 1041408   ;;  %v1695_v1 = vmov (!%p188_p2), 65535  }
   0x6   : > { %191 = sbr.rel (%p188_p2) target bundleno = 775 (0x307), region = 40  ;;  %v615_v2 = vsel (!%p188_p2), %vm613_vm0, 4294967295, %v1695_v1  ;;  %s1696_s26 = smov (!%p188_p2), 2   ;;  %v1698_v53 = vmov (!%p188_p2), 0.0   ;;  %vm474_vm2 = vcmask (!%p188_p2), 7168   ;;  %vm507_vm3 = vcmask (!%p188_p2), 15360  }
   0x7   : > { %v616_v3 = vsel (!%p188_p2), %vm614_vm1, %v615_v2, 0  ;;  %s1697_s27 = smov (!%p188_p2), 1   ;;  %vm564_vm4 = vcmask (!%p188_p2), 23552   ;;  %s1699_s15 = smov (!%p188_p2), 32   ;;  %vm944_vm5 = vcmask (!%p188_p2), 261120   ;;  %vm965_vm6 = vcmask (!%p188_p2), 523264  }
   0x8   : > { %v618_v4 = vand.u32 (!%p188_p2), %v616_v3, %v556_v0  ;;  %s1700_s20 = smov (!%p188_p2), 64   ;;  %vm1051_vm7 = vcmask (!%p188_p2), 785408  }
   0xa   : > { %1360 = vmatprep.subr.bf16.mxu0 (!%p188_p2), %v618_v4 }
   0xb   : > { %1361 = vmatpush3.bf16.msra.mxu0 (!%p188_p2), %v618_v4 }
   0xd   : > { %s2272_s19 = smov (!%p215_p3, %s1282_s19), 1 }
   0xe   : > { %s1326_s22 = sshll.u32 %s2272_s19, 8  ;;  %s1426_s21 = smul.u32 96, %s2272_s19 }
   0xf   : > { %s1748_s25 = scalar_lea.vmem %s2265_s0, %s1326_s22 }
  0x10   : > { %v1751_v5 = vld [vmem:[%s1748_s25 + $0x20] sm:$0xff]  ;;  %v1754_v6 = vld [vmem:[%s1748_s25 + $0x28] sm:$0xff]  ;;  %v1765_v10 = vld [vmem:[%s1748_s25 + $0x30] sm:$0xff] }
  0x11   : > { %v1757_v7 = vld [vmem:[%s1748_s25] sm:$0xff]  ;;  %v1451_v8 = vpack.i.bf16 %v1754_v6, %v1751_v5  ;;  %v1762_v9 = vld [vmem:[%s1748_s25 + $0x8] sm:$0xff]  ;;  %v1768_v11 = vld [vmem:[%s1748_s25 + $0x38] sm:$0xff] }
  0x12   : > { %v1441_v12 = vpack.i.bf16 %v1762_v9, %v1757_v7  ;;  %v1773_v13 = vld [vmem:[%s1748_s25 + $0x10] sm:$0xff]  ;;  %v1776_v14 = vld [vmem:[%s1748_s25 + $0x18] sm:$0xff]  ;;  %v1456_v15 = vpack.i.bf16 %v1768_v11, %v1765_v10  ;;  %v1793_v19 = vld [vmem:[%s1748_s25 + $0x40] sm:$0xff] }
  0x13   : > { %1452 = vrot.lane.b32.xlu1 %v1451_v8, %s1696_s26  ;;  %v1446_v16 = vpack.i.bf16 %v1776_v14, %v1773_v13  ;;  %v1787_v17 = vld [vmem:[%s1748_s25 + $0x50] sm:$0xff]  ;;  %v1790_v18 = vld [vmem:[%s1748_s25 + $0x58] sm:$0xff]  ;;  %v1796_v20 = vld [vmem:[%s1748_s25 + $0x48] sm:$0xff] }
  0x14   : > { %1442 = vrot.lane.b32.xlu0 %v1441_v12, %s1697_s27  ;;  %v1476_v21 = vpack.i.bf16 %v1790_v18, %v1787_v17  ;;  %v1471_v22 = vpack.i.bf16 %v1796_v20, %v1793_v19  ;;  %v1807_v23 = vld [vmem:[%s1748_s25 + $0x70] sm:$0xff]  ;;  %v1810_v24 = vld [vmem:[%s1748_s25 + $0x78] sm:$0xff]  ;;  %v1813_v25 = vld [vmem:[%s1748_s25 + $0x60] sm:$0xff] }
  0x15   : > { %v1816_v26 = vld [vmem:[%s1748_s25 + $0x68] sm:$0xff]  ;;  %v1496_v27 = vpack.i.bf16 %v1810_v24, %v1807_v23  ;;  %v1827_v29 = vld [vmem:[%s1748_s25 + $0x90] sm:$0xff]  ;;  %v1830_v30 = vld [vmem:[%s1748_s25 + $0x98] sm:$0xff] }
  0x16   : > { %v1491_v28 = vpack.i.bf16 %v1816_v26, %v1813_v25  ;;  %v1833_v31 = vld [vmem:[%s1748_s25 + $0x80] sm:$0xff]  ;;  %v1836_v32 = vld [vmem:[%s1748_s25 + $0x88] sm:$0xff]  ;;  %v1516_v33 = vpack.i.bf16 %v1830_v30, %v1827_v29  ;;  %v1847_v35 = vld [vmem:[%s1748_s25 + $0xb0] sm:$0xff] }
  0x17   : > { %1457 = vrot.lane.b32.xlu1 %v1456_v15, %s1696_s26  ;;  %v1511_v34 = vpack.i.bf16 %v1836_v32, %v1833_v31  ;;  %v1850_v36 = vld [vmem:[%s1748_s25 + $0xb8] sm:$0xff]  ;;  %v1853_v37 = vld [vmem:[%s1748_s25 + $0xa0] sm:$0xff]  ;;  %v1856_v38 = vld [vmem:[%s1748_s25 + $0xa8] sm:$0xff] }
  0x18   : > { %1447 = vrot.lane.b32.xlu0 %v1446_v16, %s1697_s27  ;;  %v1536_v39 = vpack.i.bf16 %v1850_v36, %v1847_v35  ;;  %v1531_v40 = vpack.i.bf16 %v1856_v38, %v1853_v37  ;;  %v1867_v41 = vld [vmem:[%s1748_s25 + $0xd0] sm:$0xff]  ;;  %v1870_v42 = vld [vmem:[%s1748_s25 + $0xd8] sm:$0xff]  ;;  %v1873_v43 = vld [vmem:[%s1748_s25 + $0xc0] sm:$0xff] }
  0x19   : > { %v1876_v44 = vld [vmem:[%s1748_s25 + $0xc8] sm:$0xff]  ;;  %v1556_v45 = vpack.i.bf16 %v1870_v42, %v1867_v41  ;;  %v256_v47 = vld [vmem:[%s1748_s25 + $0xf0] sm:$0xff]  ;;  %v257_v48 = vld [vmem:[%s1748_s25 + $0xf8] sm:$0xff] }
  0x1a   : > { %v1551_v46 = vpack.i.bf16 %v1876_v44, %v1873_v43  ;;  %v254_v49 = vld [vmem:[%s1748_s25 + $0xe0] sm:$0xff]  ;;  %v255_v50 = vld [vmem:[%s1748_s25 + $0xe8] sm:$0xff]  ;;  %v1576_v51 = vpack.i.bf16 %v257_v48, %v256_v47 }
  0x1b   : > { %1467 = vrot.lane.b32.xlu1 %v1456_v15, %s1697_s27  ;;  %v1571_v52 = vpack.i.bf16 %v255_v50, %v254_v49 }
  0x1c   : > { %1462 = vrot.lane.b32.xlu0 %v1451_v8, %s1697_s27 }
  0x1f   : > { %1477 = vrot.lane.b32.xlu1 %v1476_v21, %s1696_s26 }
  0x20   : > { %1472 = vrot.lane.b32.xlu0 %v1471_v22, %s1696_s26 }
  0x23   : > { %1487 = vrot.lane.b32.xlu1 %v1476_v21, %s1697_s27 }
  0x24   : > { %1482 = vrot.lane.b32.xlu0 %v1471_v22, %s1697_s27 }
  0x27   : > { %1497 = vrot.lane.b32.xlu1 %v1496_v27, %s1696_s26 }
  0x28   : > { %1492 = vrot.lane.b32.xlu0 %v1491_v28, %s1696_s26 }
  0x2b   : > { %1507 = vrot.lane.b32.xlu1 %v1496_v27, %s1697_s27 }
  0x2c   : > { %1502 = vrot.lane.b32.xlu0 %v1491_v28, %s1697_s27 }
  0x2f   : > { %1517 = vrot.lane.b32.xlu1 %v1516_v33, %s1696_s26 }
  0x30   : > { %1512 = vrot.lane.b32.xlu0 %v1511_v34, %s1696_s26 }
  0x33   : > { %1527 = vrot.lane.b32.xlu1 %v1516_v33, %s1697_s27 }
  0x34   : > { %1522 = vrot.lane.b32.xlu0 %v1511_v34, %s1697_s27 }
  0x37   : > { %1537 = vrot.lane.b32.xlu1 %v1536_v39, %s1696_s26 }
  0x38   : > { %1532 = vrot.lane.b32.xlu0 %v1531_v40, %s1696_s26 }
  0x3b   : > { %1547 = vrot.lane.b32.xlu1 %v1536_v39, %s1697_s27 }
  0x3c   : > { %1542 = vrot.lane.b32.xlu0 %v1531_v40, %s1697_s27 }
  0x3f   : > { %1557 = vrot.lane.b32.xlu1 %v1556_v45, %s1696_s26 }
  0x40   : > { %1552 = vrot.lane.b32.xlu0 %v1551_v46, %s1696_s26 }
  0x43   : > { %1567 = vrot.lane.b32.xlu1 %v1556_v45, %s1697_s27 }
  0x44   : > { %1562 = vrot.lane.b32.xlu0 %v1551_v46, %s1697_s27 }
  0x47   : > { %1577 = vrot.lane.b32.xlu1 %v1576_v51, %s1696_s26 }
  0x48   : > { %1572 = vrot.lane.b32.xlu0 %v1571_v52, %s1696_s26 }
  0x4b   : > { %1587 = vrot.lane.b32.xlu1 %v1576_v51, %s1697_s27 }
  0x4c   : > { %1582 = vrot.lane.b32.xlu0 %v1571_v52, %s1697_s27 }
  0x50   : > { %443 = vrot.lane.b32.xlu0 %v1698_v53, %s1696_s26  ;;  %s2217_s26 = scalar_lea.vmem %s2270_s5, %s1426_s21 }
  0x85   : > { %v1453_v54 = vpop.permute.xlu1 %1452 }
  0x86   : > { %v1455_v55 = vunpack.i.h.bf16 %v1453_v54  ;;  %v1454_v56 = vunpack.i.l.bf16 %v1453_v54  ;;  %v1443_v57 = vpop.permute.xlu0 %1442 }
  0x87   : > { %v1445_v58 = vunpack.i.h.bf16 %v1443_v57  ;;  %v1444_v59 = vunpack.i.l.bf16 %v1443_v57 }
  0x89   : > { %v476_v60 = vsel %vm474_vm2, 0.0, %v1445_v58  ;;  %v475_v61 = vsel %vm474_vm2, 0.0, %v1444_v59  ;;  %v1458_v62 = vpop.permute.xlu1 %1457 }
  0x8a   : > { %v1460_v63 = vunpack.i.h.bf16 %v1458_v62  ;;  %v1459_v0 = vunpack.i.l.bf16 %v1458_v62  ;;  %v1448_v1 = vpop.permute.xlu0 %1447  ;;  %v508_v2 = vsel %vm507_vm3, %v475_v61, %v1454_v56  ;;  %v509_v3 = vsel %vm507_vm3, %v476_v60, %v1455_v55 }
  0x8b   : > { %v1450_v4 = vunpack.i.h.bf16 %v1448_v1  ;;  %v1449_v8 = vunpack.i.l.bf16 %v1448_v1  ;;  %v540_v12 = vpack.c.bf16 %v509_v3, %v508_v2 }
  0x8d   : > { %v478_v15 = vsel %vm474_vm2, 0.0, %v1450_v4  ;;  %v477_v16 = vsel %vm474_vm2, 0.0, %v1449_v8  ;;  %1362 = vmatprep.mubr.msk.bf16.mxu0 %vm564_vm4, %v540_v12  ;;  %v1468_v21 = vpop.permute.xlu1 %1467 }
  0x8e   : > { %v511_v22 = vsel %vm507_vm3, %v478_v15, %v1460_v63  ;;  %v510_v27 = vsel %vm507_vm3, %v477_v16, %v1459_v0  ;;  %v1463_v28 = vpop.permute.xlu0 %1462  ;;  %v1470_v34 = vunpack.i.h.bf16 %v1468_v21  ;;  %v1469_v39 = vunpack.i.l.bf16 %v1468_v21 }
  0x8f   : > { %v541_v33 = vpack.c.bf16 %v511_v22, %v510_v27  ;;  %v1465_v40 = vunpack.i.h.bf16 %v1463_v28  ;;  %v1464_v45 = vunpack.i.l.bf16 %v1463_v28 }
  0x90   : > { %v481_v50 = vsel %vm474_vm2, %v1773_v13, %v1469_v39  ;;  %v482_v51 = vsel %vm474_vm2, %v1776_v14, %v1470_v34 }
  0x91   : > { %1363 = vmatmul.mubr.msk.bf16.vlgmr.msra.gmra.mrb[0].mxu0 %vm564_vm4, %v541_v33  ;;  %v1478_v46 = vpop.permute.xlu1 %1477  ;;  %v480_v55 = vsel %vm474_vm2, %v1762_v9, %v1465_v40  ;;  %v479_v56 = vsel %vm474_vm2, %v1757_v7, %v1464_v45 }
  0x92   : > { %v1480_v47 = vunpack.i.h.bf16 %v1478_v46  ;;  %v1479_v48 = vunpack.i.l.bf16 %v1478_v46  ;;  %v1473_v49 = vpop.permute.xlu0 %1472 }
  0x93   : > { %v1475_v52 = vunpack.i.h.bf16 %v1473_v49  ;;  %v1474_v54 = vunpack.i.l.bf16 %v1473_v49 }
  0x94   : > { %v514_v57 = vsel %vm507_vm3, %v481_v50, %v1479_v48  ;;  %v515_v58 = vsel %vm507_vm3, %v482_v51, %v1480_v47 }
  0x95   : > { %v543_v59 = vpack.c.bf16 %v515_v58, %v514_v57  ;;  %v512_v60 = vsel %vm507_vm3, %v479_v56, %v1474_v54  ;;  %v513_v13 = vsel %vm507_vm3, %v480_v55, %v1475_v52  ;;  %v1488_v61 = vpop.permute.xlu1 %1487 }
  0x96   : > { %v542_v62 = vpack.c.bf16 %v513_v13, %v512_v60  ;;  %v1483_v14 = vpop.permute.xlu0 %1482  ;;  %v1490_v63 = vunpack.i.h.bf16 %v1488_v61  ;;  %v1489_v0 = vunpack.i.l.bf16 %v1488_v61 }
  0x97   : > { %v1485_v1 = vunpack.i.h.bf16 %v1483_v14  ;;  %v1484_v2 = vunpack.i.l.bf16 %v1483_v14 }
  0x98   : > { %1366 = vmatprep.mubr.msk.bf16.mxu0 %vm564_vm4, %v542_v62  ;;  %v486_v8 = vsel %vm474_vm2, %v1768_v11, %v1490_v63  ;;  %v485_v12 = vsel %vm474_vm2, %v1765_v10, %v1489_v0 }
  0x99   : > { %1367 = vmatmul.mubr.msk.bf16.gmra.mrb[4].mxu0 %vm564_vm4, %v543_v59  ;;  %v1498_v7 = vpop.permute.xlu1 %1497  ;;  %v484_v21 = vsel %vm474_vm2, %v1754_v6, %v1485_v1  ;;  %v483_v22 = vsel %vm474_vm2, %v1751_v5, %v1484_v2 }
  0x9a   : > { %v1500_v9 = vunpack.i.h.bf16 %v1498_v7  ;;  %v1499_v3 = vunpack.i.l.bf16 %v1498_v7  ;;  %v1493_v4 = vpop.permute.xlu0 %1492 }
  0x9b   : > { %v1495_v15 = vunpack.i.h.bf16 %v1493_v4  ;;  %v1494_v16 = vunpack.i.l.bf16 %v1493_v4 }
  0x9c   : > { %v518_v27 = vsel %vm507_vm3, %v485_v12, %v1499_v3  ;;  %v519_v28 = vsel %vm507_vm3, %v486_v8, %v1500_v9 }
  0x9d   : > { %v545_v33 = vpack.c.bf16 %v519_v28, %v518_v27  ;;  %v516_v34 = vsel %vm507_vm3, %v483_v22, %v1494_v16  ;;  %v517_v11 = vsel %vm507_vm3, %v484_v21, %v1495_v15  ;;  %v1508_v39 = vpop.permute.xlu1 %1507 }
  0x9e   : > { %v544_v40 = vpack.c.bf16 %v517_v11, %v516_v34  ;;  %v1503_v10 = vpop.permute.xlu0 %1502  ;;  %v1510_v45 = vunpack.i.h.bf16 %v1508_v39  ;;  %v1509_v46 = vunpack.i.l.bf16 %v1508_v39 }
  0x9f   : > { %v1505_v47 = vunpack.i.h.bf16 %v1503_v10  ;;  %v1504_v48 = vunpack.i.l.bf16 %v1503_v10 }
  0xa0   : > { %1370 = vmatprep.mubr.msk.bf16.mxu0 %vm564_vm4, %v544_v40  ;;  %v490_v51 = vsel %vm474_vm2, %v1790_v18, %v1510_v45  ;;  %v489_v52 = vsel %vm474_vm2, %v1787_v17, %v1509_v46 }
  0xa1   : > { %1371 = vmatmul.mubr.msk.bf16.gmra.mrb[8].mxu0 %vm564_vm4, %v545_v33  ;;  %v1518_v5 = vpop.permute.xlu1 %1517  ;;  %v488_v56 = vsel %vm474_vm2, %v1796_v20, %v1505_v47  ;;  %v487_v57 = vsel %vm474_vm2, %v1793_v19, %v1504_v48 }
  0xa2   : > { %v1520_v6 = vunpack.i.h.bf16 %v1518_v5  ;;  %v1519_v49 = vunpack.i.l.bf16 %v1518_v5  ;;  %v1513_v50 = vpop.permute.xlu0 %1512 }
  0xa3   : > { %v1515_v54 = vunpack.i.h.bf16 %v1513_v50  ;;  %v1514_v55 = vunpack.i.l.bf16 %v1513_v50 }
  0xa4   : > { %v522_v58 = vsel %vm507_vm3, %v489_v52, %v1519_v49  ;;  %v523_v59 = vsel %vm507_vm3, %v490_v51, %v1520_v6 }
  0xa5   : > { %v547_v60 = vpack.c.bf16 %v523_v59, %v522_v58  ;;  %v520_v13 = vsel %vm507_vm3, %v487_v57, %v1514_v55  ;;  %v521_v18 = vsel %vm507_vm3, %v488_v56, %v1515_v54  ;;  %v1528_v61 = vpop.permute.xlu1 %1527 }
  0xa6   : > { %v546_v62 = vpack.c.bf16 %v521_v18, %v520_v13  ;;  %v1523_v17 = vpop.permute.xlu0 %1522  ;;  %v1530_v14 = vunpack.i.h.bf16 %v1528_v61  ;;  %v1529_v63 = vunpack.i.l.bf16 %v1528_v61 }
  0xa7   : > { %v1525_v0 = vunpack.i.h.bf16 %v1523_v17  ;;  %v1524_v1 = vunpack.i.l.bf16 %v1523_v17 }
  0xa8   : > { %1374 = vmatprep.mubr.msk.bf16.mxu0 %vm564_vm4, %v546_v62  ;;  %v494_v9 = vsel %vm474_vm2, %v1810_v24, %v1530_v14  ;;  %v493_v3 = vsel %vm474_vm2, %v1807_v23, %v1529_v63 }
  0xa9   : > { %1375 = vmatmul.mubr.msk.bf16.gmra.mrb[12].mxu0 %vm564_vm4, %v547_v60  ;;  %v1538_v19 = vpop.permute.xlu1 %1537  ;;  %v492_v12 = vsel %vm474_vm2, %v1816_v26, %v1525_v0  ;;  %v491_v15 = vsel %vm474_vm2, %v1813_v25, %v1524_v1 }
  0xaa   : > { %v1540_v20 = vunpack.i.h.bf16 %v1538_v19  ;;  %v1539_v2 = vunpack.i.l.bf16 %v1538_v19  ;;  %v1533_v7 = vpop.permute.xlu0 %1532 }
  0xab   : > { %v1535_v4 = vunpack.i.h.bf16 %v1533_v7  ;;  %v1534_v8 = vunpack.i.l.bf16 %v1533_v7 }
  0xac   : > { %v526_v16 = vsel %vm507_vm3, %v493_v3, %v1539_v2  ;;  %v527_v21 = vsel %vm507_vm3, %v494_v9, %v1540_v20 }
  0xad   : > { %v549_v22 = vpack.c.bf16 %v527_v21, %v526_v16  ;;  %v524_v27 = vsel %vm507_vm3, %v491_v15, %v1534_v8  ;;  %v525_v24 = vsel %vm507_vm3, %v492_v12, %v1535_v4  ;;  %v1548_v28 = vpop.permute.xlu1 %1547 }
  0xae   : > { %v548_v33 = vpack.c.bf16 %v525_v24, %v524_v27  ;;  %v1543_v23 = vpop.permute.xlu0 %1542  ;;  %v1550_v34 = vunpack.i.h.bf16 %v1548_v28  ;;  %v1549_v11 = vunpack.i.l.bf16 %v1548_v28 }
  0xaf   : > { %v1545_v39 = vunpack.i.h.bf16 %v1543_v23  ;;  %v1544_v40 = vunpack.i.l.bf16 %v1543_v23  ;;  %v1683_v23 = vld [vmem:[%s2268_s3 + $0x10] sm:$0xff]  }
  0xb0   : > { %1378 = vmatprep.mubr.msk.bf16.mxu0 %vm564_vm4, %v548_v33  ;;  %v498_v46 = vsel %vm474_vm2, %v1830_v30, %v1550_v34  ;;  %v497_v47 = vsel %vm474_vm2, %v1827_v29, %v1549_v11 }
  0xb1   : > { %1379 = vmatmul.mubr.msk.bf16.gmra.mrb[16].mxu0 %vm564_vm4, %v549_v22  ;;  %v1558_v25 = vpop.permute.xlu1 %1557  ;;  %v496_v6 = vsel %vm474_vm2, %v1836_v32, %v1545_v39  ;;  %v495_v49 = vsel %vm474_vm2, %v1833_v31, %v1544_v40 }
  0xb2   : > { %v1560_v26 = vunpack.i.h.bf16 %v1558_v25  ;;  %v1559_v10 = vunpack.i.l.bf16 %v1558_v25  ;;  %v1553_v45 = vpop.permute.xlu0 %1552 }
  0xb3   : > { %v1555_v48 = vunpack.i.h.bf16 %v1553_v45  ;;  %v1554_v5 = vunpack.i.l.bf16 %v1553_v45  ;;  %v1684_v45 = vld [vmem:[%s2268_s3 + $0x18] sm:$0xff]  }
  0xb4   : > { %v530_v50 = vsel %vm507_vm3, %v497_v47, %v1559_v10  ;;  %v531_v51 = vsel %vm507_vm3, %v498_v46, %v1560_v26 }
  0xb5   : > { %v551_v52 = vpack.c.bf16 %v531_v51, %v530_v50  ;;  %v528_v54 = vsel %vm507_vm3, %v495_v49, %v1554_v5  ;;  %v529_v30 = vsel %vm507_vm3, %v496_v6, %v1555_v48  ;;  %v1568_v55 = vpop.permute.xlu1 %1567  ;;  %v1685_v50 = vld [vmem:[%s2268_s3 + $0x20] sm:$0xff]  }
  0xb6   : > { %v550_v56 = vpack.c.bf16 %v529_v30, %v528_v54  ;;  %v1563_v29 = vpop.permute.xlu0 %1562  ;;  %v1570_v57 = vunpack.i.h.bf16 %v1568_v55  ;;  %v1569_v58 = vunpack.i.l.bf16 %v1568_v55 }
  0xb7   : > { %v1565_v59 = vunpack.i.h.bf16 %v1563_v29  ;;  %v1564_v60 = vunpack.i.l.bf16 %v1563_v29 }
  0xb8   : > { %1382 = vmatprep.mubr.msk.bf16.mxu0 %vm564_vm4, %v550_v56  ;;  %v502_v61 = vsel %vm474_vm2, %v1850_v36, %v1570_v57  ;;  %v501_v62 = vsel %vm474_vm2, %v1847_v35, %v1569_v58  ;;  %v1686_v56 = vld [vmem:[%s2268_s3 + $0x28] sm:$0xff]  }
  0xb9   : > { %1383 = vmatmul.mubr.msk.bf16.gmra.mrb[20].mxu0 %vm564_vm4, %v551_v52  ;;  %v1578_v31 = vpop.permute.xlu1 %1577  ;;  %v500_v63 = vsel %vm474_vm2, %v1856_v38, %v1565_v59  ;;  %v499_v0 = vsel %vm474_vm2, %v1853_v37, %v1564_v60 }
  0xba   : > { %v1580_v32 = vunpack.i.h.bf16 %v1578_v31  ;;  %v1579_v13 = vunpack.i.l.bf16 %v1578_v31  ;;  %v1573_v18 = vpop.permute.xlu0 %1572 }
  0xbb   : > { %v1575_v17 = vunpack.i.h.bf16 %v1573_v18  ;;  %v1574_v14 = vunpack.i.l.bf16 %v1573_v18 }
  0xbc   : > { %v534_v1 = vsel %vm507_vm3, %v501_v62, %v1579_v13  ;;  %v535_v19 = vsel %vm507_vm3, %v502_v61, %v1580_v32 }
  0xbd   : > { %v553_v20 = vpack.c.bf16 %v535_v19, %v534_v1  ;;  %v532_v2 = vsel %vm507_vm3, %v499_v0, %v1574_v14  ;;  %v533_v36 = vsel %vm507_vm3, %v500_v63, %v1575_v17  ;;  %v1588_v7 = vpop.permute.xlu1 %1587 }
  0xbe   : > { %v552_v9 = vpack.c.bf16 %v533_v36, %v532_v2  ;;  %v1583_v35 = vpop.permute.xlu0 %1582  ;;  %v1590_v3 = vunpack.i.h.bf16 %v1588_v7  ;;  %v1589_v4 = vunpack.i.l.bf16 %v1588_v7 }
  0xbf   : > { %v1585_v8 = vunpack.i.h.bf16 %v1583_v35  ;;  %v1584_v12 = vunpack.i.l.bf16 %v1583_v35 }
  0xc0   : > { %1386 = vmatprep.mubr.msk.bf16.mxu0 %vm564_vm4, %v552_v9  ;;  %v506_v37 = vsel %vm474_vm2, %v1870_v42, %v1590_v3  ;;  %v505_v38 = vsel %vm474_vm2, %v1867_v41, %v1589_v4  ;;  %v1681_v41 = vld [vmem:[%s2268_s3] sm:$0xff]  }
  0xc1   : > { %v504_v15 = vsel %vm474_vm2, %v1876_v44, %v1585_v8  ;;  %v503_v16 = vsel %vm474_vm2, %v1873_v43, %v1584_v12  ;;  %1387 = vmatmul.mubr.msk.bf16.gmra.mrb[24].mxu0 %vm564_vm4, %v553_v20  ;;  %1394 = vmatprep.subr.bf16.mxu1 %v1681_v41  ;;  %v2012_v43 = vld [vmem:[%s2267_s2] ss:$0 sm:$0xff]  ;;  %v1682_v44 = vld [vmem:[%s2268_s3 + $0x8] sm:$0xff]  }
  0xc2   : > { %v444_v21 = vpop.permute.xlu0 %443  ;;  %1395 = vmatpush3.bf16.msra.mxu1 %v1681_v41 }
  0xc3   : > { %v536_v22 = vsel %vm507_vm3, %v503_v16, %v444_v21  ;;  %v537_v27 = vsel %vm507_vm3, %v504_v15, %v444_v21  ;;  %v538_v24 = vsel %vm507_vm3, %v505_v38, %v444_v21  ;;  %v539_v42 = vsel %vm507_vm3, %v506_v37, %v444_v21  ;;  %1396 = vmatprep.subr.bf16.mxu1 %v1682_v44 }
  0xc4   : > { %v554_v28 = vpack.c.bf16 %v537_v27, %v536_v22  ;;  %v555_v33 = vpack.c.bf16 %v539_v42, %v538_v24 }
  0xc6   : > { %1390 = vmatprep.mubr.msk.bf16.mxu0 %vm564_vm4, %v554_v28  ;;  %1397 = vmatpush3.bf16.msra.mxu1 %v1682_v44 }
  0xc7   : > { %1398 = vmatprep.subr.bf16.mxu1 %v1683_v23 }
  0xc9   : > { %1391 = vmatmul.mubr.msk.bf16.gmra.mrb[28].mxu0 %vm564_vm4, %v555_v33 }
  0xca   : > { %1399 = vmatpush3.bf16.msra.mxu1 %v1683_v23 }
  0xcb   : > { %1400 = vmatprep.subr.bf16.mxu1 %v1684_v45 }
  0xce   : > { %1401 = vmatpush3.bf16.msra.mxu1 %v1684_v45 }
  0xcf   : > { %1402 = vmatprep.subr.bf16.mxu1 %v1685_v50 }
  0xd2   : > { %1403 = vmatpush3.bf16.msra.mxu1 %v1685_v50 }
  0xd3   : > { %1404 = vmatprep.subr.bf16.mxu1 %v1686_v56 }
  0xd6   : > { %1405 = vmatpush3.bf16.msra.mxu1 %v1686_v56 }
 0x164   : > { %v1364_v34 = vpop.f32.mrb[0].mxu0 }
 0x165   : > { %v2021_v11 = vadd.f32 %v1364_v34, %v2012_v43  ;;  %v654_v39 = vpop.f32.mrb[1].mxu0 }
 0x166   : > { %v2024_v40 = vadd.f32 %v2012_v43, %v654_v39  ;;  %v1365_v25 = vpop.f32.mrb[2].mxu0 }
 0x167   : > { %v2027_v26 = vadd.f32 %v1365_v25, %v2012_v43  ;;  %v657_v10 = vpop.f32.mrb[3].mxu0  ;;  %v795_v47 = vmax.f32 %v2021_v11, 0.0 }
 0x168   : > { %v2033_v46 = vadd.f32 %v2012_v43, %v657_v10  ;;  %v793_v5 = vmax.f32 %v2024_v40, 0.0 }
 0x169   : > { %v796_v48 = vmax.f32 %v2027_v26, 0.0 }
 0x16a   : > { %v794_v6 = vmax.f32 %v2033_v46, 0.0 }
 0x16b   : > { %v1591_v49 = vpack.i.bf16 %v796_v48, %v795_v47 }
 0x16c   : > { %v1596_v51 = vpack.i.bf16 %v794_v6, %v793_v5  ;;  %v1368_v52 = vpop.f32.mrb[4].mxu0 }
 0x16d   : > { %1592 = vrot.lane.b32.xlu0 %v1591_v49, %s1699_s15  ;;  %v670_v54 = vpop.f32.mrb[5].mxu0  ;;  %v679_v57 = vadd.f32 %v1368_v52, %v2012_v43 }
 0x16e   : > { %v1369_v30 = vpop.f32.mrb[6].mxu0  ;;  %1597 = vrot.lane.b32.xlu1 %v1596_v51, %s1699_s15  ;;  %v671_v60 = vadd.f32 %v2012_v43, %v670_v54 }
 0x16f   : > { %v673_v55 = vpop.f32.mrb[7].mxu0  ;;  %v682_v13 = vadd.f32 %v1369_v30, %v2012_v43 }
 0x170   : > { %v674_v17 = vadd.f32 %v2012_v43, %v673_v55 }
 0x174   : > { %v1372_v29 = vpop.f32.mrb[8].mxu0 }
 0x175   : > { %v695_v58 = vadd.f32 %v1372_v29, %v2012_v43  ;;  %v686_v59 = vpop.f32.mrb[9].mxu0 }
 0x176   : > { %v687_v31 = vadd.f32 %v2012_v43, %v686_v59  ;;  %v1373_v32 = vpop.f32.mrb[10].mxu0 }
 0x177   : > { %v783_v18 = vmax.f32 %v679_v57, %v695_v58  ;;  %v698_v61 = vadd.f32 %v1373_v32, %v2012_v43  ;;  %v689_v62 = vpop.f32.mrb[11].mxu0 }
 0x178   : > { %v781_v14 = vmax.f32 %v671_v60, %v687_v31  ;;  %v690_v63 = vadd.f32 %v2012_v43, %v689_v62 }
 0x179   : > { %v784_v0 = vmax.f32 %v682_v13, %v698_v61  ;;  %v2063_v19 = vmax.f32 %v783_v18, 0.0 }
 0x17a   : > { %v782_v1 = vmax.f32 %v674_v17, %v690_v63  ;;  %v2067_v2 = vmax.f32 %v781_v14, 0.0 }
 0x17b   : > { %v2065_v20 = vmax.f32 %v784_v0, 0.0 }
 0x17c   : > { %v2069_v36 = vmax.f32 %v782_v1, 0.0  ;;  %v1376_v7 = vpop.f32.mrb[12].mxu0 }
 0x17d   : > { %v702_v9 = vpop.f32.mrb[13].mxu0  ;;  %v1601_v35 = vpack.i.bf16 %v2065_v20, %v2063_v19  ;;  %v711_v37 = vadd.f32 %v1376_v7, %v2012_v43 }
 0x17e   : > { %v1377_v3 = vpop.f32.mrb[14].mxu0  ;;  %v1611_v4 = vpack.i.bf16 %v2069_v36, %v2067_v2  ;;  %v703_v16 = vadd.f32 %v2012_v43, %v702_v9 }
 0x17f   : > { %1602 = vrot.lane.b32.xlu0 %v1601_v35, %s1700_s20  ;;  %v705_v8 = vpop.f32.mrb[15].mxu0  ;;  %v714_v27 = vadd.f32 %v1377_v3, %v2012_v43 }
 0x180   : > { %1612 = vrot.lane.b32.xlu1 %v1611_v4, %s1700_s20  ;;  %v706_v33 = vadd.f32 %v2012_v43, %v705_v8 }
 0x183   : > { %1607 = vrot.lane.b32.xlu0 %v1601_v35, %s1699_s15 }
 0x184   : > { %v1380_v12 = vpop.f32.mrb[16].mxu0  ;;  %1617 = vrot.lane.b32.xlu1 %v1611_v4, %s1699_s15 }
 0x185   : > { %v727_v38 = vadd.f32 %v1380_v12, %v2012_v43  ;;  %v718_v15 = vpop.f32.mrb[17].mxu0 }
 0x186   : > { %v719_v21 = vadd.f32 %v2012_v43, %v718_v15  ;;  %v1381_v22 = vpop.f32.mrb[18].mxu0 }
 0x187   : > { %v787_v24 = vmax.f32 %v711_v37, %v727_v38  ;;  %v730_v42 = vadd.f32 %v1381_v22, %v2012_v43  ;;  %v721_v28 = vpop.f32.mrb[19].mxu0 }
 0x188   : > { %v785_v41 = vmax.f32 %v703_v16, %v719_v21  ;;  %v722_v44 = vadd.f32 %v2012_v43, %v721_v28 }
 0x189   : > { %v788_v23 = vmax.f32 %v714_v27, %v730_v42  ;;  %v2087_v39 = vmax.f32 %v787_v24, 0.0 }
 0x18a   : > { %v786_v34 = vmax.f32 %v706_v33, %v722_v44  ;;  %v2091_v10 = vmax.f32 %v785_v41, 0.0 }
 0x18b   : > { %v2089_v25 = vmax.f32 %v788_v23, 0.0 }
 0x18c   : > { %v2093_v45 = vmax.f32 %v786_v34, 0.0  ;;  %v1384_v49 = vpop.f32.mrb[20].mxu0 }
 0x18d   : > { %v734_v50 = vpop.f32.mrb[21].mxu0  ;;  %v1621_v51 = vpack.i.bf16 %v2089_v25, %v2087_v39  ;;  %v743_v56 = vadd.f32 %v1384_v49, %v2012_v43 }
 0x18e   : > { %v1385_v52 = vpop.f32.mrb[22].mxu0  ;;  %v1631_v54 = vpack.i.bf16 %v2093_v45, %v2091_v10  ;;  %v735_v58 = vadd.f32 %v2012_v43, %v734_v50 }
 0x18f   : > { %1622 = vrot.lane.b32.xlu0 %v1621_v51, %s1700_s20  ;;  %v737_v30 = vpop.f32.mrb[23].mxu0  ;;  %v746_v31 = vadd.f32 %v1385_v52, %v2012_v43 }
 0x190   : > { %1632 = vrot.lane.b32.xlu1 %v1631_v54, %s1700_s20  ;;  %v738_v61 = vadd.f32 %v2012_v43, %v737_v30 }
 0x193   : > { %1627 = vrot.lane.b32.xlu0 %v1621_v51, %s1699_s15 }
 0x194   : > { %v1388_v55 = vpop.f32.mrb[24].mxu0  ;;  %1637 = vrot.lane.b32.xlu1 %v1631_v54, %s1699_s15 }
 0x195   : > { %v759_v29 = vadd.f32 %v1388_v55, %v2012_v43  ;;  %v750_v57 = vpop.f32.mrb[25].mxu0 }
 0x196   : > { %v751_v59 = vadd.f32 %v2012_v43, %v750_v57  ;;  %v1389_v60 = vpop.f32.mrb[26].mxu0 }
 0x197   : > { %v791_v32 = vmax.f32 %v743_v56, %v759_v29  ;;  %v762_v13 = vadd.f32 %v1389_v60, %v2012_v43  ;;  %v753_v18 = vpop.f32.mrb[27].mxu0 }
 0x198   : > { %v789_v62 = vmax.f32 %v735_v58, %v751_v59  ;;  %v754_v17 = vadd.f32 %v2012_v43, %v753_v18 }
 0x199   : > { %v792_v14 = vmax.f32 %v746_v31, %v762_v13  ;;  %v2111_v0 = vmax.f32 %v791_v32, 0.0 }
 0x19a   : > { %v790_v63 = vmax.f32 %v738_v61, %v754_v17  ;;  %v2115_v7 = vmax.f32 %v789_v62, 0.0 }
 0x19b   : > { %v2113_v1 = vmax.f32 %v792_v14, 0.0 }
 0x19c   : > { %v2117_v9 = vmax.f32 %v790_v63, 0.0  ;;  %v1392_v35 = vpop.f32.mrb[28].mxu0 }
 0x19d   : > { %v775_v3 = vadd.f32 %v1392_v35, %v2012_v43  ;;  %v766_v4 = vpop.f32.mrb[29].mxu0  ;;  %v1641_v8 = vpack.i.bf16 %v2113_v1, %v2111_v0 }
 0x19e   : > { %v767_v12 = vadd.f32 %v2012_v43, %v766_v4  ;;  %v1393_v37 = vpop.f32.mrb[30].mxu0  ;;  %v1651_v38 = vpack.i.bf16 %v2117_v9, %v2115_v7 }
 0x19f   : > { %v811_v15 = vmax.f32 %v775_v3, 0.0  ;;  %v778_v16 = vadd.f32 %v1393_v37, %v2012_v43  ;;  %1642 = vrot.lane.b32.xlu0 %v1641_v8, %s1700_s20  ;;  %v769_v21 = vpop.f32.mrb[31].mxu0 }
 0x1a0   : > { %v770_v22 = vadd.f32 %v2012_v43, %v769_v21  ;;  %1652 = vrot.lane.b32.xlu1 %v1651_v38, %s1700_s20  ;;  %v809_v24 = vmax.f32 %v767_v12, 0.0 }
 0x1a1   : > { %v812_v27 = vmax.f32 %v778_v16, 0.0 }
 0x1a2   : > { %v810_v42 = vmax.f32 %v770_v22, 0.0 }
 0x1a3   : > { %v1676_v28 = vpack.i.bf16 %v812_v27, %v811_v15  ;;  %1647 = vrot.lane.b32.xlu0 %v1641_v8, %s1699_s15 }
 0x1a4   : > { %v1671_v33 = vpack.i.bf16 %v810_v42, %v809_v24  ;;  %1657 = vrot.lane.b32.xlu1 %v1651_v38, %s1699_s15 }
 0x1a7   : > { %1662 = vrot.lane.b32.xlu0 %v1676_v28, %s1700_s20 }
 0x1a8   : > { %1667 = vrot.lane.b32.xlu1 %v1671_v33, %s1700_s20 }
 0x1ab   : > { %1677 = vrot.lane.b32.xlu0 %v1676_v28, %s1699_s15 }
 0x1ac   : > { %1672 = vrot.lane.b32.xlu1 %v1671_v33, %s1699_s15 }
 0x1b0   : > { %925 = vrot.lane.b32.xlu1 %v1698_v53, %s1700_s20 }
 0x1df   : > { %v1593_v43 = vpop.permute.xlu0 %1592 }
 0x1e0   : > { %v1598_v41 = vpop.permute.xlu1 %1597  ;;  %v1595_v44 = vunpack.i.h.bf16 %v1593_v43  ;;  %v1594_v23 = vunpack.i.l.bf16 %v1593_v43 }
 0x1e1   : > { %v1600_v34 = vunpack.i.h.bf16 %v1598_v41  ;;  %v1599_v49 = vunpack.i.l.bf16 %v1598_v41 }
 0x1e2   : > { %v948_v30 = vsel %vm944_vm5, 0.0, %v1595_v44  ;;  %v947_v55 = vsel %vm944_vm5, 0.0, %v1594_v23 }
 0x1e3   : > { %v946_v53 = vsel %vm944_vm5, 0.0, %v1600_v34  ;;  %v945_v57 = vsel %vm944_vm5, 0.0, %v1599_v49 }
 0x1f1   : > { %v1603_v50 = vpop.permute.xlu0 %1602 }
 0x1f2   : > { %v1605_v51 = vunpack.i.h.bf16 %v1603_v50  ;;  %v1604_v52 = vunpack.i.l.bf16 %v1603_v50  ;;  %v1613_v54 = vpop.permute.xlu1 %1612 }
 0x1f3   : > { %v1615_v56 = vunpack.i.h.bf16 %v1613_v54  ;;  %v1614_v29 = vunpack.i.l.bf16 %v1613_v54 }
 0x1f4   : > { %v969_v58 = vsel %vm965_vm6, %v948_v30, %v1605_v51  ;;  %v968_v59 = vsel %vm965_vm6, %v947_v55, %v1604_v52 }
 0x1f5   : > { %v966_v60 = vsel %vm965_vm6, %v945_v57, %v1614_v29  ;;  %v967_v31 = vsel %vm965_vm6, %v946_v53, %v1615_v56  ;;  %v987_v13 = vpack.c.bf16 %v969_v58, %v968_v59  ;;  %v1608_v18 = vpop.permute.xlu0 %1607 }
 0x1f6   : > { %v986_v32 = vpack.c.bf16 %v967_v31, %v966_v60  ;;  %v1618_v61 = vpop.permute.xlu1 %1617  ;;  %v1610_v62 = vunpack.i.h.bf16 %v1608_v18  ;;  %v1609_v17 = vunpack.i.l.bf16 %v1608_v18 }
 0x1f7   : > { %v1620_v14 = vunpack.i.h.bf16 %v1618_v61  ;;  %v1619_v63 = vunpack.i.l.bf16 %v1618_v61 }
 0x1f8   : > { %1406 = vmatprep.mubr.msk.bf16.mxu1 %vm1051_vm7, %v986_v32  ;;  %v952_v12 = vsel %vm944_vm5, %v796_v48, %v1610_v62  ;;  %v951_v37 = vsel %vm944_vm5, %v795_v47, %v1609_v17 }
 0x1f9   : > { %1407 = vmatmul.mubr.msk.bf16.vlgmr.msra.gmra.mrb[0].mxu1 %vm1051_vm7, %v987_v13  ;;  %v950_v16 = vsel %vm944_vm5, %v794_v6, %v1620_v14  ;;  %v949_v21 = vsel %vm944_vm5, %v793_v5, %v1619_v63 }
 0x201   : > { %v1623_v35 = vpop.permute.xlu0 %1622 }
 0x202   : > { %v1625_v3 = vunpack.i.h.bf16 %v1623_v35  ;;  %v1624_v4 = vunpack.i.l.bf16 %v1623_v35  ;;  %v1633_v8 = vpop.permute.xlu1 %1632 }
 0x203   : > { %v1635_v38 = vunpack.i.h.bf16 %v1633_v8  ;;  %v1634_v15 = vunpack.i.l.bf16 %v1633_v8 }
 0x204   : > { %v973_v22 = vsel %vm965_vm6, %v952_v12, %v1625_v3  ;;  %v972_v26 = vsel %vm965_vm6, %v951_v37, %v1624_v4 }
 0x205   : > { %v970_v48 = vsel %vm965_vm6, %v949_v21, %v1634_v15  ;;  %v971_v11 = vsel %vm965_vm6, %v950_v16, %v1635_v38  ;;  %v989_v47 = vpack.c.bf16 %v973_v22, %v972_v26  ;;  %v1628_v46 = vpop.permute.xlu0 %1627 }
 0x206   : > { %v988_v27 = vpack.c.bf16 %v971_v11, %v970_v48  ;;  %v1638_v6 = vpop.permute.xlu1 %1637  ;;  %v1630_v24 = vunpack.i.h.bf16 %v1628_v46  ;;  %v1629_v40 = vunpack.i.l.bf16 %v1628_v46 }
 0x207   : > { %v1640_v42 = vunpack.i.h.bf16 %v1638_v6  ;;  %v1639_v5 = vunpack.i.l.bf16 %v1638_v6 }
 0x208   : > { %1410 = vmatprep.mubr.msk.bf16.mxu1 %vm1051_vm7, %v988_v27  ;;  %v956_v44 = vsel %vm944_vm5, %v2065_v20, %v1630_v24  ;;  %v955_v23 = vsel %vm944_vm5, %v2063_v19, %v1629_v40 }
 0x209   : > { %1411 = vmatmul.mubr.msk.bf16.gmra.mrb[4].mxu1 %vm1051_vm7, %v989_v47  ;;  %v954_v50 = vsel %vm944_vm5, %v2069_v36, %v1640_v42  ;;  %v953_v51 = vsel %vm944_vm5, %v2067_v2, %v1639_v5 }
 0x211   : > { %v1643_v28 = vpop.permute.xlu0 %1642 }
 0x212   : > { %v1645_v33 = vunpack.i.h.bf16 %v1643_v28  ;;  %v1644_v43 = vunpack.i.l.bf16 %v1643_v28  ;;  %v1653_v41 = vpop.permute.xlu1 %1652 }
 0x213   : > { %v1655_v34 = vunpack.i.h.bf16 %v1653_v41  ;;  %v1654_v49 = vunpack.i.l.bf16 %v1653_v41 }
 0x214   : > { %v977_v52 = vsel %vm965_vm6, %v956_v44, %v1645_v33  ;;  %v976_v54 = vsel %vm965_vm6, %v955_v23, %v1644_v43 }
 0x215   : > { %v974_v30 = vsel %vm965_vm6, %v953_v51, %v1654_v49  ;;  %v975_v55 = vsel %vm965_vm6, %v954_v50, %v1655_v34  ;;  %v1648_v20 = vpop.permute.xlu0 %1647  ;;  %v991_v19 = vpack.c.bf16 %v977_v52, %v976_v54 }
 0x216   : > { %v990_v56 = vpack.c.bf16 %v975_v55, %v974_v30  ;;  %v1658_v29 = vpop.permute.xlu1 %1657  ;;  %v1650_v53 = vunpack.i.h.bf16 %v1648_v20  ;;  %v1649_v57 = vunpack.i.l.bf16 %v1648_v20 }
 0x217   : > { %v1660_v58 = vunpack.i.h.bf16 %v1658_v29  ;;  %v1659_v59 = vunpack.i.l.bf16 %v1658_v29 }
 0x218   : > { %1414 = vmatprep.mubr.msk.bf16.mxu1 %vm1051_vm7, %v990_v56  ;;  %v960_v32 = vsel %vm944_vm5, %v2089_v25, %v1650_v53  ;;  %v959_v13 = vsel %vm944_vm5, %v2087_v39, %v1649_v57 }
 0x219   : > { %v1663_v36 = vpop.permute.xlu0 %1662  ;;  %1415 = vmatmul.mubr.msk.bf16.gmra.mrb[8].mxu1 %vm1051_vm7, %v991_v19  ;;  %v958_v62 = vsel %vm944_vm5, %v2093_v45, %v1660_v58  ;;  %v957_v17 = vsel %vm944_vm5, %v2091_v10, %v1659_v59 }
 0x21a   : > { %v1665_v2 = vunpack.i.h.bf16 %v1663_v36  ;;  %v1664_v60 = vunpack.i.l.bf16 %v1663_v36  ;;  %v1668_v31 = vpop.permute.xlu1 %1667 }
 0x21b   : > { %v1670_v18 = vunpack.i.h.bf16 %v1668_v31  ;;  %v1669_v61 = vunpack.i.l.bf16 %v1668_v31 }
 0x21c   : > { %v981_v14 = vsel %vm965_vm6, %v960_v32, %v1665_v2  ;;  %v980_v63 = vsel %vm965_vm6, %v959_v13, %v1664_v60 }
 0x21d   : > { %v978_v35 = vsel %vm965_vm6, %v957_v17, %v1669_v61  ;;  %v979_v3 = vsel %vm965_vm6, %v958_v62, %v1670_v18  ;;  %v1678_v25 = vpop.permute.xlu0 %1677  ;;  %v993_v4 = vpack.c.bf16 %v981_v14, %v980_v63 }
 0x21e   : > { %v992_v8 = vpack.c.bf16 %v979_v3, %v978_v35  ;;  %v1673_v39 = vpop.permute.xlu1 %1672  ;;  %v1680_v12 = vunpack.i.h.bf16 %v1678_v25  ;;  %v1679_v37 = vunpack.i.l.bf16 %v1678_v25 }
 0x21f   : > { %v1675_v38 = vunpack.i.h.bf16 %v1673_v39  ;;  %v1674_v15 = vunpack.i.l.bf16 %v1673_v39 }
 0x220   : > { %1418 = vmatprep.mubr.msk.bf16.mxu1 %vm1051_vm7, %v992_v8  ;;  %v964_v21 = vsel %vm944_vm5, %v2113_v1, %v1680_v12  ;;  %v963_v22 = vsel %vm944_vm5, %v2111_v0, %v1679_v37  ;;  %v2211_v1 = vld [vmem:[%s2269_s4] ss:$0 sm:$0xff] }
 0x221   : > { %1419 = vmatmul.mubr.msk.bf16.gmra.mrb[12].mxu1 %vm1051_vm7, %v993_v4  ;;  %v961_v10 = vsel %vm944_vm5, %v2115_v7, %v1674_v15  ;;  %v962_v45 = vsel %vm944_vm5, %v2117_v9, %v1675_v38 }
 0x222   : > { %v926_v16 = vpop.permute.xlu1 %925 }
 0x223   : > { %v982_v26 = vsel %vm965_vm6, %v961_v10, %v926_v16  ;;  %v983_v48 = vsel %vm965_vm6, %v962_v45, %v926_v16  ;;  %v984_v11 = vsel %vm965_vm6, %v963_v22, %v926_v16  ;;  %v985_v27 = vsel %vm965_vm6, %v964_v21, %v926_v16 }
 0x224   : > { %v994_v47 = vpack.c.bf16 %v983_v48, %v982_v26  ;;  %v995_v7 = vpack.c.bf16 %v985_v27, %v984_v11 }
 0x226   : > { %1422 = vmatprep.mubr.msk.bf16.mxu1 %vm1051_vm7, %v994_v47 }
 0x229   : > { %1423 = vmatmul.mubr.msk.bf16.gmra.mrb[16].mxu1 %vm1051_vm7, %v995_v7 }
 0x2cc   : > { %v1408_v0 = vpop.f32.mrb[0].mxu1 }
 0x2cd   : > { %v1125_v9 = vadd.f32 %v1408_v0, %v2211_v1  ;;  %v1116_v46 = vpop.f32.mrb[1].mxu1 }
 0x2ce   : > { %v1117_v6 = vadd.f32 %v2211_v1, %v1116_v46  ;;  %v1409_v24 = vpop.f32.mrb[2].mxu1 }
 0x2cf   : > { %v1205_v40 = vmax.f32 %v1125_v9, 0.0  ;;  %v1128_v42 = vadd.f32 %v1409_v24, %v2211_v1  ;;  %v1119_v5 = vpop.f32.mrb[3].mxu1 }
 0x2d0   : > { %v1203_v28 = vmax.f32 %v1117_v6, 0.0  ;;  %v1120_v33 = vadd.f32 %v2211_v1, %v1119_v5 }
 0x2d1   : > { %1217 = vst.msk [vmem:[%s2217_s26 + $0x10] sm:$0xff] %vm965_vm6, %v1205_v40  ;;  %v1206_v43 = vmax.f32 %v1128_v42, 0.0 }
 0x2d2   : > { %1215 = vst.msk [vmem:[%s2217_s26] sm:$0xff] %vm965_vm6, %v1203_v28  ;;  %v1204_v41 = vmax.f32 %v1120_v33, 0.0 }
 0x2d3   : > { %1218 = vst.msk [vmem:[%s2217_s26 + $0x18] sm:$0xff] %vm965_vm6, %v1206_v43 }
 0x2d4   : > { %1216 = vst.msk [vmem:[%s2217_s26 + $0x8] sm:$0xff] %vm965_vm6, %v1204_v41 }
 0x2dc   : > { %v1412_v44 = vpop.f32.mrb[4].mxu1 }
 0x2dd   : > { %v1132_v23 = vpop.f32.mrb[5].mxu1  ;;  %v1141_v51 = vadd.f32 %v1412_v44, %v2211_v1 }
 0x2de   : > { %v1413_v34 = vpop.f32.mrb[6].mxu1  ;;  %v1133_v30 = vadd.f32 %v2211_v1, %v1132_v23 }
 0x2df   : > { %v1135_v49 = vpop.f32.mrb[7].mxu1  ;;  %v1144_v56 = vadd.f32 %v1413_v34, %v2211_v1 }
 0x2e0   : > { %v1136_v57 = vadd.f32 %v2211_v1, %v1135_v49 }
 0x2ec   : > { %v1416_v50 = vpop.f32.mrb[8].mxu1 }
 0x2ed   : > { %v1157_v52 = vadd.f32 %v1416_v50, %v2211_v1  ;;  %v1148_v54 = vpop.f32.mrb[9].mxu1 }
 0x2ee   : > { %v1149_v55 = vadd.f32 %v2211_v1, %v1148_v54  ;;  %v1417_v20 = vpop.f32.mrb[10].mxu1 }
 0x2ef   : > { %v1197_v29 = vmax.f32 %v1141_v51, %v1157_v52  ;;  %v1160_v19 = vadd.f32 %v1417_v20, %v2211_v1  ;;  %v1151_v53 = vpop.f32.mrb[11].mxu1 }
 0x2f0   : > { %v1195_v58 = vmax.f32 %v1133_v30, %v1149_v55  ;;  %v1152_v59 = vadd.f32 %v2211_v1, %v1151_v53 }
 0x2f1   : > { %v1209_v36 = vmax.f32 %v1197_v29, 0.0  ;;  %v1198_v2 = vmax.f32 %v1144_v56, %v1160_v19 }
 0x2f2   : > { %v1207_v60 = vmax.f32 %v1195_v58, 0.0  ;;  %v1196_v31 = vmax.f32 %v1136_v57, %v1152_v59 }
 0x2f3   : > { %1221 = vst.msk [vmem:[%s2217_s26 + $0x30] sm:$0xff] %vm965_vm6, %v1209_v36  ;;  %v1210_v32 = vmax.f32 %v1198_v2, 0.0 }
 0x2f4   : > { %1219 = vst.msk [vmem:[%s2217_s26 + $0x20] sm:$0xff] %vm965_vm6, %v1207_v60  ;;  %v1208_v13 = vmax.f32 %v1196_v31, 0.0  ;;  %v1420_v18 = vpop.f32.mrb[12].mxu1 }
 0x2f5   : > { %1222 = vst.msk [vmem:[%s2217_s26 + $0x38] sm:$0xff] %vm965_vm6, %v1210_v32  ;;  %v1164_v61 = vpop.f32.mrb[13].mxu1  ;;  %v1173_v63 = vadd.f32 %v1420_v18, %v2211_v1 }
 0x2f6   : > { %1220 = vst.msk [vmem:[%s2217_s26 + $0x28] sm:$0xff] %vm965_vm6, %v1208_v13  ;;  %v1421_v62 = vpop.f32.mrb[14].mxu1  ;;  %v1165_v25 = vadd.f32 %v2211_v1, %v1164_v61 }
 0x2f7   : > { %v1167_v17 = vpop.f32.mrb[15].mxu1  ;;  %v1176_v39 = vadd.f32 %v1421_v62, %v2211_v1 }
 0x2f8   : > { %v1168_v15 = vadd.f32 %v2211_v1, %v1167_v17 }
 0x2fc   : > { %v1424_v14 = vpop.f32.mrb[16].mxu1 }
 0x2fd   : > { %v1189_v35 = vadd.f32 %v1424_v14, %v2211_v1  ;;  %v1180_v3 = vpop.f32.mrb[17].mxu1 }
 0x2fe   : > { %v1181_v4 = vadd.f32 %v2211_v1, %v1180_v3  ;;  %v1425_v8 = vpop.f32.mrb[18].mxu1 }
 0x2ff   : > { %v1201_v12 = vmax.f32 %v1173_v63, %v1189_v35  ;;  %v1192_v37 = vadd.f32 %v1425_v8, %v2211_v1  ;;  %v1183_v38 = vpop.f32.mrb[19].mxu1 }
 0x300   : > { %v1199_v10 = vmax.f32 %v1165_v25, %v1181_v4  ;;  %v1184_v45 = vadd.f32 %v2211_v1, %v1183_v38 }
 0x301   : > { %v1213_v16 = vmax.f32 %v1201_v12, 0.0  ;;  %v1202_v21 = vmax.f32 %v1176_v39, %v1192_v37 }
 0x302   : > { %v1211_v22 = vmax.f32 %v1199_v10, 0.0  ;;  %v1200_v26 = vmax.f32 %v1168_v15, %v1184_v45 }
 0x303   : > { %1225 = vst.msk [vmem:[%s2217_s26 + $0x50] sm:$0xff] %vm965_vm6, %v1213_v16  ;;  %v1214_v48 = vmax.f32 %v1202_v21, 0.0 }
 0x304   : > { %1223 = vst.msk [vmem:[%s2217_s26 + $0x40] sm:$0xff] %vm965_vm6, %v1211_v22  ;;  %v1212_v11 = vmax.f32 %v1200_v26, 0.0 }
 0x305   : > { %1226 = vst.msk [vmem:[%s2217_s26 + $0x58] sm:$0xff] %vm965_vm6, %v1214_v48 }
 0x306   : > { %1224 = vst.msk [vmem:[%s2217_s26 + $0x48] sm:$0xff] %vm965_vm6, %v1212_v11 }
 0x307 PF: > { %s15_s18 = sadd.s32 1, %s1693_s18  }
 0x308   : > { %p12_p4 = scmp.ge.s32.totalorder %s15_s18, 4  }
 0x30a   :  { %14 = sbr.rel (!%p12_p4) target bundleno = 1 (0x1), region = 70 }

// kernel: transformer_forward.4
= control target key start
LH: loop header
LB: loop body
LE: loop exit
PB: predicated region body
PF: predicated region fallthrough
CT: control target
= control target key end

     0   :  { %s4742_s0 = inlined_call_operand.hbm [shape: f32[16,32], index: 0, kind: input, shape index: {}]   ;;  %s4743_s1 = inlined_call_operand.hbm [shape: f32[2,4,32], index: 1, kind: input, shape index: {}]   ;;  %s4744_s2 = inlined_call_operand.vmem [shape: bf16[2,12,32,8], index: 2, kind: input, shape index: {}]   ;;  %s4745_s3 = inlined_call_operand.vmem [shape: f32[2,12,1,8], index: 3, kind: input, shape index: {}]   ;;  %s4746_s4 = inlined_call_operand.hbm [shape: bf16[2,4,8,32], index: 4, kind: input, shape index: {}]   ;;  %s4747_s5 = inlined_call_operand.hbm [shape: f32[2,1,32], index: 5, kind: input, shape index: {}]   ;;  %s4748_s6 = inlined_call_operand.hbm [shape: bf16[2,32,64], index: 6, kind: input, shape index: {}]   ;;  %s4749_s7 = inlined_call_operand.hbm [shape: f32[2,1,64], index: 7, kind: input, shape index: {}]   ;;  %s4750_s8 = inlined_call_operand.vmem [shape: bf16[2,64,32], index: 8, kind: input, shape index: {}]   ;;  %s4751_s9 = inlined_call_operand.hbm [shape: f32[2,1,32], index: 9, kind: input, shape index: {}]   ;;  %s4752_s10 = inlined_call_operand.hbm [shape: f32[2,32], index: 10, kind: input, shape index: {}]   ;;  %s4753_s11 = inlined_call_operand.vmem [shape: f32[16,32], index: 11, kind: output, shape index: {}]  }
   0x1   :  { %4766 = sst [smem:[#allocation24_spill]] %s4742_s0 }
   0x2   :  { %4767 = sst [smem:[#allocation25_spill]] %s4743_s1 }
   0x3   :  { %4768 = sst [smem:[#allocation26_spill]] %s4745_s3 }
   0x4   :  { %4769 = sst [smem:[#allocation27_spill]] %s4747_s5 }
   0x5   :  { %4770 = sst [smem:[#allocation28_spill]] %s4749_s7 }
   0x6   :  { %4771 = sst [smem:[#allocation29_spill]] %s4753_s11 }
   0x7   :  { %16 = vsyncpa [#allocation4], 0 }
   0x8   :  { %17 = vsyncpa [#allocation6], 0 }
   0x9   :  { %19 = vsyncpa [#allocation6 + $0x1], 0 }
   0xa   :  { %20 = vsyncpa [#allocation9], 0 }
   0xb   :  { %22 = vsyncpa [#allocation9 + $0x1], 0 }
   0xc   :  { %23 = vsyncpa [#allocation12], 0 }
   0xd   :  { %25 = vsyncpa [#allocation12 + $0x1], 0 }
   0xe   :  { %26 = vsyncpa [#allocation15], 0  ;;  %s4033_s17 = smov 0   ;;  %s4035_s18 = smov 0  }
   0xf   :  { %s4037_s19 = smov 0   ;;  %s4039_s20 = smov 0  }
  0x10 LB: > { %4772 = sst [smem:[#allocation21_spill]] %s3953_s19  ;;  %s4054_s21 = sadd.s32 1, %s3957_s20   ;;  %s3957_s20 = sphi %s4039_s20, %s4806_s20   ;;  %s3953_s19 = sphi %s4037_s19, %s4808_s19   ;;  %s3949_s18 = sphi %s4035_s18, %s4810_s18   ;;  %s3945_s17 = sphi %s4033_s17, %s4809_s17  }
  0x11   : > { %4773 = sst [smem:[#allocation22_spill]] %s4054_s21  ;;  %s60_s22 = sadd.s32 1, %s3953_s19 }
  0x12   : > { %s57_s23 = ssub.s32 %s3957_s20, %s4054_s21  ;;  %p67_p0 = scmp.ne.s32.totalorder %s3953_s19, %s3949_s18 }
  0x13   : > { %p58_p1 = scmp.eq.s32.totalorder %s57_s23, 0  ;;  %p68_p2 = scmp.eq.s32.totalorder %s3957_s20, 0 }
  0x14   : > { %p3551_p3 = scmp.lt.s32.totalorder %s3957_s20, 2  ;;  %s4067_s25 = sand.u32 1, %s3957_s20  }
  0x15   : > { %s4064_s24 = scalar_select %p58_p1, %s3953_s19, %s60_s22  }
  0x16   : > { %p69_p4 = por %p68_p2, %p67_p0  ;;  %s4070_s26 = sand.u32 1, %s3953_s19  }
  0x17   : > { %4774 = sst [smem:[#allocation23_spill]] %s4064_s24  ;;  %s3017_s27 = sshll.u32 %s4070_s26, 2 }
  0x18   : > { %s3018_s28 = sshll.u32 %s3957_s20, 6  ;;  %s4775_s1 = sld [smem:[#allocation25_spill]] }
  0x19   : > { %s375_s13 = scalar_lea.vmem [#allocation5], %s3017_s27  ;;  %p4079_p5 = pnand %p3551_p3, %p69_p4 }
  0x1a   : > { %s382_s14 = sshll.u32 %s375_s13, 4  ;;  %s4083_s14 = int_to_ptr.vmem [resolvable:$true] %s382_s14 }
  0x1b   : > { %s4776_s15 = scalar_select %p4079_p5, 1, 0 }
  0x1c   : > { %p4090_p7 = pneg %p4079_p5 }
  0x1e   : > { %s4077_s12 = scalar_lea.hbm %s4775_s1, %s3018_s28  ;;  %s3676_s29 = scalar_lea.hbm %s4775_s1, 128 }
  0x1f   : > { %s3671_s22 = scalar_lea.hbm %s4077_s12, 64  ;;  %p3677_p10 = scmp.lt.u32.totalorder %s4077_s12, %s4775_s1 }
  0x20   : > { %p3672_p6 = scmp.ne.s32.totalorder %s4077_s12, %s3671_s22  ;;  %p3678_p11 = scmp.lt.u32.totalorder %s3676_s29, %s3671_s22 }
  0x21   : > { %s4777_s23 = scalar_select %p4090_p7, 1, 0 }
  0x22   : > { %p3674_p8 = pnand %p4090_p7, %p3672_p6  ;;  %p3679_p12 = por %p3678_p11, %p3677_p10 }
  0x23   : > { %p3680_p13 = scmp.lt.u32.totalorder %s3671_s22, %s4077_s12 }
  0x24   : > { %p3675_p9 = pneg %p3674_p8 }
  0x25   : > { %p3681_p0 = por %p3680_p13, %p3679_p12 }
  0x27   : > { %p3682_p1 = pnand %p3681_p0, %p3675_p9 }
  0x29   : > { %3685 = shalt.err (!%p3682_p1)
}
  0x2a   : > { %s3686_s16 = scalar_lea.vmem %s4083_s14, 64  ;;  %s3959_s27 = smov [#allocation5]  }
  0x2b   : > { %p3687_p2 = scmp.ne.s32.totalorder %s4083_s14, %s3686_s16  ;;  %s3691_s28 = sshll.u32 %s3959_s27, 4  ;;  %s3692_s28 = int_to_ptr.vmem [resolvable:$false] %s3691_s28 }
  0x2c   : > { %s3693_s30 = scalar_lea.vmem %s3692_s28, 128  ;;  %p3694_p6 = scmp.lt.s32.totalorder %s4083_s14, %s3692_s28 }
  0x2d   : > { %p3689_p3 = pnand %p3687_p2, %p4090_p7  ;;  %p3695_p8 = scmp.lt.s32.totalorder %s3693_s30, %s3686_s16 }
  0x2f   : > { %p3690_p4 = pneg %p3689_p3  ;;  %p3696_p10 = por %p3695_p8, %p3694_p6 }
  0x31   : > { %p3697_p11 = pnand %p3696_p10, %p3690_p4 }
  0x33   : > { %3700 = shalt.err (!%p3697_p11)
}
  0x34   : > { %s4778_s22 = scalar_lea.sflag [#allocation6], %s4067_s25  ;;  %s4116_s29 = sshll.u32 %s3957_s20, 4 }
  0x35   : > { %3533 = dma.hbm_to_vmem [thread:$0]  (!%p4079_p5), %s4077_s12, 64, %s4083_s14, %s4778_s22  }
  0x36   : > { %s428_s13 = scalar_lea.vmem [#allocation8], %s4070_s26  ;;  %s4779_s5 = sld [smem:[#allocation27_spill]] }
  0x37   : > { %s435_s27 = sshll.u32 %s428_s13, 4  ;;  %s436_s27 = int_to_ptr.vmem [resolvable:$true] %s435_s27 }
  0x3c   : > { %s4123_s30 = scalar_lea.hbm %s4779_s5, %s4116_s29  ;;  %s3706_s22 = scalar_lea.hbm %s4779_s5, 32 }
  0x3d   : > { %s3701_s24 = scalar_lea.hbm %s4123_s30, 16  ;;  %p3707_p0 = scmp.lt.u32.totalorder %s4123_s30, %s4779_s5 }
  0x3e   : > { %p3702_p9 = scmp.ne.s32.totalorder %s4123_s30, %s3701_s24  ;;  %p3708_p1 = scmp.lt.u32.totalorder %s3706_s22, %s3701_s24 }
  0x3f   : > { %p3710_p3 = scmp.lt.u32.totalorder %s3701_s24, %s4123_s30 }
  0x40   : > { %p3704_p12 = pnand %p3702_p9, %p4090_p7  ;;  %p3709_p2 = por %p3708_p1, %p3707_p0 }
  0x42   : > { %p3705_p13 = pneg %p3704_p12  ;;  %p3711_p4 = por %p3710_p3, %p3709_p2 }
  0x44   : > { %p3712_p6 = pnand %p3711_p4, %p3705_p13 }
  0x46   : > { %3715 = shalt.err (!%p3712_p6)
}
  0x47   : > { %s3716_s16 = scalar_lea.vmem %s436_s27, 16  ;;  %s3960_s28 = smov [#allocation8]  }
  0x48   : > { %p3717_p8 = scmp.ne.s32.totalorder %s436_s27, %s3716_s16  ;;  %s3721_s1 = sshll.u32 %s3960_s28, 4  ;;  %s3722_s1 = int_to_ptr.vmem [resolvable:$false] %s3721_s1 }
  0x49   : > { %s3723_s12 = scalar_lea.vmem %s3722_s1, 32  ;;  %p3724_p9 = scmp.lt.s32.totalorder %s436_s27, %s3722_s1 }
  0x4a   : > { %p3719_p10 = pnand %p3717_p8, %p4090_p7  ;;  %p3725_p12 = scmp.lt.s32.totalorder %s3723_s12, %s3716_s16 }
  0x4c   : > { %p3720_p11 = pneg %p3719_p10  ;;  %p3726_p5 = por %p3725_p12, %p3724_p9 }
  0x4e   : > { %p3727_p0 = pnand %p3726_p5, %p3720_p11 }
  0x50   : > { %3730 = shalt.err (!%p3727_p0)
}
  0x51   : > { %p4780_p1 = scmp.ne.s32.totalorder %s4776_s15, 0  ;;  %s4781_s19 = scalar_lea.sflag [#allocation9], %s4067_s25 }
  0x52   : > { %s4782_s7 = sld [smem:[#allocation28_spill]]  ;;  %s466_s1 = scalar_lea.vmem [#allocation11], %s4070_s26 }
  0x53   : > { %3539 = dma.hbm_to_vmem [thread:$0]  (!%p4780_p1), %s4123_s30, 16, %s436_s27, %s4781_s19  }
  0x54   : > { %s473_s13 = sshll.u32 %s466_s1, 4  ;;  %s474_s13 = int_to_ptr.vmem [resolvable:$true] %s473_s13 }
  0x58   : > { %s4149_s22 = scalar_lea.hbm %s4782_s7, %s4116_s29  ;;  %s3736_s30 = scalar_lea.hbm %s4782_s7, 32 }
  0x59   : > { %s3731_s28 = scalar_lea.hbm %s4149_s22, 16  ;;  %p3737_p3 = scmp.lt.u32.totalorder %s4149_s22, %s4782_s7 }
  0x5a   : > { %p3732_p5 = scmp.ne.s32.totalorder %s4149_s22, %s3731_s28  ;;  %p3738_p4 = scmp.lt.u32.totalorder %s3736_s30, %s3731_s28 }
  0x5b   : > { %p3740_p8 = scmp.lt.u32.totalorder %s3731_s28, %s4149_s22 }
  0x5c   : > { %p3734_p13 = pnand %p3732_p5, %p4090_p7  ;;  %p3739_p6 = por %p3738_p4, %p3737_p3 }
  0x5e   : > { %p3735_p2 = pneg %p3734_p13  ;;  %p3741_p10 = por %p3740_p8, %p3739_p6 }
  0x60   : > { %p3742_p11 = pnand %p3741_p10, %p3735_p2 }
  0x62   : > { %3745 = shalt.err (!%p3742_p11)
}
  0x63   : > { %s3746_s14 = scalar_lea.vmem %s474_s13, 16  ;;  %s3961_s1 = smov [#allocation11]  }
  0x64   : > { %p3747_p9 = scmp.ne.s32.totalorder %s474_s13, %s3746_s14  ;;  %s3751_s16 = sshll.u32 %s3961_s1, 4  ;;  %s3752_s16 = int_to_ptr.vmem [resolvable:$false] %s3751_s16 }
  0x65   : > { %s3753_s12 = scalar_lea.vmem %s3752_s16, 32  ;;  %p3754_p5 = scmp.lt.s32.totalorder %s474_s13, %s3752_s16 }
  0x66   : > { %p3749_p12 = pnand %p3747_p9, %p4090_p7  ;;  %p3755_p13 = scmp.lt.s32.totalorder %s3753_s12, %s3746_s14 }
  0x68   : > { %p3750_p0 = pneg %p3749_p12  ;;  %p3756_p1 = por %p3755_p13, %p3754_p5 }
  0x6a   : > { %p3757_p3 = pnand %p3756_p1, %p3750_p0 }
  0x6c   : > { %3760 = shalt.err (!%p3757_p3)
}
  0x6d   : > { %p4783_p4 = scmp.ne.s32.totalorder %s4776_s15, 0  ;;  %s4784_s28 = scalar_lea.sflag [#allocation12], %s4067_s25 }
  0x6e   : > { %s4173_s27 = sadd.s32 4294967295, %s3957_s20   ;;  %p73_p1 = scmp.ne.s32.totalorder %s3949_s18, %s3945_s17 }
  0x6f   : > { %3545 = dma.hbm_to_vmem [thread:$0]  (!%p4783_p4), %s4149_s22, 16, %s474_s13, %s4784_s28  }
  0x70   : > { %p4759_p2 = scmp.eq.s32.totalorder %s4173_s27, 0  ;;  %p3013_p6 = scmp.ge.s32.totalorder %s3957_s20, 1 }
  0x71   : > { %p334_p8 = scmp.lt.s32.totalorder %s3957_s20, 3  ;;  %s3962_s22 = smov [#allocation3]  }
  0x72   : > { %p4182_p10 = por %p4759_p2, %p73_p1  ;;  %s346_s13 = sshll.u32 %s3962_s22, 4  ;;  %s347_s13 = int_to_ptr.vmem [resolvable:$true] %s346_s13 }
  0x73   : > { %p4187_p9 = pnand %p3013_p6, %p334_p8  ;;  %s3963_s19 = smov [#allocation14]  }
  0x74   : > { %s4785_s16 = scalar_select %p4182_p10, 1, 0 }
  0x75   : > { %s4786_s30 = scalar_select %p4187_p9, 1, 0 }
  0x76   : > { %p3523_p12 = pneg %p4187_p9  ;;  %s360_s24 = sshll.u32 %s3963_s19, 4  ;;  %s4199_s24 = int_to_ptr.vmem [resolvable:$true] %s360_s24 }
  0x77   : > { %s4788_s0 = sld [smem:[#allocation24_spill]] }
  0x78   : > { %p4195_p0 = pnand %p3523_p12, %p4759_p2 }
  0x7a   : > { %p3763_p13 = pneg %p4195_p0 }
  0x7d   : > { %s3761_s28 = scalar_lea.hbm %s4788_s0, 256 }
  0x7e   : > { %p3762_p5 = scmp.ne.s32.totalorder %s4788_s0, %s3761_s28  ;;  %p3768_p6 = scmp.lt.u32.totalorder %s3761_s28, %s4788_s0 }
  0x80   : > { %p3764_p3 = pnand %p3763_p13, %p3762_p5 }
  0x82   : > { %p3765_p1 = pneg %p3764_p3 }
  0x84   : > { %p3770_p8 = pnand %p3768_p6, %p3765_p1 }
  0x86   : > { %3773 = shalt.err (!%p3770_p8)
}
  0x87   : > { %s3774_s19 = scalar_lea.vmem %s347_s13, 256  ;;  %p3782_p10 = scmp.lt.s32.totalorder %s347_s13, %s347_s13 }
  0x88   : > { %p3775_p12 = scmp.ne.s32.totalorder %s347_s13, %s3774_s19  ;;  %p3783_p9 = scmp.lt.s32.totalorder %s3774_s19, %s3774_s19 }
  0x8a   : > { %p3777_p11 = pnand %p3775_p12, %p3763_p13  ;;  %p3784_p4 = por %p3783_p9, %p3782_p10 }
  0x8c   : > { %p3778_p2 = pneg %p3777_p11 }
  0x8e   : > { %p3785_p7 = pnand %p3784_p4, %p3778_p2 }
  0x90   : > { %3788 = shalt.err (!%p3785_p7)
}
  0x91   : > { %s3964_s5 = smov 128   ;;  %s3965_s1 = smov 8  }
  0x92   : > { %3526 = dma.hbm_to_vmem [thread:$0]  (!%p4195_p0), %s4788_s0, 256, %s347_s13, [#allocation4], %s3964_s5, %s3964_s5, %s3965_s1  }
  0x93   : > { %s3789_s22 = scalar_lea.hbm %s4752_s10, 32 }
  0x94   : > { %p3790_p11 = scmp.ne.s32.totalorder %s4752_s10, %s3789_s22  ;;  %p3796_p2 = scmp.lt.u32.totalorder %s3789_s22, %s4752_s10 }
  0x96   : > { %p3792_p7 = pnand %p3790_p11, %p3763_p13 }
  0x98   : > { %p3793_p4 = pneg %p3792_p7 }
  0x9a   : > { %p3798_p10 = pnand %p3796_p2, %p3793_p4 }
  0x9c   : > { %3801 = shalt.err (!%p3798_p10)
}
  0x9d   : > { %s3802_s13 = scalar_lea.vmem %s4199_s24, 32  ;;  %p3810_p1 = scmp.lt.s32.totalorder %s4199_s24, %s4199_s24 }
  0x9e   : > { %p3803_p9 = scmp.ne.s32.totalorder %s4199_s24, %s3802_s13  ;;  %p3811_p6 = scmp.lt.s32.totalorder %s3802_s13, %s3802_s13 }
  0xa0   : > { %p3805_p5 = pnand %p3803_p9, %p3763_p13  ;;  %p3812_p8 = por %p3811_p6, %p3810_p1 }
  0xa2   : > { %p3806_p3 = pneg %p3805_p5 }
  0xa4   : > { %p3813_p12 = pnand %p3812_p8, %p3806_p3 }
  0xa6   : > { %3816 = shalt.err (!%p3813_p12)
}
  0xa7   : > { %3529 = dma.hbm_to_vmem [thread:$0]  (!%p4195_p0), %s4752_s10, 32, %s4199_s24, [#allocation15]  }
  0xa8   : > { %s3178_s14 = sshll.u32 %s3957_s20, 8  ;;  %s4789_s5 = sshll.u32 %s4070_s26, 4 }
  0xa9   : > { %s408_s1 = scalar_lea.vmem [#allocation7], %s4789_s5  ;;  %s4257_s28 = scalar_lea.hbm %s4746_s4, %s3178_s14 }
  0xaa   : > { %s415_s7 = sshll.u32 %s408_s1, 4  ;;  %s3817_s17 = scalar_lea.hbm %s4257_s28, 256  ;;  %s4259_s7 = int_to_ptr.vmem [resolvable:$true] %s415_s7 }
  0xab   : > { %p3818_p13 = scmp.ne.s32.totalorder %s4257_s28, %s3817_s17  ;;  %p4790_p11 = scmp.ne.s32.totalorder %s4777_s23, 0 }
  0xac   : > { %s3822_s19 = scalar_lea.hbm %s4746_s4, 512  ;;  %p3823_p4 = scmp.lt.u32.totalorder %s4257_s28, %s4746_s4 }
  0xad   : > { %p3820_p0 = pnand %p3818_p13, %p4790_p11  ;;  %p3824_p2 = scmp.lt.u32.totalorder %s3822_s19, %s3817_s17 }
  0xae   : > { %p3826_p9 = scmp.lt.u32.totalorder %s3817_s17, %s4257_s28 }
  0xaf   : > { %p3821_p7 = pneg %p3820_p0  ;;  %p3825_p10 = por %p3824_p2, %p3823_p4 }
  0xb1   : > { %p3827_p5 = por %p3826_p9, %p3825_p10 }
  0xb3   : > { %p3828_p3 = pnand %p3827_p5, %p3821_p7 }
  0xb5   : > { %3831 = shalt.err (!%p3828_p3)
}
  0xb6   : > { %s3832_s11 = scalar_lea.vmem %s4259_s7, 256  ;;  %s3966_s5 = smov [#allocation7]  }
  0xb7   : > { %p3833_p1 = scmp.ne.s32.totalorder %s4259_s7, %s3832_s11  ;;  %s3837_s1 = sshll.u32 %s3966_s5, 4  ;;  %s3838_s1 = int_to_ptr.vmem [resolvable:$false] %s3837_s1 }
  0xb8   : > { %s3839_s21 = scalar_lea.vmem %s3838_s1, 512  ;;  %p3840_p12 = scmp.lt.s32.totalorder %s4259_s7, %s3838_s1 }
  0xb9   : > { %p3835_p6 = pnand %p3833_p1, %p4790_p11  ;;  %p3841_p13 = scmp.lt.s32.totalorder %s3839_s21, %s3832_s11 }
  0xbb   : > { %p3836_p8 = pneg %p3835_p6  ;;  %p3842_p0 = por %p3841_p13, %p3840_p12 }
  0xbd   : > { %p3843_p4 = pnand %p3842_p0, %p3836_p8 }
  0xbf   : > { %3846 = shalt.err (!%p3843_p4)
}
  0xc0   : > { %s3967_s12 = smov 64   ;;  %s3968_s17 = smov 4  }
  0xc1   : > { %p4791_p7 = scmp.ne.s32.totalorder %s4776_s15, 0  ;;  %s4792_s24 = scalar_lea.sflag [#allocation6], %s4067_s25 }
  0xc2   : > { %s4292_s13 = scalar_lea.hbm %s4748_s6, %s3178_s14  ;;  %s4793_s3 = sshll.u32 %s4070_s26, 4 }
  0xc3   : > { %3536 = dma.hbm_to_vmem [thread:$0]  (!%p4791_p7), %s4257_s28, 256, %s4259_s7, %s4792_s24, %s3967_s12, %s3967_s12, %s3968_s17  }
  0xc4   : > { %s446_s11 = scalar_lea.vmem [#allocation10], %s4793_s3  ;;  %s4302_s0 = scalar_lea.hbm %s4751_s9, %s4116_s29 }
  0xc5   : > { %s453_s5 = sshll.u32 %s446_s11, 4  ;;  %s3847_s20 = scalar_lea.hbm %s4292_s13, 256  ;;  %s4296_s5 = int_to_ptr.vmem [resolvable:$true] %s453_s5 }
  0xc6   : > { %p3848_p2 = scmp.ne.s32.totalorder %s4292_s13, %s3847_s20  ;;  %s3852_s28 = scalar_lea.hbm %s4748_s6, 512 }
  0xc7   : > { %p3853_p5 = scmp.lt.u32.totalorder %s4292_s13, %s4748_s6  ;;  %p3854_p3 = scmp.lt.u32.totalorder %s3852_s28, %s3847_s20 }
  0xc8   : > { %p3850_p10 = pnand %p3848_p2, %p4790_p11  ;;  %p3856_p6 = scmp.lt.u32.totalorder %s3847_s20, %s4292_s13 }
  0xc9   : > { %p3855_p1 = por %p3854_p3, %p3853_p5 }
  0xca   : > { %p3851_p9 = pneg %p3850_p10 }
  0xcb   : > { %p3857_p8 = por %p3856_p6, %p3855_p1 }
  0xcd   : > { %p3858_p12 = pnand %p3857_p8, %p3851_p9 }
  0xcf   : > { %3861 = shalt.err (!%p3858_p12)
}
  0xd0   : > { %s3862_s29 = scalar_lea.vmem %s4296_s5, 256  ;;  %s3969_s19 = smov [#allocation10]  }
  0xd1   : > { %p3863_p13 = scmp.ne.s32.totalorder %s4296_s5, %s3862_s29  ;;  %s3867_s3 = sshll.u32 %s3969_s19, 4  ;;  %s3868_s3 = int_to_ptr.vmem [resolvable:$false] %s3867_s3 }
  0xd2   : > { %s3869_s11 = scalar_lea.vmem %s3868_s3, 512  ;;  %p3870_p2 = scmp.lt.s32.totalorder %s4296_s5, %s3868_s3 }
  0xd3   : > { %p3865_p0 = pnand %p3863_p13, %p4790_p11  ;;  %p3871_p10 = scmp.lt.s32.totalorder %s3869_s11, %s3862_s29 }
  0xd5   : > { %p3866_p4 = pneg %p3865_p0  ;;  %p3872_p5 = por %p3871_p10, %p3870_p2 }
  0xd7   : > { %p3873_p3 = pnand %p3872_p5, %p3866_p4 }
  0xd9   : > { %3876 = shalt.err (!%p3873_p3)
}
  0xda   : > { %s4794_s1 = scalar_lea.sflag [#allocation9], %s4067_s25  ;;  %s491_s21 = scalar_lea.vmem [#allocation13], %s4070_s26 }
  0xdb   : > { %3542 = dma.hbm_to_vmem [thread:$0]  (!%p4791_p7), %s4292_s13, 256, %s4296_s5, %s4794_s1, %s3967_s12, %s3967_s12, %s3968_s17  }
  0xdc   : > { %s498_s20 = sshll.u32 %s491_s21, 4  ;;  %s3877_s14 = scalar_lea.hbm %s4302_s0, 16  ;;  %s499_s20 = int_to_ptr.vmem [resolvable:$true] %s498_s20 }
  0xdd   : > { %p3878_p9 = scmp.ne.s32.totalorder %s4302_s0, %s3877_s14  ;;  %s3882_s24 = scalar_lea.hbm %s4751_s9, 32 }
  0xde   : > { %p3883_p8 = scmp.lt.u32.totalorder %s4302_s0, %s4751_s9  ;;  %p3884_p12 = scmp.lt.u32.totalorder %s3882_s24, %s3877_s14 }
  0xdf   : > { %p3880_p1 = pnand %p3878_p9, %p4790_p11  ;;  %p3886_p0 = scmp.lt.u32.totalorder %s3877_s14, %s4302_s0 }
  0xe0   : > { %p3885_p13 = por %p3884_p12, %p3883_p8 }
  0xe1   : > { %p3881_p6 = pneg %p3880_p1 }
  0xe2   : > { %p3887_p4 = por %p3886_p0, %p3885_p13 }
  0xe4   : > { %p3888_p2 = pnand %p3887_p4, %p3881_p6 }
  0xe6   : > { %3891 = shalt.err (!%p3888_p2)
}
  0xe7   : > { %s3892_s26 = scalar_lea.vmem %s499_s20, 16  ;;  %s3970_s12 = smov [#allocation13]  }
  0xe8   : > { %p3893_p10 = scmp.ne.s32.totalorder %s499_s20, %s3892_s26  ;;  %s3897_s17 = sshll.u32 %s3970_s12, 4  ;;  %s3898_s17 = int_to_ptr.vmem [resolvable:$false] %s3897_s17 }
  0xe9   : > { %s3899_s13 = scalar_lea.vmem %s3898_s17, 32  ;;  %p3900_p9 = scmp.lt.s32.totalorder %s499_s20, %s3898_s17 }
  0xea   : > { %p3895_p5 = pnand %p3893_p10, %p4790_p11  ;;  %p3901_p1 = scmp.lt.s32.totalorder %s3899_s13, %s3892_s26 }
  0xec   : > { %p3896_p3 = pneg %p3895_p5  ;;  %p3902_p7 = por %p3901_p1, %p3900_p9 }
  0xee   : > { %p3903_p8 = pnand %p3902_p7, %p3896_p3 }
  0xf0   : > { %3906 = shalt.err (!%p3903_p8)
}
  0xf1   : > { %p4795_p12 = scmp.ne.s32.totalorder %s4776_s15, 0  ;;  %s4796_s5 = scalar_lea.sflag [#allocation12], %s4067_s25 }
  0xf2   : > { %p4797_p6 = scmp.ne.s32.totalorder %s4786_s30, 0 }
  0xf3   : > { %3548 = dma.hbm_to_vmem [thread:$0]  (!%p4795_p12), %s4302_s0, 16, %s499_s20, %s4796_s5  }
  0xf4   : > { %507 = sbr.rel (%p4797_p6) target bundleno = 5568 (0x15c0), region = 64  ;;  %p4798_p11 = scmp.eq.s32.totalorder (!%p4797_p6), %s4173_s27, 0 }
  0xfb   : > { %3924 = dma.done.wait (%p4798_p11), [#allocation4], 256   ;;  %p4799_p13 = pmov %p4798_p11 }
  0xfc   : > { %s513_s23 = sand.u32 1, %s4173_s27   ;;  %s4358_s19 = sand.u32 1, %s3949_s18  }
  0xfd   : > { %3926 = vsyncadd (%p4799_p13), [#allocation4], 4294967040  ;;  %s3030_s15 = sshll.u32 %s4358_s19, 2  ;;  %s514_s25 = scalar_lea.sflag [#allocation6], %s513_s23 }
  0xfe   : > { %s4361_s3 = scalar_lea.vmem [#allocation5], %s3030_s15  ;;  %p4800_p7 = scmp.ne.s32.totalorder %s4785_s16, 0 }
 0x100   : > { %3928 = dma.done.wait (%p4800_p7), %s514_s25, 320  }
 0x101   : > { %3930 = vsyncadd (%p4800_p7), %s514_s25, 4294966976  ;;  %s3031_s0 = sshll.u32 %s4358_s19, 4  ;;  %s532_s11 = scalar_lea.sflag [#allocation9], %s513_s23 }
 0x102   : > { %s4368_s30 = scalar_lea.vmem [#allocation7], %s3031_s0  ;;  %s534_s1 = scalar_lea.vmem [#allocation8], %s4358_s19 }
 0x103   : > { %3932 = dma.done.wait (%p4800_p7), %s532_s11, 272  }
 0x104   : > { %3934 = vsyncadd (%p4800_p7), %s532_s11, 4294967024  ;;  %s4375_s21 = scalar_lea.vmem [#allocation10], %s3031_s0  ;;  %s549_s20 = scalar_lea.sflag [#allocation12], %s513_s23 }
 0x105   : > { %s551_s14 = scalar_lea.vmem [#allocation11], %s4358_s19 }
 0x106   : > { %3936 = dma.done.wait (%p4800_p7), %s549_s20, 32  }
 0x107   : > { %3938 = vsyncadd (%p4800_p7), %s549_s20, 4294967264  ;;  %s559_s7 = scalar_lea.vmem [#allocation13], %s4358_s19  ;;  %p4801_p0 = pmov %p4798_p11 }
 0x109   : > { %3940 = dma.done.wait (%p4801_p0), [#allocation15], 32   ;;  %p4802_p4 = pmov %p4801_p0 }
 0x10a   : > { %p633_p2 = scmp.lt.s32.totalorder %s4173_s27, 1  ;;  %s4803_s25 = sld [smem:[#allocation26_spill]] }
 0x10b   : > { %3942 = vsyncadd (%p4802_p4), [#allocation15], 4294967264  ;;  %p4804_p10 = scmp.ne.s32.totalorder %s4173_s27, 0 }
 0x10c   : > { %s634_s28 = scalar_select %p633_p2, %s4173_s27, 1 }
 0x10d   : > { %651 = sbr.rel (%p4804_p10) target bundleno = 276 (0x114), region = 100  ;;  %v652_v0 = vld [vmem:[#allocation3] sm:$0xff] (!%p4804_p10)  ;;  %vm654_vm0 = vcmask (!%p4804_p10), 261120   ;;  %v653_v1 = vld [vmem:[#allocation3 + $0x8] sm:$0xff] (!%p4804_p10) }
 0x10e   : > { %s3501_s24 = smul.u32 192, %s634_s28  ;;  %s3180_s22 = sshll.u32 %s634_s28, 5  ;;  %655 = vst.msk [vmem:[#allocation2] sm:$0xff] (!%p4804_p10), %vm654_vm0, %v652_v0  ;;  %656 = vst.msk [vmem:[#allocation2 + $0x8] sm:$0xff] (!%p4804_p10), %vm654_vm0, %v653_v1 }
 0x10f   : > { %s3502_s29 = smul.u32 12, %s634_s28  ;;  %s4392_s16 = scalar_lea.vmem %s4750_s8, %s3180_s22 }
 0x110   : > { %s4397_s5 = scalar_lea.vmem %s4744_s2, %s3501_s24 }
 0x111   : > { %s4402_s0 = scalar_lea.vmem %s4803_s25, %s3502_s29 }
 0x114 PF: > { %vm660_vm1 = vcmask 261120   ;;  %v3594_v16 = vld [vmem:[%s4397_s5] sm:$0xff]   ;;  %v3971_v18 = vmov 0.0   ;;  %v3596_v19 = vld [vmem:[%s4397_s5 + $0x8] sm:$0xff]   ;;  %vm3972_vm2 = vmmov 0   ;;  %v688_v24 = vlaneseq  ;;  %p3175_p5 = scmp.ne.s32.totalorder %s4173_s27, 1 }
 0x115   : > { %v657_v2 = vld [vmem:[#allocation2] sm:$0xff]  ;;  %v658_v3 = vld [vmem:[#allocation2 + $0x8] sm:$0xff]  ;;  %3265 = vmatprep.subr.bf16.mxu0 %v3971_v18  ;;  %3273 = vmatprep.subr.bf16.mxu1 %v3971_v18  ;;  %vm904_vm3 = vcmask 64512   ;;  %vm1028_vm4 = vcmask 1043456   ;;  %vm2715_vm5 = vcmask 523264  }
 0x116   : > { %v661_v4 = vsel %vm660_vm1, %v657_v2, 0.0  ;;  %v664_v5 = vsel %vm660_vm1, %v658_v3, 0.0  ;;  %v3595_v17 = vld [vmem:[%s4397_s5 + $0x40] sm:$0xff]   ;;  %3266 = vmatpush3.bf16.msra.mxu0 %v3594_v16  ;;  %v3597_v20 = vld [vmem:[%s4397_s5 + $0x48] sm:$0xff]   ;;  %3269 = vmatprep.mubr.msk.bf16.mxu0 %vm3972_vm2, %v3971_v18  ;;  %v4424_v28 = vshrl.u32 %v688_v24, 7 }
 0x117   : > { %662 = vadd.xlane.f32.xlu0 %v661_v4  ;;  %3274 = vmatpush3.bf16.msra.mxu1 %v3595_v17  ;;  %v659_v30 = vld [vmem:[%s4361_s3] sm:$0xf]  ;;  %v3599_v44 = vld [vmem:[%s4397_s5 + $0x88] sm:$0xff]  }
 0x118   : > { %3267 = vmatprep.subr.bf16.mxu0 %v3971_v18  ;;  %3275 = vmatprep.subr.bf16.mxu1 %v3971_v18  ;;  %v690_v29 = vsub.s32 0, %v4424_v28  ;;  %v696_v33 = vsub.s32 1, %v4424_v28  ;;  %v3598_v42 = vld [vmem:[%s4397_s5 + $0x80] sm:$0xff]   ;;  %v3056_v60 = vld [vmem:[%s4402_s0 + $0x8] ss:$0 sm:$0xff] }
 0x119   : > { %3277 = vmatprep.mubr.msk.bf16.mxu1 %vm3972_vm2, %v3971_v18  ;;  %v3047_v45 = vld [vmem:[%s4402_s0 + $0x4] ss:$0 sm:$0xff]  ;;  %v3038_v57 = vld [vmem:[%s4402_s0] ss:$0 sm:$0xff] }
 0x11a   : > { %3268 = vmatpush3.bf16.msra.mxu0 %v3596_v19  ;;  %v691_v32 = vrot.slane %v659_v30, %v690_v29  ;;  %v697_v36 = vrot.slane %v659_v30, %v696_v33 }
 0x11b   : > { %665 = vadd.xlane.f32.xlu0 %v664_v5  ;;  %3276 = vmatpush3.bf16.msra.mxu1 %v3597_v20 }
 0x11c   : > { %3281 = vmatprep.subr.bf16.mxu0 %v3971_v18  ;;  %3289 = vmatprep.subr.bf16.mxu1 %v3971_v18 }
 0x1a4   : > { %v663_v6 = vpop.xlane.xlu0 %662 }
 0x1a5   : > { %v668_v7 = vmul.f32 0.03125, %v663_v6 }
 0x1a7   : > { %v670_v8 = vsub.f32 %v657_v2, %v668_v7 }
 0x1a8   : > { %v666_v9 = vpop.xlane.xlu0 %665 }
 0x1a9   : > { %v669_v10 = vmul.f32 0.03125, %v666_v9  ;;  %v672_v11 = vmul.f32 %v670_v8, %v670_v8 }
 0x1ab   : > { %v671_v12 = vsub.f32 %v658_v3, %v669_v10  ;;  %v674_v13 = vsel %vm660_vm1, %v672_v11, 0.0 }
 0x1ac   : > { %675 = vadd.xlane.f32.xlu1 %v674_v13 }
 0x1ad   : > { %v673_v14 = vmul.f32 %v671_v12, %v671_v12 }
 0x1af   : > { %v677_v15 = vsel %vm660_vm1, %v673_v14, 0.0 }
 0x1b0   : > { %678 = vadd.xlane.f32.xlu1 %v677_v15 }
 0x239   : > { %v676_v21 = vpop.xlane.xlu1 %675 }
 0x23a   : > { %v680_v22 = vmul.f32 0.03125, %v676_v21 }
 0x23c   : > { %v682_v23 = vadd.f32 1e-05, %v680_v22 }
 0x23d   : > { %v679_v25 = vpop.xlane.xlu1 %678 }
 0x23e   : > { %3624 = vrsqrt.f32 %v682_v23  ;;  %v681_v26 = vmul.f32 0.03125, %v679_v25 }
 0x240   : > { %v683_v27 = vadd.f32 1e-05, %v681_v26 }
 0x242   : > { %3626 = vrsqrt.f32 %v683_v27 }
 0x248   : > { %v3625_v31 = vpop.eup %3624 }
 0x249   : > { %v686_v34 = vmul.f32 %v3625_v31, %v670_v8 }
 0x24b   : > { %v692_v37 = vmul.f32 %v691_v32, %v686_v34 }
 0x24c   : > { %v3627_v35 = vpop.eup %3626 }
 0x24d   : > { %v687_v38 = vmul.f32 %v3627_v35, %v671_v12  ;;  %v698_v40 = vadd.f32 %v697_v36, %v692_v37 }
 0x24f   : > { %v693_v39 = vmul.f32 %v691_v32, %v687_v38 }
 0x251   : > { %v699_v41 = vadd.f32 %v697_v36, %v693_v39 }
 0x253   : > { %v4434_v43 = vpack.c.bf16 %v699_v41, %v698_v40 }
 0x255   : > { %3270 = vmatmul.mubr.msk.bf16.vlgmr.msra.gmra.mrb[0].mxu0 %vm660_vm1, %v4434_v43  ;;  %3278 = vmatmul.mubr.msk.bf16.vlgmr.msra.gmra.mrb[0].mxu1 %vm660_vm1, %v4434_v43 }
 0x256   : > { %3282 = vmatpush3.bf16.msra.mxu0 %v3598_v42  ;;  %3285 = vmatprep.mubr.msk.bf16.mxu0 %vm3972_vm2, %v3971_v18 }
 0x257   : > { %3283 = vmatprep.subr.bf16.mxu0 %v3971_v18  ;;  %3291 = vmatprep.mubr.msk.bf16.mxu1 %vm3972_vm2, %v3971_v18 }
 0x25a   : > { %3284 = vmatpush3.bf16.msra.mxu0 %v3599_v44  ;;  %v3600_v44 = vld [vmem:[%s4397_s5 + $0x10] sm:$0xff]  }
 0x25b   : > { %3295 = vmatprep.subr.bf16.mxu0 %v3971_v18 }
 0x25d   : > { %3286 = vmatmul.mubr.msk.bf16.vlgmr.msra.gmra.mrb[4].mxu0 %vm660_vm1, %v4434_v43 }
 0x25e   : > { %3297 = vmatprep.mubr.msk.bf16.mxu0 %vm3972_vm2, %v3971_v18 }
 0x328   : > { %v761_v46 = vpop.f32.mrb[0].mxu0  ;;  %v827_v47 = vpop.f32.mrb[0].mxu1 }
 0x329   : > { %v828_v48 = vadd.f32 %v3047_v45, %v827_v47  ;;  %v3271_v49 = vpop.f32.mrb[1].mxu0  ;;  %v3279_v50 = vpop.f32.mrb[1].mxu1  ;;  %v762_v61 = vadd.f32 %v3038_v57, %v761_v46  ;;  %v3601_v47 = vld [vmem:[%s4397_s5 + $0x50] sm:$0xff]  }
 0x32a   : > { %v764_v51 = vpop.f32.mrb[2].mxu0  ;;  %v830_v52 = vpop.f32.mrb[2].mxu1  ;;  %v3602_v49 = vld [vmem:[%s4397_s5 + $0x18] sm:$0xff]  }
 0x32b   : > { %v902_v53 = vpack.c.bf16 %v828_v48, %v828_v48  ;;  %v831_v54 = vadd.f32 %v3047_v45, %v830_v52  ;;  %v3272_v55 = vpop.f32.mrb[3].mxu0  ;;  %v3280_v56 = vpop.f32.mrb[3].mxu1  ;;  %v765_v0 = vadd.f32 %v3038_v57, %v764_v51  ;;  %v900_v4 = vpack.c.bf16 %v762_v61, %v762_v61  ;;  %v3603_v50 = vld [vmem:[%s4397_s5 + $0x58] sm:$0xff]   ;;  %v3604_v51 = vld [vmem:[%s4397_s5 + $0x90] sm:$0xff]  }
 0x32c   : > { %v3605_v52 = vld [vmem:[%s4397_s5 + $0x98] sm:$0xff]  }
 0x32d   : > { %v909_v58 = vsel %vm904_vm3, %v902_v53, 0  ;;  %v903_v59 = vpack.c.bf16 %v831_v54, %v831_v54  ;;  %v901_v8 = vpack.c.bf16 %v765_v0, %v765_v0 }
 0x32e   : > { %3290 = vmatpush3.bf16.xpose.msra.mxu1 %v909_v58 }
 0x32f   : > { %v955_v62 = vsel %vm904_vm3, %v903_v59, 0  ;;  %3301 = vmatprep.subr.bf16.mxu1 %v3971_v18 }
 0x330   : > { %v893_v63 = vpop.f32.mrb[4].mxu0  ;;  %3296 = vmatpush3.bf16.xpose.msra.mxu0 %v955_v62 }
 0x331   : > { %v894_v1 = vadd.f32 %v3056_v60, %v893_v63  ;;  %v3287_v2 = vpop.f32.mrb[5].mxu0  ;;  %3307 = vmatprep.subr.bf16.mxu0 %v3971_v18  ;;  %v3078_v63 = vld [vmem:[%s4402_s0 + $0x5] ss:$0 sm:$0xff] }
 0x332   : > { %v896_v3 = vpop.f32.mrb[6].mxu0 }
 0x333   : > { %v1023_v5 = vpack.c.bf16 %v894_v1, %v894_v1  ;;  %v897_v6 = vadd.f32 %v3056_v60, %v896_v3  ;;  %v3288_v7 = vpop.f32.mrb[7].mxu0 }
 0x335   : > { %v1030_v9 = vsel %vm1028_vm4, %v1023_v5, 0  ;;  %v1024_v10 = vpack.c.bf16 %v897_v6, %v897_v6  ;;  %3292 = vmatmul.mubr.msk.bf16.vlgmr.msra.gmra.mrb[4].mxu1 %vm904_vm3, %v900_v4 }
 0x336   : > { %3302 = vmatpush3.bf16.msra.mxu1 %v1030_v9  ;;  %3303 = vmatprep.mubr.msk.bf16.mxu1 %vm3972_vm2, %v3971_v18 }
 0x337   : > { %v1076_v11 = vsel %vm1028_vm4, %v1024_v10, 0  ;;  %3298 = vmatmul.mubr.msk.bf16.vlgmr.msra.gmra.mrb[8].mxu0 %vm904_vm3, %v901_v8  ;;  %3313 = vmatprep.subr.bf16.mxu1 %v3971_v18  ;;  %v3069_v10 = vld [vmem:[%s4402_s0 + $0x1] ss:$0 sm:$0xff] }
 0x338   : > { %3308 = vmatpush3.bf16.msra.mxu0 %v1076_v11  ;;  %3309 = vmatprep.mubr.msk.bf16.mxu0 %vm3972_vm2, %v3971_v18  ;;  %v3087_v11 = vld [vmem:[%s4402_s0 + $0x9] ss:$0 sm:$0xff] }
 0x339   : > { %3321 = vmatprep.subr.bf16.mxu0 %v3971_v18 }
 0x408   : > { %v945_v12 = vpop.f32.mrb[4].mxu1 }
 0x409   : > { %v997_v13 = vmul.f32 0.35355338, %v945_v12  ;;  %v3293_v14 = vpop.f32.mrb[5].mxu1 }
 0x40a   : > { %v948_v15 = vpop.f32.mrb[6].mxu1  ;;  %v991_v16 = vpop.f32.mrb[8].mxu0 }
 0x40b   : > { %v998_v17 = vmul.f32 0.35355338, %v991_v16  ;;  %v3294_v19 = vpop.f32.mrb[7].mxu1  ;;  %v3299_v20 = vpop.f32.mrb[9].mxu0  ;;  %v999_v21 = vsel %vm904_vm3, %v997_v13, -inf }
 0x40c   : > { %1000 = vmax.xlane.f32.xlu1 %v999_v21  ;;  %v994_v22 = vpop.f32.mrb[10].mxu0 }
 0x40d   : > { %v3300_v23 = vpop.f32.mrb[11].mxu0  ;;  %v1002_v24 = vsel %vm904_vm3, %v998_v17, -inf }
 0x40e   : > { %1003 = vmax.xlane.f32.xlu0 %v1002_v24 }
 0x499   : > { %v1001_v25 = vpop.xlane.xlu1 %1000 }
 0x49a   : > { %v1005_v26 = vsub.f32 %v997_v13, %v1001_v25 }
 0x49b   : > { %v1004_v27 = vpop.xlane.xlu0 %1003 }
 0x49c   : > { %v1007_v30 = vmul.f32 1.442695, %v1005_v26  ;;  %v1006_v31 = vsub.f32 %v998_v17, %v1004_v27 }
 0x49e   : > { %3628 = vpow2.f32 %v1007_v30  ;;  %v1009_v32 = vmul.f32 1.442695, %v1006_v31 }
 0x4a0   : > { %3630 = vpow2.f32 %v1009_v32 }
 0x4a8   : > { %v3629_v34 = vpop.eup %3628 }
 0x4a9   : > { %v1011_v35 = vsel %vm904_vm3, %v3629_v34, 0.0 }
 0x4aa   : > { %v3631_v36 = vpop.eup %3630  ;;  %1012 = vadd.xlane.f32.xlu1 %v1011_v35 }
 0x4ab   : > { %v1014_v37 = vsel %vm904_vm3, %v3631_v36, 0.0 }
 0x4ac   : > { %1015 = vadd.xlane.f32.xlu0 %v1014_v37 }
 0x537   : > { %v1013_v38 = vpop.xlane.xlu1 %1012 }
 0x538   : > { %3632 = vrcp.f32 %v1013_v38 }
 0x539   : > { %v1016_v39 = vpop.xlane.xlu0 %1015 }
 0x53a   : > { %3634 = vrcp.f32 %v1016_v39 }
 0x542   : > { %v3633_v40 = vpop.eup %3632 }
 0x543   : > { %v1018_v41 = vmul.f32 %v3633_v40, %v3629_v34 }
 0x544   : > { %v3635_v42 = vpop.eup %3634 }
 0x545   : > { %v1020_v45 = vmul.f32 %v3635_v42, %v3631_v36  ;;  %v1021_v46 = vpack.c.bf16 %v1018_v41, %v1018_v41 }
 0x547   : > { %3304 = vmatmul.mubr.msk.bf16.vlgmr.msra.gmra.mrb[8].mxu1 %vm904_vm3, %v1021_v46  ;;  %v1022_v48 = vpack.c.bf16 %v1020_v45, %v1020_v45 }
 0x548   : > { %3314 = vmatpush3.bf16.msra.mxu1 %v3600_v44  ;;  %3317 = vmatprep.mubr.msk.bf16.mxu1 %vm3972_vm2, %v3971_v18 }
 0x549   : > { %3310 = vmatmul.mubr.msk.bf16.vlgmr.msra.gmra.mrb[12].mxu0 %vm904_vm3, %v1022_v48  ;;  %3315 = vmatprep.subr.bf16.mxu1 %v3971_v18 }
 0x54a   : > { %3322 = vmatpush3.bf16.msra.mxu0 %v3601_v47  ;;  %3325 = vmatprep.mubr.msk.bf16.mxu0 %vm3972_vm2, %v3971_v18 }
 0x54b   : > { %3323 = vmatprep.subr.bf16.mxu0 %v3971_v18 }
 0x54c   : > { %3316 = vmatpush3.bf16.msra.mxu1 %v3602_v49 }
 0x54d   : > { %3329 = vmatprep.subr.bf16.mxu1 %v3971_v18 }
 0x54e   : > { %3324 = vmatpush3.bf16.msra.mxu0 %v3603_v50 }
 0x54f   : > { %3318 = vmatmul.mubr.msk.bf16.vlgmr.msra.gmra.mrb[12].mxu1 %vm660_vm1, %v4434_v43  ;;  %3337 = vmatprep.subr.bf16.mxu0 %v3971_v18 }
 0x550   : > { %3330 = vmatpush3.bf16.msra.mxu1 %v3604_v51  ;;  %3333 = vmatprep.mubr.msk.bf16.mxu1 %vm3972_vm2, %v3971_v18 }
 0x551   : > { %3326 = vmatmul.mubr.msk.bf16.vlgmr.msra.gmra.mrb[16].mxu0 %vm660_vm1, %v4434_v43  ;;  %3331 = vmatprep.subr.bf16.mxu1 %v3971_v18 }
 0x552   : > { %3339 = vmatprep.mubr.msk.bf16.mxu0 %vm3972_vm2, %v3971_v18 }
 0x554   : > { %3332 = vmatpush3.bf16.msra.mxu1 %v3605_v52 }
 0x555   : > { %3343 = vmatprep.subr.bf16.mxu1 %v3971_v18 }
 0x557   : > { %3334 = vmatmul.mubr.msk.bf16.vlgmr.msra.gmra.mrb[16].mxu1 %vm660_vm1, %v4434_v43 }
 0x558   : > { %3345 = vmatprep.mubr.msk.bf16.mxu1 %vm3972_vm2, %v3971_v18 }
 0x61a   : > { %v4502_v53 = vpop.f32.mrb[8].mxu1 }
 0x61b   : > { %v3305_v54 = vpop.f32.mrb[9].mxu1 }
 0x61c   : > { %v1069_v55 = vpop.f32.mrb[10].mxu1  ;;  %v4504_v56 = vpop.f32.mrb[12].mxu0 }
 0x61d   : > { %v1118_v57 = vpack.c.bf16 %v4504_v56, %v4502_v53  ;;  %v3306_v58 = vpop.f32.mrb[11].mxu1  ;;  %v3311_v59 = vpop.f32.mrb[13].mxu0 }
 0x61e   : > { %v1115_v60 = vpop.f32.mrb[14].mxu0 }
 0x61f   : > { %v3312_v61 = vpop.f32.mrb[15].mxu0 }
 0x622   : > { %v1179_v62 = vpop.f32.mrb[12].mxu1 }
 0x623   : > { %v3319_v0 = vpop.f32.mrb[13].mxu1  ;;  %v1180_v15 = vadd.f32 %v3069_v10, %v1179_v62  ;;  %v3095_v62 = vld [vmem:[%s4368_s30 + $0x4] sm:$0xf] }
 0x624   : > { %v1182_v1 = vpop.f32.mrb[14].mxu1  ;;  %v1245_v2 = vpop.f32.mrb[16].mxu0 }
 0x625   : > { %v1246_v3 = vadd.f32 %v3078_v63, %v1245_v2  ;;  %v3320_v4 = vpop.f32.mrb[15].mxu1  ;;  %v3327_v5 = vpop.f32.mrb[17].mxu0  ;;  %v1183_v21 = vadd.f32 %v3069_v10, %v1182_v1  ;;  %v1318_v25 = vpack.c.bf16 %v1180_v15, %v1180_v15  ;;  %v1119_v1 = vld [vmem:[%s4368_s30] sm:$0xf]  ;;  %v3608_v10 = vld [vmem:[%s4397_s5 + $0x20] sm:$0xff]  }
 0x626   : > { %v1248_v6 = vpop.f32.mrb[18].mxu0  ;;  %v1541_v4 = vsel %vm1028_vm4, %v3095_v62, 0 }
 0x627   : > { %v1320_v7 = vpack.c.bf16 %v1246_v3, %v1246_v3  ;;  %v1249_v8 = vadd.f32 %v3078_v63, %v1248_v6  ;;  %v3328_v9 = vpop.f32.mrb[19].mxu0  ;;  %v1319_v27 = vpack.c.bf16 %v1183_v21, %v1183_v21  ;;  %v1588_v6 = vsel %vm1028_vm4, %v1119_v1, 0 }
 0x629   : > { %v1326_v12 = vsel %vm904_vm3, %v1320_v7, 0  ;;  %v1321_v13 = vpack.c.bf16 %v1249_v8, %v1249_v8  ;;  %v3606_v7 = vld [vmem:[%s4397_s5 + $0x60] sm:$0xff]   ;;  %v3607_v8 = vld [vmem:[%s4397_s5 + $0x68] sm:$0xff]  }
 0x62a   : > { %v1311_v14 = vpop.f32.mrb[16].mxu1  ;;  %3338 = vmatpush3.bf16.xpose.msra.mxu0 %v1326_v12 }
 0x62b   : > { %v1372_v16 = vsel %vm904_vm3, %v1321_v13, 0  ;;  %v1312_v17 = vadd.f32 %v3087_v11, %v1311_v14  ;;  %v3335_v19 = vpop.f32.mrb[17].mxu1  ;;  %3349 = vmatprep.subr.bf16.mxu0 %v3971_v18 }
 0x62c   : > { %v1314_v20 = vpop.f32.mrb[18].mxu1  ;;  %3344 = vmatpush3.bf16.xpose.msra.mxu1 %v1372_v16  ;;  %v3609_v16 = vld [vmem:[%s4397_s5 + $0x28] sm:$0xff]   ;;  %v3610_v19 = vld [vmem:[%s4397_s5 + $0xa0] sm:$0xff]  }
 0x62d   : > { %v1440_v22 = vpack.c.bf16 %v1312_v17, %v1312_v17  ;;  %v1315_v23 = vadd.f32 %v3087_v11, %v1314_v20  ;;  %v3336_v24 = vpop.f32.mrb[19].mxu1  ;;  %3355 = vmatprep.subr.bf16.mxu1 %v3971_v18 }
 0x62e   : > { %v3112_v24 = vld [vmem:[%s4402_s0 + $0x6] ss:$0 sm:$0xff] }
 0x62f   : > { %v1441_v26 = vpack.c.bf16 %v1315_v23, %v1315_v23  ;;  %v1446_v30 = vsel %vm1028_vm4, %v1440_v22, 0  ;;  %v3611_v23 = vld [vmem:[%s4397_s5 + $0xa8] sm:$0xff]  }
 0x631   : > { %3340 = vmatmul.mubr.msk.bf16.vlgmr.msra.gmra.mrb[20].mxu0 %vm904_vm3, %v1318_v25  ;;  %v1492_v31 = vsel %vm1028_vm4, %v1441_v26, 0 }
 0x632   : > { %3350 = vmatpush3.bf16.msra.mxu0 %v1446_v30  ;;  %3351 = vmatprep.mubr.msk.bf16.mxu0 %vm3972_vm2, %v3971_v18 }
 0x633   : > { %3346 = vmatmul.mubr.msk.bf16.vlgmr.msra.gmra.mrb[20].mxu1 %vm904_vm3, %v1319_v27  ;;  %3361 = vmatprep.subr.bf16.mxu0 %v3971_v18 }
 0x634   : > { %3356 = vmatpush3.bf16.msra.mxu1 %v1492_v31  ;;  %3357 = vmatprep.mubr.msk.bf16.mxu1 %vm3972_vm2, %v3971_v18 }
 0x635   : > { %3367 = vmatprep.subr.bf16.mxu1 %v3971_v18 }
 0x704   : > { %v1362_v32 = vpop.f32.mrb[20].mxu0 }
 0x705   : > { %v1414_v34 = vmul.f32 0.35355338, %v1362_v32  ;;  %v3341_v35 = vpop.f32.mrb[21].mxu0 }
 0x706   : > { %v1365_v36 = vpop.f32.mrb[22].mxu0  ;;  %v1408_v37 = vpop.f32.mrb[20].mxu1 }
 0x707   : > { %v1415_v38 = vmul.f32 0.35355338, %v1408_v37  ;;  %v3342_v39 = vpop.f32.mrb[23].mxu0  ;;  %v3347_v40 = vpop.f32.mrb[21].mxu1  ;;  %v1416_v41 = vsel %vm904_vm3, %v1414_v34, -inf }
 0x708   : > { %v1411_v42 = vpop.f32.mrb[22].mxu1  ;;  %1417 = vmax.xlane.f32.xlu0 %v1416_v41 }
 0x709   : > { %v3348_v44 = vpop.f32.mrb[23].mxu1  ;;  %v1419_v45 = vsel %vm904_vm3, %v1415_v38, -inf }
 0x70a   : > { %1420 = vmax.xlane.f32.xlu1 %v1419_v45  ;;  %v3103_v45 = vld [vmem:[%s4402_s0 + $0x2] ss:$0 sm:$0xff] }
 0x795   : > { %v1418_v46 = vpop.xlane.xlu0 %1417 }
 0x796   : > { %v1422_v47 = vsub.f32 %v1414_v34, %v1418_v46 }
 0x797   : > { %v1421_v48 = vpop.xlane.xlu1 %1420 }
 0x798   : > { %v1424_v49 = vmul.f32 1.442695, %v1422_v47  ;;  %v1423_v50 = vsub.f32 %v1415_v38, %v1421_v48 }
 0x79a   : > { %3636 = vpow2.f32 %v1424_v49  ;;  %v1426_v51 = vmul.f32 1.442695, %v1423_v50 }
 0x79c   : > { %3638 = vpow2.f32 %v1426_v51 }
 0x7a4   : > { %v3637_v52 = vpop.eup %3636 }
 0x7a5   : > { %v1428_v54 = vsel %vm904_vm3, %v3637_v52, 0.0 }
 0x7a6   : > { %v3639_v55 = vpop.eup %3638  ;;  %1429 = vadd.xlane.f32.xlu0 %v1428_v54 }
 0x7a7   : > { %v1431_v58 = vsel %vm904_vm3, %v3639_v55, 0.0 }
 0x7a8   : > { %1432 = vadd.xlane.f32.xlu1 %v1431_v58 }
 0x833   : > { %v1430_v59 = vpop.xlane.xlu0 %1429 }
 0x834   : > { %3640 = vrcp.f32 %v1430_v59 }
 0x835   : > { %v1433_v60 = vpop.xlane.xlu1 %1432 }
 0x836   : > { %3642 = vrcp.f32 %v1433_v60 }
 0x83e   : > { %v3641_v61 = vpop.eup %3640 }
 0x83f   : > { %v1435_v63 = vmul.f32 %v3641_v61, %v3637_v52 }
 0x840   : > { %v3643_v0 = vpop.eup %3642 }
 0x841   : > { %v1437_v2 = vmul.f32 %v3643_v0, %v3639_v55  ;;  %v1438_v3 = vpack.c.bf16 %v1435_v63, %v1435_v63  ;;  %v3121_v55 = vld [vmem:[%s4402_s0 + $0xa] ss:$0 sm:$0xff] }
 0x843   : > { %3352 = vmatmul.mubr.msk.bf16.vlgmr.msra.gmra.mrb[24].mxu0 %vm904_vm3, %v1438_v3  ;;  %v1439_v5 = vpack.c.bf16 %v1437_v2, %v1437_v2 }
 0x844   : > { %3362 = vmatpush3.bf16.msra.mxu0 %v1541_v4  ;;  %3363 = vmatprep.mubr.msk.bf16.mxu0 %vm3972_vm2, %v3971_v18 }
 0x845   : > { %3358 = vmatmul.mubr.msk.bf16.vlgmr.msra.gmra.mrb[24].mxu1 %vm904_vm3, %v1439_v5  ;;  %3373 = vmatprep.subr.bf16.mxu0 %v3971_v18 }
 0x846   : > { %3368 = vmatpush3.bf16.msra.mxu1 %v1588_v6  ;;  %3369 = vmatprep.mubr.msk.bf16.mxu1 %vm3972_vm2, %v3971_v18 }
 0x847   : > { %3381 = vmatprep.subr.bf16.mxu1 %v3971_v18 }
 0x84d   : > { %3370 = vmatmul.mubr.msk.bf16.vlgmr.msra.gmra.mrb[28].mxu1 %vm904_vm3, %v1118_v57 }
 0x84e   : > { %3382 = vmatpush3.bf16.msra.mxu1 %v3606_v7  ;;  %3385 = vmatprep.mubr.msk.bf16.mxu1 %vm3972_vm2, %v3971_v18 }
 0x84f   : > { %3383 = vmatprep.subr.bf16.mxu1 %v3971_v18 }
 0x852   : > { %3384 = vmatpush3.bf16.msra.mxu1 %v3607_v8 }
 0x853   : > { %3397 = vmatprep.subr.bf16.mxu1 %v3971_v18 }
 0x855   : > { %3386 = vmatmul.mubr.msk.bf16.vlgmr.msra.gmra.mrb[32].mxu1 %vm660_vm1, %v4434_v43 }
 0x856   : > { %3399 = vmatprep.mubr.msk.bf16.mxu1 %vm3972_vm2, %v3971_v18 }
 0x916   : > { %v1482_v53 = vpop.f32.mrb[24].mxu0 }
 0x917   : > { %v3353_v56 = vpop.f32.mrb[25].mxu0 }
 0x918   : > { %v1485_v57 = vpop.f32.mrb[26].mxu0  ;;  %v1528_v9 = vpop.f32.mrb[24].mxu1 }
 0x919   : > { %v1534_v11 = vpack.c.bf16 %v1528_v9, %v1482_v53  ;;  %v3354_v12 = vpop.f32.mrb[27].mxu0  ;;  %v3359_v13 = vpop.f32.mrb[25].mxu1 }
 0x91a   : > { %v1531_v14 = vpop.f32.mrb[26].mxu1 }
 0x91b   : > { %v3360_v15 = vpop.f32.mrb[27].mxu1  ;;  %3364 = vmatmul.mubr.msk.bf16.vlgmr.msra.gmra.mrb[28].mxu0 %vm904_vm3, %v1534_v11 }
 0x91c   : > { %3374 = vmatpush3.bf16.msra.mxu0 %v3608_v10  ;;  %3377 = vmatprep.mubr.msk.bf16.mxu0 %vm3972_vm2, %v3971_v18 }
 0x91d   : > { %3375 = vmatprep.subr.bf16.mxu0 %v3971_v18 }
 0x920   : > { %3376 = vmatpush3.bf16.msra.mxu0 %v3609_v16  ;;  %v1624_v17 = vpop.f32.mrb[28].mxu1 }
 0x921   : > { %v3371_v20 = vpop.f32.mrb[29].mxu1  ;;  %3389 = vmatprep.subr.bf16.mxu0 %v3971_v18 }
 0x922   : > { %v1627_v21 = vpop.f32.mrb[30].mxu1 }
 0x923   : > { %v3372_v22 = vpop.f32.mrb[31].mxu1  ;;  %3378 = vmatmul.mubr.msk.bf16.vlgmr.msra.gmra.mrb[32].mxu0 %vm660_vm1, %v4434_v43 }
 0x924   : > { %3390 = vmatpush3.bf16.msra.mxu0 %v3610_v19  ;;  %3393 = vmatprep.mubr.msk.bf16.mxu0 %vm3972_vm2, %v3971_v18 }
 0x925   : > { %3391 = vmatprep.subr.bf16.mxu0 %v3971_v18 }
 0x928   : > { %3392 = vmatpush3.bf16.msra.mxu0 %v3611_v23  ;;  %v1756_v25 = vpop.f32.mrb[32].mxu1 }
 0x929   : > { %v1757_v26 = vadd.f32 %v3112_v24, %v1756_v25  ;;  %v3387_v27 = vpop.f32.mrb[33].mxu1  ;;  %3403 = vmatprep.subr.bf16.mxu0 %v3971_v18 }
 0x92a   : > { %v1759_v30 = vpop.f32.mrb[34].mxu1  ;;  %v3129_v27 = vld [vmem:[%s4368_s30 + $0x8] sm:$0xf] }
 0x92b   : > { %v1831_v31 = vpack.c.bf16 %v1757_v26, %v1757_v26  ;;  %v1760_v32 = vadd.f32 %v3112_v24, %v1759_v30  ;;  %v3388_v34 = vpop.f32.mrb[35].mxu1  ;;  %3394 = vmatmul.mubr.msk.bf16.vlgmr.msra.gmra.mrb[36].mxu0 %vm660_vm1, %v4434_v43 }
 0x92c   : > { %3405 = vmatprep.mubr.msk.bf16.mxu0 %vm3972_vm2, %v3971_v18 }
 0x92d   : > { %v1837_v35 = vsel %vm904_vm3, %v1831_v31, 0  ;;  %v1832_v36 = vpack.c.bf16 %v1760_v32, %v1760_v32 }
 0x92e   : > { %3398 = vmatpush3.bf16.xpose.msra.mxu1 %v1837_v35  ;;  %v2052_v35 = vsel %vm1028_vm4, %v3129_v27, 0 }
 0x92f   : > { %v1883_v37 = vsel %vm904_vm3, %v1832_v36, 0  ;;  %3409 = vmatprep.subr.bf16.mxu1 %v3971_v18  ;;  %v3612_v36 = vld [vmem:[%s4397_s5 + $0x30] sm:$0xff]  }
 0x931   : > { %3404 = vmatpush3.bf16.xpose.msra.mxu0 %v1883_v37 }
 0x932   : > { %3415 = vmatprep.subr.bf16.mxu0 %v3971_v18 }
 0x9ee   : > { %v1577_v38 = vpop.f32.mrb[28].mxu0 }
 0x9ef   : > { %v4579_v39 = vadd.f32 %v1624_v17, %v1577_v38  ;;  %v3365_v40 = vpop.f32.mrb[29].mxu0  ;;  %v3613_v38 = vld [vmem:[%s4397_s5 + $0x38] sm:$0xff]  }
 0x9f0   : > { %v1580_v41 = vpop.f32.mrb[30].mxu0  ;;  %v3614_v40 = vld [vmem:[%s4397_s5 + $0xb0] sm:$0xff]  }
 0x9f1   : > { %v4581_v42 = vadd.f32 %v1627_v21, %v1580_v41  ;;  %v3366_v44 = vpop.f32.mrb[31].mxu0  ;;  %v3615_v41 = vld [vmem:[%s4397_s5 + $0xb8] sm:$0xff]  }
 0x9f6   : > { %v1690_v46 = vpop.f32.mrb[32].mxu0 }
 0x9f7   : > { %v1691_v47 = vadd.f32 %v3103_v45, %v1690_v46  ;;  %v3379_v48 = vpop.f32.mrb[33].mxu0 }
 0x9f8   : > { %v1693_v49 = vpop.f32.mrb[34].mxu0  ;;  %v3616_v48 = vld [vmem:[%s4397_s5 + $0x70] sm:$0xff]  }
 0x9f9   : > { %v1829_v50 = vpack.c.bf16 %v1691_v47, %v1691_v47  ;;  %v1694_v51 = vadd.f32 %v3103_v45, %v1693_v49  ;;  %v3380_v52 = vpop.f32.mrb[35].mxu0 }
 0x9fb   : > { %v1830_v54 = vpack.c.bf16 %v1694_v51, %v1694_v51  ;;  %3400 = vmatmul.mubr.msk.bf16.vlgmr.msra.gmra.mrb[36].mxu1 %vm904_vm3, %v1829_v50 }
 0x9fc   : > { %3411 = vmatprep.mubr.msk.bf16.mxu1 %vm3972_vm2, %v3971_v18 }
 0x9fd   : > { %3406 = vmatmul.mubr.msk.bf16.vlgmr.msra.gmra.mrb[40].mxu0 %vm904_vm3, %v1830_v54 }
 0x9fe   : > { %v1822_v58 = vpop.f32.mrb[36].mxu0  ;;  %3417 = vmatprep.mubr.msk.bf16.mxu0 %vm3972_vm2, %v3971_v18 }
 0x9ff   : > { %v1823_v59 = vadd.f32 %v3121_v55, %v1822_v58  ;;  %v3395_v60 = vpop.f32.mrb[37].mxu0 }
 0xa00   : > { %v1825_v61 = vpop.f32.mrb[38].mxu0 }
 0xa01   : > { %v1951_v62 = vpack.c.bf16 %v1823_v59, %v1823_v59  ;;  %v1826_v63 = vadd.f32 %v3121_v55, %v1825_v61  ;;  %v3396_v0 = vpop.f32.mrb[39].mxu0  ;;  %v3617_v55 = vld [vmem:[%s4397_s5 + $0x78] sm:$0xff]  }
 0xa03   : > { %v1957_v1 = vsel %vm1028_vm4, %v1951_v62, 0  ;;  %v1952_v2 = vpack.c.bf16 %v1826_v63, %v1826_v63 }
 0xa04   : > { %3410 = vmatpush3.bf16.msra.mxu1 %v1957_v1 }
 0xa05   : > { %v2003_v3 = vsel %vm1028_vm4, %v1952_v2, 0  ;;  %3421 = vmatprep.subr.bf16.mxu1 %v3971_v18 }
 0xa06   : > { %3416 = vmatpush3.bf16.msra.mxu0 %v2003_v3 }
 0xa07   : > { %3427 = vmatprep.subr.bf16.mxu0 %v3971_v18 }
 0xace   : > { %v1873_v4 = vpop.f32.mrb[36].mxu1 }
 0xacf   : > { %v1925_v5 = vmul.f32 0.35355338, %v1873_v4  ;;  %v3401_v6 = vpop.f32.mrb[37].mxu1 }
 0xad0   : > { %v1876_v7 = vpop.f32.mrb[38].mxu1  ;;  %v1919_v8 = vpop.f32.mrb[40].mxu0 }
 0xad1   : > { %v1926_v53 = vmul.f32 0.35355338, %v1919_v8  ;;  %v3402_v56 = vpop.f32.mrb[39].mxu1  ;;  %v3407_v57 = vpop.f32.mrb[41].mxu0  ;;  %v1927_v9 = vsel %vm904_vm3, %v1925_v5, -inf }
 0xad2   : > { %1928 = vmax.xlane.f32.xlu0 %v1927_v9  ;;  %v1922_v10 = vpop.f32.mrb[42].mxu0  ;;  %v3154_v57 = vld [vmem:[%s4402_s0 + $0xb] ss:$0 sm:$0xff] }
 0xad3   : > { %v3408_v11 = vpop.f32.mrb[43].mxu0  ;;  %v1930_v12 = vsel %vm904_vm3, %v1926_v53, -inf }
 0xad4   : > { %1931 = vmax.xlane.f32.xlu1 %v1930_v12 }
 0xb5f   : > { %v1929_v13 = vpop.xlane.xlu0 %1928 }
 0xb60   : > { %v1933_v14 = vsub.f32 %v1925_v5, %v1929_v13  ;;  %v3136_v13 = vld [vmem:[%s4402_s0 + $0x3] ss:$0 sm:$0xff] }
 0xb61   : > { %v1932_v15 = vpop.xlane.xlu1 %1931 }
 0xb62   : > { %v1935_v16 = vmul.f32 1.442695, %v1933_v14  ;;  %v1934_v17 = vsub.f32 %v1926_v53, %v1932_v15 }
 0xb64   : > { %3644 = vpow2.f32 %v1935_v16  ;;  %v1937_v19 = vmul.f32 1.442695, %v1934_v17 }
 0xb66   : > { %3646 = vpow2.f32 %v1937_v19 }
 0xb6e   : > { %v3645_v20 = vpop.eup %3644 }
 0xb6f   : > { %v1939_v21 = vsel %vm904_vm3, %v3645_v20, 0.0 }
 0xb70   : > { %v3647_v22 = vpop.eup %3646  ;;  %1940 = vadd.xlane.f32.xlu0 %v1939_v21 }
 0xb71   : > { %v1942_v23 = vsel %vm904_vm3, %v3647_v22, 0.0 }
 0xb72   : > { %1943 = vadd.xlane.f32.xlu1 %v1942_v23 }
 0xbfd   : > { %v1941_v24 = vpop.xlane.xlu0 %1940 }
 0xbfe   : > { %3648 = vrcp.f32 %v1941_v24 }
 0xbff   : > { %v1944_v25 = vpop.xlane.xlu1 %1943 }
 0xc00   : > { %3650 = vrcp.f32 %v1944_v25 }
 0xc08   : > { %v3649_v26 = vpop.eup %3648 }
 0xc09   : > { %v1946_v30 = vmul.f32 %v3649_v26, %v3645_v20 }
 0xc0a   : > { %v3651_v31 = vpop.eup %3650 }
 0xc0b   : > { %v1948_v32 = vmul.f32 %v3651_v31, %v3647_v22  ;;  %v1949_v34 = vpack.c.bf16 %v1946_v30, %v1946_v30 }
 0xc0d   : > { %3412 = vmatmul.mubr.msk.bf16.vlgmr.msra.gmra.mrb[40].mxu1 %vm904_vm3, %v1949_v34  ;;  %v1950_v37 = vpack.c.bf16 %v1948_v32, %v1948_v32 }
 0xc0e   : > { %3422 = vmatpush3.bf16.msra.mxu1 %v2052_v35  ;;  %3423 = vmatprep.mubr.msk.bf16.mxu1 %vm3972_vm2, %v3971_v18 }
 0xc0f   : > { %3418 = vmatmul.mubr.msk.bf16.vlgmr.msra.gmra.mrb[44].mxu0 %vm904_vm3, %v1950_v37  ;;  %3435 = vmatprep.subr.bf16.mxu1 %v3971_v18 }
 0xc10   : > { %3428 = vmatpush3.bf16.msra.mxu0 %v3612_v36  ;;  %3431 = vmatprep.mubr.msk.bf16.mxu0 %vm3972_vm2, %v3971_v18 }
 0xc11   : > { %3429 = vmatprep.subr.bf16.mxu0 %v3971_v18 }
 0xc14   : > { %3430 = vmatpush3.bf16.msra.mxu0 %v3613_v38 }
 0xc15   : > { %3443 = vmatprep.subr.bf16.mxu0 %v3971_v18 }
 0xc17   : > { %3432 = vmatmul.mubr.msk.bf16.vlgmr.msra.gmra.mrb[48].mxu0 %vm660_vm1, %v4434_v43 }
 0xc18   : > { %3444 = vmatpush3.bf16.msra.mxu0 %v3614_v40  ;;  %3447 = vmatprep.mubr.msk.bf16.mxu0 %vm3972_vm2, %v3971_v18 }
 0xc19   : > { %3445 = vmatprep.subr.bf16.mxu0 %v3971_v18 }
 0xc1c   : > { %3446 = vmatpush3.bf16.msra.mxu0 %v3615_v41 }
 0xc1d   : > { %3457 = vmatprep.subr.bf16.mxu0 %v3971_v18 }
 0xc1f   : > { %3448 = vmatmul.mubr.msk.bf16.vlgmr.msra.gmra.mrb[52].mxu0 %vm660_vm1, %v4434_v43 }
 0xc20   : > { %3459 = vmatprep.mubr.msk.bf16.mxu0 %vm3972_vm2, %v3971_v18 }
 0xce0   : > { %v1993_v44 = vpop.f32.mrb[40].mxu1 }
 0xce1   : > { %v3413_v45 = vpop.f32.mrb[41].mxu1 }
 0xce2   : > { %v1996_v46 = vpop.f32.mrb[42].mxu1  ;;  %v2039_v47 = vpop.f32.mrb[44].mxu0 }
 0xce3   : > { %v2045_v49 = vpack.c.bf16 %v2039_v47, %v1993_v44  ;;  %v3414_v50 = vpop.f32.mrb[43].mxu1  ;;  %v3419_v51 = vpop.f32.mrb[45].mxu0 }
 0xce4   : > { %v2042_v52 = vpop.f32.mrb[46].mxu0 }
 0xce5   : > { %v3420_v54 = vpop.f32.mrb[47].mxu0  ;;  %3424 = vmatmul.mubr.msk.bf16.vlgmr.msra.gmra.mrb[44].mxu1 %vm904_vm3, %v2045_v49 }
 0xce6   : > { %3436 = vmatpush3.bf16.msra.mxu1 %v3616_v48  ;;  %3439 = vmatprep.mubr.msk.bf16.mxu1 %vm3972_vm2, %v3971_v18 }
 0xce7   : > { %3437 = vmatprep.subr.bf16.mxu1 %v3971_v18 }
 0xcea   : > { %v2156_v58 = vpop.f32.mrb[48].mxu0  ;;  %3438 = vmatpush3.bf16.msra.mxu1 %v3617_v55 }
 0xceb   : > { %v3433_v59 = vpop.f32.mrb[49].mxu0  ;;  %3451 = vmatprep.subr.bf16.mxu1 %v3971_v18  ;;  %v2157_v16 = vadd.f32 %v3136_v13, %v2156_v58 }
 0xcec   : > { %v2159_v60 = vpop.f32.mrb[50].mxu0 }
 0xced   : > { %v3434_v61 = vpop.f32.mrb[51].mxu0  ;;  %3440 = vmatmul.mubr.msk.bf16.vlgmr.msra.gmra.mrb[48].mxu1 %vm660_vm1, %v4434_v43  ;;  %v3145_v43 = vld [vmem:[%s4402_s0 + $0x7] ss:$0 sm:$0xff]  ;;  %v2160_v19 = vadd.f32 %v3136_v13, %v2159_v60  ;;  %v2295_v21 = vpack.c.bf16 %v2157_v16, %v2157_v16  ;;  %v3164_v13 = vld [vmem:[%s534_s1] ss:$0 sm:$0xff] }
 0xcee   : > { %3453 = vmatprep.mubr.msk.bf16.mxu1 %vm3972_vm2, %v3971_v18  ;;  %v3162_v60 = vld [vmem:[%s4368_s30 + $0xc] sm:$0xf] }
 0xcef   : > { %v2296_v23 = vpack.c.bf16 %v2160_v19, %v2160_v19  ;;  %v3665_v19 = vld [vmem:[#allocation2 + $0x8] sm:$0xff] }
 0xcf2   : > { %v2288_v62 = vpop.f32.mrb[52].mxu0 }
 0xcf3   : > { %v3449_v63 = vpop.f32.mrb[53].mxu0  ;;  %v2289_v14 = vadd.f32 %v3154_v57, %v2288_v62 }
 0xcf4   : > { %v2291_v0 = vpop.f32.mrb[54].mxu0 }
 0xcf5   : > { %v3450_v1 = vpop.f32.mrb[55].mxu0  ;;  %v2292_v17 = vadd.f32 %v3154_v57, %v2291_v0  ;;  %v2417_v20 = vpack.c.bf16 %v2289_v14, %v2289_v14 }
 0xcf6   : > { %v2518_v1 = vsel %vm1028_vm4, %v3162_v60, 0 }
 0xcf7   : > { %v2418_v22 = vpack.c.bf16 %v2292_v17, %v2292_v17  ;;  %v2423_v24 = vsel %vm1028_vm4, %v2417_v20, 0 }
 0xcf9   : > { %v2469_v25 = vsel %vm1028_vm4, %v2418_v22, 0 }
 0xdb8   : > { %v2088_v2 = vpop.f32.mrb[44].mxu1 }
 0xdb9   : > { %v4636_v3 = vadd.f32 %v2088_v2, %v4579_v39  ;;  %v3425_v4 = vpop.f32.mrb[45].mxu1 }
 0xdba   : > { %v2091_v5 = vpop.f32.mrb[46].mxu1 }
 0xdbb   : > { %v4639_v6 = vadd.f32 %v2091_v5, %v4581_v42  ;;  %v3426_v7 = vpop.f32.mrb[47].mxu1 }
 0xdc0   : > { %v2222_v8 = vpop.f32.mrb[48].mxu1 }
 0xdc1   : > { %v2223_v53 = vadd.f32 %v3145_v43, %v2222_v8  ;;  %v3441_v56 = vpop.f32.mrb[49].mxu1 }
 0xdc2   : > { %v2225_v9 = vpop.f32.mrb[50].mxu1 }
 0xdc3   : > { %v2297_v10 = vpack.c.bf16 %v2223_v53, %v2223_v53  ;;  %v2226_v11 = vadd.f32 %v3145_v43, %v2225_v9  ;;  %v3442_v12 = vpop.f32.mrb[51].mxu1 }
 0xdc5   : > { %v2303_v39 = vsel %vm904_vm3, %v2297_v10, 0  ;;  %v2298_v15 = vpack.c.bf16 %v2226_v11, %v2226_v11 }
 0xdc6   : > { %3452 = vmatpush3.bf16.xpose.msra.mxu1 %v2303_v39  ;;  %v3664_v39 = vld [vmem:[#allocation2] sm:$0xff] }
 0xdc7   : > { %v2349_v42 = vsel %vm904_vm3, %v2298_v15, 0  ;;  %3463 = vmatprep.subr.bf16.mxu1 %v3971_v18 }
 0xdc8   : > { %3458 = vmatpush3.bf16.xpose.msra.mxu0 %v2349_v42 }
 0xdc9   : > { %3469 = vmatprep.subr.bf16.mxu0 %v3971_v18 }
 0xdcd   : > { %3454 = vmatmul.mubr.msk.bf16.vlgmr.msra.gmra.mrb[52].mxu1 %vm904_vm3, %v2295_v21 }
 0xdce   : > { %3464 = vmatpush3.bf16.msra.mxu1 %v2423_v24  ;;  %3465 = vmatprep.mubr.msk.bf16.mxu1 %vm3972_vm2, %v3971_v18 }
 0xdcf   : > { %3460 = vmatmul.mubr.msk.bf16.vlgmr.msra.gmra.mrb[56].mxu0 %vm904_vm3, %v2296_v23  ;;  %3475 = vmatprep.subr.bf16.mxu1 %v3971_v18 }
 0xdd0   : > { %3470 = vmatpush3.bf16.msra.mxu0 %v2469_v25  ;;  %3471 = vmatprep.mubr.msk.bf16.mxu0 %vm3972_vm2, %v3971_v18 }
 0xdd1   : > { %3481 = vmatprep.subr.bf16.mxu0 %v3971_v18 }
 0xea0   : > { %v2339_v26 = vpop.f32.mrb[52].mxu1 }
 0xea1   : > { %v2391_v27 = vmul.f32 0.35355338, %v2339_v26  ;;  %v3455_v30 = vpop.f32.mrb[53].mxu1 }
 0xea2   : > { %v2342_v31 = vpop.f32.mrb[54].mxu1  ;;  %v2385_v32 = vpop.f32.mrb[56].mxu0 }
 0xea3   : > { %v2392_v34 = vmul.f32 0.35355338, %v2385_v32  ;;  %v3456_v35 = vpop.f32.mrb[55].mxu1  ;;  %v3461_v36 = vpop.f32.mrb[57].mxu0  ;;  %v2393_v37 = vsel %vm904_vm3, %v2391_v27, -inf }
 0xea4   : > { %2394 = vmax.xlane.f32.xlu0 %v2393_v37  ;;  %v2388_v38 = vpop.f32.mrb[58].mxu0  ;;  %v3618_v35 = vld [vmem:[%s4375_s21] sm:$0xff]   ;;  %v3619_v36 = vld [vmem:[%s4375_s21 + $0x8] sm:$0xff]  }
 0xea5   : > { %v3462_v40 = vpop.f32.mrb[59].mxu0  ;;  %v2396_v41 = vsel %vm904_vm3, %v2392_v34, -inf  ;;  %v3620_v37 = vld [vmem:[%s4392_s16] sm:$0xff]   ;;  %v3621_v38 = vld [vmem:[%s4392_s16 + $0x8] sm:$0xff]  }
 0xea6   : > { %2397 = vmax.xlane.f32.xlu1 %v2396_v41 }
 0xf31   : > { %v2395_v44 = vpop.xlane.xlu0 %2394 }
 0xf32   : > { %v2399_v45 = vsub.f32 %v2391_v27, %v2395_v44 }
 0xf33   : > { %v2398_v46 = vpop.xlane.xlu1 %2397 }
 0xf34   : > { %v2401_v47 = vmul.f32 1.442695, %v2399_v45  ;;  %v2400_v48 = vsub.f32 %v2392_v34, %v2398_v46 }
 0xf36   : > { %3652 = vpow2.f32 %v2401_v47  ;;  %v2403_v49 = vmul.f32 1.442695, %v2400_v48  ;;  %v2602_v48 = vsub.s32 2, %v4424_v28 }
 0xf38   : > { %3654 = vpow2.f32 %v2403_v49  ;;  %v3666_v49 = vld [vmem:[%s4361_s3] sm:$0xf]  ;;  %s4805_s3 = sld [smem:[#allocation29_spill]] (!%p3175_p5) }
 0xf40   : > { %v3653_v50 = vpop.eup %3652 }
 0xf41   : > { %v2405_v51 = vsel %vm904_vm3, %v3653_v50, 0.0 }
 0xf42   : > { %v3655_v52 = vpop.eup %3654  ;;  %2406 = vadd.xlane.f32.xlu0 %v2405_v51  ;;  %v2608_v51 = vsub.s32 3, %v4424_v28 }
 0xf43   : > { %v2408_v54 = vsel %vm904_vm3, %v3655_v52, 0.0 }
 0xf44   : > { %2409 = vadd.xlane.f32.xlu1 %v2408_v54  ;;  %v2609_v60 = vrot.slane %v3666_v49, %v2608_v51 }
 0xfcf   : > { %v2407_v55 = vpop.xlane.xlu0 %2406 }
 0xfd0   : > { %3656 = vrcp.f32 %v2407_v55 }
 0xfd1   : > { %v2410_v58 = vpop.xlane.xlu1 %2409 }
 0xfd2   : > { %3658 = vrcp.f32 %v2410_v58 }
 0xfda   : > { %v3657_v59 = vpop.eup %3656 }
 0xfdb   : > { %v2412_v61 = vmul.f32 %v3657_v59, %v3653_v50  ;;  %v2603_v50 = vrot.slane %v3666_v49, %v2602_v48 }
 0xfdc   : > { %v3659_v62 = vpop.eup %3658 }
 0xfdd   : > { %v2414_v63 = vmul.f32 %v3659_v62, %v3655_v52  ;;  %v2415_v0 = vpack.c.bf16 %v2412_v61, %v2412_v61 }
 0xfdf   : > { %3466 = vmatmul.mubr.msk.bf16.vlgmr.msra.gmra.mrb[56].mxu1 %vm904_vm3, %v2415_v0  ;;  %v2416_v2 = vpack.c.bf16 %v2414_v63, %v2414_v63 }
 0xfe0   : > { %3476 = vmatpush3.bf16.msra.mxu1 %v2518_v1  ;;  %3477 = vmatprep.mubr.msk.bf16.mxu1 %vm3972_vm2, %v3971_v18  ;;  %v3622_v1 = vld [vmem:[%s4392_s16 + $0x10] sm:$0xff]  }
 0xfe1   : > { %3472 = vmatmul.mubr.msk.bf16.vlgmr.msra.gmra.mrb[60].mxu0 %vm904_vm3, %v2416_v2  ;;  %3489 = vmatprep.subr.bf16.mxu1 %v3971_v18  ;;  %v3623_v2 = vld [vmem:[%s4392_s16 + $0x18] sm:$0xff]  }
 0xfe2   : > { %3485 = vmatprep.mubr.msk.bf16.mxu0 %vm3972_vm2, %v3971_v18  ;;  %3482 = vmatpush3.bf16.msra.mxu0 %v3618_v35 }
 0xfe3   : > { %3483 = vmatprep.subr.bf16.mxu0 %v3971_v18 }
 0xfe6   : > { %3484 = vmatpush3.bf16.msra.mxu0 %v3619_v36 }
0x10b2   : > { %v2459_v4 = vpop.f32.mrb[56].mxu1 }
0x10b3   : > { %v3467_v5 = vpop.f32.mrb[57].mxu1 }
0x10b4   : > { %v2462_v7 = vpop.f32.mrb[58].mxu1  ;;  %v2505_v43 = vpop.f32.mrb[60].mxu0 }
0x10b5   : > { %v2511_v8 = vpack.c.bf16 %v2505_v43, %v2459_v4  ;;  %v3468_v53 = vpop.f32.mrb[59].mxu1  ;;  %v3473_v56 = vpop.f32.mrb[61].mxu0  ;;  %v3165_v4 = vld [vmem:[%s551_s14] ss:$0 sm:$0xff] }
0x10b6   : > { %v2508_v57 = vpop.f32.mrb[62].mxu0 }
0x10b7   : > { %v3474_v9 = vpop.f32.mrb[63].mxu0  ;;  %3478 = vmatmul.mubr.msk.bf16.vlgmr.msra.gmra.mrb[60].mxu1 %vm904_vm3, %v2511_v8 }
0x10b8   : > { %3497 = vmatprep.mubr.msk.bf16.mxu1 %vm3972_vm2, %v3971_v18  ;;  %3490 = vmatpush3.bf16.msra.mxu1 %v3620_v37  ;;  %v2777_v37 = vld [vmem:[#allocation14] sm:$0x3] (!%p3175_p5) }
0x10b9   : > { %3491 = vmatprep.subr.bf16.mxu1 %v3971_v18 }
0x10bc   : > { %3492 = vmatpush3.bf16.msra.mxu1 %v3621_v38  ;;  %v2807_v38 = vrot.slane (!%p3175_p5), %v2777_v37, %v690_v29 }
0x10bd   : > { %3493 = vmatprep.subr.bf16.mxu1 %v3971_v18 }
0x10c0   : > { %3494 = vmatpush3.bf16.msra.mxu1 %v3622_v1 }
0x10c1   : > { %3495 = vmatprep.subr.bf16.mxu1 %v3971_v18 }
0x10c4   : > { %3496 = vmatpush3.bf16.msra.mxu1 %v3623_v2 }
0x118a   : > { %v2554_v10 = vpop.f32.mrb[60].mxu1 }
0x118b   : > { %v2561_v11 = vadd.f32 %v2554_v10, %v4636_v3  ;;  %v3479_v12 = vpop.f32.mrb[61].mxu1 }
0x118c   : > { %v2557_v14 = vpop.f32.mrb[62].mxu1  ;;  %v3174_v12 = vld [vmem:[%s559_s7] ss:$0 sm:$0xff] }
0x118d   : > { %v2563_v15 = vadd.f32 %v3664_v39, %v2561_v11  ;;  %v2562_v16 = vadd.f32 %v2557_v14, %v4639_v6  ;;  %v3480_v17 = vpop.f32.mrb[63].mxu1 }
0x118f   : > { %v4678_v42 = vadd.f32 %v3164_v13, %v2563_v15  ;;  %v2564_v20 = vadd.f32 %v3665_v19, %v2562_v16 }
0x1191   : > { %v4680_v21 = vadd.f32 %v3164_v13, %v2564_v20  ;;  %v2574_v22 = vsel %vm660_vm1, %v4678_v42, 0.0 }
0x1192   : > { %2575 = vadd.xlane.f32.xlu0 %v2574_v22 }
0x1193   : > { %v2577_v3 = vsel %vm660_vm1, %v4680_v21, 0.0 }
0x1194   : > { %2578 = vadd.xlane.f32.xlu1 %v2577_v3 }
0x121f   : > { %v2576_v23 = vpop.xlane.xlu0 %2575 }
0x1220   : > { %v2580_v24 = vmul.f32 0.03125, %v2576_v23 }
0x1221   : > { %v2579_v6 = vpop.xlane.xlu1 %2578 }
0x1222   : > { %v2582_v25 = vsub.f32 %v4678_v42, %v2580_v24  ;;  %v2581_v26 = vmul.f32 0.03125, %v2579_v6 }
0x1224   : > { %v2583_v27 = vsub.f32 %v4680_v21, %v2581_v26  ;;  %v2584_v30 = vmul.f32 %v2582_v25, %v2582_v25 }
0x1226   : > { %v2586_v31 = vsel %vm660_vm1, %v2584_v30, 0.0  ;;  %v2585_v32 = vmul.f32 %v2583_v27, %v2583_v27 }
0x1227   : > { %2587 = vadd.xlane.f32.xlu0 %v2586_v31 }
0x1228   : > { %v2589_v34 = vsel %vm660_vm1, %v2585_v32, 0.0 }
0x1229   : > { %2590 = vadd.xlane.f32.xlu1 %v2589_v34 }
0x12b4   : > { %v2588_v40 = vpop.xlane.xlu0 %2587 }
0x12b5   : > { %v2592_v41 = vmul.f32 0.03125, %v2588_v40 }
0x12b6   : > { %v2591_v44 = vpop.xlane.xlu1 %2590 }
0x12b7   : > { %v2594_v45 = vadd.f32 1e-05, %v2592_v41  ;;  %v2593_v46 = vmul.f32 0.03125, %v2591_v44  ;;  %v2813_v44 = vrot.slane (!%p3175_p5), %v2777_v37, %v696_v33 }
0x12b9   : > { %3660 = vrsqrt.f32 %v2594_v45  ;;  %v2595_v47 = vadd.f32 1e-05, %v2593_v46 }
0x12bb   : > { %3662 = vrsqrt.f32 %v2595_v47 }
0x12c3   : > { %v3661_v52 = vpop.eup %3660 }
0x12c4   : > { %v2598_v54 = vmul.f32 %v3661_v52, %v2582_v25 }
0x12c5   : > { %v3663_v55 = vpop.eup %3662 }
0x12c6   : > { %v2604_v58 = vmul.f32 %v2603_v50, %v2598_v54  ;;  %v2599_v59 = vmul.f32 %v3663_v55, %v2583_v27 }
0x12c8   : > { %v2605_v61 = vmul.f32 %v2603_v50, %v2599_v59  ;;  %v2610_v62 = vadd.f32 %v2609_v60, %v2604_v58 }
0x12ca   : > { %v2611_v63 = vadd.f32 %v2609_v60, %v2605_v61 }
0x12cc   : > { %v2612_v0 = vpack.c.bf16 %v2611_v63, %v2610_v62 }
0x12ce   : > { %3486 = vmatmul.mubr.msk.bf16.vlgmr.msra.gmra.mrb[64].mxu0 %vm660_vm1, %v2612_v0 }
0x13a1   : > { %v2673_v5 = vpop.f32.mrb[64].mxu0 }
0x13a2   : > { %v2674_v7 = vadd.f32 %v3165_v4, %v2673_v5  ;;  %v3487_v43 = vpop.f32.mrb[65].mxu0 }
0x13a3   : > { %v2676_v8 = vpop.f32.mrb[66].mxu0 }
0x13a4   : > { %v2677_v53 = vadd.f32 %v3165_v4, %v2676_v8  ;;  %v3488_v56 = vpop.f32.mrb[67].mxu0  ;;  %v2680_v57 = vmax.f32 %v2674_v7, 0.0 }
0x13a6   : > { %v2681_v9 = vmax.f32 %v2677_v53, 0.0 }
0x13a8   : > { %v2682_v10 = vpack.c.bf16 %v2681_v9, %v2680_v57 }
0x13aa   : > { %3498 = vmatmul.mubr.msk.bf16.vlgmr.msra.gmra.mrb[64].mxu1 %vm2715_vm5, %v2682_v10 }
0x147d   : > { %v2753_v11 = vpop.f32.mrb[64].mxu1 }
0x147e   : > { %v2760_v18 = vadd.f32 %v2753_v11, %v4678_v42  ;;  %v3499_v13 = vpop.f32.mrb[65].mxu1  ;;  %2776 = sbr.rel (%p3175_p5) target bundleno = 5568 (0x15c0), region = 104 }
0x147f   : > { %v2756_v14 = vpop.f32.mrb[66].mxu1 }
0x1480   : > { %v2769_v39 = vadd.f32 %v3174_v12, %v2760_v18  ;;  %v2761_v15 = vadd.f32 %v2756_v14, %v4680_v21  ;;  %v3500_v16 = vpop.f32.mrb[67].mxu1 }
0x1482   : > { %2771 = vst.msk [vmem:[#allocation2] sm:$0xff] %vm660_vm1, %v2769_v39  ;;  %v2770_v17 = vadd.f32 %v3174_v12, %v2761_v15  ;;  %v2778_v19 = vsel (!%p3175_p5), %vm660_vm1, %v2769_v39, 0.0 }
0x1483   : > { %2779 = vadd.xlane.f32.xlu0 (!%p3175_p5), %v2778_v19 }
0x1484   : > { %2772 = vst.msk [vmem:[#allocation2 + $0x8] sm:$0xff] %vm660_vm1, %v2770_v17  ;;  %v2781_v20 = vsel (!%p3175_p5), %vm660_vm1, %v2770_v17, 0.0 }
0x1487   : > { %2782 = vadd.xlane.f32.xlu0 %v2781_v20 }
0x1510   : > { %v2780_v42 = vpop.xlane.xlu0 %2779 }
0x1511   : > { %v2784_v22 = vmul.f32 0.03125, %v2780_v42 }
0x1513   : > { %v2786_v3 = vsub.f32 %v2769_v39, %v2784_v22 }
0x1514   : > { %v2783_v23 = vpop.xlane.xlu0 %2782 }
0x1515   : > { %v2785_v21 = vmul.f32 0.03125, %v2783_v23  ;;  %v2788_v24 = vmul.f32 %v2786_v3, %v2786_v3 }
0x1517   : > { %v2787_v6 = vsub.f32 %v2770_v17, %v2785_v21  ;;  %v2790_v25 = vsel %vm660_vm1, %v2788_v24, 0.0 }
0x1518   : > { %2791 = vadd.xlane.f32.xlu1 %v2790_v25 }
0x1519   : > { %v2789_v26 = vmul.f32 %v2787_v6, %v2787_v6 }
0x151b   : > { %v2793_v27 = vsel %vm660_vm1, %v2789_v26, 0.0 }
0x151c   : > { %2794 = vadd.xlane.f32.xlu1 %v2793_v27 }
0x15a5   : > { %v2792_v30 = vpop.xlane.xlu1 %2791 }
0x15a6   : > { %v2796_v31 = vmul.f32 0.03125, %v2792_v30 }
0x15a8   : > { %v2798_v32 = vadd.f32 1e-05, %v2796_v31 }
0x15a9   : > { %v2795_v34 = vpop.xlane.xlu1 %2794 }
0x15aa   : > { %3667 = vrsqrt.f32 %v2798_v32  ;;  %v2797_v35 = vmul.f32 0.03125, %v2795_v34 }
0x15ac   : > { %v2799_v36 = vadd.f32 1e-05, %v2797_v35 }
0x15ae   : > { %3669 = vrsqrt.f32 %v2799_v36 }
0x15b4   : > { %v3668_v40 = vpop.eup %3667 }
0x15b5   : > { %v2802_v41 = vmul.f32 %v3668_v40, %v2786_v3 }
0x15b7   : > { %v2808_v45 = vmul.f32 %v2807_v38, %v2802_v41 }
0x15b8   : > { %v3670_v46 = vpop.eup %3669 }
0x15b9   : > { %v2814_v47 = vadd.f32 %v2813_v44, %v2808_v45  ;;  %v2803_v48 = vmul.f32 %v3670_v46, %v2787_v6 }
0x15bb   : > { %2816 = vst.msk [vmem:[%s4805_s3] sm:$0xff] %vm660_vm1, %v2814_v47  ;;  %v2809_v49 = vmul.f32 %v2807_v38, %v2803_v48 }
0x15bd   : > { %v2815_v50 = vadd.f32 %v2813_v44, %v2809_v49 }
0x15bf   : > { %2817 = vst.msk [vmem:[%s4805_s3 + $0x8] sm:$0xff] %vm660_vm1, %v2815_v50 }
0x15c0 PF: > { %s4806_s20 = sld [smem:[#allocation22_spill]]  ;;  %s4807_s1 = sld [smem:[#allocation21_spill]] }
0x15c1   : > { %s4808_s19 = sld [smem:[#allocation23_spill]]  ;;  %s4809_s17 = smov %s3949_s18 }
0x15c6   : > { %p29_p3 = scmp.ge.s32.totalorder %s4806_s20, 4   ;;  %s4810_s18 = smov %s4807_s1 }
0x15c8   :  { %31 = sbr.rel (!%p29_p3) target bundleno = 16 (0x10), region = 210 }
0x15cf   :  { %2829 = vsyncpa [#allocation4], 1 }
0x15d0   :  { %2831 = vsyncpa [#allocation4 + $0x1], 1 }
0x15d1   :  { %2832 = vsyncpa [#allocation6], 1 }
0x15d2   :  { %2834 = vsyncpa [#allocation6 + $0x1], 1 }
0x15d3   :  { %2835 = vsyncpa [#allocation9], 1 }
0x15d4   :  { %2837 = vsyncpa [#allocation9 + $0x1], 1 }
0x15d5   :  { %2838 = vsyncpa [#allocation12], 1 }
0x15d6   :  { %2840 = vsyncpa [#allocation12 + $0x1], 1 }
0x15d7   :  { %2841 = vsyncpa [#allocation15], 1 }

// kernel: transformer_forward.5
= control target key start
LH: loop header
LB: loop body
LE: loop exit
PB: predicated region body
PF: predicated region fallthrough
CT: control target
= control target key end

     0   :  { %s7810_s0 = inlined_call_operand.hbm [shape: f32[16,32], index: 0, kind: input, shape index: {}]   ;;  %s7811_s1 = inlined_call_operand.vmem [shape: f32[16,32], index: 1, kind: input, shape index: {}]   ;;  %s7812_s2 = inlined_call_operand.vmem [shape: f32[2,6,32], index: 2, kind: input, shape index: {}]   ;;  %s7813_s3 = inlined_call_operand.vmem [shape: bf16[2,12,32,8], index: 3, kind: input, shape index: {}]   ;;  %s7814_s4 = inlined_call_operand.vmem [shape: f32[2,12,1,8], index: 4, kind: input, shape index: {}]   ;;  %s7815_s5 = inlined_call_operand.hbm [shape: bf16[2,4,8,32], index: 5, kind: input, shape index: {}]   ;;  %s7816_s6 = inlined_call_operand.hbm [shape: f32[2,1,32], index: 6, kind: input, shape index: {}]   ;;  %s7817_s7 = inlined_call_operand.vmem [shape: bf16[2,12,32,8], index: 7, kind: input, shape index: {}]   ;;  %s7818_s8 = inlined_call_operand.vmem [shape: f32[2,12,1,8], index: 8, kind: input, shape index: {}]   ;;  %s7819_s9 = inlined_call_operand.hbm [shape: bf16[2,4,8,32], index: 9, kind: input, shape index: {}]   ;;  %s7820_s10 = inlined_call_operand.hbm [shape: f32[2,1,32], index: 10, kind: input, shape index: {}]   ;;  %s7821_s11 = inlined_call_operand.hbm [shape: bf16[2,32,64], index: 11, kind: input, shape index: {}]   ;;  %s7822_s12 = inlined_call_operand.hbm [shape: f32[2,1,64], index: 12, kind: input, shape index: {}]   ;;  %s7823_s13 = inlined_call_operand.vmem [shape: bf16[2,64,32], index: 13, kind: input, shape index: {}]   ;;  %s7824_s14 = inlined_call_operand.hbm [shape: f32[2,1,32], index: 14, kind: input, shape index: {}]   ;;  %s7825_s15 = inlined_call_operand.hbm [shape: f32[2,32], index: 15, kind: input, shape index: {}]   ;;  %s7826_s16 = inlined_call_operand.vmem [shape: f32[16,32], index: 16, kind: output, shape index: {}]  }
   0x1   :  { %7843 = sst [smem:[#allocation26_spill]] %s7810_s0 }
   0x2   :  { %7844 = sst [smem:[#allocation27_spill]] %s7811_s1 }
   0x3   :  { %7845 = sst [smem:[#allocation28_spill]] %s7812_s2 }
   0x4   :  { %7846 = sst [smem:[#allocation29_spill]] %s7813_s3 }
   0x5   :  { %7847 = sst [smem:[#allocation30_spill]] %s7814_s4 }
   0x6   :  { %7848 = sst [smem:[#allocation31_spill]] %s7815_s5 }
   0x7   :  { %7849 = sst [smem:[#allocation32_spill]] %s7816_s6 }
   0x8   :  { %7850 = sst [smem:[#allocation33_spill]] %s7817_s7 }
   0x9   :  { %7851 = sst [smem:[#allocation34_spill]] %s7818_s8 }
   0xa   :  { %7852 = sst [smem:[#allocation35_spill]] %s7819_s9 }
   0xb   :  { %7853 = sst [smem:[#allocation36_spill]] %s7820_s10 }
   0xc   :  { %7854 = sst [smem:[#allocation37_spill]] %s7821_s11 }
   0xd   :  { %7855 = sst [smem:[#allocation38_spill]] %s7823_s13 }
   0xe   :  { %7856 = sst [smem:[#allocation39_spill]] %s7825_s15 }
   0xf   :  { %7857 = sst [smem:[#allocation40_spill]] %s7826_s16 }
  0x10   :  { %21 = vsyncpa [#allocation4], 0 }
  0x11   :  { %22 = vsyncpa [#allocation6], 0 }
  0x12   :  { %24 = vsyncpa [#allocation6 + $0x1], 0 }
  0x13   :  { %25 = vsyncpa [#allocation9], 0 }
  0x14   :  { %27 = vsyncpa [#allocation9 + $0x1], 0 }
  0x15   :  { %28 = vsyncpa [#allocation12], 0 }
  0x16   :  { %30 = vsyncpa [#allocation12 + $0x1], 0 }
  0x17   :  { %31 = vsyncpa [#allocation15], 0 }
  0x18   :  { %33 = vsyncpa [#allocation15 + $0x1], 0  ;;  %s6779_s21 = smov 0   ;;  %s6781_s22 = smov 0  }
  0x19   :  { %s6783_s23 = smov 0   ;;  %s6785_s24 = smov 0  }
  0x1a LB: > { %7858 = sst [smem:[#allocation23_spill]] %s6673_s23  ;;  %s6798_s25 = sadd.s32 4294967295, %s6677_s24   ;;  %s6677_s24 = sphi %s6785_s24, %s7906_s24   ;;  %s6673_s23 = sphi %s6783_s23, %s7908_s23   ;;  %s6669_s22 = sphi %s6781_s22, %s7910_s22   ;;  %s6665_s21 = sphi %s6779_s21, %s7909_s21  }
  0x1b   : > { %s6801_s26 = sadd.s32 1, %s6677_s24   ;;  %s166_s28 = sadd.s32 1, %s6673_s23 }
  0x1c   : > { %7859 = sst [smem:[#allocation24_spill]] %s6801_s26  ;;  %s163_s27 = ssub.s32 %s6677_s24, %s6801_s26 }
  0x1d   : > { %p164_p0 = scmp.eq.s32.totalorder %s163_s27, 0  ;;  %p173_p1 = scmp.ne.s32.totalorder %s6673_s23, %s6669_s22 }
  0x1e   : > { %p174_p2 = scmp.eq.s32.totalorder %s6677_s24, 0  ;;  %p179_p3 = scmp.ne.s32.totalorder %s6669_s22, %s6665_s21 }
  0x1f   : > { %s6811_s29 = scalar_select %p164_p0, %s6673_s23, %s166_s28  }
  0x20   : > { %p6813_p4 = por %p174_p2, %p173_p1  ;;  %p7833_p5 = scmp.eq.s32.totalorder %s6798_s25, 0 }
  0x21   : > { %7860 = sst [smem:[#allocation25_spill]] %s6811_s29  ;;  %p5209_p6 = scmp.ge.s32.totalorder %s6677_s24, 1 }
  0x22   : > { %p466_p7 = scmp.lt.s32.totalorder %s6677_s24, 3  ;;  %p6822_p8 = por %p7833_p5, %p179_p3 }
  0x23   : > { %s6679_s18 = smov [#allocation16]   ;;  %p6176_p12 = scmp.lt.s32.totalorder %s6677_s24, 2 }
  0x24   : > { %s7862_s0 = scalar_select %p6822_p8, 1, 0 }
  0x25   : > { %p6827_p10 = pnand %p5209_p6, %p466_p7  ;;  %s495_s19 = sshll.u32 %s6679_s18, 4  ;;  %s496_s19 = int_to_ptr.vmem [resolvable:$true] %s495_s19 }
  0x26   : > { %s6835_s20 = sand.u32 1, %s6677_s24   ;;  %p6845_p0 = pnand %p6176_p12, %p6813_p4 }
  0x27   : > { %s7863_s17 = scalar_select %p6827_p10, 1, 0 }
  0x28   : > { %p6145_p11 = pneg %p6827_p10  ;;  %s6850_s28 = sand.u32 1, %s6673_s23  }
  0x29   : > { %s7865_s27 = scalar_select %p6845_p0, 1, 0 }
  0x2a   : > { %p6839_p13 = pnand %p6145_p11, %p7833_p5  ;;  %s6853_s18 = sshll.u32 %s6850_s28, 4 }
  0x2b   : > { %s7866_s15 = sld [smem:[#allocation39_spill]] }
  0x2c   : > { %s7864_s21 = scalar_select %p6839_p13, 1, 0 }
  0x2d   : > { %p7837_p2 = pneg %p6839_p13 }
  0x31   : > { %s6357_s16 = scalar_lea.hbm %s7866_s15, 32 }
  0x32   : > { %p6358_p1 = scmp.ne.s32.totalorder %s7866_s15, %s6357_s16  ;;  %p6364_p6 = scmp.lt.u32.totalorder %s6357_s16, %s7866_s15 }
  0x34   : > { %p6360_p3 = pnand %p7837_p2, %p6358_p1 }
  0x36   : > { %p6361_p4 = pneg %p6360_p3 }
  0x38   : > { %p6366_p7 = pnand %p6364_p6, %p6361_p4 }
  0x3a   : > { %6369 = shalt.err (!%p6366_p7)
}
  0x3b   : > { %s6370_s8 = scalar_lea.vmem %s496_s19, 32  ;;  %p6378_p5 = scmp.lt.s32.totalorder %s496_s19, %s496_s19 }
  0x3c   : > { %p6371_p11 = scmp.ne.s32.totalorder %s496_s19, %s6370_s8  ;;  %p6379_p8 = scmp.lt.s32.totalorder %s6370_s8, %s6370_s8 }
  0x3e   : > { %p6373_p12 = pnand %p6371_p11, %p7837_p2  ;;  %p6380_p10 = por %p6379_p8, %p6378_p5 }
  0x40   : > { %p6374_p9 = pneg %p6373_p12 }
  0x42   : > { %p6381_p0 = pnand %p6380_p10, %p6374_p9 }
  0x44   : > { %6384 = shalt.err (!%p6381_p0)
}
  0x45   : > { %6151 = dma.hbm_to_vmem [thread:$0]  (!%p6839_p13), %s7866_s15, 32, %s496_s19, [#allocation15]  }
  0x46   : > { %s6878_s16 = sshll.u32 %s6677_s24, 8  ;;  %s532_s23 = scalar_lea.vmem [#allocation5], %s6853_s18 }
  0x47   : > { %s539_s26 = sshll.u32 %s532_s23, 4  ;;  %s7867_s5 = sld [smem:[#allocation31_spill]]  ;;  %s6887_s26 = int_to_ptr.vmem [resolvable:$true] %s539_s26 }
  0x48   : > { %p7868_p8 = scmp.ne.s32.totalorder %s7865_s27, 0 }
  0x4a   : > { %p6894_p9 = pneg %p7868_p8 }
  0x4c   : > { %s7869_s19 = scalar_select %p6894_p9, 1, 0 }
  0x4d   : > { %s6885_s30 = scalar_lea.hbm %s7867_s5, %s6878_s16  ;;  %s6390_s8 = scalar_lea.hbm %s7867_s5, 512 }
  0x4e   : > { %s6385_s13 = scalar_lea.hbm %s6885_s30, 256  ;;  %p6391_p1 = scmp.lt.u32.totalorder %s6885_s30, %s7867_s5 }
  0x4f   : > { %p6386_p5 = scmp.ne.s32.totalorder %s6885_s30, %s6385_s13  ;;  %p6392_p3 = scmp.lt.u32.totalorder %s6390_s8, %s6385_s13 }
  0x50   : > { %p6394_p6 = scmp.lt.u32.totalorder %s6385_s13, %s6885_s30 }
  0x51   : > { %p6388_p10 = pnand %p6894_p9, %p6386_p5  ;;  %p6393_p4 = por %p6392_p3, %p6391_p1 }
  0x53   : > { %p6389_p0 = pneg %p6388_p10  ;;  %p6395_p7 = por %p6394_p6, %p6393_p4 }
  0x55   : > { %p6396_p11 = pnand %p6395_p7, %p6389_p0 }
  0x57   : > { %6399 = shalt.err (!%p6396_p11)
}
  0x58   : > { %s6400_s1 = scalar_lea.vmem %s6887_s26, 256  ;;  %s6680_s23 = smov [#allocation5]  }
  0x59   : > { %p6401_p12 = scmp.ne.s32.totalorder %s6887_s26, %s6400_s1  ;;  %s6405_s29 = sshll.u32 %s6680_s23, 4  ;;  %s6406_s29 = int_to_ptr.vmem [resolvable:$false] %s6405_s29 }
  0x5a   : > { %s6407_s4 = scalar_lea.vmem %s6406_s29, 512  ;;  %p6408_p2 = scmp.lt.s32.totalorder %s6887_s26, %s6406_s29 }
  0x5b   : > { %p6403_p5 = pnand %p6401_p12, %p6894_p9  ;;  %p6409_p13 = scmp.lt.s32.totalorder %s6407_s4, %s6400_s1 }
  0x5d   : > { %p6404_p10 = pneg %p6403_p5  ;;  %p6410_p1 = por %p6409_p13, %p6408_p2 }
  0x5f   : > { %p6411_p3 = pnand %p6410_p1, %p6404_p10 }
  0x61   : > { %6414 = shalt.err (!%p6411_p3)
}
  0x62   : > { %s6681_s15 = smov 64   ;;  %s6682_s13 = smov 4  }
  0x63   : > { %s7870_s8 = scalar_lea.sflag [#allocation6], %s6835_s20  ;;  %s7871_s9 = sld [smem:[#allocation35_spill]] }
  0x64   : > { %6155 = dma.hbm_to_vmem [thread:$0]  (!%p7868_p8), %s6885_s30, 256, %s6887_s26, %s7870_s8, %s6681_s15, %s6681_s15, %s6682_s13  }
  0x65   : > { %s585_s4 = scalar_lea.vmem [#allocation8], %s6853_s18  ;;  %s582_s7 = scalar_lea.sflag [#allocation9], %s6835_s20 }
  0x66   : > { %s592_s5 = sshll.u32 %s585_s4, 4  ;;  %s6929_s5 = int_to_ptr.vmem [resolvable:$true] %s592_s5 }
  0x69   : > { %s6926_s29 = scalar_lea.hbm %s7871_s9, %s6878_s16  ;;  %s6420_s8 = scalar_lea.hbm %s7871_s9, 512 }
  0x6a   : > { %s6415_s3 = scalar_lea.hbm %s6926_s29, 256  ;;  %p6421_p4 = scmp.lt.u32.totalorder %s6926_s29, %s7871_s9 }
  0x6b   : > { %p6416_p13 = scmp.ne.s32.totalorder %s6926_s29, %s6415_s3  ;;  %p6422_p6 = scmp.lt.u32.totalorder %s6420_s8, %s6415_s3 }
  0x6c   : > { %p6424_p11 = scmp.lt.u32.totalorder %s6415_s3, %s6926_s29 }
  0x6d   : > { %p6418_p2 = pnand %p6416_p13, %p6894_p9  ;;  %p6423_p7 = por %p6422_p6, %p6421_p4 }
  0x6f   : > { %p6419_p0 = pneg %p6418_p2  ;;  %p6425_p12 = por %p6424_p11, %p6423_p7 }
  0x71   : > { %p6426_p5 = pnand %p6425_p12, %p6419_p0 }
  0x73   : > { %6429 = shalt.err (!%p6426_p5)
}
  0x74   : > { %s6430_s4 = scalar_lea.vmem %s6929_s5, 256  ;;  %s6683_s26 = smov [#allocation8]  }
  0x75   : > { %p6431_p10 = scmp.ne.s32.totalorder %s6929_s5, %s6430_s4  ;;  %s6435_s30 = sshll.u32 %s6683_s26, 4  ;;  %s6436_s30 = int_to_ptr.vmem [resolvable:$false] %s6435_s30 }
  0x76   : > { %s6437_s1 = scalar_lea.vmem %s6436_s30, 512  ;;  %p6438_p13 = scmp.lt.s32.totalorder %s6929_s5, %s6436_s30 }
  0x77   : > { %p6433_p1 = pnand %p6431_p10, %p6894_p9  ;;  %p6439_p2 = scmp.lt.s32.totalorder %s6437_s1, %s6430_s4 }
  0x79   : > { %p6434_p3 = pneg %p6433_p1  ;;  %p6440_p4 = por %p6439_p2, %p6438_p13 }
  0x7b   : > { %p6441_p6 = pnand %p6440_p4, %p6434_p3 }
  0x7d   : > { %6444 = shalt.err (!%p6441_p6)
}
  0x7e   : > { %6161 = dma.hbm_to_vmem [thread:$0]  (!%p7868_p8), %s6926_s29, 256, %s6929_s5, %s582_s7, %s6681_s15, %s6681_s15, %s6682_s13  }
  0x7f   : > { %s7872_s11 = sld [smem:[#allocation37_spill]]  ;;  %s623_s4 = scalar_lea.vmem [#allocation11], %s6853_s18 }
  0x80   : > { %s630_s26 = sshll.u32 %s623_s4, 4  ;;  %s6684_s30 = smov [#allocation3]   ;;  %s6965_s26 = int_to_ptr.vmem [resolvable:$true] %s630_s26 }
  0x81   : > { %s6967_s1 = sshll.u32 %s6684_s30, 4  ;;  %s620_s9 = scalar_lea.sflag [#allocation12], %s6835_s20  ;;  %s479_s1 = int_to_ptr.vmem [resolvable:$true] %s6967_s1 }
  0x85   : > { %s6962_s23 = scalar_lea.hbm %s7872_s11, %s6878_s16  ;;  %s6450_s29 = scalar_lea.hbm %s7872_s11, 512 }
  0x86   : > { %s6445_s2 = scalar_lea.hbm %s6962_s23, 256  ;;  %p6451_p12 = scmp.lt.u32.totalorder %s6962_s23, %s7872_s11 }
  0x87   : > { %p6446_p0 = scmp.ne.s32.totalorder %s6962_s23, %s6445_s2  ;;  %p6452_p5 = scmp.lt.u32.totalorder %s6450_s29, %s6445_s2 }
  0x88   : > { %p6454_p1 = scmp.lt.u32.totalorder %s6445_s2, %s6962_s23 }
  0x89   : > { %p6448_p7 = pnand %p6446_p0, %p6894_p9  ;;  %p6453_p10 = por %p6452_p5, %p6451_p12 }
  0x8b   : > { %p6449_p11 = pneg %p6448_p7  ;;  %p6455_p3 = por %p6454_p1, %p6453_p10 }
  0x8d   : > { %p6456_p13 = pnand %p6455_p3, %p6449_p11 }
  0x8f   : > { %6459 = shalt.err (!%p6456_p13)
}
  0x90   : > { %s6460_s18 = scalar_lea.vmem %s6965_s26, 256  ;;  %s6685_s4 = smov [#allocation11]  }
  0x91   : > { %p6461_p2 = scmp.ne.s32.totalorder %s6965_s26, %s6460_s18  ;;  %s6465_s30 = sshll.u32 %s6685_s4, 4  ;;  %s6466_s30 = int_to_ptr.vmem [resolvable:$false] %s6465_s30 }
  0x92   : > { %s6467_s5 = scalar_lea.vmem %s6466_s30, 512  ;;  %p6468_p0 = scmp.lt.s32.totalorder %s6965_s26, %s6466_s30 }
  0x93   : > { %p6463_p4 = pnand %p6461_p2, %p6894_p9  ;;  %p6469_p7 = scmp.lt.s32.totalorder %s6467_s5, %s6460_s18 }
  0x95   : > { %p6464_p6 = pneg %p6463_p4  ;;  %p6470_p12 = por %p6469_p7, %p6468_p0 }
  0x97   : > { %p6471_p5 = pnand %p6470_p12, %p6464_p6 }
  0x99   : > { %6474 = shalt.err (!%p6471_p5)
}
  0x9a   : > { %6167 = dma.hbm_to_vmem [thread:$0]  (!%p7868_p8), %s6962_s23, 256, %s6965_s26, %s620_s9, %s6681_s15, %s6681_s15, %s6682_s13  }
  0x9b   : > { %s7873_s29 = sld [smem:[#allocation26_spill]]  ;;  %p7874_p10 = scmp.ne.s32.totalorder %s7864_s21, 0 }
  0x9d   : > { %p7875_p1 = pneg %p7874_p10 }
  0xa1   : > { %s6475_s3 = scalar_lea.hbm %s7873_s29, 256 }
  0xa2   : > { %p6476_p11 = scmp.ne.s32.totalorder %s7873_s29, %s6475_s3  ;;  %p6482_p2 = scmp.lt.u32.totalorder %s6475_s3, %s7873_s29 }
  0xa4   : > { %p6478_p3 = pnand %p6476_p11, %p7875_p1 }
  0xa6   : > { %p6479_p13 = pneg %p6478_p3 }
  0xa8   : > { %p6484_p4 = pnand %p6482_p2, %p6479_p13 }
  0xaa   : > { %6487 = shalt.err (!%p6484_p4)
}
  0xab   : > { %s6488_s15 = scalar_lea.vmem %s479_s1, 256  ;;  %p7876_p0 = pmov %p7875_p1 }
  0xac   : > { %p6489_p6 = scmp.ne.s32.totalorder %s479_s1, %s6488_s15  ;;  %p6496_p5 = scmp.lt.s32.totalorder %s479_s1, %s479_s1 }
  0xad   : > { %p6497_p8 = scmp.lt.s32.totalorder %s6488_s15, %s6488_s15 }
  0xae   : > { %p6491_p7 = pnand %p6489_p6, %p7876_p0 }
  0xaf   : > { %p6498_p9 = por %p6497_p8, %p6496_p5 }
  0xb0   : > { %p6492_p12 = pneg %p6491_p7 }
  0xb2   : > { %p6499_p1 = pnand %p6498_p9, %p6492_p12 }
  0xb4   : > { %6502 = shalt.err (!%p6499_p1)
}
  0xb5   : > { %s6686_s13 = smov 128   ;;  %s6687_s23 = smov 8  }
  0xb6   : > { %6148 = dma.hbm_to_vmem [thread:$0]  (!%p7874_p10), %s7873_s29, 256, %s479_s1, [#allocation4], %s6686_s13, %s6686_s13, %s6687_s23  }
  0xb7   : > { %s7018_s2 = sshll.u32 %s6677_s24, 4  ;;  %s552_s16 = scalar_lea.vmem [#allocation7], %s6850_s28 }
  0xb8   : > { %s559_s3 = sshll.u32 %s552_s16, 4  ;;  %s7877_s6 = sld [smem:[#allocation32_spill]]  ;;  %s560_s3 = int_to_ptr.vmem [resolvable:$true] %s559_s3 }
  0xb9   : > { %p7878_p9 = scmp.ne.s32.totalorder %s7869_s19, 0 }
  0xbe   : > { %s557_s4 = scalar_lea.hbm %s7877_s6, %s7018_s2  ;;  %s6508_s26 = scalar_lea.hbm %s7877_s6, 32 }
  0xbf   : > { %s6503_s30 = scalar_lea.hbm %s557_s4, 16  ;;  %p6509_p10 = scmp.lt.u32.totalorder %s557_s4, %s7877_s6 }
  0xc0   : > { %p6504_p8 = scmp.ne.s32.totalorder %s557_s4, %s6503_s30  ;;  %p6510_p13 = scmp.lt.u32.totalorder %s6508_s26, %s6503_s30 }
  0xc1   : > { %p6512_p4 = scmp.lt.u32.totalorder %s6503_s30, %s557_s4 }
  0xc2   : > { %p6506_p11 = pnand %p6504_p8, %p7878_p9  ;;  %p6511_p2 = por %p6510_p13, %p6509_p10 }
  0xc4   : > { %p6507_p3 = pneg %p6506_p11  ;;  %p6513_p6 = por %p6512_p4, %p6511_p2 }
  0xc6   : > { %p6514_p0 = pnand %p6513_p6, %p6507_p3 }
  0xc8   : > { %6517 = shalt.err (!%p6514_p0)
}
  0xc9   : > { %s6518_s13 = scalar_lea.vmem %s560_s3, 16  ;;  %s6688_s23 = smov [#allocation7]  }
  0xca   : > { %p6519_p7 = scmp.ne.s32.totalorder %s560_s3, %s6518_s13  ;;  %s6523_s5 = sshll.u32 %s6688_s23, 4  ;;  %s6524_s5 = int_to_ptr.vmem [resolvable:$false] %s6523_s5 }
  0xcb   : > { %s6525_s16 = scalar_lea.vmem %s6524_s5, 32  ;;  %p6526_p1 = scmp.lt.s32.totalorder %s560_s3, %s6524_s5 }
  0xcc   : > { %p6521_p12 = pnand %p6519_p7, %p7878_p9  ;;  %p6527_p8 = scmp.lt.s32.totalorder %s6525_s16, %s6518_s13 }
  0xce   : > { %p6522_p5 = pneg %p6521_p12  ;;  %p6528_p11 = por %p6527_p8, %p6526_p1 }
  0xd0   : > { %p6529_p10 = pnand %p6528_p11, %p6522_p5 }
  0xd2   : > { %6532 = shalt.err (!%p6529_p10)
}
  0xd3   : > { %p7879_p13 = scmp.ne.s32.totalorder %s7865_s27, 0  ;;  %s7880_s8 = scalar_lea.sflag [#allocation6], %s6835_s20 }
  0xd4   : > { %s7881_s10 = sld [smem:[#allocation36_spill]]  ;;  %s605_s15 = scalar_lea.vmem [#allocation10], %s6850_s28 }
  0xd5   : > { %6158 = dma.hbm_to_vmem [thread:$0]  (!%p7879_p13), %s557_s4, 16, %s560_s3, %s7880_s8  }
  0xd6   : > { %s612_s26 = sshll.u32 %s605_s15, 4  ;;  %s7050_s13 = scalar_lea.hbm %s7822_s12, %s7018_s2  ;;  %s613_s26 = int_to_ptr.vmem [resolvable:$true] %s612_s26 }
  0xda   : > { %s7043_s21 = scalar_lea.hbm %s7881_s10, %s7018_s2  ;;  %s6538_s5 = scalar_lea.hbm %s7881_s10, 32 }
  0xdb   : > { %s6533_s23 = scalar_lea.hbm %s7043_s21, 16  ;;  %p6539_p6 = scmp.lt.u32.totalorder %s7043_s21, %s7881_s10 }
  0xdc   : > { %p6534_p3 = scmp.ne.s32.totalorder %s7043_s21, %s6533_s23  ;;  %p6540_p0 = scmp.lt.u32.totalorder %s6538_s5, %s6533_s23 }
  0xdd   : > { %p6542_p12 = scmp.lt.u32.totalorder %s6533_s23, %s7043_s21 }
  0xde   : > { %p6536_p2 = pnand %p6534_p3, %p7878_p9  ;;  %p6541_p7 = por %p6540_p0, %p6539_p6 }
  0xe0   : > { %p6537_p4 = pneg %p6536_p2  ;;  %p6543_p5 = por %p6542_p12, %p6541_p7 }
  0xe2   : > { %p6544_p1 = pnand %p6543_p5, %p6537_p4 }
  0xe4   : > { %6547 = shalt.err (!%p6544_p1)
}
  0xe5   : > { %s6548_s18 = scalar_lea.vmem %s613_s26, 16  ;;  %s6689_s30 = smov [#allocation10]  }
  0xe6   : > { %p6549_p8 = scmp.ne.s32.totalorder %s613_s26, %s6548_s18  ;;  %s6553_s15 = sshll.u32 %s6689_s30, 4  ;;  %s6554_s15 = int_to_ptr.vmem [resolvable:$false] %s6553_s15 }
  0xe7   : > { %s6555_s1 = scalar_lea.vmem %s6554_s15, 32  ;;  %p6556_p3 = scmp.lt.s32.totalorder %s613_s26, %s6554_s15 }
  0xe8   : > { %p6551_p11 = pnand %p6549_p8, %p7878_p9  ;;  %p6557_p2 = scmp.lt.s32.totalorder %s6555_s1, %s6548_s18 }
  0xea   : > { %p6552_p10 = pneg %p6551_p11  ;;  %p6558_p13 = por %p6557_p2, %p6556_p3 }
  0xec   : > { %p6559_p0 = pnand %p6558_p13, %p6552_p10 }
  0xee   : > { %6562 = shalt.err (!%p6559_p0)
}
  0xef   : > { %p7882_p6 = scmp.ne.s32.totalorder %s7865_s27, 0  ;;  %s643_s24 = scalar_lea.vmem [#allocation13], %s6850_s28 }
  0xf0   : > { %s650_s23 = sshll.u32 %s643_s24, 4  ;;  %s6563_s3 = scalar_lea.hbm %s7050_s13, 16  ;;  %s651_s23 = int_to_ptr.vmem [resolvable:$true] %s650_s23 }
  0xf1   : > { %6164 = dma.hbm_to_vmem [thread:$0]  (!%p7882_p6), %s7043_s21, 16, %s613_s26, %s582_s7  }
  0xf2   : > { %p6564_p4 = scmp.ne.s32.totalorder %s7050_s13, %s6563_s3  ;;  %s6568_s16 = scalar_lea.hbm %s7822_s12, 32 }
  0xf3   : > { %p6569_p12 = scmp.lt.u32.totalorder %s7050_s13, %s7822_s12  ;;  %p6570_p5 = scmp.lt.u32.totalorder %s6568_s16, %s6563_s3 }
  0xf4   : > { %p6566_p13 = pnand %p6564_p4, %p7878_p9  ;;  %p6572_p8 = scmp.lt.u32.totalorder %s6563_s3, %s7050_s13 }
  0xf5   : > { %p6571_p1 = por %p6570_p5, %p6569_p12 }
  0xf6   : > { %p6567_p7 = pneg %p6566_p13 }
  0xf7   : > { %p6573_p11 = por %p6572_p8, %p6571_p1 }
  0xf9   : > { %p6574_p10 = pnand %p6573_p11, %p6567_p7 }
  0xfb   : > { %6577 = shalt.err (!%p6574_p10)
}
  0xfc   : > { %s6578_s7 = scalar_lea.vmem %s651_s23, 16  ;;  %s6690_s21 = smov [#allocation13]  }
  0xfd   : > { %p6579_p3 = scmp.ne.s32.totalorder %s651_s23, %s6578_s7  ;;  %s6583_s26 = sshll.u32 %s6690_s21, 4  ;;  %s6584_s26 = int_to_ptr.vmem [resolvable:$false] %s6583_s26 }
  0xfe   : > { %s6585_s30 = scalar_lea.vmem %s6584_s26, 32  ;;  %p6586_p4 = scmp.lt.s32.totalorder %s651_s23, %s6584_s26 }
  0xff   : > { %p6581_p2 = pnand %p6579_p3, %p7878_p9  ;;  %p6587_p13 = scmp.lt.s32.totalorder %s6585_s30, %s6578_s7 }
 0x101   : > { %p6582_p0 = pneg %p6581_p2  ;;  %p6588_p6 = por %p6587_p13, %p6586_p4 }
 0x103   : > { %p6589_p5 = pnand %p6588_p6, %p6582_p0 }
 0x105   : > { %6592 = shalt.err (!%p6589_p5)
}
 0x106   : > { %p7883_p12 = scmp.ne.s32.totalorder %s7865_s27, 0  ;;  %s7095_s24 = scalar_lea.hbm %s7824_s14, %s7018_s2 }
 0x107   : > { %s668_s3 = scalar_lea.vmem [#allocation14], %s6850_s28  ;;  %s666_s5 = scalar_lea.sflag [#allocation15], %s6835_s20 }
 0x108   : > { %6170 = dma.hbm_to_vmem [thread:$0]  (!%p7883_p12), %s7050_s13, 16, %s651_s23, %s620_s9  }
 0x109   : > { %s675_s4 = sshll.u32 %s668_s3, 4  ;;  %s6593_s16 = scalar_lea.hbm %s7095_s24, 16  ;;  %s676_s4 = int_to_ptr.vmem [resolvable:$true] %s675_s4 }
 0x10a   : > { %p6594_p6 = scmp.ne.s32.totalorder %s7095_s24, %s6593_s16  ;;  %s6598_s13 = scalar_lea.hbm %s7824_s14, 32 }
 0x10b   : > { %p6599_p8 = scmp.lt.u32.totalorder %s7095_s24, %s7824_s14  ;;  %p6600_p11 = scmp.lt.u32.totalorder %s6598_s13, %s6593_s16 }
 0x10c   : > { %p6596_p7 = pnand %p6594_p6, %p7878_p9  ;;  %p6602_p3 = scmp.lt.u32.totalorder %s6593_s16, %s7095_s24 }
 0x10d   : > { %p6601_p10 = por %p6600_p11, %p6599_p8 }
 0x10e   : > { %p6597_p1 = pneg %p6596_p7 }
 0x10f   : > { %p6603_p2 = por %p6602_p3, %p6601_p10 }
 0x111   : > { %p6604_p0 = pnand %p6603_p2, %p6597_p1 }
 0x113   : > { %6607 = shalt.err (!%p6604_p0)
}
 0x114   : > { %s6608_s20 = scalar_lea.vmem %s676_s4, 16  ;;  %s6691_s28 = smov [#allocation14]  }
 0x115   : > { %p6609_p4 = scmp.ne.s32.totalorder %s676_s4, %s6608_s20  ;;  %s6613_s18 = sshll.u32 %s6691_s28, 4  ;;  %s6614_s18 = int_to_ptr.vmem [resolvable:$false] %s6613_s18 }
 0x116   : > { %s6615_s7 = scalar_lea.vmem %s6614_s18, 32  ;;  %p6616_p6 = scmp.lt.s32.totalorder %s676_s4, %s6614_s18 }
 0x117   : > { %p6611_p13 = pnand %p6609_p4, %p7878_p9  ;;  %p6617_p7 = scmp.lt.s32.totalorder %s6615_s7, %s6608_s20 }
 0x119   : > { %p6612_p5 = pneg %p6611_p13  ;;  %p6618_p12 = por %p6617_p7, %p6616_p6 }
 0x11b   : > { %p6619_p8 = pnand %p6618_p12, %p6612_p5 }
 0x11d   : > { %6622 = shalt.err (!%p6619_p8)
}
 0x11e   : > { %p7884_p11 = scmp.ne.s32.totalorder %s7865_s27, 0  ;;  %p7885_p1 = scmp.ne.s32.totalorder %s7863_s17, 0 }
 0x11f   : > { %p7886_p10 = scmp.eq.s32.totalorder (!%p7885_p1), %s6798_s25, 0 }
 0x120   : > { %6173 = dma.hbm_to_vmem [thread:$0]  (!%p7884_p11), %s7095_s24, 16, %s676_s4, %s666_s5  }
 0x121   : > { %684 = sbr.rel (%p7885_p1) target bundleno = 9826 (0x2662), region = 84 }
 0x128   : > { %6640 = dma.done.wait (%p7886_p10), [#allocation4], 256   ;;  %p7887_p9 = pmov %p7886_p10 }
 0x129   : > { %s690_s19 = sand.u32 1, %s6798_s25   ;;  %s7124_s21 = sand.u32 1, %s6669_s22  }
 0x12a   : > { %6642 = vsyncadd (%p7887_p9), [#allocation4], 4294967040  ;;  %s7127_s26 = sshll.u32 %s7124_s21, 4  ;;  %s691_s27 = scalar_lea.sflag [#allocation6], %s690_s19 }
 0x12b   : > { %s7130_s30 = scalar_lea.vmem [#allocation5], %s7127_s26  ;;  %p7888_p12 = scmp.ne.s32.totalorder %s7862_s0, 0 }
 0x12d   : > { %6644 = dma.done.wait (%p7888_p12), %s691_s27, 272  }
 0x12e   : > { %6646 = vsyncadd (%p7888_p12), %s691_s27, 4294967024  ;;  %s708_s15 = scalar_lea.sflag [#allocation9], %s690_s19  ;;  %s7138_s1 = scalar_lea.vmem [#allocation8], %s7127_s26 }
 0x12f   : > { %6648 = dma.done.wait (%p7888_p12), %s708_s15, 272  }
 0x130   : > { %6650 = vsyncadd (%p7888_p12), %s708_s15, 4294967024  ;;  %s725_s3 = scalar_lea.sflag [#allocation12], %s690_s19 }
 0x131   : > { %6652 = dma.done.wait (%p7888_p12), %s725_s3, 272  }
 0x132   : > { %6654 = vsyncadd (%p7888_p12), %s725_s3, 4294967024  ;;  %s742_s16 = scalar_lea.sflag [#allocation15], %s690_s19 }
 0x133   : > { %6656 = dma.done.wait (%p7888_p12), %s742_s16, 16  }
 0x134   : > { %6658 = vsyncadd (%p7888_p12), %s742_s16, 4294967280  ;;  %p7889_p3 = pmov %p7887_p9 }
 0x136   : > { %6660 = dma.done.wait (%p7889_p3), [#allocation15], 32   ;;  %p7890_p2 = pmov %p7889_p3 }
 0x137   : > { %p845_p0 = scmp.lt.s32.totalorder %s6798_s25, 1  ;;  %s7891_s28 = sld [smem:[#allocation28_spill]] }
 0x138   : > { %6662 = vsyncadd (%p7890_p2), [#allocation15], 4294967264  ;;  %s7892_s27 = sld [smem:[#allocation29_spill]]  ;;  %s7893_s8 = sld [smem:[#allocation33_spill]] }
 0x139   : > { %s846_s9 = scalar_select %p845_p0, %s6798_s25, 1 }
 0x13a   : > { %s7894_s17 = sld [smem:[#allocation30_spill]]  ;;  %p7897_p4 = scmp.ne.s32.totalorder %s6798_s25, 0 }
 0x13b   : > { %s5232_s13 = sshll.u32 %s846_s9, 3  ;;  %s6121_s23 = smul.u32 192, %s846_s9  ;;  %v877_v0 = vld [vmem:[#allocation3] sm:$0xff] (!%p7897_p4)  ;;  %vm879_vm0 = vcmask (!%p7897_p4), 261120   ;;  %v878_v1 = vld [vmem:[#allocation3 + $0x8] sm:$0xff] (!%p7897_p4) }
 0x13c   : > { %s6122_s7 = smul.u32 12, %s846_s9  ;;  %s7896_s19 = sld [smem:[#allocation38_spill]]  ;;  %880 = vst.msk [vmem:[#allocation2] sm:$0xff] (!%p7897_p4), %vm879_vm0, %v877_v0  ;;  %881 = vst.msk [vmem:[#allocation2 + $0x8] sm:$0xff] (!%p7897_p4), %vm879_vm0, %v878_v1 }
 0x13d   : > { %s7165_s18 = scalar_lea.vmem %s7891_s28, %s5232_s13  ;;  %s7895_s13 = sld [smem:[#allocation34_spill]] }
 0x13e   : > { %s7170_s15 = scalar_lea.vmem %s7892_s27, %s6121_s23  ;;  %s7175_s5 = scalar_lea.vmem %s7893_s8, %s6121_s23 }
 0x13f   : > { %s5508_s28 = sshll.u32 %s846_s9, 5  ;;  %876 = sbr.rel (%p7897_p4) target bundleno = 326 (0x146), region = 124 }
 0x140   : > { %s7180_s6 = scalar_lea.vmem %s7894_s17, %s6122_s7 }
 0x142   : > { %s7190_s27 = scalar_lea.vmem %s7896_s19, %s5508_s28 }
 0x143   : > { %s7185_s20 = scalar_lea.vmem %s7895_s13, %s6122_s7 }
 0x146 PF: > { %v882_v2 = vld [vmem:[#allocation2] sm:$0xff]  ;;  %vm887_vm1 = vcmask 261120   ;;  %v883_v3 = vld [vmem:[#allocation2 + $0x8] sm:$0xff]  ;;  %v6692_v18 = vmov 0.0   ;;  %vm6693_vm2 = vmmov 0   ;;  %v915_v24 = vlaneseq  ;;  %s7901_s4 = scalar_lea.vmem [#allocation11], %s7127_s26 }
 0x147   : > { %v888_v4 = vsel %vm887_vm1, %v882_v2, 0.0  ;;  %v891_v5 = vsel %vm887_vm1, %v883_v3, 0.0  ;;  %v6219_v16 = vld [vmem:[%s7170_s15] sm:$0xff]   ;;  %5669 = vmatprep.subr.bf16.mxu0 %v6692_v18  ;;  %5677 = vmatprep.subr.bf16.mxu1 %v6692_v18  ;;  %v6221_v19 = vld [vmem:[%s7170_s15 + $0x8] sm:$0xff]   ;;  %vm1131_vm3 = vcmask 64512   ;;  %vm1255_vm4 = vcmask 1043456  }
 0x148   : > { %889 = vadd.xlane.f32.xlu0 %v888_v4  ;;  %v6220_v17 = vld [vmem:[%s7170_s15 + $0x40] sm:$0xff]   ;;  %5670 = vmatpush3.bf16.msra.mxu0 %v6219_v16  ;;  %v6222_v20 = vld [vmem:[%s7170_s15 + $0x48] sm:$0xff]   ;;  %v7212_v28 = vshrl.u32 %v915_v24, 7  ;;  %s7903_s26 = scalar_lea.vmem [#allocation13], %s7124_s21  ;;  %vm4856_vm5 = vcmask 523264   ;;  %s7904_s8 = scalar_lea.vmem [#allocation14], %s7124_s21 }
 0x149   : > { %5678 = vmatpush3.bf16.msra.mxu1 %v6220_v17  ;;  %5671 = vmatprep.subr.bf16.mxu0 %v6692_v18  ;;  %v886_v30 = vld [vmem:[%s7165_s18] sm:$0x3f]  ;;  %v6224_v44 = vld [vmem:[%s7170_s15 + $0x88] sm:$0xff]   ;;  %p5502_p13 = scmp.ne.s32.totalorder %s6798_s25, 1 }
 0x14a   : > { %5679 = vmatprep.subr.bf16.mxu1 %v6692_v18  ;;  %5673 = vmatprep.mubr.msk.bf16.mxu0 %vm6693_vm2, %v6692_v18  ;;  %v917_v29 = vsub.s32 0, %v7212_v28  ;;  %v923_v33 = vsub.s32 1, %v7212_v28  ;;  %v6223_v42 = vld [vmem:[%s7170_s15 + $0x80] sm:$0xff]   ;;  %v5256_v60 = vld [vmem:[%s7180_s6 + $0x8] ss:$0 sm:$0xff]  ;;  %s7905_s9 = sld [smem:[#allocation40_spill]] (!%p5502_p13) }
 0x14b   : > { %5681 = vmatprep.mubr.msk.bf16.mxu1 %vm6693_vm2, %v6692_v18  ;;  %v5247_v45 = vld [vmem:[%s7180_s6 + $0x4] ss:$0 sm:$0xff]  ;;  %v5238_v57 = vld [vmem:[%s7180_s6] ss:$0 sm:$0xff] }
 0x14c   : > { %892 = vadd.xlane.f32.xlu0 %v891_v5  ;;  %5672 = vmatpush3.bf16.msra.mxu0 %v6221_v19  ;;  %v918_v32 = vrot.slane %v886_v30, %v917_v29  ;;  %v924_v36 = vrot.slane %v886_v30, %v923_v33 }
 0x14d   : > { %5680 = vmatpush3.bf16.msra.mxu1 %v6222_v20  ;;  %5685 = vmatprep.subr.bf16.mxu0 %v6692_v18 }
 0x14e   : > { %5693 = vmatprep.subr.bf16.mxu1 %v6692_v18 }
 0x1d5   : > { %v890_v6 = vpop.xlane.xlu0 %889 }
 0x1d6   : > { %v895_v7 = vmul.f32 0.03125, %v890_v6 }
 0x1d8   : > { %v897_v8 = vsub.f32 %v882_v2, %v895_v7 }
 0x1d9   : > { %v893_v9 = vpop.xlane.xlu0 %892 }
 0x1da   : > { %v896_v10 = vmul.f32 0.03125, %v893_v9  ;;  %v899_v11 = vmul.f32 %v897_v8, %v897_v8 }
 0x1dc   : > { %v898_v12 = vsub.f32 %v883_v3, %v896_v10  ;;  %v901_v13 = vsel %vm887_vm1, %v899_v11, 0.0 }
 0x1dd   : > { %902 = vadd.xlane.f32.xlu1 %v901_v13 }
 0x1de   : > { %v900_v14 = vmul.f32 %v898_v12, %v898_v12 }
 0x1e0   : > { %v904_v15 = vsel %vm887_vm1, %v900_v14, 0.0 }
 0x1e1   : > { %905 = vadd.xlane.f32.xlu1 %v904_v15 }
 0x26a   : > { %v903_v21 = vpop.xlane.xlu1 %902 }
 0x26b   : > { %v907_v22 = vmul.f32 0.03125, %v903_v21 }
 0x26d   : > { %v909_v23 = vadd.f32 1e-05, %v907_v22 }
 0x26e   : > { %v906_v25 = vpop.xlane.xlu1 %905 }
 0x26f   : > { %6273 = vrsqrt.f32 %v909_v23  ;;  %v908_v26 = vmul.f32 0.03125, %v906_v25 }
 0x271   : > { %v910_v27 = vadd.f32 1e-05, %v908_v26 }
 0x273   : > { %6275 = vrsqrt.f32 %v910_v27 }
 0x279   : > { %v6274_v31 = vpop.eup %6273 }
 0x27a   : > { %v913_v34 = vmul.f32 %v6274_v31, %v897_v8 }
 0x27c   : > { %v919_v37 = vmul.f32 %v918_v32, %v913_v34 }
 0x27d   : > { %v6276_v35 = vpop.eup %6275 }
 0x27e   : > { %v914_v38 = vmul.f32 %v6276_v35, %v898_v12  ;;  %v925_v40 = vadd.f32 %v924_v36, %v919_v37 }
 0x280   : > { %v920_v39 = vmul.f32 %v918_v32, %v914_v38 }
 0x282   : > { %v926_v41 = vadd.f32 %v924_v36, %v920_v39 }
 0x284   : > { %v7222_v43 = vpack.c.bf16 %v926_v41, %v925_v40 }
 0x286   : > { %5674 = vmatmul.mubr.msk.bf16.vlgmr.msra.gmra.mrb[0].mxu0 %vm887_vm1, %v7222_v43  ;;  %5682 = vmatmul.mubr.msk.bf16.vlgmr.msra.gmra.mrb[0].mxu1 %vm887_vm1, %v7222_v43 }
 0x287   : > { %5686 = vmatpush3.bf16.msra.mxu0 %v6223_v42  ;;  %5689 = vmatprep.mubr.msk.bf16.mxu0 %vm6693_vm2, %v6692_v18 }
 0x288   : > { %5687 = vmatprep.subr.bf16.mxu0 %v6692_v18  ;;  %5695 = vmatprep.mubr.msk.bf16.mxu1 %vm6693_vm2, %v6692_v18 }
 0x28b   : > { %5688 = vmatpush3.bf16.msra.mxu0 %v6224_v44  ;;  %v6225_v44 = vld [vmem:[%s7170_s15 + $0x10] sm:$0xff]  }
 0x28c   : > { %5699 = vmatprep.subr.bf16.mxu0 %v6692_v18 }
 0x28e   : > { %5690 = vmatmul.mubr.msk.bf16.vlgmr.msra.gmra.mrb[4].mxu0 %vm887_vm1, %v7222_v43 }
 0x28f   : > { %5701 = vmatprep.mubr.msk.bf16.mxu0 %vm6693_vm2, %v6692_v18 }
 0x359   : > { %v988_v46 = vpop.f32.mrb[0].mxu0  ;;  %v1054_v47 = vpop.f32.mrb[0].mxu1 }
 0x35a   : > { %v1055_v48 = vadd.f32 %v5247_v45, %v1054_v47  ;;  %v5675_v49 = vpop.f32.mrb[1].mxu0  ;;  %v5683_v50 = vpop.f32.mrb[1].mxu1  ;;  %v989_v61 = vadd.f32 %v5238_v57, %v988_v46  ;;  %v6226_v47 = vld [vmem:[%s7170_s15 + $0x50] sm:$0xff]  }
 0x35b   : > { %v991_v51 = vpop.f32.mrb[2].mxu0  ;;  %v1057_v52 = vpop.f32.mrb[2].mxu1  ;;  %v6227_v49 = vld [vmem:[%s7170_s15 + $0x18] sm:$0xff]  }
 0x35c   : > { %v1129_v53 = vpack.c.bf16 %v1055_v48, %v1055_v48  ;;  %v1058_v54 = vadd.f32 %v5247_v45, %v1057_v52  ;;  %v5676_v55 = vpop.f32.mrb[3].mxu0  ;;  %v5684_v56 = vpop.f32.mrb[3].mxu1  ;;  %v992_v0 = vadd.f32 %v5238_v57, %v991_v51  ;;  %v1127_v4 = vpack.c.bf16 %v989_v61, %v989_v61  ;;  %v6228_v50 = vld [vmem:[%s7170_s15 + $0x58] sm:$0xff]   ;;  %v6229_v51 = vld [vmem:[%s7170_s15 + $0x90] sm:$0xff]  }
 0x35d   : > { %v6230_v52 = vld [vmem:[%s7170_s15 + $0x98] sm:$0xff]  }
 0x35e   : > { %v1136_v58 = vsel %vm1131_vm3, %v1129_v53, 0  ;;  %v1130_v59 = vpack.c.bf16 %v1058_v54, %v1058_v54  ;;  %v1128_v8 = vpack.c.bf16 %v992_v0, %v992_v0 }
 0x35f   : > { %5694 = vmatpush3.bf16.xpose.msra.mxu1 %v1136_v58 }
 0x360   : > { %v1182_v62 = vsel %vm1131_vm3, %v1130_v59, 0  ;;  %5705 = vmatprep.subr.bf16.mxu1 %v6692_v18 }
 0x361   : > { %v1120_v63 = vpop.f32.mrb[4].mxu0  ;;  %5700 = vmatpush3.bf16.xpose.msra.mxu0 %v1182_v62 }
 0x362   : > { %v1121_v1 = vadd.f32 %v5256_v60, %v1120_v63  ;;  %v5691_v2 = vpop.f32.mrb[5].mxu0  ;;  %5711 = vmatprep.subr.bf16.mxu0 %v6692_v18  ;;  %v5278_v63 = vld [vmem:[%s7180_s6 + $0x5] ss:$0 sm:$0xff] }
 0x363   : > { %v1123_v3 = vpop.f32.mrb[6].mxu0 }
 0x364   : > { %v1250_v5 = vpack.c.bf16 %v1121_v1, %v1121_v1  ;;  %v1124_v6 = vadd.f32 %v5256_v60, %v1123_v3  ;;  %v5692_v7 = vpop.f32.mrb[7].mxu0 }
 0x366   : > { %v1257_v9 = vsel %vm1255_vm4, %v1250_v5, 0  ;;  %v1251_v10 = vpack.c.bf16 %v1124_v6, %v1124_v6  ;;  %5696 = vmatmul.mubr.msk.bf16.vlgmr.msra.gmra.mrb[4].mxu1 %vm1131_vm3, %v1127_v4 }
 0x367   : > { %5706 = vmatpush3.bf16.msra.mxu1 %v1257_v9  ;;  %5707 = vmatprep.mubr.msk.bf16.mxu1 %vm6693_vm2, %v6692_v18 }
 0x368   : > { %v1303_v11 = vsel %vm1255_vm4, %v1251_v10, 0  ;;  %5702 = vmatmul.mubr.msk.bf16.vlgmr.msra.gmra.mrb[8].mxu0 %vm1131_vm3, %v1128_v8  ;;  %5717 = vmatprep.subr.bf16.mxu1 %v6692_v18  ;;  %v5269_v10 = vld [vmem:[%s7180_s6 + $0x1] ss:$0 sm:$0xff] }
 0x369   : > { %5712 = vmatpush3.bf16.msra.mxu0 %v1303_v11  ;;  %5713 = vmatprep.mubr.msk.bf16.mxu0 %vm6693_vm2, %v6692_v18  ;;  %v5287_v11 = vld [vmem:[%s7180_s6 + $0x9] ss:$0 sm:$0xff] }
 0x36a   : > { %5725 = vmatprep.subr.bf16.mxu0 %v6692_v18 }
 0x439   : > { %v1172_v12 = vpop.f32.mrb[4].mxu1 }
 0x43a   : > { %v1224_v13 = vmul.f32 0.35355338, %v1172_v12  ;;  %v5697_v14 = vpop.f32.mrb[5].mxu1 }
 0x43b   : > { %v1175_v15 = vpop.f32.mrb[6].mxu1  ;;  %v1218_v16 = vpop.f32.mrb[8].mxu0 }
 0x43c   : > { %v1225_v17 = vmul.f32 0.35355338, %v1218_v16  ;;  %v5698_v19 = vpop.f32.mrb[7].mxu1  ;;  %v5703_v20 = vpop.f32.mrb[9].mxu0  ;;  %v1226_v21 = vsel %vm1131_vm3, %v1224_v13, -inf }
 0x43d   : > { %1227 = vmax.xlane.f32.xlu1 %v1226_v21  ;;  %v1221_v22 = vpop.f32.mrb[10].mxu0 }
 0x43e   : > { %v5704_v23 = vpop.f32.mrb[11].mxu0  ;;  %v1229_v24 = vsel %vm1131_vm3, %v1225_v17, -inf }
 0x43f   : > { %1230 = vmax.xlane.f32.xlu0 %v1229_v24 }
 0x4ca   : > { %v1228_v25 = vpop.xlane.xlu1 %1227 }
 0x4cb   : > { %v1232_v26 = vsub.f32 %v1224_v13, %v1228_v25 }
 0x4cc   : > { %v1231_v27 = vpop.xlane.xlu0 %1230 }
 0x4cd   : > { %v1234_v30 = vmul.f32 1.442695, %v1232_v26  ;;  %v1233_v31 = vsub.f32 %v1225_v17, %v1231_v27 }
 0x4cf   : > { %6277 = vpow2.f32 %v1234_v30  ;;  %v1236_v32 = vmul.f32 1.442695, %v1233_v31 }
 0x4d1   : > { %6279 = vpow2.f32 %v1236_v32 }
 0x4d9   : > { %v6278_v34 = vpop.eup %6277 }
 0x4da   : > { %v1238_v35 = vsel %vm1131_vm3, %v6278_v34, 0.0 }
 0x4db   : > { %v6280_v36 = vpop.eup %6279  ;;  %1239 = vadd.xlane.f32.xlu1 %v1238_v35 }
 0x4dc   : > { %v1241_v37 = vsel %vm1131_vm3, %v6280_v36, 0.0 }
 0x4dd   : > { %1242 = vadd.xlane.f32.xlu0 %v1241_v37 }
 0x568   : > { %v1240_v38 = vpop.xlane.xlu1 %1239 }
 0x569   : > { %6281 = vrcp.f32 %v1240_v38 }
 0x56a   : > { %v1243_v39 = vpop.xlane.xlu0 %1242 }
 0x56b   : > { %6283 = vrcp.f32 %v1243_v39 }
 0x573   : > { %v6282_v40 = vpop.eup %6281 }
 0x574   : > { %v1245_v41 = vmul.f32 %v6282_v40, %v6278_v34 }
 0x575   : > { %v6284_v42 = vpop.eup %6283 }
 0x576   : > { %v1247_v45 = vmul.f32 %v6284_v42, %v6280_v36  ;;  %v1248_v46 = vpack.c.bf16 %v1245_v41, %v1245_v41 }
 0x578   : > { %5708 = vmatmul.mubr.msk.bf16.vlgmr.msra.gmra.mrb[8].mxu1 %vm1131_vm3, %v1248_v46  ;;  %v1249_v48 = vpack.c.bf16 %v1247_v45, %v1247_v45 }
 0x579   : > { %5718 = vmatpush3.bf16.msra.mxu1 %v6225_v44  ;;  %5721 = vmatprep.mubr.msk.bf16.mxu1 %vm6693_vm2, %v6692_v18 }
 0x57a   : > { %5714 = vmatmul.mubr.msk.bf16.vlgmr.msra.gmra.mrb[12].mxu0 %vm1131_vm3, %v1249_v48  ;;  %5719 = vmatprep.subr.bf16.mxu1 %v6692_v18 }
 0x57b   : > { %5726 = vmatpush3.bf16.msra.mxu0 %v6226_v47  ;;  %5729 = vmatprep.mubr.msk.bf16.mxu0 %vm6693_vm2, %v6692_v18 }
 0x57c   : > { %5727 = vmatprep.subr.bf16.mxu0 %v6692_v18 }
 0x57d   : > { %5720 = vmatpush3.bf16.msra.mxu1 %v6227_v49 }
 0x57e   : > { %5733 = vmatprep.subr.bf16.mxu1 %v6692_v18 }
 0x57f   : > { %5728 = vmatpush3.bf16.msra.mxu0 %v6228_v50 }
 0x580   : > { %5722 = vmatmul.mubr.msk.bf16.vlgmr.msra.gmra.mrb[12].mxu1 %vm887_vm1, %v7222_v43  ;;  %5741 = vmatprep.subr.bf16.mxu0 %v6692_v18 }
 0x581   : > { %5734 = vmatpush3.bf16.msra.mxu1 %v6229_v51  ;;  %5737 = vmatprep.mubr.msk.bf16.mxu1 %vm6693_vm2, %v6692_v18 }
 0x582   : > { %5730 = vmatmul.mubr.msk.bf16.vlgmr.msra.gmra.mrb[16].mxu0 %vm887_vm1, %v7222_v43  ;;  %5735 = vmatprep.subr.bf16.mxu1 %v6692_v18 }
 0x583   : > { %5743 = vmatprep.mubr.msk.bf16.mxu0 %vm6693_vm2, %v6692_v18 }
 0x585   : > { %5736 = vmatpush3.bf16.msra.mxu1 %v6230_v52 }
 0x586   : > { %5747 = vmatprep.subr.bf16.mxu1 %v6692_v18 }
 0x588   : > { %5738 = vmatmul.mubr.msk.bf16.vlgmr.msra.gmra.mrb[16].mxu1 %vm887_vm1, %v7222_v43 }
 0x589   : > { %5749 = vmatprep.mubr.msk.bf16.mxu1 %vm6693_vm2, %v6692_v18 }
 0x64b   : > { %v7290_v53 = vpop.f32.mrb[8].mxu1 }
 0x64c   : > { %v5709_v54 = vpop.f32.mrb[9].mxu1 }
 0x64d   : > { %v1296_v55 = vpop.f32.mrb[10].mxu1  ;;  %v7292_v56 = vpop.f32.mrb[12].mxu0 }
 0x64e   : > { %v1345_v57 = vpack.c.bf16 %v7292_v56, %v7290_v53  ;;  %v5710_v58 = vpop.f32.mrb[11].mxu1  ;;  %v5715_v59 = vpop.f32.mrb[13].mxu0 }
 0x64f   : > { %v1342_v60 = vpop.f32.mrb[14].mxu0 }
 0x650   : > { %v5716_v61 = vpop.f32.mrb[15].mxu0 }
 0x653   : > { %v1406_v62 = vpop.f32.mrb[12].mxu1 }
 0x654   : > { %v5723_v0 = vpop.f32.mrb[13].mxu1  ;;  %v1407_v15 = vadd.f32 %v5269_v10, %v1406_v62  ;;  %v5295_v62 = vld [vmem:[%s7130_s30 + $0x4] sm:$0xf] }
 0x655   : > { %v1409_v1 = vpop.f32.mrb[14].mxu1  ;;  %v1472_v2 = vpop.f32.mrb[16].mxu0 }
 0x656   : > { %v1473_v3 = vadd.f32 %v5278_v63, %v1472_v2  ;;  %v5724_v4 = vpop.f32.mrb[15].mxu1  ;;  %v5731_v5 = vpop.f32.mrb[17].mxu0  ;;  %v1410_v21 = vadd.f32 %v5269_v10, %v1409_v1  ;;  %v1545_v25 = vpack.c.bf16 %v1407_v15, %v1407_v15  ;;  %v1346_v1 = vld [vmem:[%s7130_s30] sm:$0xf] }
 0x657   : > { %v1475_v6 = vpop.f32.mrb[18].mxu0  ;;  %v1768_v4 = vsel %vm1255_vm4, %v5295_v62, 0  ;;  %v6233_v10 = vld [vmem:[%s7170_s15 + $0x20] sm:$0xff]  }
 0x658   : > { %v1547_v7 = vpack.c.bf16 %v1473_v3, %v1473_v3  ;;  %v1476_v8 = vadd.f32 %v5278_v63, %v1475_v6  ;;  %v5732_v9 = vpop.f32.mrb[19].mxu0  ;;  %v1546_v27 = vpack.c.bf16 %v1410_v21, %v1410_v21  ;;  %v1815_v6 = vsel %vm1255_vm4, %v1346_v1, 0 }
 0x65a   : > { %v1553_v12 = vsel %vm1131_vm3, %v1547_v7, 0  ;;  %v1548_v13 = vpack.c.bf16 %v1476_v8, %v1476_v8  ;;  %v6231_v7 = vld [vmem:[%s7170_s15 + $0x60] sm:$0xff]   ;;  %v6232_v8 = vld [vmem:[%s7170_s15 + $0x68] sm:$0xff]  }
 0x65b   : > { %v1538_v14 = vpop.f32.mrb[16].mxu1  ;;  %5742 = vmatpush3.bf16.xpose.msra.mxu0 %v1553_v12 }
 0x65c   : > { %v1599_v16 = vsel %vm1131_vm3, %v1548_v13, 0  ;;  %v1539_v17 = vadd.f32 %v5287_v11, %v1538_v14  ;;  %v5739_v19 = vpop.f32.mrb[17].mxu1  ;;  %5753 = vmatprep.subr.bf16.mxu0 %v6692_v18 }
 0x65d   : > { %v1541_v20 = vpop.f32.mrb[18].mxu1  ;;  %5748 = vmatpush3.bf16.xpose.msra.mxu1 %v1599_v16  ;;  %v6234_v16 = vld [vmem:[%s7170_s15 + $0x28] sm:$0xff]   ;;  %v6235_v19 = vld [vmem:[%s7170_s15 + $0xa0] sm:$0xff]  }
 0x65e   : > { %v1667_v22 = vpack.c.bf16 %v1539_v17, %v1539_v17  ;;  %v1542_v23 = vadd.f32 %v5287_v11, %v1541_v20  ;;  %v5740_v24 = vpop.f32.mrb[19].mxu1  ;;  %5759 = vmatprep.subr.bf16.mxu1 %v6692_v18 }
 0x65f   : > { %v5312_v24 = vld [vmem:[%s7180_s6 + $0x6] ss:$0 sm:$0xff] }
 0x660   : > { %v1668_v26 = vpack.c.bf16 %v1542_v23, %v1542_v23  ;;  %v1673_v30 = vsel %vm1255_vm4, %v1667_v22, 0  ;;  %v6236_v23 = vld [vmem:[%s7170_s15 + $0xa8] sm:$0xff]  }
 0x662   : > { %5744 = vmatmul.mubr.msk.bf16.vlgmr.msra.gmra.mrb[20].mxu0 %vm1131_vm3, %v1545_v25  ;;  %v1719_v31 = vsel %vm1255_vm4, %v1668_v26, 0 }
 0x663   : > { %5754 = vmatpush3.bf16.msra.mxu0 %v1673_v30  ;;  %5755 = vmatprep.mubr.msk.bf16.mxu0 %vm6693_vm2, %v6692_v18 }
 0x664   : > { %5750 = vmatmul.mubr.msk.bf16.vlgmr.msra.gmra.mrb[20].mxu1 %vm1131_vm3, %v1546_v27  ;;  %5765 = vmatprep.subr.bf16.mxu0 %v6692_v18 }
 0x665   : > { %5760 = vmatpush3.bf16.msra.mxu1 %v1719_v31  ;;  %5761 = vmatprep.mubr.msk.bf16.mxu1 %vm6693_vm2, %v6692_v18 }
 0x666   : > { %5771 = vmatprep.subr.bf16.mxu1 %v6692_v18 }
 0x735   : > { %v1589_v32 = vpop.f32.mrb[20].mxu0 }
 0x736   : > { %v1641_v34 = vmul.f32 0.35355338, %v1589_v32  ;;  %v5745_v35 = vpop.f32.mrb[21].mxu0 }
 0x737   : > { %v1592_v36 = vpop.f32.mrb[22].mxu0  ;;  %v1635_v37 = vpop.f32.mrb[20].mxu1 }
 0x738   : > { %v1642_v38 = vmul.f32 0.35355338, %v1635_v37  ;;  %v5746_v39 = vpop.f32.mrb[23].mxu0  ;;  %v5751_v40 = vpop.f32.mrb[21].mxu1  ;;  %v1643_v41 = vsel %vm1131_vm3, %v1641_v34, -inf }
 0x739   : > { %v1638_v42 = vpop.f32.mrb[22].mxu1  ;;  %1644 = vmax.xlane.f32.xlu0 %v1643_v41 }
 0x73a   : > { %v5752_v44 = vpop.f32.mrb[23].mxu1  ;;  %v1646_v45 = vsel %vm1131_vm3, %v1642_v38, -inf }
 0x73b   : > { %1647 = vmax.xlane.f32.xlu1 %v1646_v45  ;;  %v5303_v45 = vld [vmem:[%s7180_s6 + $0x2] ss:$0 sm:$0xff] }
 0x7c6   : > { %v1645_v46 = vpop.xlane.xlu0 %1644 }
 0x7c7   : > { %v1649_v47 = vsub.f32 %v1641_v34, %v1645_v46 }
 0x7c8   : > { %v1648_v48 = vpop.xlane.xlu1 %1647 }
 0x7c9   : > { %v1651_v49 = vmul.f32 1.442695, %v1649_v47  ;;  %v1650_v50 = vsub.f32 %v1642_v38, %v1648_v48 }
 0x7cb   : > { %6285 = vpow2.f32 %v1651_v49  ;;  %v1653_v51 = vmul.f32 1.442695, %v1650_v50 }
 0x7cd   : > { %6287 = vpow2.f32 %v1653_v51 }
 0x7d5   : > { %v6286_v52 = vpop.eup %6285 }
 0x7d6   : > { %v1655_v54 = vsel %vm1131_vm3, %v6286_v52, 0.0 }
 0x7d7   : > { %v6288_v55 = vpop.eup %6287  ;;  %1656 = vadd.xlane.f32.xlu0 %v1655_v54 }
 0x7d8   : > { %v1658_v58 = vsel %vm1131_vm3, %v6288_v55, 0.0 }
 0x7d9   : > { %1659 = vadd.xlane.f32.xlu1 %v1658_v58 }
 0x864   : > { %v1657_v59 = vpop.xlane.xlu0 %1656 }
 0x865   : > { %6289 = vrcp.f32 %v1657_v59 }
 0x866   : > { %v1660_v60 = vpop.xlane.xlu1 %1659 }
 0x867   : > { %6291 = vrcp.f32 %v1660_v60 }
 0x86f   : > { %v6290_v61 = vpop.eup %6289 }
 0x870   : > { %v1662_v63 = vmul.f32 %v6290_v61, %v6286_v52 }
 0x871   : > { %v6292_v0 = vpop.eup %6291 }
 0x872   : > { %v1664_v2 = vmul.f32 %v6292_v0, %v6288_v55  ;;  %v1665_v3 = vpack.c.bf16 %v1662_v63, %v1662_v63  ;;  %v5321_v55 = vld [vmem:[%s7180_s6 + $0xa] ss:$0 sm:$0xff] }
 0x874   : > { %5756 = vmatmul.mubr.msk.bf16.vlgmr.msra.gmra.mrb[24].mxu0 %vm1131_vm3, %v1665_v3  ;;  %v1666_v5 = vpack.c.bf16 %v1664_v2, %v1664_v2 }
 0x875   : > { %5766 = vmatpush3.bf16.msra.mxu0 %v1768_v4  ;;  %5767 = vmatprep.mubr.msk.bf16.mxu0 %vm6693_vm2, %v6692_v18 }
 0x876   : > { %5762 = vmatmul.mubr.msk.bf16.vlgmr.msra.gmra.mrb[24].mxu1 %vm1131_vm3, %v1666_v5  ;;  %5777 = vmatprep.subr.bf16.mxu0 %v6692_v18 }
 0x877   : > { %5772 = vmatpush3.bf16.msra.mxu1 %v1815_v6  ;;  %5773 = vmatprep.mubr.msk.bf16.mxu1 %vm6693_vm2, %v6692_v18 }
 0x878   : > { %5785 = vmatprep.subr.bf16.mxu1 %v6692_v18 }
 0x87e   : > { %5774 = vmatmul.mubr.msk.bf16.vlgmr.msra.gmra.mrb[28].mxu1 %vm1131_vm3, %v1345_v57 }
 0x87f   : > { %5786 = vmatpush3.bf16.msra.mxu1 %v6231_v7  ;;  %5789 = vmatprep.mubr.msk.bf16.mxu1 %vm6693_vm2, %v6692_v18 }
 0x880   : > { %5787 = vmatprep.subr.bf16.mxu1 %v6692_v18 }
 0x883   : > { %5788 = vmatpush3.bf16.msra.mxu1 %v6232_v8 }
 0x884   : > { %5801 = vmatprep.subr.bf16.mxu1 %v6692_v18 }
 0x886   : > { %5790 = vmatmul.mubr.msk.bf16.vlgmr.msra.gmra.mrb[32].mxu1 %vm887_vm1, %v7222_v43 }
 0x887   : > { %5803 = vmatprep.mubr.msk.bf16.mxu1 %vm6693_vm2, %v6692_v18 }
 0x947   : > { %v1709_v53 = vpop.f32.mrb[24].mxu0 }
 0x948   : > { %v5757_v56 = vpop.f32.mrb[25].mxu0 }
 0x949   : > { %v1712_v57 = vpop.f32.mrb[26].mxu0  ;;  %v1755_v9 = vpop.f32.mrb[24].mxu1 }
 0x94a   : > { %v1761_v11 = vpack.c.bf16 %v1755_v9, %v1709_v53  ;;  %v5758_v12 = vpop.f32.mrb[27].mxu0  ;;  %v5763_v13 = vpop.f32.mrb[25].mxu1 }
 0x94b   : > { %v1758_v14 = vpop.f32.mrb[26].mxu1 }
 0x94c   : > { %v5764_v15 = vpop.f32.mrb[27].mxu1  ;;  %5768 = vmatmul.mubr.msk.bf16.vlgmr.msra.gmra.mrb[28].mxu0 %vm1131_vm3, %v1761_v11 }
 0x94d   : > { %5778 = vmatpush3.bf16.msra.mxu0 %v6233_v10  ;;  %5781 = vmatprep.mubr.msk.bf16.mxu0 %vm6693_vm2, %v6692_v18 }
 0x94e   : > { %5779 = vmatprep.subr.bf16.mxu0 %v6692_v18 }
 0x951   : > { %5780 = vmatpush3.bf16.msra.mxu0 %v6234_v16  ;;  %v1851_v17 = vpop.f32.mrb[28].mxu1 }
 0x952   : > { %v5775_v20 = vpop.f32.mrb[29].mxu1  ;;  %5793 = vmatprep.subr.bf16.mxu0 %v6692_v18 }
 0x953   : > { %v1854_v21 = vpop.f32.mrb[30].mxu1 }
 0x954   : > { %v5776_v22 = vpop.f32.mrb[31].mxu1  ;;  %5782 = vmatmul.mubr.msk.bf16.vlgmr.msra.gmra.mrb[32].mxu0 %vm887_vm1, %v7222_v43 }
 0x955   : > { %5794 = vmatpush3.bf16.msra.mxu0 %v6235_v19  ;;  %5797 = vmatprep.mubr.msk.bf16.mxu0 %vm6693_vm2, %v6692_v18 }
 0x956   : > { %5795 = vmatprep.subr.bf16.mxu0 %v6692_v18 }
 0x959   : > { %5796 = vmatpush3.bf16.msra.mxu0 %v6236_v23  ;;  %v1983_v25 = vpop.f32.mrb[32].mxu1 }
 0x95a   : > { %v1984_v26 = vadd.f32 %v5312_v24, %v1983_v25  ;;  %v5791_v27 = vpop.f32.mrb[33].mxu1  ;;  %5807 = vmatprep.subr.bf16.mxu0 %v6692_v18 }
 0x95b   : > { %v1986_v30 = vpop.f32.mrb[34].mxu1  ;;  %v5329_v27 = vld [vmem:[%s7130_s30 + $0x8] sm:$0xf] }
 0x95c   : > { %v2058_v31 = vpack.c.bf16 %v1984_v26, %v1984_v26  ;;  %v1987_v32 = vadd.f32 %v5312_v24, %v1986_v30  ;;  %v5792_v34 = vpop.f32.mrb[35].mxu1  ;;  %5798 = vmatmul.mubr.msk.bf16.vlgmr.msra.gmra.mrb[36].mxu0 %vm887_vm1, %v7222_v43 }
 0x95d   : > { %5809 = vmatprep.mubr.msk.bf16.mxu0 %vm6693_vm2, %v6692_v18 }
 0x95e   : > { %v2064_v35 = vsel %vm1131_vm3, %v2058_v31, 0  ;;  %v2059_v36 = vpack.c.bf16 %v1987_v32, %v1987_v32 }
 0x95f   : > { %5802 = vmatpush3.bf16.xpose.msra.mxu1 %v2064_v35  ;;  %v2279_v35 = vsel %vm1255_vm4, %v5329_v27, 0 }
 0x960   : > { %v2110_v37 = vsel %vm1131_vm3, %v2059_v36, 0  ;;  %5813 = vmatprep.subr.bf16.mxu1 %v6692_v18  ;;  %v6237_v36 = vld [vmem:[%s7170_s15 + $0x30] sm:$0xff]  }
 0x962   : > { %5808 = vmatpush3.bf16.xpose.msra.mxu0 %v2110_v37 }
 0x963   : > { %5819 = vmatprep.subr.bf16.mxu0 %v6692_v18 }
 0xa1f   : > { %v1804_v38 = vpop.f32.mrb[28].mxu0 }
 0xa20   : > { %v7367_v39 = vadd.f32 %v1851_v17, %v1804_v38  ;;  %v5769_v40 = vpop.f32.mrb[29].mxu0  ;;  %v6238_v38 = vld [vmem:[%s7170_s15 + $0x38] sm:$0xff]  }
 0xa21   : > { %v1807_v41 = vpop.f32.mrb[30].mxu0  ;;  %v6239_v40 = vld [vmem:[%s7170_s15 + $0xb0] sm:$0xff]  }
 0xa22   : > { %v7369_v42 = vadd.f32 %v1854_v21, %v1807_v41  ;;  %v5770_v44 = vpop.f32.mrb[31].mxu0  ;;  %v6240_v41 = vld [vmem:[%s7170_s15 + $0xb8] sm:$0xff]  }
 0xa27   : > { %v1917_v46 = vpop.f32.mrb[32].mxu0 }
 0xa28   : > { %v1918_v47 = vadd.f32 %v5303_v45, %v1917_v46  ;;  %v5783_v48 = vpop.f32.mrb[33].mxu0 }
 0xa29   : > { %v1920_v49 = vpop.f32.mrb[34].mxu0  ;;  %v6241_v48 = vld [vmem:[%s7170_s15 + $0x70] sm:$0xff]  }
 0xa2a   : > { %v2056_v50 = vpack.c.bf16 %v1918_v47, %v1918_v47  ;;  %v1921_v51 = vadd.f32 %v5303_v45, %v1920_v49  ;;  %v5784_v52 = vpop.f32.mrb[35].mxu0 }
 0xa2c   : > { %v2057_v54 = vpack.c.bf16 %v1921_v51, %v1921_v51  ;;  %5804 = vmatmul.mubr.msk.bf16.vlgmr.msra.gmra.mrb[36].mxu1 %vm1131_vm3, %v2056_v50 }
 0xa2d   : > { %5815 = vmatprep.mubr.msk.bf16.mxu1 %vm6693_vm2, %v6692_v18 }
 0xa2e   : > { %5810 = vmatmul.mubr.msk.bf16.vlgmr.msra.gmra.mrb[40].mxu0 %vm1131_vm3, %v2057_v54 }
 0xa2f   : > { %v2049_v58 = vpop.f32.mrb[36].mxu0  ;;  %5821 = vmatprep.mubr.msk.bf16.mxu0 %vm6693_vm2, %v6692_v18 }
 0xa30   : > { %v2050_v59 = vadd.f32 %v5321_v55, %v2049_v58  ;;  %v5799_v60 = vpop.f32.mrb[37].mxu0 }
 0xa31   : > { %v2052_v61 = vpop.f32.mrb[38].mxu0 }
 0xa32   : > { %v2178_v62 = vpack.c.bf16 %v2050_v59, %v2050_v59  ;;  %v2053_v63 = vadd.f32 %v5321_v55, %v2052_v61  ;;  %v5800_v0 = vpop.f32.mrb[39].mxu0  ;;  %v6242_v55 = vld [vmem:[%s7170_s15 + $0x78] sm:$0xff]  }
 0xa34   : > { %v2184_v1 = vsel %vm1255_vm4, %v2178_v62, 0  ;;  %v2179_v2 = vpack.c.bf16 %v2053_v63, %v2053_v63 }
 0xa35   : > { %5814 = vmatpush3.bf16.msra.mxu1 %v2184_v1 }
 0xa36   : > { %v2230_v3 = vsel %vm1255_vm4, %v2179_v2, 0  ;;  %5825 = vmatprep.subr.bf16.mxu1 %v6692_v18 }
 0xa37   : > { %5820 = vmatpush3.bf16.msra.mxu0 %v2230_v3 }
 0xa38   : > { %5831 = vmatprep.subr.bf16.mxu0 %v6692_v18 }
 0xaff   : > { %v2100_v4 = vpop.f32.mrb[36].mxu1 }
 0xb00   : > { %v2152_v5 = vmul.f32 0.35355338, %v2100_v4  ;;  %v5805_v6 = vpop.f32.mrb[37].mxu1 }
 0xb01   : > { %v2103_v7 = vpop.f32.mrb[38].mxu1  ;;  %v2146_v8 = vpop.f32.mrb[40].mxu0 }
 0xb02   : > { %v2153_v53 = vmul.f32 0.35355338, %v2146_v8  ;;  %v5806_v56 = vpop.f32.mrb[39].mxu1  ;;  %v5811_v57 = vpop.f32.mrb[41].mxu0  ;;  %v2154_v9 = vsel %vm1131_vm3, %v2152_v5, -inf }
 0xb03   : > { %2155 = vmax.xlane.f32.xlu0 %v2154_v9  ;;  %v2149_v10 = vpop.f32.mrb[42].mxu0  ;;  %v5354_v57 = vld [vmem:[%s7180_s6 + $0xb] ss:$0 sm:$0xff] }
 0xb04   : > { %v5812_v11 = vpop.f32.mrb[43].mxu0  ;;  %v2157_v12 = vsel %vm1131_vm3, %v2153_v53, -inf }
 0xb05   : > { %2158 = vmax.xlane.f32.xlu1 %v2157_v12 }
 0xb90   : > { %v2156_v13 = vpop.xlane.xlu0 %2155 }
 0xb91   : > { %v2160_v14 = vsub.f32 %v2152_v5, %v2156_v13  ;;  %v5336_v13 = vld [vmem:[%s7180_s6 + $0x3] ss:$0 sm:$0xff] }
 0xb92   : > { %v2159_v15 = vpop.xlane.xlu1 %2158 }
 0xb93   : > { %v2162_v16 = vmul.f32 1.442695, %v2160_v14  ;;  %v2161_v17 = vsub.f32 %v2153_v53, %v2159_v15 }
 0xb95   : > { %6293 = vpow2.f32 %v2162_v16  ;;  %v2164_v19 = vmul.f32 1.442695, %v2161_v17 }
 0xb97   : > { %6295 = vpow2.f32 %v2164_v19 }
 0xb9f   : > { %v6294_v20 = vpop.eup %6293 }
 0xba0   : > { %v2166_v21 = vsel %vm1131_vm3, %v6294_v20, 0.0 }
 0xba1   : > { %v6296_v22 = vpop.eup %6295  ;;  %2167 = vadd.xlane.f32.xlu0 %v2166_v21 }
 0xba2   : > { %v2169_v23 = vsel %vm1131_vm3, %v6296_v22, 0.0 }
 0xba3   : > { %2170 = vadd.xlane.f32.xlu1 %v2169_v23 }
 0xc2e   : > { %v2168_v24 = vpop.xlane.xlu0 %2167 }
 0xc2f   : > { %6297 = vrcp.f32 %v2168_v24 }
 0xc30   : > { %v2171_v25 = vpop.xlane.xlu1 %2170 }
 0xc31   : > { %6299 = vrcp.f32 %v2171_v25 }
 0xc39   : > { %v6298_v26 = vpop.eup %6297 }
 0xc3a   : > { %v2173_v30 = vmul.f32 %v6298_v26, %v6294_v20 }
 0xc3b   : > { %v6300_v31 = vpop.eup %6299 }
 0xc3c   : > { %v2175_v32 = vmul.f32 %v6300_v31, %v6296_v22  ;;  %v2176_v34 = vpack.c.bf16 %v2173_v30, %v2173_v30 }
 0xc3e   : > { %5816 = vmatmul.mubr.msk.bf16.vlgmr.msra.gmra.mrb[40].mxu1 %vm1131_vm3, %v2176_v34  ;;  %v2177_v37 = vpack.c.bf16 %v2175_v32, %v2175_v32 }
 0xc3f   : > { %5826 = vmatpush3.bf16.msra.mxu1 %v2279_v35  ;;  %5827 = vmatprep.mubr.msk.bf16.mxu1 %vm6693_vm2, %v6692_v18 }
 0xc40   : > { %5822 = vmatmul.mubr.msk.bf16.vlgmr.msra.gmra.mrb[44].mxu0 %vm1131_vm3, %v2177_v37  ;;  %5839 = vmatprep.subr.bf16.mxu1 %v6692_v18 }
 0xc41   : > { %5832 = vmatpush3.bf16.msra.mxu0 %v6237_v36  ;;  %5835 = vmatprep.mubr.msk.bf16.mxu0 %vm6693_vm2, %v6692_v18 }
 0xc42   : > { %5833 = vmatprep.subr.bf16.mxu0 %v6692_v18 }
 0xc45   : > { %5834 = vmatpush3.bf16.msra.mxu0 %v6238_v38 }
 0xc46   : > { %5847 = vmatprep.subr.bf16.mxu0 %v6692_v18 }
 0xc48   : > { %5836 = vmatmul.mubr.msk.bf16.vlgmr.msra.gmra.mrb[48].mxu0 %vm887_vm1, %v7222_v43 }
 0xc49   : > { %5848 = vmatpush3.bf16.msra.mxu0 %v6239_v40  ;;  %5851 = vmatprep.mubr.msk.bf16.mxu0 %vm6693_vm2, %v6692_v18 }
 0xc4a   : > { %5849 = vmatprep.subr.bf16.mxu0 %v6692_v18 }
 0xc4d   : > { %5850 = vmatpush3.bf16.msra.mxu0 %v6240_v41 }
 0xc4e   : > { %5861 = vmatprep.subr.bf16.mxu0 %v6692_v18 }
 0xc50   : > { %5852 = vmatmul.mubr.msk.bf16.vlgmr.msra.gmra.mrb[52].mxu0 %vm887_vm1, %v7222_v43 }
 0xc51   : > { %5863 = vmatprep.mubr.msk.bf16.mxu0 %vm6693_vm2, %v6692_v18 }
 0xd11   : > { %v2220_v44 = vpop.f32.mrb[40].mxu1 }
 0xd12   : > { %v5817_v45 = vpop.f32.mrb[41].mxu1 }
 0xd13   : > { %v2223_v46 = vpop.f32.mrb[42].mxu1  ;;  %v2266_v47 = vpop.f32.mrb[44].mxu0 }
 0xd14   : > { %v2272_v49 = vpack.c.bf16 %v2266_v47, %v2220_v44  ;;  %v5818_v50 = vpop.f32.mrb[43].mxu1  ;;  %v5823_v51 = vpop.f32.mrb[45].mxu0 }
 0xd15   : > { %v2269_v52 = vpop.f32.mrb[46].mxu0 }
 0xd16   : > { %v5824_v54 = vpop.f32.mrb[47].mxu0  ;;  %5828 = vmatmul.mubr.msk.bf16.vlgmr.msra.gmra.mrb[44].mxu1 %vm1131_vm3, %v2272_v49 }
 0xd17   : > { %5840 = vmatpush3.bf16.msra.mxu1 %v6241_v48  ;;  %5843 = vmatprep.mubr.msk.bf16.mxu1 %vm6693_vm2, %v6692_v18 }
 0xd18   : > { %5841 = vmatprep.subr.bf16.mxu1 %v6692_v18 }
 0xd1b   : > { %v2383_v58 = vpop.f32.mrb[48].mxu0  ;;  %5842 = vmatpush3.bf16.msra.mxu1 %v6242_v55 }
 0xd1c   : > { %v5837_v59 = vpop.f32.mrb[49].mxu0  ;;  %5855 = vmatprep.subr.bf16.mxu1 %v6692_v18  ;;  %v2384_v16 = vadd.f32 %v5336_v13, %v2383_v58 }
 0xd1d   : > { %v2386_v60 = vpop.f32.mrb[50].mxu0 }
 0xd1e   : > { %v5838_v61 = vpop.f32.mrb[51].mxu0  ;;  %5844 = vmatmul.mubr.msk.bf16.vlgmr.msra.gmra.mrb[48].mxu1 %vm887_vm1, %v7222_v43  ;;  %v5345_v43 = vld [vmem:[%s7180_s6 + $0x7] ss:$0 sm:$0xff]  ;;  %v2387_v19 = vadd.f32 %v5336_v13, %v2386_v60  ;;  %v2522_v21 = vpack.c.bf16 %v2384_v16, %v2384_v16  ;;  %v5362_v60 = vld [vmem:[%s7130_s30 + $0xc] sm:$0xf]  ;;  %s7898_s6 = scalar_lea.vmem [#allocation7], %s7124_s21 }
 0xd1f   : > { %5857 = vmatprep.mubr.msk.bf16.mxu1 %vm6693_vm2, %v6692_v18  ;;  %v5364_v13 = vld [vmem:[%s7898_s6] ss:$0 sm:$0xff]  ;;  %s7899_s30 = sld [smem:[#allocation27_spill]] }
 0xd20   : > { %v2523_v23 = vpack.c.bf16 %v2387_v19, %v2387_v19  ;;  %v6350_v19 = vld [vmem:[#allocation2 + $0x8] sm:$0xff] }
 0xd23   : > { %v2515_v62 = vpop.f32.mrb[52].mxu0 }
 0xd24   : > { %v5853_v63 = vpop.f32.mrb[53].mxu0  ;;  %v2516_v14 = vadd.f32 %v5354_v57, %v2515_v62 }
 0xd25   : > { %v2518_v0 = vpop.f32.mrb[54].mxu0 }
 0xd26   : > { %v5854_v1 = vpop.f32.mrb[55].mxu0  ;;  %v2519_v17 = vadd.f32 %v5354_v57, %v2518_v0  ;;  %v2644_v20 = vpack.c.bf16 %v2516_v14, %v2516_v14 }
 0xd27   : > { %v2745_v1 = vsel %vm1255_vm4, %v5362_v60, 0 }
 0xd28   : > { %v2645_v22 = vpack.c.bf16 %v2519_v17, %v2519_v17  ;;  %v2650_v24 = vsel %vm1255_vm4, %v2644_v20, 0 }
 0xd2a   : > { %v2696_v25 = vsel %vm1255_vm4, %v2645_v22, 0 }
 0xde9   : > { %v2315_v2 = vpop.f32.mrb[44].mxu1 }
 0xdea   : > { %v7424_v3 = vadd.f32 %v2315_v2, %v7367_v39  ;;  %v5829_v4 = vpop.f32.mrb[45].mxu1 }
 0xdeb   : > { %v2318_v5 = vpop.f32.mrb[46].mxu1 }
 0xdec   : > { %v7427_v6 = vadd.f32 %v2318_v5, %v7369_v42  ;;  %v5830_v7 = vpop.f32.mrb[47].mxu1 }
 0xdf1   : > { %v2449_v8 = vpop.f32.mrb[48].mxu1 }
 0xdf2   : > { %v2450_v53 = vadd.f32 %v5345_v43, %v2449_v8  ;;  %v5845_v56 = vpop.f32.mrb[49].mxu1 }
 0xdf3   : > { %v2452_v9 = vpop.f32.mrb[50].mxu1 }
 0xdf4   : > { %v2524_v10 = vpack.c.bf16 %v2450_v53, %v2450_v53  ;;  %v2453_v11 = vadd.f32 %v5345_v43, %v2452_v9  ;;  %v5846_v12 = vpop.f32.mrb[51].mxu1 }
 0xdf6   : > { %v2530_v39 = vsel %vm1131_vm3, %v2524_v10, 0  ;;  %v2525_v15 = vpack.c.bf16 %v2453_v11, %v2453_v11 }
 0xdf7   : > { %5856 = vmatpush3.bf16.xpose.msra.mxu1 %v2530_v39  ;;  %v6349_v39 = vld [vmem:[#allocation2] sm:$0xff] }
 0xdf8   : > { %v2576_v42 = vsel %vm1131_vm3, %v2525_v15, 0  ;;  %5867 = vmatprep.subr.bf16.mxu1 %v6692_v18 }
 0xdf9   : > { %5862 = vmatpush3.bf16.xpose.msra.mxu0 %v2576_v42 }
 0xdfa   : > { %5873 = vmatprep.subr.bf16.mxu0 %v6692_v18 }
 0xdfe   : > { %5858 = vmatmul.mubr.msk.bf16.vlgmr.msra.gmra.mrb[52].mxu1 %vm1131_vm3, %v2522_v21 }
 0xdff   : > { %5868 = vmatpush3.bf16.msra.mxu1 %v2650_v24  ;;  %5869 = vmatprep.mubr.msk.bf16.mxu1 %vm6693_vm2, %v6692_v18 }
 0xe00   : > { %5864 = vmatmul.mubr.msk.bf16.vlgmr.msra.gmra.mrb[56].mxu0 %vm1131_vm3, %v2523_v23  ;;  %5879 = vmatprep.subr.bf16.mxu1 %v6692_v18 }
 0xe01   : > { %5874 = vmatpush3.bf16.msra.mxu0 %v2696_v25  ;;  %5875 = vmatprep.mubr.msk.bf16.mxu0 %vm6693_vm2, %v6692_v18 }
 0xe02   : > { %5885 = vmatprep.subr.bf16.mxu0 %v6692_v18 }
 0xed1   : > { %v2566_v26 = vpop.f32.mrb[52].mxu1 }
 0xed2   : > { %v2618_v27 = vmul.f32 0.35355338, %v2566_v26  ;;  %v5859_v30 = vpop.f32.mrb[53].mxu1 }
 0xed3   : > { %v2569_v31 = vpop.f32.mrb[54].mxu1  ;;  %v2612_v32 = vpop.f32.mrb[56].mxu0 }
 0xed4   : > { %v2619_v34 = vmul.f32 0.35355338, %v2612_v32  ;;  %v5860_v35 = vpop.f32.mrb[55].mxu1  ;;  %v5865_v36 = vpop.f32.mrb[57].mxu0  ;;  %v2620_v37 = vsel %vm1131_vm3, %v2618_v27, -inf }
 0xed5   : > { %2621 = vmax.xlane.f32.xlu0 %v2620_v37  ;;  %v2615_v38 = vpop.f32.mrb[58].mxu0  ;;  %v6243_v35 = vld [vmem:[%s7175_s5 + $0x40] sm:$0xff]   ;;  %v6244_v36 = vld [vmem:[%s7175_s5 + $0x48] sm:$0xff]  }
 0xed6   : > { %v5866_v40 = vpop.f32.mrb[59].mxu0  ;;  %v2623_v41 = vsel %vm1131_vm3, %v2619_v34, -inf  ;;  %v884_v37 = vld [vmem:[%s7899_s30] sm:$0xff]  ;;  %v885_v38 = vld [vmem:[%s7899_s30 + $0x8] sm:$0xff] }
 0xed7   : > { %2624 = vmax.xlane.f32.xlu1 %v2623_v41  ;;  %v7487_v40 = vpack.c.bf16 %v885_v38, %v884_v37  ;;  %v6245_v41 = vld [vmem:[%s7175_s5] sm:$0xff]  }
 0xf62   : > { %v2622_v44 = vpop.xlane.xlu0 %2621 }
 0xf63   : > { %v2626_v45 = vsub.f32 %v2618_v27, %v2622_v44  ;;  %v6246_v44 = vld [vmem:[%s7175_s5 + $0x8] sm:$0xff]  }
 0xf64   : > { %v2625_v46 = vpop.xlane.xlu1 %2624 }
 0xf65   : > { %v2628_v47 = vmul.f32 1.442695, %v2626_v45  ;;  %v2627_v48 = vsub.f32 %v2619_v34, %v2625_v46 }
 0xf67   : > { %6301 = vpow2.f32 %v2628_v47  ;;  %v2630_v49 = vmul.f32 1.442695, %v2627_v48 }
 0xf69   : > { %6303 = vpow2.f32 %v2630_v49 }
 0xf71   : > { %v6302_v50 = vpop.eup %6301 }
 0xf72   : > { %v2632_v51 = vsel %vm1131_vm3, %v6302_v50, 0.0 }
 0xf73   : > { %v6304_v52 = vpop.eup %6303  ;;  %2633 = vadd.xlane.f32.xlu0 %v2632_v51  ;;  %v2829_v51 = vsub.s32 2, %v7212_v28 }
 0xf74   : > { %v2635_v54 = vsel %vm1131_vm3, %v6304_v52, 0.0 }
 0xf75   : > { %2636 = vadd.xlane.f32.xlu1 %v2635_v54 }
0x1000   : > { %v2634_v55 = vpop.xlane.xlu0 %2633 }
0x1001   : > { %6305 = vrcp.f32 %v2634_v55  ;;  %v2835_v55 = vsub.s32 3, %v7212_v28 }
0x1002   : > { %v2637_v58 = vpop.xlane.xlu1 %2636 }
0x1003   : > { %6307 = vrcp.f32 %v2637_v58 }
0x100b   : > { %v6306_v59 = vpop.eup %6305 }
0x100c   : > { %v2639_v61 = vmul.f32 %v6306_v59, %v6302_v50 }
0x100d   : > { %v6308_v62 = vpop.eup %6307 }
0x100e   : > { %v2641_v63 = vmul.f32 %v6308_v62, %v6304_v52  ;;  %v2642_v0 = vpack.c.bf16 %v2639_v61, %v2639_v61  ;;  %v6351_v52 = vld [vmem:[%s7165_s18] sm:$0x3f] }
0x100f   : > { %v2830_v54 = vrot.slane %v6351_v52, %v2829_v51 }
0x1010   : > { %5870 = vmatmul.mubr.msk.bf16.vlgmr.msra.gmra.mrb[56].mxu1 %vm1131_vm3, %v2642_v0  ;;  %v2643_v2 = vpack.c.bf16 %v2641_v63, %v2641_v63  ;;  %v2836_v63 = vrot.slane %v6351_v52, %v2835_v55 }
0x1011   : > { %5880 = vmatpush3.bf16.msra.mxu1 %v2745_v1  ;;  %5881 = vmatprep.mubr.msk.bf16.mxu1 %vm6693_vm2, %v6692_v18 }
0x1012   : > { %5876 = vmatmul.mubr.msk.bf16.vlgmr.msra.gmra.mrb[60].mxu0 %vm1131_vm3, %v2643_v2  ;;  %5893 = vmatprep.subr.bf16.mxu1 %v6692_v18 }
0x1013   : > { %5889 = vmatprep.mubr.msk.bf16.mxu0 %vm6693_vm2, %v6692_v18  ;;  %5886 = vmatpush3.bf16.msra.mxu0 %v6245_v41 }
0x1014   : > { %5887 = vmatprep.subr.bf16.mxu0 %v6692_v18 }
0x1017   : > { %5888 = vmatpush3.bf16.msra.mxu0 %v6246_v44 }
0x1018   : > { %5901 = vmatprep.subr.bf16.mxu0 %v6692_v18 }
0x10e3   : > { %v2686_v4 = vpop.f32.mrb[56].mxu1 }
0x10e4   : > { %v5871_v5 = vpop.f32.mrb[57].mxu1 }
0x10e5   : > { %v2689_v7 = vpop.f32.mrb[58].mxu1  ;;  %v2732_v43 = vpop.f32.mrb[60].mxu0 }
0x10e6   : > { %v2738_v8 = vpack.c.bf16 %v2732_v43, %v2686_v4  ;;  %v5872_v53 = vpop.f32.mrb[59].mxu1  ;;  %v5877_v56 = vpop.f32.mrb[61].mxu0  ;;  %v6247_v4 = vld [vmem:[%s7175_s5 + $0x80] sm:$0xff]   ;;  %v6248_v7 = vld [vmem:[%s7175_s5 + $0x88] sm:$0xff]  }
0x10e7   : > { %v2735_v57 = vpop.f32.mrb[62].mxu0  ;;  %v5374_v43 = vld [vmem:[%s7185_s20 + $0x4] ss:$0 sm:$0xff] }
0x10e8   : > { %v5878_v9 = vpop.f32.mrb[63].mxu0  ;;  %5882 = vmatmul.mubr.msk.bf16.vlgmr.msra.gmra.mrb[60].mxu1 %vm1131_vm3, %v2738_v8 }
0x10e9   : > { %5897 = vmatprep.mubr.msk.bf16.mxu1 %vm6693_vm2, %v6692_v18  ;;  %5894 = vmatpush3.bf16.msra.mxu1 %v6243_v35 }
0x10ea   : > { %5895 = vmatprep.subr.bf16.mxu1 %v6692_v18 }
0x10ed   : > { %5896 = vmatpush3.bf16.msra.mxu1 %v6244_v36 }
0x10ee   : > { %5909 = vmatprep.subr.bf16.mxu1 %v6692_v18 }
0x10f0   : > { %5898 = vmatmul.mubr.msk.bf16.vlgmr.msra.gmra.mrb[64].mxu1 %vm887_vm1, %v7487_v40 }
0x10f1   : > { %5911 = vmatprep.mubr.msk.bf16.mxu1 %vm6693_vm2, %v6692_v18 }
0x11bb   : > { %v2781_v10 = vpop.f32.mrb[60].mxu1 }
0x11bc   : > { %v2788_v11 = vadd.f32 %v2781_v10, %v7424_v3  ;;  %v5883_v12 = vpop.f32.mrb[61].mxu1 }
0x11bd   : > { %v2784_v14 = vpop.f32.mrb[62].mxu1 }
0x11be   : > { %v2790_v15 = vadd.f32 %v6349_v39, %v2788_v11  ;;  %v2789_v16 = vadd.f32 %v2784_v14, %v7427_v6  ;;  %v5884_v17 = vpop.f32.mrb[63].mxu1  ;;  %v5365_v39 = vld [vmem:[%s7185_s20] ss:$0 sm:$0xff] }
0x11c0   : > { %v7466_v42 = vadd.f32 %v5364_v13, %v2790_v15  ;;  %v2791_v20 = vadd.f32 %v6350_v19, %v2789_v16 }
0x11c2   : > { %v7468_v21 = vadd.f32 %v5364_v13, %v2791_v20  ;;  %v2801_v22 = vsel %vm887_vm1, %v7466_v42, 0.0 }
0x11c3   : > { %2802 = vadd.xlane.f32.xlu0 %v2801_v22  ;;  %v2970_v8 = vpop.f32.mrb[64].mxu1 }
0x11c4   : > { %v2804_v3 = vsel %vm887_vm1, %v7468_v21, 0.0  ;;  %v2971_v53 = vadd.f32 %v5374_v43, %v2970_v8  ;;  %v5899_v56 = vpop.f32.mrb[65].mxu1 }
0x11c5   : > { %2805 = vadd.xlane.f32.xlu1 %v2804_v3  ;;  %v2973_v57 = vpop.f32.mrb[66].mxu1 }
0x11c6   : > { %v3045_v9 = vpack.c.bf16 %v2971_v53, %v2971_v53  ;;  %v2974_v10 = vadd.f32 %v5374_v43, %v2973_v57  ;;  %v5900_v11 = vpop.f32.mrb[67].mxu1  ;;  %v6249_v53 = vld [vmem:[%s7175_s5 + $0x10] sm:$0xff]  }
0x11c7   : > { %v6251_v11 = vld [vmem:[%s7175_s5 + $0x18] sm:$0xff]  }
0x11c8   : > { %v3051_v12 = vsel %vm1131_vm3, %v3045_v9, 0  ;;  %v3046_v13 = vpack.c.bf16 %v2974_v10, %v2974_v10  ;;  %v6250_v9 = vld [vmem:[%s7175_s5 + $0x50] sm:$0xff]  }
0x11c9   : > { %5910 = vmatpush3.bf16.xpose.msra.mxu1 %v3051_v12  ;;  %v6252_v12 = vld [vmem:[%s7175_s5 + $0x58] sm:$0xff]  }
0x11ca   : > { %v3097_v14 = vsel %vm1131_vm3, %v3046_v13, 0  ;;  %5921 = vmatprep.subr.bf16.mxu1 %v6692_v18  ;;  %v6253_v13 = vld [vmem:[%s7175_s5 + $0x90] sm:$0xff]  }
0x1250   : > { %v2803_v23 = vpop.xlane.xlu0 %2802 }
0x1251   : > { %v2807_v24 = vmul.f32 0.03125, %v2803_v23 }
0x1252   : > { %v2806_v6 = vpop.xlane.xlu1 %2805 }
0x1253   : > { %v2809_v25 = vsub.f32 %v7466_v42, %v2807_v24  ;;  %v2808_v26 = vmul.f32 0.03125, %v2806_v6  ;;  %v5383_v24 = vld [vmem:[%s7185_s20 + $0x8] ss:$0 sm:$0xff] }
0x1255   : > { %v2810_v27 = vsub.f32 %v7468_v21, %v2808_v26  ;;  %v2811_v30 = vmul.f32 %v2809_v25, %v2809_v25 }
0x1257   : > { %v2813_v31 = vsel %vm887_vm1, %v2811_v30, 0.0  ;;  %v2812_v32 = vmul.f32 %v2810_v27, %v2810_v27 }
0x1258   : > { %2814 = vadd.xlane.f32.xlu0 %v2813_v31 }
0x1259   : > { %v2816_v34 = vsel %vm887_vm1, %v2812_v32, 0.0 }
0x125a   : > { %2817 = vadd.xlane.f32.xlu1 %v2816_v34 }
0x12e5   : > { %v2815_v45 = vpop.xlane.xlu0 %2814 }
0x12e6   : > { %v2819_v46 = vmul.f32 0.03125, %v2815_v45 }
0x12e7   : > { %v2818_v47 = vpop.xlane.xlu1 %2817 }
0x12e8   : > { %v2821_v48 = vadd.f32 1e-05, %v2819_v46  ;;  %v2820_v49 = vmul.f32 0.03125, %v2818_v47 }
0x12ea   : > { %6309 = vrsqrt.f32 %v2821_v48  ;;  %v2822_v50 = vadd.f32 1e-05, %v2820_v49 }
0x12ec   : > { %6311 = vrsqrt.f32 %v2822_v50 }
0x12f4   : > { %v6310_v58 = vpop.eup %6309 }
0x12f5   : > { %v2825_v59 = vmul.f32 %v6310_v58, %v2809_v25 }
0x12f6   : > { %v6312_v60 = vpop.eup %6311 }
0x12f7   : > { %v2831_v61 = vmul.f32 %v2830_v54, %v2825_v59  ;;  %v2826_v62 = vmul.f32 %v6312_v60, %v2810_v27 }
0x12f9   : > { %v2832_v0 = vmul.f32 %v2830_v54, %v2826_v62  ;;  %v2837_v1 = vadd.f32 %v2836_v63, %v2831_v61 }
0x12fb   : > { %v2838_v2 = vadd.f32 %v2836_v63, %v2832_v0 }
0x12fd   : > { %v7502_v5 = vpack.c.bf16 %v2838_v2, %v2837_v1 }
0x12ff   : > { %5890 = vmatmul.mubr.msk.bf16.vlgmr.msra.gmra.mrb[64].mxu0 %vm887_vm1, %v7502_v5 }
0x1300   : > { %5902 = vmatpush3.bf16.msra.mxu0 %v6247_v4  ;;  %5905 = vmatprep.mubr.msk.bf16.mxu0 %vm6693_vm2, %v6692_v18 }
0x1301   : > { %5903 = vmatprep.subr.bf16.mxu0 %v6692_v18 }
0x1304   : > { %5904 = vmatpush3.bf16.msra.mxu0 %v6248_v7 }
0x1305   : > { %5915 = vmatprep.subr.bf16.mxu0 %v6692_v18 }
0x1307   : > { %5906 = vmatmul.mubr.msk.bf16.vlgmr.msra.gmra.mrb[68].mxu0 %vm887_vm1, %v7487_v40 }
0x1308   : > { %5917 = vmatprep.mubr.msk.bf16.mxu0 %vm6693_vm2, %v6692_v18 }
0x130d   : > { %5916 = vmatpush3.bf16.xpose.msra.mxu0 %v3097_v14  ;;  %v6254_v14 = vld [vmem:[%s7175_s5 + $0x98] sm:$0xff]  }
0x130e   : > { %5927 = vmatprep.subr.bf16.mxu0 %v6692_v18 }
0x13d2   : > { %v2901_v15 = vpop.f32.mrb[64].mxu0 }
0x13d3   : > { %v2902_v16 = vadd.f32 %v5365_v39, %v2901_v15  ;;  %v5891_v17 = vpop.f32.mrb[65].mxu0 }
0x13d4   : > { %v2904_v19 = vpop.f32.mrb[66].mxu0 }
0x13d5   : > { %v3043_v20 = vpack.c.bf16 %v2902_v16, %v2902_v16  ;;  %v2905_v22 = vadd.f32 %v5365_v39, %v2904_v19  ;;  %v5892_v3 = vpop.f32.mrb[67].mxu0 }
0x13d7   : > { %v3044_v23 = vpack.c.bf16 %v2905_v22, %v2905_v22  ;;  %5912 = vmatmul.mubr.msk.bf16.vlgmr.msra.gmra.mrb[68].mxu1 %vm1131_vm3, %v3043_v20 }
0x13d8   : > { %5923 = vmatprep.mubr.msk.bf16.mxu1 %vm6693_vm2, %v6692_v18 }
0x13d9   : > { %5918 = vmatmul.mubr.msk.bf16.vlgmr.msra.gmra.mrb[72].mxu0 %vm1131_vm3, %v3044_v23 }
0x13da   : > { %v3036_v6 = vpop.f32.mrb[68].mxu0  ;;  %5929 = vmatprep.mubr.msk.bf16.mxu0 %vm6693_vm2, %v6692_v18 }
0x13db   : > { %v3037_v25 = vadd.f32 %v5383_v24, %v3036_v6  ;;  %v5907_v26 = vpop.f32.mrb[69].mxu0  ;;  %v5405_v6 = vld [vmem:[%s7185_s20 + $0x5] ss:$0 sm:$0xff] }
0x13dc   : > { %v3039_v27 = vpop.f32.mrb[70].mxu0 }
0x13dd   : > { %v3165_v30 = vpack.c.bf16 %v3037_v25, %v3037_v25  ;;  %v3040_v31 = vadd.f32 %v5383_v24, %v3039_v27  ;;  %v5908_v32 = vpop.f32.mrb[71].mxu0 }
0x13df   : > { %v3171_v34 = vsel %vm1255_vm4, %v3165_v30, 0  ;;  %v3166_v35 = vpack.c.bf16 %v3040_v31, %v3040_v31 }
0x13e0   : > { %5922 = vmatpush3.bf16.msra.mxu1 %v3171_v34 }
0x13e1   : > { %v3217_v36 = vsel %vm1255_vm4, %v3166_v35, 0  ;;  %5933 = vmatprep.subr.bf16.mxu1 %v6692_v18 }
0x13e2   : > { %5928 = vmatpush3.bf16.msra.mxu0 %v3217_v36 }
0x13e3   : > { %5941 = vmatprep.subr.bf16.mxu0 %v6692_v18 }
0x14aa   : > { %v3087_v37 = vpop.f32.mrb[68].mxu1 }
0x14ab   : > { %v3139_v38 = vmul.f32 0.35355338, %v3087_v37  ;;  %v5913_v41 = vpop.f32.mrb[69].mxu1 }
0x14ac   : > { %v3090_v44 = vpop.f32.mrb[70].mxu1  ;;  %v3133_v45 = vpop.f32.mrb[72].mxu0 }
0x14ad   : > { %v3140_v46 = vmul.f32 0.35355338, %v3133_v45  ;;  %v5914_v47 = vpop.f32.mrb[71].mxu1  ;;  %v5919_v48 = vpop.f32.mrb[73].mxu0  ;;  %v3141_v49 = vsel %vm1131_vm3, %v3139_v38, -inf }
0x14ae   : > { %3142 = vmax.xlane.f32.xlu1 %v3141_v49  ;;  %v3136_v50 = vpop.f32.mrb[74].mxu0 }
0x14af   : > { %v5920_v51 = vpop.f32.mrb[75].mxu0  ;;  %v3144_v52 = vsel %vm1131_vm3, %v3140_v46, -inf  ;;  %v5414_v50 = vld [vmem:[%s7185_s20 + $0x9] ss:$0 sm:$0xff] }
0x14b0   : > { %3145 = vmax.xlane.f32.xlu0 %v3144_v52 }
0x153b   : > { %v3143_v54 = vpop.xlane.xlu1 %3142 }
0x153c   : > { %v3147_v55 = vsub.f32 %v3139_v38, %v3143_v54  ;;  %v5396_v38 = vld [vmem:[%s7185_s20 + $0x1] ss:$0 sm:$0xff] }
0x153d   : > { %v3146_v58 = vpop.xlane.xlu0 %3145 }
0x153e   : > { %v3149_v59 = vmul.f32 1.442695, %v3147_v55  ;;  %v3148_v60 = vsub.f32 %v3140_v46, %v3146_v58 }
0x1540   : > { %6313 = vpow2.f32 %v3149_v59  ;;  %v3151_v61 = vmul.f32 1.442695, %v3148_v60 }
0x1542   : > { %6315 = vpow2.f32 %v3151_v61 }
0x154a   : > { %v6314_v62 = vpop.eup %6313 }
0x154b   : > { %v3153_v63 = vsel %vm1131_vm3, %v6314_v62, 0.0 }
0x154c   : > { %v6316_v0 = vpop.eup %6315  ;;  %3154 = vadd.xlane.f32.xlu1 %v3153_v63 }
0x154d   : > { %v3156_v1 = vsel %vm1131_vm3, %v6316_v0, 0.0 }
0x154e   : > { %3157 = vadd.xlane.f32.xlu0 %v3156_v1 }
0x15d9   : > { %v3155_v2 = vpop.xlane.xlu1 %3154 }
0x15da   : > { %6317 = vrcp.f32 %v3155_v2 }
0x15db   : > { %v3158_v4 = vpop.xlane.xlu0 %3157 }
0x15dc   : > { %6319 = vrcp.f32 %v3158_v4 }
0x15e4   : > { %v6318_v7 = vpop.eup %6317 }
0x15e5   : > { %v3160_v43 = vmul.f32 %v6318_v7, %v6314_v62 }
0x15e6   : > { %v6320_v8 = vpop.eup %6319 }
0x15e7   : > { %v3162_v56 = vmul.f32 %v6320_v8, %v6316_v0  ;;  %v3163_v57 = vpack.c.bf16 %v3160_v43, %v3160_v43 }
0x15e9   : > { %5924 = vmatmul.mubr.msk.bf16.vlgmr.msra.gmra.mrb[72].mxu1 %vm1131_vm3, %v3163_v57  ;;  %v3164_v10 = vpack.c.bf16 %v3162_v56, %v3162_v56 }
0x15ea   : > { %5934 = vmatpush3.bf16.msra.mxu1 %v6249_v53  ;;  %5937 = vmatprep.mubr.msk.bf16.mxu1 %vm6693_vm2, %v6692_v18 }
0x15eb   : > { %5930 = vmatmul.mubr.msk.bf16.vlgmr.msra.gmra.mrb[76].mxu0 %vm1131_vm3, %v3164_v10  ;;  %5935 = vmatprep.subr.bf16.mxu1 %v6692_v18 }
0x15ec   : > { %5942 = vmatpush3.bf16.msra.mxu0 %v6250_v9  ;;  %5945 = vmatprep.mubr.msk.bf16.mxu0 %vm6693_vm2, %v6692_v18 }
0x15ed   : > { %5943 = vmatprep.subr.bf16.mxu0 %v6692_v18 }
0x15ee   : > { %5936 = vmatpush3.bf16.msra.mxu1 %v6251_v11 }
0x15ef   : > { %5949 = vmatprep.subr.bf16.mxu1 %v6692_v18 }
0x15f0   : > { %5944 = vmatpush3.bf16.msra.mxu0 %v6252_v12 }
0x15f1   : > { %5938 = vmatmul.mubr.msk.bf16.vlgmr.msra.gmra.mrb[76].mxu1 %vm887_vm1, %v7502_v5  ;;  %5957 = vmatprep.subr.bf16.mxu0 %v6692_v18 }
0x15f2   : > { %5953 = vmatprep.mubr.msk.bf16.mxu1 %vm6693_vm2, %v6692_v18  ;;  %5950 = vmatpush3.bf16.msra.mxu1 %v6253_v13 }
0x15f3   : > { %5946 = vmatmul.mubr.msk.bf16.vlgmr.msra.gmra.mrb[80].mxu0 %vm887_vm1, %v7487_v40  ;;  %5951 = vmatprep.subr.bf16.mxu1 %v6692_v18 }
0x15f4   : > { %5959 = vmatprep.mubr.msk.bf16.mxu0 %vm6693_vm2, %v6692_v18 }
0x15f6   : > { %5952 = vmatpush3.bf16.msra.mxu1 %v6254_v14 }
0x15f7   : > { %5963 = vmatprep.subr.bf16.mxu1 %v6692_v18 }
0x15f9   : > { %5954 = vmatmul.mubr.msk.bf16.vlgmr.msra.gmra.mrb[80].mxu1 %vm887_vm1, %v7487_v40 }
0x15fa   : > { %5965 = vmatprep.mubr.msk.bf16.mxu1 %vm6693_vm2, %v6692_v18 }
0x16bc   : > { %v7566_v39 = vpop.f32.mrb[72].mxu1 }
0x16bd   : > { %v5925_v15 = vpop.f32.mrb[73].mxu1 }
0x16be   : > { %v3210_v16 = vpop.f32.mrb[74].mxu1  ;;  %v7568_v17 = vpop.f32.mrb[76].mxu0 }
0x16bf   : > { %v3259_v19 = vpack.c.bf16 %v7568_v17, %v7566_v39  ;;  %v5926_v20 = vpop.f32.mrb[75].mxu1  ;;  %v5931_v22 = vpop.f32.mrb[77].mxu0 }
0x16c0   : > { %v3256_v3 = vpop.f32.mrb[78].mxu0 }
0x16c1   : > { %v5932_v23 = vpop.f32.mrb[79].mxu0 }
0x16c4   : > { %v3320_v24 = vpop.f32.mrb[76].mxu1 }
0x16c5   : > { %v5939_v25 = vpop.f32.mrb[77].mxu1  ;;  %v3321_v45 = vadd.f32 %v5396_v38, %v3320_v24 }
0x16c6   : > { %v3323_v26 = vpop.f32.mrb[78].mxu1  ;;  %v3386_v27 = vpop.f32.mrb[80].mxu0 }
0x16c7   : > { %v3387_v30 = vadd.f32 %v5405_v6, %v3386_v27  ;;  %v5940_v31 = vpop.f32.mrb[79].mxu1  ;;  %v5947_v32 = vpop.f32.mrb[81].mxu0  ;;  %v3324_v47 = vadd.f32 %v5396_v38, %v3323_v26  ;;  %v3459_v48 = vpack.c.bf16 %v3321_v45, %v3321_v45  ;;  %v5422_v26 = vld [vmem:[%s7138_s1 + $0x4] sm:$0xf] }
0x16c8   : > { %v3389_v34 = vpop.f32.mrb[82].mxu0  ;;  %v3260_v31 = vld [vmem:[%s7138_s1] sm:$0xf] }
0x16c9   : > { %v3461_v35 = vpack.c.bf16 %v3387_v30, %v3387_v30  ;;  %v3390_v36 = vadd.f32 %v5405_v6, %v3389_v34  ;;  %v5948_v37 = vpop.f32.mrb[83].mxu0  ;;  %v3460_v49 = vpack.c.bf16 %v3324_v47, %v3324_v47  ;;  %v6255_v38 = vld [vmem:[%s7175_s5 + $0x60] sm:$0xff]  }
0x16ca   : > { %v3729_v37 = vsel %vm1255_vm4, %v3260_v31, 0  ;;  %v6257_v45 = vld [vmem:[%s7175_s5 + $0x20] sm:$0xff]  }
0x16cb   : > { %v3467_v41 = vsel %vm1131_vm3, %v3461_v35, 0  ;;  %v3462_v44 = vpack.c.bf16 %v3390_v36, %v3390_v36  ;;  %v3682_v35 = vsel %vm1255_vm4, %v5422_v26, 0 }
0x16cc   : > { %5958 = vmatpush3.bf16.xpose.msra.mxu0 %v3467_v41  ;;  %v3452_v51 = vpop.f32.mrb[80].mxu1  ;;  %v6256_v41 = vld [vmem:[%s7175_s5 + $0x68] sm:$0xff]  }
0x16cd   : > { %v3513_v46 = vsel %vm1131_vm3, %v3462_v44, 0  ;;  %5969 = vmatprep.subr.bf16.mxu0 %v6692_v18  ;;  %v3453_v52 = vadd.f32 %v5414_v50, %v3452_v51  ;;  %v5955_v54 = vpop.f32.mrb[81].mxu1  ;;  %v6258_v51 = vld [vmem:[%s7175_s5 + $0x28] sm:$0xff]  }
0x16ce   : > { %5964 = vmatpush3.bf16.xpose.msra.mxu1 %v3513_v46  ;;  %v3455_v55 = vpop.f32.mrb[82].mxu1  ;;  %v6259_v54 = vld [vmem:[%s7175_s5 + $0xa0] sm:$0xff]  }
0x16cf   : > { %5975 = vmatprep.subr.bf16.mxu1 %v6692_v18  ;;  %v3581_v58 = vpack.c.bf16 %v3453_v52, %v3453_v52  ;;  %v3456_v59 = vadd.f32 %v5414_v50, %v3455_v55  ;;  %v5956_v60 = vpop.f32.mrb[83].mxu1 }
0x16d0   : > { %v6260_v60 = vld [vmem:[%s7175_s5 + $0xa8] sm:$0xff]  }
0x16d1   : > { %v3587_v61 = vsel %vm1255_vm4, %v3581_v58, 0  ;;  %v3582_v62 = vpack.c.bf16 %v3456_v59, %v3456_v59 }
0x16d3   : > { %5960 = vmatmul.mubr.msk.bf16.vlgmr.msra.gmra.mrb[84].mxu0 %vm1131_vm3, %v3459_v48  ;;  %v3633_v63 = vsel %vm1255_vm4, %v3582_v62, 0 }
0x16d4   : > { %5971 = vmatprep.mubr.msk.bf16.mxu0 %vm6693_vm2, %v6692_v18  ;;  %5970 = vmatpush3.bf16.msra.mxu0 %v3587_v61  ;;  %v5439_v61 = vld [vmem:[%s7185_s20 + $0x6] ss:$0 sm:$0xff] }
0x16d5   : > { %5966 = vmatmul.mubr.msk.bf16.vlgmr.msra.gmra.mrb[84].mxu1 %vm1131_vm3, %v3460_v49  ;;  %5981 = vmatprep.subr.bf16.mxu0 %v6692_v18 }
0x16d6   : > { %5977 = vmatprep.mubr.msk.bf16.mxu1 %vm6693_vm2, %v6692_v18  ;;  %5976 = vmatpush3.bf16.msra.mxu1 %v3633_v63 }
0x16d7   : > { %5987 = vmatprep.subr.bf16.mxu1 %v6692_v18 }
0x17a6   : > { %v3503_v0 = vpop.f32.mrb[84].mxu0 }
0x17a7   : > { %v3555_v1 = vmul.f32 0.35355338, %v3503_v0  ;;  %v5961_v2 = vpop.f32.mrb[85].mxu0 }
0x17a8   : > { %v3506_v4 = vpop.f32.mrb[86].mxu0  ;;  %v3549_v7 = vpop.f32.mrb[84].mxu1 }
0x17a9   : > { %v3556_v43 = vmul.f32 0.35355338, %v3549_v7  ;;  %v5962_v8 = vpop.f32.mrb[87].mxu0  ;;  %v5967_v53 = vpop.f32.mrb[85].mxu1  ;;  %v3557_v56 = vsel %vm1131_vm3, %v3555_v1, -inf }
0x17aa   : > { %v3552_v57 = vpop.f32.mrb[86].mxu1  ;;  %3558 = vmax.xlane.f32.xlu0 %v3557_v56 }
0x17ab   : > { %v5968_v9 = vpop.f32.mrb[87].mxu1  ;;  %v3560_v10 = vsel %vm1131_vm3, %v3556_v43, -inf }
0x17ac   : > { %3561 = vmax.xlane.f32.xlu1 %v3560_v10 }
0x1837   : > { %v3559_v11 = vpop.xlane.xlu0 %3558 }
0x1838   : > { %v3563_v12 = vsub.f32 %v3555_v1, %v3559_v11 }
0x1839   : > { %v3562_v13 = vpop.xlane.xlu1 %3561 }
0x183a   : > { %v3565_v14 = vmul.f32 1.442695, %v3563_v12  ;;  %v3564_v15 = vsub.f32 %v3556_v43, %v3562_v13  ;;  %v5430_v13 = vld [vmem:[%s7185_s20 + $0x2] ss:$0 sm:$0xff] }
0x183c   : > { %6321 = vpow2.f32 %v3565_v14  ;;  %v3567_v16 = vmul.f32 1.442695, %v3564_v15 }
0x183e   : > { %6323 = vpow2.f32 %v3567_v16 }
0x1846   : > { %v6322_v20 = vpop.eup %6321 }
0x1847   : > { %v3569_v22 = vsel %vm1131_vm3, %v6322_v20, 0.0 }
0x1848   : > { %v6324_v3 = vpop.eup %6323  ;;  %3570 = vadd.xlane.f32.xlu0 %v3569_v22 }
0x1849   : > { %v3572_v23 = vsel %vm1131_vm3, %v6324_v3, 0.0 }
0x184a   : > { %3573 = vadd.xlane.f32.xlu1 %v3572_v23 }
0x18d5   : > { %v3571_v24 = vpop.xlane.xlu0 %3570 }
0x18d6   : > { %6325 = vrcp.f32 %v3571_v24 }
0x18d7   : > { %v3574_v6 = vpop.xlane.xlu1 %3573 }
0x18d8   : > { %6327 = vrcp.f32 %v3574_v6  ;;  %v5448_v6 = vld [vmem:[%s7185_s20 + $0xa] ss:$0 sm:$0xff] }
0x18e0   : > { %v6326_v25 = vpop.eup %6325 }
0x18e1   : > { %v3576_v27 = vmul.f32 %v6326_v25, %v6322_v20 }
0x18e2   : > { %v6328_v30 = vpop.eup %6327 }
0x18e3   : > { %v3578_v32 = vmul.f32 %v6328_v30, %v6324_v3  ;;  %v3579_v34 = vpack.c.bf16 %v3576_v27, %v3576_v27 }
0x18e5   : > { %5972 = vmatmul.mubr.msk.bf16.vlgmr.msra.gmra.mrb[88].mxu0 %vm1131_vm3, %v3579_v34  ;;  %v3580_v36 = vpack.c.bf16 %v3578_v32, %v3578_v32 }
0x18e6   : > { %5982 = vmatpush3.bf16.msra.mxu0 %v3682_v35  ;;  %5983 = vmatprep.mubr.msk.bf16.mxu0 %vm6693_vm2, %v6692_v18 }
0x18e7   : > { %5978 = vmatmul.mubr.msk.bf16.vlgmr.msra.gmra.mrb[88].mxu1 %vm1131_vm3, %v3580_v36  ;;  %5993 = vmatprep.subr.bf16.mxu0 %v6692_v18 }
0x18e8   : > { %5988 = vmatpush3.bf16.msra.mxu1 %v3729_v37  ;;  %5989 = vmatprep.mubr.msk.bf16.mxu1 %vm6693_vm2, %v6692_v18 }
0x18e9   : > { %6001 = vmatprep.subr.bf16.mxu1 %v6692_v18 }
0x18ef   : > { %5990 = vmatmul.mubr.msk.bf16.vlgmr.msra.gmra.mrb[92].mxu1 %vm1131_vm3, %v3259_v19 }
0x18f0   : > { %6002 = vmatpush3.bf16.msra.mxu1 %v6255_v38  ;;  %6005 = vmatprep.mubr.msk.bf16.mxu1 %vm6693_vm2, %v6692_v18 }
0x18f1   : > { %6003 = vmatprep.subr.bf16.mxu1 %v6692_v18 }
0x18f4   : > { %6004 = vmatpush3.bf16.msra.mxu1 %v6256_v41 }
0x18f5   : > { %6017 = vmatprep.subr.bf16.mxu1 %v6692_v18 }
0x18f7   : > { %6006 = vmatmul.mubr.msk.bf16.vlgmr.msra.gmra.mrb[96].mxu1 %vm887_vm1, %v7487_v40 }
0x18f8   : > { %6019 = vmatprep.mubr.msk.bf16.mxu1 %vm6693_vm2, %v6692_v18 }
0x19b8   : > { %v3623_v39 = vpop.f32.mrb[88].mxu0 }
0x19b9   : > { %v5973_v17 = vpop.f32.mrb[89].mxu0 }
0x19ba   : > { %v3626_v19 = vpop.f32.mrb[90].mxu0  ;;  %v3669_v44 = vpop.f32.mrb[88].mxu1 }
0x19bb   : > { %v3675_v46 = vpack.c.bf16 %v3669_v44, %v3623_v39  ;;  %v5974_v47 = vpop.f32.mrb[91].mxu0  ;;  %v5979_v48 = vpop.f32.mrb[89].mxu1 }
0x19bc   : > { %v3672_v49 = vpop.f32.mrb[90].mxu1 }
0x19bd   : > { %v5980_v50 = vpop.f32.mrb[91].mxu1  ;;  %5984 = vmatmul.mubr.msk.bf16.vlgmr.msra.gmra.mrb[92].mxu0 %vm1131_vm3, %v3675_v46 }
0x19be   : > { %5994 = vmatpush3.bf16.msra.mxu0 %v6257_v45  ;;  %5997 = vmatprep.mubr.msk.bf16.mxu0 %vm6693_vm2, %v6692_v18 }
0x19bf   : > { %5995 = vmatprep.subr.bf16.mxu0 %v6692_v18 }
0x19c2   : > { %v3765_v52 = vpop.f32.mrb[92].mxu1  ;;  %5996 = vmatpush3.bf16.msra.mxu0 %v6258_v51 }
0x19c3   : > { %v5991_v55 = vpop.f32.mrb[93].mxu1  ;;  %6009 = vmatprep.subr.bf16.mxu0 %v6692_v18 }
0x19c4   : > { %v3768_v58 = vpop.f32.mrb[94].mxu1 }
0x19c5   : > { %v5992_v59 = vpop.f32.mrb[95].mxu1  ;;  %5998 = vmatmul.mubr.msk.bf16.vlgmr.msra.gmra.mrb[96].mxu0 %vm887_vm1, %v7502_v5 }
0x19c6   : > { %6010 = vmatpush3.bf16.msra.mxu0 %v6259_v54  ;;  %6013 = vmatprep.mubr.msk.bf16.mxu0 %vm6693_vm2, %v6692_v18 }
0x19c7   : > { %6011 = vmatprep.subr.bf16.mxu0 %v6692_v18 }
0x19ca   : > { %v3897_v62 = vpop.f32.mrb[96].mxu1  ;;  %6012 = vmatpush3.bf16.msra.mxu0 %v6260_v60 }
0x19cb   : > { %v3898_v63 = vadd.f32 %v5439_v61, %v3897_v62  ;;  %v6007_v0 = vpop.f32.mrb[97].mxu1  ;;  %6023 = vmatprep.subr.bf16.mxu0 %v6692_v18 }
0x19cc   : > { %v3900_v1 = vpop.f32.mrb[98].mxu1 }
0x19cd   : > { %v3972_v2 = vpack.c.bf16 %v3898_v63, %v3898_v63  ;;  %v3901_v4 = vadd.f32 %v5439_v61, %v3900_v1  ;;  %v6008_v7 = vpop.f32.mrb[99].mxu1  ;;  %6014 = vmatmul.mubr.msk.bf16.vlgmr.msra.gmra.mrb[100].mxu0 %vm887_vm1, %v7487_v40 }
0x19ce   : > { %6025 = vmatprep.mubr.msk.bf16.mxu0 %vm6693_vm2, %v6692_v18 }
0x19cf   : > { %v3978_v43 = vsel %vm1131_vm3, %v3972_v2, 0  ;;  %v3973_v8 = vpack.c.bf16 %v3901_v4, %v3901_v4  ;;  %v5456_v4 = vld [vmem:[%s7138_s1 + $0x8] sm:$0xf] }
0x19d0   : > { %6018 = vmatpush3.bf16.xpose.msra.mxu1 %v3978_v43 }
0x19d1   : > { %v4024_v53 = vsel %vm1131_vm3, %v3973_v8, 0  ;;  %6029 = vmatprep.subr.bf16.mxu1 %v6692_v18 }
0x19d3   : > { %6024 = vmatpush3.bf16.xpose.msra.mxu0 %v4024_v53 }
0x19d4   : > { %6035 = vmatprep.subr.bf16.mxu0 %v6692_v18 }
0x1a90   : > { %v3718_v56 = vpop.f32.mrb[92].mxu0 }
0x1a91   : > { %v7643_v57 = vadd.f32 %v3765_v52, %v3718_v56  ;;  %v5985_v9 = vpop.f32.mrb[93].mxu0  ;;  %v4193_v56 = vsel %vm1255_vm4, %v5456_v4, 0 }
0x1a92   : > { %v3721_v10 = vpop.f32.mrb[94].mxu0  ;;  %v6261_v9 = vld [vmem:[%s7175_s5 + $0x30] sm:$0xff]  }
0x1a93   : > { %v7645_v11 = vadd.f32 %v3768_v58, %v3721_v10  ;;  %v5986_v12 = vpop.f32.mrb[95].mxu0 }
0x1a94   : > { %v6262_v12 = vld [vmem:[%s7175_s5 + $0x38] sm:$0xff]  }
0x1a98   : > { %v3831_v14 = vpop.f32.mrb[96].mxu0 }
0x1a99   : > { %v3832_v15 = vadd.f32 %v5430_v13, %v3831_v14  ;;  %v5999_v16 = vpop.f32.mrb[97].mxu0 }
0x1a9a   : > { %v3834_v20 = vpop.f32.mrb[98].mxu0 }
0x1a9b   : > { %v3970_v22 = vpack.c.bf16 %v3832_v15, %v3832_v15  ;;  %v3835_v3 = vadd.f32 %v5430_v13, %v3834_v20  ;;  %v6000_v23 = vpop.f32.mrb[99].mxu0  ;;  %v6263_v20 = vld [vmem:[%s7175_s5 + $0x70] sm:$0xff]  }
0x1a9d   : > { %v3971_v24 = vpack.c.bf16 %v3835_v3, %v3835_v3  ;;  %6020 = vmatmul.mubr.msk.bf16.vlgmr.msra.gmra.mrb[100].mxu1 %vm1131_vm3, %v3970_v22 }
0x1a9e   : > { %6031 = vmatprep.mubr.msk.bf16.mxu1 %vm6693_vm2, %v6692_v18 }
0x1a9f   : > { %6026 = vmatmul.mubr.msk.bf16.vlgmr.msra.gmra.mrb[104].mxu0 %vm1131_vm3, %v3971_v24 }
0x1aa0   : > { %v3963_v25 = vpop.f32.mrb[100].mxu0  ;;  %6037 = vmatprep.mubr.msk.bf16.mxu0 %vm6693_vm2, %v6692_v18 }
0x1aa1   : > { %v3964_v26 = vadd.f32 %v5448_v6, %v3963_v25  ;;  %v6015_v27 = vpop.f32.mrb[101].mxu0  ;;  %v6264_v25 = vld [vmem:[%s7175_s5 + $0x78] sm:$0xff]  }
0x1aa2   : > { %v3966_v30 = vpop.f32.mrb[102].mxu0 }
0x1aa3   : > { %v4092_v31 = vpack.c.bf16 %v3964_v26, %v3964_v26  ;;  %v3967_v32 = vadd.f32 %v5448_v6, %v3966_v30  ;;  %v6016_v34 = vpop.f32.mrb[103].mxu0 }
0x1aa5   : > { %v4098_v35 = vsel %vm1255_vm4, %v4092_v31, 0  ;;  %v4093_v36 = vpack.c.bf16 %v3967_v32, %v3967_v32  ;;  %v6265_v31 = vld [vmem:[%s7175_s5 + $0xb0] sm:$0xff]   ;;  %v6266_v32 = vld [vmem:[%s7175_s5 + $0xb8] sm:$0xff]   ;;  %s7902_s5 = smov %s7901_s4 }
0x1aa6   : > { %6030 = vmatpush3.bf16.msra.mxu1 %v4098_v35 }
0x1aa7   : > { %v4144_v37 = vsel %vm1255_vm4, %v4093_v36, 0  ;;  %6041 = vmatprep.subr.bf16.mxu1 %v6692_v18 }
0x1aa8   : > { %6036 = vmatpush3.bf16.msra.mxu0 %v4144_v37 }
0x1aa9   : > { %6047 = vmatprep.subr.bf16.mxu0 %v6692_v18 }
0x1b70   : > { %v4014_v38 = vpop.f32.mrb[100].mxu1 }
0x1b71   : > { %v4066_v41 = vmul.f32 0.35355338, %v4014_v38  ;;  %v6021_v39 = vpop.f32.mrb[101].mxu1 }
0x1b72   : > { %v4017_v17 = vpop.f32.mrb[102].mxu1  ;;  %v4060_v19 = vpop.f32.mrb[104].mxu0  ;;  %v5472_v39 = vld [vmem:[%s7185_s20 + $0x7] ss:$0 sm:$0xff] }
0x1b73   : > { %v4067_v44 = vmul.f32 0.35355338, %v4060_v19  ;;  %v6022_v45 = vpop.f32.mrb[103].mxu1  ;;  %v6027_v46 = vpop.f32.mrb[105].mxu0  ;;  %v4068_v47 = vsel %vm1131_vm3, %v4066_v41, -inf }
0x1b74   : > { %4069 = vmax.xlane.f32.xlu0 %v4068_v47  ;;  %v4063_v48 = vpop.f32.mrb[106].mxu0 }
0x1b75   : > { %v6028_v49 = vpop.f32.mrb[107].mxu0  ;;  %v4071_v50 = vsel %vm1131_vm3, %v4067_v44, -inf  ;;  %v5463_v48 = vld [vmem:[%s7185_s20 + $0x3] ss:$0 sm:$0xff] }
0x1b76   : > { %4072 = vmax.xlane.f32.xlu1 %v4071_v50 }
0x1c01   : > { %v4070_v51 = vpop.xlane.xlu0 %4069 }
0x1c02   : > { %v4074_v52 = vsub.f32 %v4066_v41, %v4070_v51 }
0x1c03   : > { %v4073_v54 = vpop.xlane.xlu1 %4072 }
0x1c04   : > { %v4076_v55 = vmul.f32 1.442695, %v4074_v52  ;;  %v4075_v58 = vsub.f32 %v4067_v44, %v4073_v54 }
0x1c06   : > { %6329 = vpow2.f32 %v4076_v55  ;;  %v4078_v59 = vmul.f32 1.442695, %v4075_v58  ;;  %v5481_v55 = vld [vmem:[%s7185_s20 + $0xb] ss:$0 sm:$0xff] }
0x1c08   : > { %6331 = vpow2.f32 %v4078_v59 }
0x1c10   : > { %v6330_v60 = vpop.eup %6329 }
0x1c11   : > { %v4080_v61 = vsel %vm1131_vm3, %v6330_v60, 0.0 }
0x1c12   : > { %v6332_v62 = vpop.eup %6331  ;;  %4081 = vadd.xlane.f32.xlu0 %v4080_v61 }
0x1c13   : > { %v4083_v63 = vsel %vm1131_vm3, %v6332_v62, 0.0 }
0x1c14   : > { %4084 = vadd.xlane.f32.xlu1 %v4083_v63 }
0x1c9f   : > { %v4082_v0 = vpop.xlane.xlu0 %4081 }
0x1ca0   : > { %6333 = vrcp.f32 %v4082_v0 }
0x1ca1   : > { %v4085_v1 = vpop.xlane.xlu1 %4084 }
0x1ca2   : > { %6335 = vrcp.f32 %v4085_v1 }
0x1caa   : > { %v6334_v2 = vpop.eup %6333 }
0x1cab   : > { %v4087_v7 = vmul.f32 %v6334_v2, %v6330_v60 }
0x1cac   : > { %v6336_v43 = vpop.eup %6335 }
0x1cad   : > { %v4089_v8 = vmul.f32 %v6336_v43, %v6332_v62  ;;  %v4090_v53 = vpack.c.bf16 %v4087_v7, %v4087_v7 }
0x1caf   : > { %6032 = vmatmul.mubr.msk.bf16.vlgmr.msra.gmra.mrb[104].mxu1 %vm1131_vm3, %v4090_v53  ;;  %v4091_v10 = vpack.c.bf16 %v4089_v8, %v4089_v8 }
0x1cb0   : > { %6042 = vmatpush3.bf16.msra.mxu1 %v4193_v56  ;;  %6043 = vmatprep.mubr.msk.bf16.mxu1 %vm6693_vm2, %v6692_v18 }
0x1cb1   : > { %6038 = vmatmul.mubr.msk.bf16.vlgmr.msra.gmra.mrb[108].mxu0 %vm1131_vm3, %v4091_v10  ;;  %6055 = vmatprep.subr.bf16.mxu1 %v6692_v18 }
0x1cb2   : > { %6048 = vmatpush3.bf16.msra.mxu0 %v6261_v9  ;;  %6051 = vmatprep.mubr.msk.bf16.mxu0 %vm6693_vm2, %v6692_v18 }
0x1cb3   : > { %6049 = vmatprep.subr.bf16.mxu0 %v6692_v18 }
0x1cb6   : > { %6050 = vmatpush3.bf16.msra.mxu0 %v6262_v12 }
0x1cb7   : > { %6063 = vmatprep.subr.bf16.mxu0 %v6692_v18 }
0x1cb9   : > { %6052 = vmatmul.mubr.msk.bf16.vlgmr.msra.gmra.mrb[112].mxu0 %vm887_vm1, %v7502_v5 }
0x1cba   : > { %6067 = vmatprep.mubr.msk.bf16.mxu0 %vm6693_vm2, %v6692_v18  ;;  %6064 = vmatpush3.bf16.msra.mxu0 %v6265_v31 }
0x1cbb   : > { %6065 = vmatprep.subr.bf16.mxu0 %v6692_v18 }
0x1cbe   : > { %6066 = vmatpush3.bf16.msra.mxu0 %v6266_v32 }
0x1cbf   : > { %6077 = vmatprep.subr.bf16.mxu0 %v6692_v18 }
0x1cc1   : > { %6068 = vmatmul.mubr.msk.bf16.vlgmr.msra.gmra.mrb[116].mxu0 %vm887_vm1, %v7487_v40 }
0x1cc2   : > { %6079 = vmatprep.mubr.msk.bf16.mxu0 %vm6693_vm2, %v6692_v18 }
0x1d82   : > { %v4134_v13 = vpop.f32.mrb[104].mxu1 }
0x1d83   : > { %v6033_v14 = vpop.f32.mrb[105].mxu1 }
0x1d84   : > { %v4137_v15 = vpop.f32.mrb[106].mxu1  ;;  %v4180_v16 = vpop.f32.mrb[108].mxu0 }
0x1d85   : > { %v4186_v22 = vpack.c.bf16 %v4180_v16, %v4134_v13  ;;  %v6034_v3 = vpop.f32.mrb[107].mxu1  ;;  %v6039_v23 = vpop.f32.mrb[109].mxu0 }
0x1d86   : > { %v4183_v24 = vpop.f32.mrb[110].mxu0 }
0x1d87   : > { %v6040_v6 = vpop.f32.mrb[111].mxu0  ;;  %6044 = vmatmul.mubr.msk.bf16.vlgmr.msra.gmra.mrb[108].mxu1 %vm1131_vm3, %v4186_v22 }
0x1d88   : > { %6056 = vmatpush3.bf16.msra.mxu1 %v6263_v20  ;;  %6059 = vmatprep.mubr.msk.bf16.mxu1 %vm6693_vm2, %v6692_v18 }
0x1d89   : > { %6057 = vmatprep.subr.bf16.mxu1 %v6692_v18 }
0x1d8c   : > { %v4297_v5 = vpop.f32.mrb[112].mxu0  ;;  %6058 = vmatpush3.bf16.msra.mxu1 %v6264_v25 }
0x1d8d   : > { %v6053_v26 = vpop.f32.mrb[113].mxu0  ;;  %6071 = vmatprep.subr.bf16.mxu1 %v6692_v18  ;;  %v4298_v50 = vadd.f32 %v5463_v48, %v4297_v5 }
0x1d8e   : > { %v4300_v27 = vpop.f32.mrb[114].mxu0 }
0x1d8f   : > { %v6054_v30 = vpop.f32.mrb[115].mxu0  ;;  %6060 = vmatmul.mubr.msk.bf16.vlgmr.msra.gmra.mrb[112].mxu1 %vm887_vm1, %v7487_v40  ;;  %v4436_v52 = vpack.c.bf16 %v4298_v50, %v4298_v50 }
0x1d90   : > { %6073 = vmatprep.mubr.msk.bf16.mxu1 %vm6693_vm2, %v6692_v18 }
0x1d94   : > { %v4429_v58 = vpop.f32.mrb[116].mxu0 }
0x1d95   : > { %v4430_v59 = vadd.f32 %v5481_v55, %v4429_v58  ;;  %v6069_v60 = vpop.f32.mrb[117].mxu0 }
0x1d96   : > { %v4432_v61 = vpop.f32.mrb[118].mxu0 }
0x1d97   : > { %v4558_v62 = vpack.c.bf16 %v4430_v59, %v4430_v59  ;;  %v4433_v63 = vadd.f32 %v5481_v55, %v4432_v61  ;;  %v6070_v0 = vpop.f32.mrb[119].mxu0 }
0x1d99   : > { %v4564_v1 = vsel %vm1255_vm4, %v4558_v62, 0  ;;  %v4559_v2 = vpack.c.bf16 %v4433_v63, %v4433_v63 }
0x1d9b   : > { %v4610_v4 = vsel %vm1255_vm4, %v4559_v2, 0 }
0x1e5a   : > { %v4229_v34 = vpop.f32.mrb[108].mxu1 }
0x1e5b   : > { %v7700_v35 = vadd.f32 %v4229_v34, %v7643_v57  ;;  %v6045_v36 = vpop.f32.mrb[109].mxu1  ;;  %v5489_v34 = vld [vmem:[%s7138_s1 + $0xc] sm:$0xf]  ;;  %s7900_s1 = scalar_lea.vmem [#allocation10], %s7124_s21 }
0x1e5c   : > { %v4232_v37 = vpop.f32.mrb[110].mxu1 }
0x1e5d   : > { %v7703_v38 = vadd.f32 %v4232_v37, %v7645_v11  ;;  %v6046_v41 = vpop.f32.mrb[111].mxu1  ;;  %v4301_v11 = vadd.f32 %v5463_v48, %v4300_v27 }
0x1e5f   : > { %v4437_v54 = vpack.c.bf16 %v4301_v11, %v4301_v11 }
0x1e62   : > { %v4363_v17 = vpop.f32.mrb[112].mxu1 }
0x1e63   : > { %v4364_v19 = vadd.f32 %v5472_v39, %v4363_v17  ;;  %v6061_v44 = vpop.f32.mrb[113].mxu1  ;;  %v4659_v17 = vsel %vm1255_vm4, %v5489_v34, 0 }
0x1e64   : > { %v4366_v45 = vpop.f32.mrb[114].mxu1 }
0x1e65   : > { %v4438_v40 = vpack.c.bf16 %v4364_v19, %v4364_v19  ;;  %v4367_v46 = vadd.f32 %v5472_v39, %v4366_v45  ;;  %v6062_v47 = vpop.f32.mrb[115].mxu1 }
0x1e67   : > { %v4444_v49 = vsel %vm1131_vm3, %v4438_v40, 0  ;;  %v4439_v57 = vpack.c.bf16 %v4367_v46, %v4367_v46 }
0x1e68   : > { %6072 = vmatpush3.bf16.xpose.msra.mxu1 %v4444_v49 }
0x1e69   : > { %v4490_v51 = vsel %vm1131_vm3, %v4439_v57, 0  ;;  %6083 = vmatprep.subr.bf16.mxu1 %v6692_v18 }
0x1e6a   : > { %6078 = vmatpush3.bf16.xpose.msra.mxu0 %v4490_v51 }
0x1e6b   : > { %6089 = vmatprep.subr.bf16.mxu0 %v6692_v18 }
0x1e6f   : > { %6074 = vmatmul.mubr.msk.bf16.vlgmr.msra.gmra.mrb[116].mxu1 %vm1131_vm3, %v4436_v52 }
0x1e70   : > { %6085 = vmatprep.mubr.msk.bf16.mxu1 %vm6693_vm2, %v6692_v18  ;;  %6084 = vmatpush3.bf16.msra.mxu1 %v4564_v1 }
0x1e71   : > { %6080 = vmatmul.mubr.msk.bf16.vlgmr.msra.gmra.mrb[120].mxu0 %vm1131_vm3, %v4437_v54  ;;  %6095 = vmatprep.subr.bf16.mxu1 %v6692_v18  ;;  %v5491_v54 = vld [vmem:[%s7900_s1] ss:$0 sm:$0xff] }
0x1e72   : > { %6091 = vmatprep.mubr.msk.bf16.mxu0 %vm6693_vm2, %v6692_v18  ;;  %6090 = vmatpush3.bf16.msra.mxu0 %v4610_v4 }
0x1e73   : > { %6101 = vmatprep.subr.bf16.mxu0 %v6692_v18 }
0x1f42   : > { %v4480_v7 = vpop.f32.mrb[116].mxu1 }
0x1f43   : > { %v4532_v43 = vmul.f32 0.35355338, %v4480_v7  ;;  %v6075_v8 = vpop.f32.mrb[117].mxu1 }
0x1f44   : > { %v4483_v53 = vpop.f32.mrb[118].mxu1  ;;  %v4526_v56 = vpop.f32.mrb[120].mxu0 }
0x1f45   : > { %v4533_v9 = vmul.f32 0.35355338, %v4526_v56  ;;  %v6076_v10 = vpop.f32.mrb[119].mxu1  ;;  %v6081_v12 = vpop.f32.mrb[121].mxu0  ;;  %v4534_v13 = vsel %vm1131_vm3, %v4532_v43, -inf  ;;  %v6267_v56 = vld [vmem:[%s7901_s4] sm:$0xff]  }
0x1f46   : > { %4535 = vmax.xlane.f32.xlu0 %v4534_v13  ;;  %v4529_v14 = vpop.f32.mrb[122].mxu0  ;;  %v6269_v10 = vld [vmem:[%s7190_s27] sm:$0xff]   ;;  %v6270_v12 = vld [vmem:[%s7190_s27 + $0x8] sm:$0xff]  }
0x1f47   : > { %v6082_v15 = vpop.f32.mrb[123].mxu0  ;;  %v4537_v16 = vsel %vm1131_vm3, %v4533_v9, -inf }
0x1f48   : > { %4538 = vmax.xlane.f32.xlu1 %v4537_v16 }
0x1fd3   : > { %v4536_v20 = vpop.xlane.xlu0 %4535 }
0x1fd4   : > { %v4540_v22 = vsub.f32 %v4532_v43, %v4536_v20 }
0x1fd5   : > { %v4539_v3 = vpop.xlane.xlu1 %4538 }
0x1fd6   : > { %v4542_v23 = vmul.f32 1.442695, %v4540_v22  ;;  %v4541_v24 = vsub.f32 %v4533_v9, %v4539_v3  ;;  %v6268_v9 = vld [vmem:[%s7902_s5 + $0x8] sm:$0xff]   ;;  %v4743_v3 = vsub.s32 4, %v7212_v28 }
0x1fd8   : > { %6337 = vpow2.f32 %v4542_v23  ;;  %v4544_v6 = vmul.f32 1.442695, %v4541_v24  ;;  %v6352_v23 = vld [vmem:[%s7165_s18] sm:$0x3f] }
0x1fd9   : > { %v4744_v24 = vrot.slane %v6352_v23, %v4743_v3 }
0x1fda   : > { %6339 = vpow2.f32 %v4544_v6  ;;  %v4749_v6 = vsub.s32 5, %v7212_v28 }
0x1fe2   : > { %v6338_v25 = vpop.eup %6337 }
0x1fe3   : > { %v4546_v5 = vsel %vm1131_vm3, %v6338_v25, 0.0 }
0x1fe4   : > { %v6340_v26 = vpop.eup %6339  ;;  %4547 = vadd.xlane.f32.xlu0 %v4546_v5 }
0x1fe5   : > { %v4549_v27 = vsel %vm1131_vm3, %v6340_v26, 0.0 }
0x1fe6   : > { %4550 = vadd.xlane.f32.xlu1 %v4549_v27 }
0x2071   : > { %v4548_v30 = vpop.xlane.xlu0 %4547 }
0x2072   : > { %6341 = vrcp.f32 %v4548_v30 }
0x2073   : > { %v4551_v31 = vpop.xlane.xlu1 %4550 }
0x2074   : > { %6343 = vrcp.f32 %v4551_v31  ;;  %v4750_v31 = vrot.slane %v6352_v23, %v4749_v6 }
0x207c   : > { %v6342_v32 = vpop.eup %6341 }
0x207d   : > { %v4553_v36 = vmul.f32 %v6342_v32, %v6338_v25 }
0x207e   : > { %v6344_v37 = vpop.eup %6343 }
0x207f   : > { %v4555_v41 = vmul.f32 %v6344_v37, %v6340_v26  ;;  %v4556_v39 = vpack.c.bf16 %v4553_v36, %v4553_v36 }
0x2081   : > { %6086 = vmatmul.mubr.msk.bf16.vlgmr.msra.gmra.mrb[120].mxu1 %vm1131_vm3, %v4556_v39  ;;  %v4557_v19 = vpack.c.bf16 %v4555_v41, %v4555_v41  ;;  %v6271_v41 = vld [vmem:[%s7190_s27 + $0x10] sm:$0xff]   ;;  %v6272_v39 = vld [vmem:[%s7190_s27 + $0x18] sm:$0xff]  }
0x2082   : > { %6096 = vmatpush3.bf16.msra.mxu1 %v4659_v17  ;;  %6097 = vmatprep.mubr.msk.bf16.mxu1 %vm6693_vm2, %v6692_v18  ;;  %v5492_v17 = vld [vmem:[%s7903_s26] ss:$0 sm:$0xff] }
0x2083   : > { %6092 = vmatmul.mubr.msk.bf16.vlgmr.msra.gmra.mrb[124].mxu0 %vm1131_vm3, %v4557_v19  ;;  %6109 = vmatprep.subr.bf16.mxu1 %v6692_v18 }
0x2084   : > { %6105 = vmatprep.mubr.msk.bf16.mxu0 %vm6693_vm2, %v6692_v18  ;;  %6102 = vmatpush3.bf16.msra.mxu0 %v6267_v56 }
0x2085   : > { %6103 = vmatprep.subr.bf16.mxu0 %v6692_v18 }
0x2088   : > { %6104 = vmatpush3.bf16.msra.mxu0 %v6268_v9 }
0x2154   : > { %v4600_v44 = vpop.f32.mrb[120].mxu1 }
0x2155   : > { %v6087_v45 = vpop.f32.mrb[121].mxu1 }
0x2156   : > { %v4603_v40 = vpop.f32.mrb[122].mxu1  ;;  %v4646_v46 = vpop.f32.mrb[124].mxu0 }
0x2157   : > { %v4652_v47 = vpack.c.bf16 %v4646_v46, %v4600_v44  ;;  %v6088_v48 = vpop.f32.mrb[123].mxu1  ;;  %v6093_v49 = vpop.f32.mrb[125].mxu0 }
0x2158   : > { %v4649_v57 = vpop.f32.mrb[126].mxu0 }
0x2159   : > { %v6094_v50 = vpop.f32.mrb[127].mxu0  ;;  %6098 = vmatmul.mubr.msk.bf16.vlgmr.msra.gmra.mrb[124].mxu1 %vm1131_vm3, %v4652_v47 }
0x215a   : > { %6117 = vmatprep.mubr.msk.bf16.mxu1 %vm6693_vm2, %v6692_v18  ;;  %6110 = vmatpush3.bf16.msra.mxu1 %v6269_v10  ;;  %v4918_v10 = vld [vmem:[#allocation16] sm:$0x3] (!%p5502_p13) }
0x215b   : > { %6111 = vmatprep.subr.bf16.mxu1 %v6692_v18 }
0x215e   : > { %6112 = vmatpush3.bf16.msra.mxu1 %v6270_v12  ;;  %v4948_v12 = vrot.slane (!%p5502_p13), %v4918_v10, %v917_v29 }
0x215f   : > { %6113 = vmatprep.subr.bf16.mxu1 %v6692_v18 }
0x2162   : > { %6114 = vmatpush3.bf16.msra.mxu1 %v6271_v41 }
0x2163   : > { %6115 = vmatprep.subr.bf16.mxu1 %v6692_v18 }
0x2166   : > { %6116 = vmatpush3.bf16.msra.mxu1 %v6272_v39 }
0x222c   : > { %v4695_v51 = vpop.f32.mrb[124].mxu1 }
0x222d   : > { %v4702_v11 = vadd.f32 %v4695_v51, %v7700_v35  ;;  %v6099_v52 = vpop.f32.mrb[125].mxu1  ;;  %v5501_v51 = vld [vmem:[%s7904_s8] ss:$0 sm:$0xff] }
0x222e   : > { %v4698_v55 = vpop.f32.mrb[126].mxu1 }
0x222f   : > { %v4704_v58 = vadd.f32 %v4702_v11, %v7466_v42  ;;  %v4703_v59 = vadd.f32 %v4698_v55, %v7703_v38  ;;  %v6100_v60 = vpop.f32.mrb[127].mxu1 }
0x2231   : > { %v7743_v61 = vadd.f32 %v5491_v54, %v4704_v58  ;;  %v4705_v62 = vadd.f32 %v4703_v59, %v7468_v21 }
0x2233   : > { %v7746_v63 = vadd.f32 %v5491_v54, %v4705_v62  ;;  %v4715_v0 = vsel %vm887_vm1, %v7743_v61, 0.0 }
0x2234   : > { %4716 = vadd.xlane.f32.xlu0 %v4715_v0 }
0x2235   : > { %v4718_v35 = vsel %vm887_vm1, %v7746_v63, 0.0 }
0x2236   : > { %4719 = vadd.xlane.f32.xlu1 %v4718_v35 }
0x22c1   : > { %v4717_v42 = vpop.xlane.xlu0 %4716 }
0x22c2   : > { %v4721_v1 = vmul.f32 0.03125, %v4717_v42 }
0x22c3   : > { %v4720_v38 = vpop.xlane.xlu1 %4719 }
0x22c4   : > { %v4723_v2 = vsub.f32 %v7743_v61, %v4721_v1  ;;  %v4722_v21 = vmul.f32 0.03125, %v4720_v38 }
0x22c6   : > { %v4724_v4 = vsub.f32 %v7746_v63, %v4722_v21  ;;  %v4725_v7 = vmul.f32 %v4723_v2, %v4723_v2 }
0x22c8   : > { %v4727_v43 = vsel %vm887_vm1, %v4725_v7, 0.0  ;;  %v4726_v8 = vmul.f32 %v4724_v4, %v4724_v4 }
0x22c9   : > { %4728 = vadd.xlane.f32.xlu0 %v4727_v43 }
0x22ca   : > { %v4730_v53 = vsel %vm887_vm1, %v4726_v8, 0.0 }
0x22cb   : > { %4731 = vadd.xlane.f32.xlu1 %v4730_v53 }
0x2356   : > { %v4729_v13 = vpop.xlane.xlu0 %4728 }
0x2357   : > { %v4733_v14 = vmul.f32 0.03125, %v4729_v13 }
0x2358   : > { %v4732_v15 = vpop.xlane.xlu1 %4731 }
0x2359   : > { %v4735_v16 = vadd.f32 1e-05, %v4733_v14  ;;  %v4734_v20 = vmul.f32 0.03125, %v4732_v15  ;;  %v4954_v15 = vrot.slane (!%p5502_p13), %v4918_v10, %v923_v33 }
0x235b   : > { %6345 = vrsqrt.f32 %v4735_v16  ;;  %v4736_v22 = vadd.f32 1e-05, %v4734_v20 }
0x235d   : > { %6347 = vrsqrt.f32 %v4736_v22 }
0x2365   : > { %v6346_v25 = vpop.eup %6345 }
0x2366   : > { %v4739_v5 = vmul.f32 %v6346_v25, %v4723_v2 }
0x2367   : > { %v6348_v26 = vpop.eup %6347 }
0x2368   : > { %v4745_v27 = vmul.f32 %v4744_v24, %v4739_v5  ;;  %v4740_v30 = vmul.f32 %v6348_v26, %v4724_v4 }
0x236a   : > { %v4746_v32 = vmul.f32 %v4744_v24, %v4740_v30  ;;  %v4751_v34 = vadd.f32 %v4750_v31, %v4745_v27 }
0x236c   : > { %v4752_v36 = vadd.f32 %v4750_v31, %v4746_v32 }
0x236e   : > { %v4753_v37 = vpack.c.bf16 %v4752_v36, %v4751_v34 }
0x2370   : > { %6106 = vmatmul.mubr.msk.bf16.vlgmr.msra.gmra.mrb[128].mxu0 %vm887_vm1, %v4753_v37 }
0x2443   : > { %v4814_v19 = vpop.f32.mrb[128].mxu0 }
0x2444   : > { %v4815_v44 = vadd.f32 %v5492_v17, %v4814_v19  ;;  %v6107_v45 = vpop.f32.mrb[129].mxu0 }
0x2445   : > { %v4817_v40 = vpop.f32.mrb[130].mxu0 }
0x2446   : > { %v4818_v46 = vadd.f32 %v5492_v17, %v4817_v40  ;;  %v6108_v47 = vpop.f32.mrb[131].mxu0  ;;  %v4821_v48 = vmax.f32 %v4815_v44, 0.0 }
0x2448   : > { %v4822_v49 = vmax.f32 %v4818_v46, 0.0 }
0x244a   : > { %v4823_v57 = vpack.c.bf16 %v4822_v49, %v4821_v48 }
0x244c   : > { %6118 = vmatmul.mubr.msk.bf16.vlgmr.msra.gmra.mrb[128].mxu1 %vm4856_vm5, %v4823_v57 }
0x251f   : > { %v4894_v50 = vpop.f32.mrb[128].mxu1 }
0x2520   : > { %v4901_v18 = vadd.f32 %v4894_v50, %v7743_v61  ;;  %v6119_v11 = vpop.f32.mrb[129].mxu1  ;;  %4917 = sbr.rel (%p5502_p13) target bundleno = 9826 (0x2662), region = 128 }
0x2521   : > { %v4897_v52 = vpop.f32.mrb[130].mxu1 }
0x2522   : > { %v4910_v54 = vadd.f32 %v5501_v51, %v4901_v18  ;;  %v4902_v55 = vadd.f32 %v4897_v52, %v7746_v63  ;;  %v6120_v58 = vpop.f32.mrb[131].mxu1 }
0x2524   : > { %4912 = vst.msk [vmem:[#allocation2] sm:$0xff] %vm887_vm1, %v4910_v54  ;;  %v4911_v59 = vadd.f32 %v5501_v51, %v4902_v55  ;;  %v4919_v60 = vsel (!%p5502_p13), %vm887_vm1, %v4910_v54, 0.0 }
0x2525   : > { %4920 = vadd.xlane.f32.xlu0 (!%p5502_p13), %v4919_v60 }
0x2526   : > { %4913 = vst.msk [vmem:[#allocation2 + $0x8] sm:$0xff] %vm887_vm1, %v4911_v59  ;;  %v4922_v62 = vsel (!%p5502_p13), %vm887_vm1, %v4911_v59, 0.0 }
0x2529   : > { %4923 = vadd.xlane.f32.xlu0 %v4922_v62 }
0x25b2   : > { %v4921_v61 = vpop.xlane.xlu0 %4920 }
0x25b3   : > { %v4925_v0 = vmul.f32 0.03125, %v4921_v61 }
0x25b5   : > { %v4927_v35 = vsub.f32 %v4910_v54, %v4925_v0 }
0x25b6   : > { %v4924_v42 = vpop.xlane.xlu0 %4923 }
0x25b7   : > { %v4926_v63 = vmul.f32 0.03125, %v4924_v42  ;;  %v4929_v1 = vmul.f32 %v4927_v35, %v4927_v35 }
0x25b9   : > { %v4928_v38 = vsub.f32 %v4911_v59, %v4926_v63  ;;  %v4931_v2 = vsel %vm887_vm1, %v4929_v1, 0.0 }
0x25ba   : > { %4932 = vadd.xlane.f32.xlu1 %v4931_v2 }
0x25bb   : > { %v4930_v21 = vmul.f32 %v4928_v38, %v4928_v38 }
0x25bd   : > { %v4934_v4 = vsel %vm887_vm1, %v4930_v21, 0.0 }
0x25be   : > { %4935 = vadd.xlane.f32.xlu1 %v4934_v4 }
0x2647   : > { %v4933_v7 = vpop.xlane.xlu1 %4932 }
0x2648   : > { %v4937_v43 = vmul.f32 0.03125, %v4933_v7 }
0x264a   : > { %v4939_v8 = vadd.f32 1e-05, %v4937_v43 }
0x264b   : > { %v4936_v53 = vpop.xlane.xlu1 %4935 }
0x264c   : > { %6353 = vrsqrt.f32 %v4939_v8  ;;  %v4938_v56 = vmul.f32 0.03125, %v4936_v53 }
0x264e   : > { %v4940_v9 = vadd.f32 1e-05, %v4938_v56 }
0x2650   : > { %6355 = vrsqrt.f32 %v4940_v9 }
0x2656   : > { %v6354_v13 = vpop.eup %6353 }
0x2657   : > { %v4943_v14 = vmul.f32 %v6354_v13, %v4927_v35 }
0x2659   : > { %v4949_v16 = vmul.f32 %v4948_v12, %v4943_v14 }
0x265a   : > { %v6356_v20 = vpop.eup %6355 }
0x265b   : > { %v4955_v22 = vadd.f32 %v4954_v15, %v4949_v16  ;;  %v4944_v3 = vmul.f32 %v6356_v20, %v4928_v38 }
0x265d   : > { %4957 = vst.msk [vmem:[%s7905_s9] sm:$0xff] %vm887_vm1, %v4955_v22  ;;  %v4950_v23 = vmul.f32 %v4948_v12, %v4944_v3 }
0x265f   : > { %v4956_v24 = vadd.f32 %v4954_v15, %v4950_v23 }
0x2661   : > { %4958 = vst.msk [vmem:[%s7905_s9 + $0x8] sm:$0xff] %vm887_vm1, %v4956_v24 }
0x2662 PF: > { %s7906_s24 = sld [smem:[#allocation24_spill]]  ;;  %s7907_s7 = sld [smem:[#allocation23_spill]] }
0x2663   : > { %s7908_s23 = sld [smem:[#allocation25_spill]]  ;;  %s7909_s21 = smov %s6669_s22 }
0x2668   : > { %p36_p5 = scmp.ge.s32.totalorder %s7906_s24, 4   ;;  %s7910_s22 = smov %s7907_s7 }
0x266a   :  { %38 = sbr.rel (!%p36_p5) target bundleno = 26 (0x1a), region = 277 }
0x2671   :  { %4970 = vsyncpa [#allocation4], 1 }
0x2672   :  { %4972 = vsyncpa [#allocation4 + $0x1], 1 }
0x2673   :  { %4973 = vsyncpa [#allocation6], 1 }
0x2674   :  { %4975 = vsyncpa [#allocation6 + $0x1], 1 }
0x2675   :  { %4976 = vsyncpa [#allocation9], 1 }
0x2676   :  { %4978 = vsyncpa [#allocation9 + $0x1], 1 }
0x2677   :  { %4979 = vsyncpa [#allocation12], 1 }
0x2678   :  { %4981 = vsyncpa [#allocation12 + $0x1], 1 }
0x2679   :  { %4982 = vsyncpa [#allocation15], 1 }
0x267a   :  { %4984 = vsyncpa [#allocation15 + $0x1], 1 }

// kernel: transformer_forward.7
= control target key start
LH: loop header
LB: loop body
LE: loop exit
PB: predicated region body
PF: predicated region fallthrough
CT: control target
= control target key end

     0   :  { %s6065_s20 = smov 0   ;;  %s7411_s0 = inlined_call_operand.vmem [shape: f32[2,1,6144], index: 0, kind: input, shape index: {}]   ;;  %s7412_s1 = inlined_call_operand.vmem [shape: bf16[6144,64], index: 1, kind: input, shape index: {}]   ;;  %s7413_s2 = inlined_call_operand.vmem [shape: f32[1,64], index: 2, kind: input, shape index: {}]   ;;  %s7414_s3 = inlined_call_operand.vmem [shape: bf16[64,1], index: 3, kind: input, shape index: {}]   ;;  %s7415_s4 = inlined_call_operand.<no memory space> [shape: f32[1,1], index: 4, kind: input, shape index: {}]   ;;  %s7416_s5 = inlined_call_operand.vmem [shape: f32[2,1,1], index: 5, kind: output, shape index: {}]  }
   0x1   :  { %v10_v0 = vstv %s7415_s4 }
   0x2   :  { %11 = vst [vmem:[#allocation2] sm:$0x1] %v10_v0 }
   0x3 LB: > { %s4682_s21 = sadd.s32 4294967295, %s6028_s20   ;;  %p4686_p0 = scmp.ge.s32.totalorder %s6028_s20, 1  ;;  %s6028_s20 = sphi %s6065_s20, %s17_s20  }
   0x4   : > { %p188_p1 = scmp.lt.s32.totalorder %s6028_s20, 3 }
   0x6   : > { %p189_p2 = pnand %p4686_p0, %p188_p1 }
   0x7   : > { %v5634_v1 = vld [vmem:[%s7412_s1 + $0x40] sm:$0xff] (!%p189_p2)   ;;  %v5638_v5 = vld [vmem:[%s7412_s1 + $0x48] sm:$0xff] (!%p189_p2)   ;;  %v5642_v9 = vld [vmem:[%s7412_s1 + $0x50] sm:$0xff] (!%p189_p2)   ;;  %p213_p3 = scmp.lt.s32.totalorder (!%p189_p2), %s4682_s21, 1  ;;  %v233_v19 = vlaneseq (!%p189_p2)  ;;  %vm6031_vm0 = vmmov (!%p189_p2), 0   ;;  %vm4589_vm1 = vcmask (!%p189_p2), 523264  }
   0x8   : > { %192 = sbr.rel (%p189_p2) target bundleno = 831 (0x33f), region = 40  ;;  %v5635_v2 = vld [vmem:[%s7412_s1 + $0xc0] sm:$0xff] (!%p189_p2)   ;;  %5078 = vmatprep.subr.bf16.mxu0 (!%p189_p2), %v5634_v1  ;;  %v5639_v6 = vld [vmem:[%s7412_s1 + $0xc8] sm:$0xff] (!%p189_p2)   ;;  %v5643_v10 = vld [vmem:[%s7412_s1 + $0xd0] sm:$0xff] (!%p189_p2)   ;;  %vm4633_vm2 = vcmask (!%p189_p2), 0  }
   0x9   : > { %v5636_v3 = vld [vmem:[%s7412_s1] sm:$0xff] (!%p189_p2)   ;;  %5100 = vmatprep.subr.bf16.mxu1 (!%p189_p2), %v5635_v2  ;;  %v5640_v7 = vld [vmem:[%s7412_s1 + $0x8] sm:$0xff] (!%p189_p2)   ;;  %v5644_v11 = vld [vmem:[%s7412_s1 + $0x10] sm:$0xff] (!%p189_p2)   ;;  %v6145_v24 = vshrl.u32 (!%p189_p2), %v233_v19, 7 }
   0xa   : > { %v5637_v4 = vld [vmem:[%s7412_s1 + $0x80] sm:$0xff] (!%p189_p2)   ;;  %5079 = vmatpush3.bf16.msra.mxu0 (!%p189_p2), %v5636_v3  ;;  %v5641_v8 = vld [vmem:[%s7412_s1 + $0x88] sm:$0xff] (!%p189_p2)   ;;  %v5645_v12 = vld [vmem:[%s7412_s1 + $0x90] sm:$0xff] (!%p189_p2)  }
   0xb   : > { %5101 = vmatpush3.bf16.msra.mxu1 (!%p189_p2), %v5637_v4  ;;  %5080 = vmatprep.subr.bf16.mxu0 (!%p189_p2), %v5638_v5  ;;  %v5646_v13 = vld [vmem:[%s7412_s1 + $0x58] sm:$0xff] (!%p189_p2)   ;;  %v5650_v17 = vld [vmem:[%s7412_s1 + $0x60] sm:$0xff] (!%p189_p2)   ;;  %v5654_v22 = vld [vmem:[%s7412_s1 + $0x68] sm:$0xff] (!%p189_p2)   ;;  %v6161_v29 = vsub.s32 (!%p189_p2), 1, %v6145_v24  ;;  %v6167_v31 = vsub.s32 (!%p189_p2), 3, %v6145_v24  ;;  %v6173_v33 = vsub.s32 (!%p189_p2), 0, %v6145_v24 }
   0xc   : > { %5102 = vmatprep.subr.bf16.mxu1 (!%p189_p2), %v5639_v6  ;;  %v5647_v14 = vld [vmem:[%s7412_s1 + $0xd8] sm:$0xff] (!%p189_p2)   ;;  %v5651_v18 = vld [vmem:[%s7412_s1 + $0xe0] sm:$0xff] (!%p189_p2)   ;;  %v5655_v23 = vld [vmem:[%s7412_s1 + $0xe8] sm:$0xff] (!%p189_p2)   ;;  %v6179_v35 = vsub.s32 (!%p189_p2), 2, %v6145_v24  ;;  %v6190_v37 = vsub.s32 (!%p189_p2), 5, %v6145_v24  ;;  %v6196_v39 = vsub.s32 (!%p189_p2), 7, %v6145_v24 }
   0xd   : > { %v5648_v15 = vld [vmem:[%s7412_s1 + $0x18] sm:$0xff] (!%p189_p2)   ;;  %v5652_v20 = vld [vmem:[%s7412_s1 + $0x20] sm:$0xff] (!%p189_p2)   ;;  %v5656_v25 = vld [vmem:[%s7412_s1 + $0x28] sm:$0xff] (!%p189_p2)  }
   0xe   : > { %5081 = vmatpush3.bf16.msra.mxu0 (!%p189_p2), %v5640_v7  ;;  %v5649_v16 = vld [vmem:[%s7412_s1 + $0x98] sm:$0xff] (!%p189_p2)   ;;  %v5653_v21 = vld [vmem:[%s7412_s1 + $0xa0] sm:$0xff] (!%p189_p2)   ;;  %v5657_v26 = vld [vmem:[%s7412_s1 + $0xa8] sm:$0xff] (!%p189_p2)  }
   0xf   : > { %5103 = vmatpush3.bf16.msra.mxu1 %v5641_v8  ;;  %5082 = vmatprep.subr.bf16.mxu0 %v5642_v9  ;;  %s7418_s21 = smov (!%p213_p3, %s4682_s21), 1  ;;  %v5658_v27 = vld [vmem:[%s7412_s1 + $0x70] sm:$0xff]   ;;  %v5662_v34 = vld [vmem:[%s7412_s1 + $0x78] sm:$0xff]   ;;  %v5666_v46 = vld [vmem:[%s7412_s1 + $0x140] sm:$0xff]  }
  0x10   : > { %5104 = vmatprep.subr.bf16.mxu1 %v5643_v10  ;;  %s5623_s4 = smul.u32 48, %s7418_s21  ;;  %v5659_v28 = vld [vmem:[%s7412_s1 + $0xf0] sm:$0xff]   ;;  %v5663_v36 = vld [vmem:[%s7412_s1 + $0xf8] sm:$0xff]   ;;  %v5667_v47 = vld [vmem:[%s7412_s1 + $0x1c0] sm:$0xff]  }
  0x11   : > { %v5660_v30 = vld [vmem:[%s7412_s1 + $0x30] sm:$0xff]   ;;  %v5664_v38 = vld [vmem:[%s7412_s1 + $0x38] sm:$0xff]   ;;  %v5668_v54 = vld [vmem:[%s7412_s1 + $0x100] sm:$0xff]  }
  0x12   : > { %5083 = vmatpush3.bf16.msra.mxu0 %v5644_v11  ;;  %v5661_v32 = vld [vmem:[%s7412_s1 + $0xb0] sm:$0xff]   ;;  %s6187_s11 = scalar_lea.vmem %s7411_s0, %s5623_s4  ;;  %v5665_v40 = vld [vmem:[%s7412_s1 + $0xb8] sm:$0xff]   ;;  %v5669_v55 = vld [vmem:[%s7412_s1 + $0x180] sm:$0xff]  }
  0x13   : > { %5105 = vmatpush3.bf16.msra.mxu1 %v5645_v12  ;;  %5084 = vmatprep.subr.bf16.mxu0 %v5646_v13  ;;  %v6202_v41 = vld [vmem:[%s6187_s11] sm:$0xff]  ;;  %v5670_v56 = vld [vmem:[%s7412_s1 + $0x148] sm:$0xff]   ;;  %v5674_v62 = vld [vmem:[%s7412_s1 + $0x150] sm:$0xff]  }
  0x14   : > { %5106 = vmatprep.subr.bf16.mxu1 %v5647_v14  ;;  %v240_v42 = vrot.slane %v6202_v41, %v6161_v29  ;;  %v248_v43 = vrot.slane %v6202_v41, %v6167_v31  ;;  %v236_v44 = vrot.slane %v6202_v41, %v6173_v33  ;;  %v244_v45 = vrot.slane %v6202_v41, %v6179_v35  ;;  %v5671_v59 = vld [vmem:[%s7412_s1 + $0x1c8] sm:$0xff]   ;;  %v5675_v63 = vld [vmem:[%s7412_s1 + $0x1d0] sm:$0xff]   ;;  %v5678_v2 = vld [vmem:[%s7412_s1 + $0x158] sm:$0xff]  }
  0x15   : > { %v256_v48 = vrot.slane %v6202_v41, %v6190_v37  ;;  %v264_v49 = vrot.slane %v6202_v41, %v6196_v39  ;;  %v5672_v60 = vld [vmem:[%s7412_s1 + $0x108] sm:$0xff]   ;;  %v5676_v0 = vld [vmem:[%s7412_s1 + $0x110] sm:$0xff]   ;;  %v5679_v3 = vld [vmem:[%s7412_s1 + $0x1d8] sm:$0xff]  }
  0x16   : > { %5085 = vmatpush3.bf16.msra.mxu0 %v5648_v15  ;;  %v474_v50 = vpack.c.bf16 %v240_v42, %v240_v42  ;;  %v476_v51 = vpack.c.bf16 %v248_v43, %v248_v43  ;;  %v473_v52 = vpack.c.bf16 %v236_v44, %v236_v44  ;;  %v475_v53 = vpack.c.bf16 %v244_v45, %v244_v45  ;;  %v5673_v61 = vld [vmem:[%s7412_s1 + $0x188] sm:$0xff]   ;;  %v5677_v1 = vld [vmem:[%s7412_s1 + $0x190] sm:$0xff]   ;;  %v5680_v4 = vld [vmem:[%s7412_s1 + $0x118] sm:$0xff]  }
  0x17   : > { %5107 = vmatpush3.bf16.msra.mxu1 %v5649_v16  ;;  %5086 = vmatprep.subr.bf16.mxu0 %v5650_v17  ;;  %v478_v57 = vpack.c.bf16 %v256_v48, %v256_v48  ;;  %v480_v58 = vpack.c.bf16 %v264_v49, %v264_v49  ;;  %v5681_v5 = vld [vmem:[%s7412_s1 + $0x198] sm:$0xff]   ;;  %v5682_v6 = vld [vmem:[%s7412_s1 + $0x160] sm:$0xff]   ;;  %v5686_v10 = vld [vmem:[%s7412_s1 + $0x168] sm:$0xff]   ;;  %v6292_v15 = vsub.s32 4, %v6145_v24  ;;  %v6298_v17 = vsub.s32 6, %v6145_v24 }
  0x18   : > { %5108 = vmatprep.subr.bf16.mxu1 %v5651_v18  ;;  %3626 = vmatprep.mubr.bf16.mxu0 %v474_v50  ;;  %v5683_v7 = vld [vmem:[%s7412_s1 + $0x1e0] sm:$0xff]   ;;  %v5687_v11 = vld [vmem:[%s7412_s1 + $0x1e8] sm:$0xff]   ;;  %v5690_v14 = vld [vmem:[%s7412_s1 + $0x170] sm:$0xff]  }
  0x19   : > { %3666 = vmatprep.mubr.bf16.mxu1 %v476_v51  ;;  %v5684_v8 = vld [vmem:[%s7412_s1 + $0x120] sm:$0xff]   ;;  %v5688_v12 = vld [vmem:[%s7412_s1 + $0x128] sm:$0xff]   ;;  %v5691_v16 = vld [vmem:[%s7412_s1 + $0x1f0] sm:$0xff]  }
  0x1a   : > { %5087 = vmatpush3.bf16.msra.mxu0 %v5652_v20  ;;  %v5685_v9 = vld [vmem:[%s7412_s1 + $0x1a0] sm:$0xff]   ;;  %v5689_v13 = vld [vmem:[%s7412_s1 + $0x1a8] sm:$0xff]   ;;  %v5692_v18 = vld [vmem:[%s7412_s1 + $0x130] sm:$0xff]  }
  0x1b   : > { %5109 = vmatpush3.bf16.msra.mxu1 %v5653_v21  ;;  %5088 = vmatprep.subr.bf16.mxu0 %v5654_v22  ;;  %v5693_v19 = vld [vmem:[%s7412_s1 + $0x1b0] sm:$0xff]   ;;  %v5694_v20 = vld [vmem:[%s7412_s1 + $0x178] sm:$0xff]   ;;  %v252_v22 = vrot.slane %v6202_v41, %v6292_v15  ;;  %v5714_v50 = vld [vmem:[%s7412_s1 + $0x260] sm:$0xff]  }
  0x1c   : > { %5110 = vmatprep.subr.bf16.mxu1 %v5655_v23  ;;  %v5695_v21 = vld [vmem:[%s7412_s1 + $0x1f8] sm:$0xff]   ;;  %v260_v23 = vrot.slane %v6202_v41, %v6298_v17  ;;  %v5705_v41 = vld [vmem:[%s7412_s1 + $0x288] sm:$0xff]   ;;  %v5706_v42 = vld [vmem:[%s7412_s1 + $0x250] sm:$0xff]  }
  0x1d   : > { %v5696_v24 = vld [vmem:[%s7412_s1 + $0x138] sm:$0xff]   ;;  %v5707_v43 = vld [vmem:[%s7412_s1 + $0x2d0] sm:$0xff]   ;;  %v5715_v51 = vld [vmem:[%s7412_s1 + $0x2e0] sm:$0xff]  }
  0x1e   : > { %5089 = vmatpush3.bf16.msra.mxu0 %v5656_v25  ;;  %v5697_v25 = vld [vmem:[%s7412_s1 + $0x1b8] sm:$0xff]   ;;  %v5708_v44 = vld [vmem:[%s7412_s1 + $0x210] sm:$0xff]  }
  0x1f   : > { %5111 = vmatpush3.bf16.msra.mxu1 %v5657_v26  ;;  %5090 = vmatprep.subr.bf16.mxu0 %v5658_v27  ;;  %v5698_v26 = vld [vmem:[%s7412_s1 + $0x240] sm:$0xff]   ;;  %v477_v27 = vpack.c.bf16 %v252_v22, %v252_v22  ;;  %v5709_v45 = vld [vmem:[%s7412_s1 + $0x290] sm:$0xff]   ;;  %v5712_v48 = vld [vmem:[%s7412_s1 + $0x218] sm:$0xff]  }
  0x20   : > { %5112 = vmatprep.subr.bf16.mxu1 %v5659_v28  ;;  %v479_v28 = vpack.c.bf16 %v260_v23, %v260_v23  ;;  %v5713_v49 = vld [vmem:[%s7412_s1 + $0x298] sm:$0xff]   ;;  %v5735_v22 = vld [vmem:[%s7412_s1 + $0x3c8] sm:$0xff]  }
  0x21   : > { %v5736_v23 = vld [vmem:[%s7412_s1 + $0x308] sm:$0xff]  }
  0x22   : > { %5091 = vmatpush3.bf16.msra.mxu0 %v5660_v30  ;;  %v5699_v30 = vld [vmem:[%s7412_s1 + $0x2c0] sm:$0xff]  }
  0x23   : > { %5113 = vmatpush3.bf16.msra.mxu1 %v5661_v32  ;;  %5092 = vmatprep.subr.bf16.mxu0 %v5662_v34  ;;  %v5700_v32 = vld [vmem:[%s7412_s1 + $0x200] sm:$0xff]  }
  0x24   : > { %5114 = vmatprep.subr.bf16.mxu1 %v5663_v36  ;;  %v5701_v34 = vld [vmem:[%s7412_s1 + $0x280] sm:$0xff]   ;;  %v5702_v36 = vld [vmem:[%s7412_s1 + $0x248] sm:$0xff]  }
  0x26   : > { %5093 = vmatpush3.bf16.msra.mxu0 %v5664_v38  ;;  %v5703_v38 = vld [vmem:[%s7412_s1 + $0x2c8] sm:$0xff]  }
  0x27   : > { %5115 = vmatpush3.bf16.msra.mxu1 %v5665_v40  ;;  %5122 = vmatprep.subr.bf16.mxu0 %v5666_v46  ;;  %v5704_v40 = vld [vmem:[%s7412_s1 + $0x208] sm:$0xff]   ;;  %v5710_v46 = vld [vmem:[%s7412_s1 + $0x258] sm:$0xff]  }
  0x28   : > { %5144 = vmatprep.subr.bf16.mxu1 %v5667_v47  ;;  %v5711_v47 = vld [vmem:[%s7412_s1 + $0x2d8] sm:$0xff]  }
  0x29   : > { %3627 = vmatmul.mubr.bf16.vlgmr.msra.gmra.mrb[0].mxu0 %v473_v52  ;;  %v5716_v52 = vld [vmem:[%s7412_s1 + $0x220] sm:$0xff]  }
  0x2a   : > { %3667 = vmatmul.mubr.bf16.vlgmr.msra.gmra.mrb[0].mxu1 %v475_v53  ;;  %5123 = vmatpush3.bf16.msra.mxu0 %v5668_v54  ;;  %v5717_v53 = vld [vmem:[%s7412_s1 + $0x2a0] sm:$0xff]   ;;  %v5718_v54 = vld [vmem:[%s7412_s1 + $0x268] sm:$0xff]  }
  0x2b   : > { %5145 = vmatpush3.bf16.msra.mxu1 %v5669_v55  ;;  %5124 = vmatprep.subr.bf16.mxu0 %v5670_v56  ;;  %v5719_v55 = vld [vmem:[%s7412_s1 + $0x2e8] sm:$0xff]  }
  0x2c   : > { %5146 = vmatprep.subr.bf16.mxu1 %v5671_v59  ;;  %3706 = vmatprep.mubr.bf16.mxu0 %v478_v57  ;;  %v5720_v56 = vld [vmem:[%s7412_s1 + $0x228] sm:$0xff]   ;;  %v5723_v59 = vld [vmem:[%s7412_s1 + $0x2f0] sm:$0xff]  }
  0x2d   : > { %3746 = vmatprep.mubr.bf16.mxu1 %v480_v58  ;;  %v5721_v57 = vld [vmem:[%s7412_s1 + $0x2a8] sm:$0xff]   ;;  %v5722_v58 = vld [vmem:[%s7412_s1 + $0x270] sm:$0xff]  }
  0x2e   : > { %5125 = vmatpush3.bf16.msra.mxu0 %v5672_v60  ;;  %v5724_v60 = vld [vmem:[%s7412_s1 + $0x230] sm:$0xff]  }
  0x2f   : > { %5147 = vmatpush3.bf16.msra.mxu1 %v5673_v61  ;;  %5126 = vmatprep.subr.bf16.mxu0 %v5674_v62  ;;  %v5725_v61 = vld [vmem:[%s7412_s1 + $0x2b0] sm:$0xff]   ;;  %v5726_v62 = vld [vmem:[%s7412_s1 + $0x278] sm:$0xff]  }
  0x30   : > { %5148 = vmatprep.subr.bf16.mxu1 %v5675_v63  ;;  %v5727_v63 = vld [vmem:[%s7412_s1 + $0x2f8] sm:$0xff]  }
  0x32   : > { %5127 = vmatpush3.bf16.msra.mxu0 %v5676_v0  ;;  %v5728_v0 = vld [vmem:[%s7412_s1 + $0x238] sm:$0xff]  }
  0x33   : > { %5149 = vmatpush3.bf16.msra.mxu1 %v5677_v1  ;;  %5128 = vmatprep.subr.bf16.mxu0 %v5678_v2  ;;  %v5729_v1 = vld [vmem:[%s7412_s1 + $0x2b8] sm:$0xff]   ;;  %v6419_v2 = vld [vmem:[%s6187_s11 + $0x8] sm:$0xff] }
  0x34   : > { %5150 = vmatprep.subr.bf16.mxu1 %v5679_v3  ;;  %v272_v3 = vrot.slane %v6419_v2, %v6161_v29 }
  0x36   : > { %5129 = vmatpush3.bf16.msra.mxu0 %v5680_v4  ;;  %v280_v4 = vrot.slane %v6419_v2, %v6167_v31 }
  0x37   : > { %5151 = vmatpush3.bf16.msra.mxu1 %v5681_v5  ;;  %5130 = vmatprep.subr.bf16.mxu0 %v5682_v6  ;;  %v268_v5 = vrot.slane %v6419_v2, %v6173_v33  ;;  %v276_v6 = vrot.slane %v6419_v2, %v6179_v35 }
  0x38   : > { %5152 = vmatprep.subr.bf16.mxu1 %v5683_v7  ;;  %v5730_v7 = vld [vmem:[%s7412_s1 + $0x340] sm:$0xff]  }
  0x3a   : > { %5131 = vmatpush3.bf16.msra.mxu0 %v5684_v8  ;;  %v5731_v8 = vld [vmem:[%s7412_s1 + $0x3c0] sm:$0xff]  }
  0x3b   : > { %5153 = vmatpush3.bf16.msra.mxu1 %v5685_v9  ;;  %5132 = vmatprep.subr.bf16.mxu0 %v5686_v10  ;;  %v288_v9 = vrot.slane %v6419_v2, %v6190_v37  ;;  %v296_v10 = vrot.slane %v6419_v2, %v6196_v39 }
  0x3c   : > { %5154 = vmatprep.subr.bf16.mxu1 %v5687_v11  ;;  %v482_v11 = vpack.c.bf16 %v272_v3, %v272_v3  ;;  %v5770_v3 = vld [vmem:[%s7412_s1 + $0x450] sm:$0xff]  }
  0x3e   : > { %5133 = vmatpush3.bf16.msra.mxu0 %v5688_v12  ;;  %v484_v12 = vpack.c.bf16 %v280_v4, %v280_v4  ;;  %v5771_v4 = vld [vmem:[%s7412_s1 + $0x4d0] sm:$0xff]  }
  0x3f   : > { %5155 = vmatpush3.bf16.msra.mxu1 %v5689_v13  ;;  %5134 = vmatprep.subr.bf16.mxu0 %v5690_v14  ;;  %v481_v13 = vpack.c.bf16 %v268_v5, %v268_v5  ;;  %v5732_v14 = vld [vmem:[%s7412_s1 + $0x300] sm:$0xff]   ;;  %v5772_v5 = vld [vmem:[%s7412_s1 + $0x410] sm:$0xff]  }
  0x40   : > { %5156 = vmatprep.subr.bf16.mxu1 %v5691_v16  ;;  %v483_v16 = vpack.c.bf16 %v276_v6, %v276_v6  ;;  %v5773_v6 = vld [vmem:[%s7412_s1 + $0x490] sm:$0xff]  }
  0x42   : > { %5135 = vmatpush3.bf16.msra.mxu0 %v5692_v18  ;;  %v5733_v18 = vld [vmem:[%s7412_s1 + $0x380] sm:$0xff]  }
  0x43   : > { %5157 = vmatpush3.bf16.msra.mxu1 %v5693_v19  ;;  %5136 = vmatprep.subr.bf16.mxu0 %v5694_v20  ;;  %v5734_v19 = vld [vmem:[%s7412_s1 + $0x348] sm:$0xff]   ;;  %v486_v20 = vpack.c.bf16 %v288_v9, %v288_v9  ;;  %v5776_v9 = vld [vmem:[%s7412_s1 + $0x418] sm:$0xff]  }
  0x44   : > { %5158 = vmatprep.subr.bf16.mxu1 %v5695_v21  ;;  %v488_v21 = vpack.c.bf16 %v296_v10, %v296_v10  ;;  %v5777_v10 = vld [vmem:[%s7412_s1 + $0x498] sm:$0xff]  }
  0x46   : > { %5137 = vmatpush3.bf16.msra.mxu0 %v5696_v24  ;;  %v5737_v24 = vld [vmem:[%s7412_s1 + $0x388] sm:$0xff]  }
  0x47   : > { %5159 = vmatpush3.bf16.msra.mxu1 %v5697_v25  ;;  %5166 = vmatprep.subr.bf16.mxu0 %v5698_v26  ;;  %v5738_v25 = vld [vmem:[%s7412_s1 + $0x350] sm:$0xff]  }
  0x48   : > { %5188 = vmatprep.subr.bf16.mxu1 %v5699_v30  ;;  %v5739_v26 = vld [vmem:[%s7412_s1 + $0x3d0] sm:$0xff]   ;;  %v5742_v30 = vld [vmem:[%s7412_s1 + $0x358] sm:$0xff]  }
  0x49   : > { %3707 = vmatmul.mubr.bf16.vlgmr.msra.gmra.mrb[4].mxu0 %v477_v27  ;;  %v5740_v27 = vld [vmem:[%s7412_s1 + $0x310] sm:$0xff]  }
  0x4a   : > { %3747 = vmatmul.mubr.bf16.vlgmr.msra.gmra.mrb[4].mxu1 %v479_v28  ;;  %5167 = vmatpush3.bf16.msra.mxu0 %v5700_v32  ;;  %v5741_v28 = vld [vmem:[%s7412_s1 + $0x390] sm:$0xff]   ;;  %v5743_v32 = vld [vmem:[%s7412_s1 + $0x3d8] sm:$0xff]  }
  0x4b   : > { %5189 = vmatpush3.bf16.msra.mxu1 %v5701_v34  ;;  %5168 = vmatprep.subr.bf16.mxu0 %v5702_v36  ;;  %v5744_v34 = vld [vmem:[%s7412_s1 + $0x318] sm:$0xff]  }
  0x4c   : > { %5190 = vmatprep.subr.bf16.mxu1 %v5703_v38  ;;  %3786 = vmatprep.mubr.bf16.mxu0 %v482_v11  ;;  %v5745_v36 = vld [vmem:[%s7412_s1 + $0x398] sm:$0xff]   ;;  %v5746_v38 = vld [vmem:[%s7412_s1 + $0x360] sm:$0xff]  }
  0x4d   : > { %3826 = vmatprep.mubr.bf16.mxu1 %v484_v12  ;;  %v5778_v11 = vld [vmem:[%s7412_s1 + $0x460] sm:$0xff]  }
  0x4e   : > { %5169 = vmatpush3.bf16.msra.mxu0 %v5704_v40  ;;  %v5747_v40 = vld [vmem:[%s7412_s1 + $0x3e0] sm:$0xff]  }
  0x4f   : > { %5191 = vmatpush3.bf16.msra.mxu1 %v5705_v41  ;;  %5170 = vmatprep.subr.bf16.mxu0 %v5706_v42  ;;  %v5748_v41 = vld [vmem:[%s7412_s1 + $0x320] sm:$0xff]  }
  0x50   : > { %5192 = vmatprep.subr.bf16.mxu1 %v5707_v43  ;;  %v5749_v42 = vld [vmem:[%s7412_s1 + $0x3a0] sm:$0xff]   ;;  %v5750_v43 = vld [vmem:[%s7412_s1 + $0x368] sm:$0xff]  }
  0x51   : > { %v5779_v12 = vld [vmem:[%s7412_s1 + $0x4e0] sm:$0xff]  }
  0x52   : > { %5171 = vmatpush3.bf16.msra.mxu0 %v5708_v44  ;;  %v5751_v44 = vld [vmem:[%s7412_s1 + $0x3e8] sm:$0xff]  }
  0x53   : > { %5193 = vmatpush3.bf16.msra.mxu1 %v5709_v45  ;;  %5172 = vmatprep.subr.bf16.mxu0 %v5710_v46  ;;  %v5752_v45 = vld [vmem:[%s7412_s1 + $0x328] sm:$0xff]  }
  0x54   : > { %5194 = vmatprep.subr.bf16.mxu1 %v5711_v47  ;;  %v5753_v46 = vld [vmem:[%s7412_s1 + $0x3a8] sm:$0xff]   ;;  %v5754_v47 = vld [vmem:[%s7412_s1 + $0x370] sm:$0xff]  }
  0x56   : > { %5173 = vmatpush3.bf16.msra.mxu0 %v5712_v48  ;;  %v5755_v48 = vld [vmem:[%s7412_s1 + $0x3f0] sm:$0xff]  }
  0x57   : > { %5195 = vmatpush3.bf16.msra.mxu1 %v5713_v49  ;;  %5174 = vmatprep.subr.bf16.mxu0 %v5714_v50  ;;  %v5756_v49 = vld [vmem:[%s7412_s1 + $0x330] sm:$0xff]  }
  0x58   : > { %5196 = vmatprep.subr.bf16.mxu1 %v5715_v51  ;;  %v5757_v50 = vld [vmem:[%s7412_s1 + $0x3b0] sm:$0xff]   ;;  %v5758_v51 = vld [vmem:[%s7412_s1 + $0x378] sm:$0xff]  }
  0x5a   : > { %5175 = vmatpush3.bf16.msra.mxu0 %v5716_v52  ;;  %v5759_v52 = vld [vmem:[%s7412_s1 + $0x3f8] sm:$0xff]  }
  0x5b   : > { %5197 = vmatpush3.bf16.msra.mxu1 %v5717_v53  ;;  %5176 = vmatprep.subr.bf16.mxu0 %v5718_v54  ;;  %v284_v53 = vrot.slane %v6419_v2, %v6292_v15  ;;  %v292_v54 = vrot.slane %v6419_v2, %v6298_v17  ;;  %v5769_v2 = vld [vmem:[%s7412_s1 + $0x488] sm:$0xff]  }
  0x5c   : > { %5198 = vmatprep.subr.bf16.mxu1 %v5719_v55  ;;  %v5760_v55 = vld [vmem:[%s7412_s1 + $0x338] sm:$0xff]  }
  0x5e   : > { %5177 = vmatpush3.bf16.msra.mxu0 %v5720_v56  ;;  %v5761_v56 = vld [vmem:[%s7412_s1 + $0x3b8] sm:$0xff]  }
  0x5f   : > { %5199 = vmatpush3.bf16.msra.mxu1 %v5721_v57  ;;  %5178 = vmatprep.subr.bf16.mxu0 %v5722_v58  ;;  %v5762_v57 = vld [vmem:[%s7412_s1 + $0x440] sm:$0xff]   ;;  %v485_v58 = vpack.c.bf16 %v284_v53, %v284_v53  ;;  %v5799_v53 = vld [vmem:[%s7412_s1 + $0x5c8] sm:$0xff]  }
  0x60   : > { %5200 = vmatprep.subr.bf16.mxu1 %v5723_v59  ;;  %v487_v59 = vpack.c.bf16 %v292_v54, %v292_v54  ;;  %v5800_v54 = vld [vmem:[%s7412_s1 + $0x508] sm:$0xff]  }
  0x62   : > { %5179 = vmatpush3.bf16.msra.mxu0 %v5724_v60  ;;  %v5763_v60 = vld [vmem:[%s7412_s1 + $0x4c0] sm:$0xff]  }
  0x63   : > { %5201 = vmatpush3.bf16.msra.mxu1 %v5725_v61  ;;  %5180 = vmatprep.subr.bf16.mxu0 %v5726_v62  ;;  %v5764_v61 = vld [vmem:[%s7412_s1 + $0x400] sm:$0xff]  }
  0x64   : > { %5202 = vmatprep.subr.bf16.mxu1 %v5727_v63  ;;  %v5765_v62 = vld [vmem:[%s7412_s1 + $0x480] sm:$0xff]   ;;  %v5766_v63 = vld [vmem:[%s7412_s1 + $0x448] sm:$0xff]  }
  0x66   : > { %5181 = vmatpush3.bf16.msra.mxu0 %v5728_v0  ;;  %v5767_v0 = vld [vmem:[%s7412_s1 + $0x4c8] sm:$0xff]  }
  0x67   : > { %5203 = vmatpush3.bf16.msra.mxu1 %v5729_v1  ;;  %5210 = vmatprep.subr.bf16.mxu0 %v5730_v7  ;;  %v5768_v1 = vld [vmem:[%s7412_s1 + $0x408] sm:$0xff]   ;;  %v5774_v7 = vld [vmem:[%s7412_s1 + $0x458] sm:$0xff]  }
  0x68   : > { %5232 = vmatprep.subr.bf16.mxu1 %v5731_v8  ;;  %v5775_v8 = vld [vmem:[%s7412_s1 + $0x4d8] sm:$0xff]  }
  0x69   : > { %3787 = vmatmul.mubr.bf16.vlgmr.msra.gmra.mrb[8].mxu0 %v481_v13  ;;  %v5780_v13 = vld [vmem:[%s7412_s1 + $0x420] sm:$0xff]  }
  0x6a   : > { %3827 = vmatmul.mubr.bf16.vlgmr.msra.gmra.mrb[8].mxu1 %v483_v16  ;;  %5211 = vmatpush3.bf16.msra.mxu0 %v5732_v14  ;;  %v5781_v14 = vld [vmem:[%s7412_s1 + $0x4a0] sm:$0xff]   ;;  %v5782_v16 = vld [vmem:[%s7412_s1 + $0x468] sm:$0xff]  }
  0x6b   : > { %5233 = vmatpush3.bf16.msra.mxu1 %v5733_v18  ;;  %5212 = vmatprep.subr.bf16.mxu0 %v5734_v19  ;;  %v5783_v18 = vld [vmem:[%s7412_s1 + $0x4e8] sm:$0xff]  }
  0x6c   : > { %5234 = vmatprep.subr.bf16.mxu1 %v5735_v22  ;;  %3866 = vmatprep.mubr.bf16.mxu0 %v486_v20  ;;  %v5784_v19 = vld [vmem:[%s7412_s1 + $0x428] sm:$0xff]   ;;  %v5787_v22 = vld [vmem:[%s7412_s1 + $0x4f0] sm:$0xff]  }
  0x6d   : > { %3906 = vmatprep.mubr.bf16.mxu1 %v488_v21  ;;  %v5785_v20 = vld [vmem:[%s7412_s1 + $0x4a8] sm:$0xff]   ;;  %v5786_v21 = vld [vmem:[%s7412_s1 + $0x470] sm:$0xff]  }
  0x6e   : > { %5213 = vmatpush3.bf16.msra.mxu0 %v5736_v23  ;;  %v5788_v23 = vld [vmem:[%s7412_s1 + $0x430] sm:$0xff]  }
  0x6f   : > { %5235 = vmatpush3.bf16.msra.mxu1 %v5737_v24  ;;  %5214 = vmatprep.subr.bf16.mxu0 %v5738_v25  ;;  %v5789_v24 = vld [vmem:[%s7412_s1 + $0x4b0] sm:$0xff]   ;;  %v5790_v25 = vld [vmem:[%s7412_s1 + $0x478] sm:$0xff]  }
  0x70   : > { %5236 = vmatprep.subr.bf16.mxu1 %v5739_v26  ;;  %v5791_v26 = vld [vmem:[%s7412_s1 + $0x4f8] sm:$0xff]  }
  0x72   : > { %5215 = vmatpush3.bf16.msra.mxu0 %v5740_v27  ;;  %v5792_v27 = vld [vmem:[%s7412_s1 + $0x438] sm:$0xff]  }
  0x73   : > { %5237 = vmatpush3.bf16.msra.mxu1 %v5741_v28  ;;  %5216 = vmatprep.subr.bf16.mxu0 %v5742_v30  ;;  %v5793_v28 = vld [vmem:[%s7412_s1 + $0x4b8] sm:$0xff]   ;;  %v6630_v30 = vld [vmem:[%s6187_s11 + $0x10] sm:$0xff] }
  0x74   : > { %5238 = vmatprep.subr.bf16.mxu1 %v5743_v32  ;;  %v304_v32 = vrot.slane %v6630_v30, %v6161_v29 }
  0x76   : > { %5217 = vmatpush3.bf16.msra.mxu0 %v5744_v34  ;;  %v312_v34 = vrot.slane %v6630_v30, %v6167_v31 }
  0x77   : > { %5239 = vmatpush3.bf16.msra.mxu1 %v5745_v36  ;;  %5218 = vmatprep.subr.bf16.mxu0 %v5746_v38  ;;  %v300_v36 = vrot.slane %v6630_v30, %v6173_v33  ;;  %v308_v38 = vrot.slane %v6630_v30, %v6179_v35 }
  0x78   : > { %5240 = vmatprep.subr.bf16.mxu1 %v5747_v40  ;;  %v5794_v40 = vld [vmem:[%s7412_s1 + $0x540] sm:$0xff]  }
  0x7a   : > { %5219 = vmatpush3.bf16.msra.mxu0 %v5748_v41  ;;  %v5795_v41 = vld [vmem:[%s7412_s1 + $0x5c0] sm:$0xff]  }
  0x7b   : > { %5241 = vmatpush3.bf16.msra.mxu1 %v5749_v42  ;;  %5220 = vmatprep.subr.bf16.mxu0 %v5750_v43  ;;  %v320_v42 = vrot.slane %v6630_v30, %v6190_v37  ;;  %v328_v43 = vrot.slane %v6630_v30, %v6196_v39 }
  0x7c   : > { %5242 = vmatprep.subr.bf16.mxu1 %v5751_v44  ;;  %v490_v44 = vpack.c.bf16 %v304_v32, %v304_v32  ;;  %v5834_v32 = vld [vmem:[%s7412_s1 + $0x650] sm:$0xff]  }
  0x7e   : > { %5221 = vmatpush3.bf16.msra.mxu0 %v5752_v45  ;;  %v492_v45 = vpack.c.bf16 %v312_v34, %v312_v34  ;;  %v5835_v34 = vld [vmem:[%s7412_s1 + $0x6d0] sm:$0xff]  }
  0x7f   : > { %5243 = vmatpush3.bf16.msra.mxu1 %v5753_v46  ;;  %5222 = vmatprep.subr.bf16.mxu0 %v5754_v47  ;;  %v489_v46 = vpack.c.bf16 %v300_v36, %v300_v36  ;;  %v5796_v47 = vld [vmem:[%s7412_s1 + $0x500] sm:$0xff]   ;;  %v5836_v36 = vld [vmem:[%s7412_s1 + $0x610] sm:$0xff]  }
  0x80   : > { %5244 = vmatprep.subr.bf16.mxu1 %v5755_v48  ;;  %v491_v48 = vpack.c.bf16 %v308_v38, %v308_v38  ;;  %v5837_v38 = vld [vmem:[%s7412_s1 + $0x690] sm:$0xff]  }
  0x82   : > { %5223 = vmatpush3.bf16.msra.mxu0 %v5756_v49  ;;  %v5797_v49 = vld [vmem:[%s7412_s1 + $0x580] sm:$0xff]  }
  0x83   : > { %5245 = vmatpush3.bf16.msra.mxu1 %v5757_v50  ;;  %5224 = vmatprep.subr.bf16.mxu0 %v5758_v51  ;;  %v5798_v50 = vld [vmem:[%s7412_s1 + $0x548] sm:$0xff]   ;;  %v494_v51 = vpack.c.bf16 %v320_v42, %v320_v42  ;;  %v5840_v42 = vld [vmem:[%s7412_s1 + $0x618] sm:$0xff]  }
  0x84   : > { %5246 = vmatprep.subr.bf16.mxu1 %v5759_v52  ;;  %v496_v52 = vpack.c.bf16 %v328_v43, %v328_v43  ;;  %v5841_v43 = vld [vmem:[%s7412_s1 + $0x698] sm:$0xff]  }
  0x86   : > { %5225 = vmatpush3.bf16.msra.mxu0 %v5760_v55  ;;  %v5801_v55 = vld [vmem:[%s7412_s1 + $0x588] sm:$0xff]  }
  0x87   : > { %5247 = vmatpush3.bf16.msra.mxu1 %v5761_v56  ;;  %5254 = vmatprep.subr.bf16.mxu0 %v5762_v57  ;;  %v5802_v56 = vld [vmem:[%s7412_s1 + $0x550] sm:$0xff]  }
  0x88   : > { %5276 = vmatprep.subr.bf16.mxu1 %v5763_v60  ;;  %v5803_v57 = vld [vmem:[%s7412_s1 + $0x5d0] sm:$0xff]   ;;  %v5806_v60 = vld [vmem:[%s7412_s1 + $0x558] sm:$0xff]  }
  0x89   : > { %3867 = vmatmul.mubr.bf16.vlgmr.msra.gmra.mrb[12].mxu0 %v485_v58  ;;  %v5804_v58 = vld [vmem:[%s7412_s1 + $0x510] sm:$0xff]  }
  0x8a   : > { %3907 = vmatmul.mubr.bf16.vlgmr.msra.gmra.mrb[12].mxu1 %v487_v59  ;;  %5255 = vmatpush3.bf16.msra.mxu0 %v5764_v61  ;;  %v5805_v59 = vld [vmem:[%s7412_s1 + $0x590] sm:$0xff]   ;;  %v5807_v61 = vld [vmem:[%s7412_s1 + $0x5d8] sm:$0xff]  }
  0x8b   : > { %5277 = vmatpush3.bf16.msra.mxu1 %v5765_v62  ;;  %5256 = vmatprep.subr.bf16.mxu0 %v5766_v63  ;;  %v5808_v62 = vld [vmem:[%s7412_s1 + $0x518] sm:$0xff]  }
  0x8c   : > { %5278 = vmatprep.subr.bf16.mxu1 %v5767_v0  ;;  %3946 = vmatprep.mubr.bf16.mxu0 %v490_v44  ;;  %v5809_v63 = vld [vmem:[%s7412_s1 + $0x598] sm:$0xff]   ;;  %v5810_v0 = vld [vmem:[%s7412_s1 + $0x560] sm:$0xff]  }
  0x8d   : > { %3986 = vmatprep.mubr.bf16.mxu1 %v492_v45  ;;  %v5842_v44 = vld [vmem:[%s7412_s1 + $0x660] sm:$0xff]  }
  0x8e   : > { %5257 = vmatpush3.bf16.msra.mxu0 %v5768_v1  ;;  %v5811_v1 = vld [vmem:[%s7412_s1 + $0x5e0] sm:$0xff]  }
  0x8f   : > { %5279 = vmatpush3.bf16.msra.mxu1 %v5769_v2  ;;  %5258 = vmatprep.subr.bf16.mxu0 %v5770_v3  ;;  %v5812_v2 = vld [vmem:[%s7412_s1 + $0x520] sm:$0xff]  }
  0x90   : > { %5280 = vmatprep.subr.bf16.mxu1 %v5771_v4  ;;  %v5813_v3 = vld [vmem:[%s7412_s1 + $0x5a0] sm:$0xff]   ;;  %v5814_v4 = vld [vmem:[%s7412_s1 + $0x568] sm:$0xff]  }
  0x91   : > { %v5843_v45 = vld [vmem:[%s7412_s1 + $0x6e0] sm:$0xff]  }
  0x92   : > { %5259 = vmatpush3.bf16.msra.mxu0 %v5772_v5  ;;  %v5815_v5 = vld [vmem:[%s7412_s1 + $0x5e8] sm:$0xff]  }
  0x93   : > { %5281 = vmatpush3.bf16.msra.mxu1 %v5773_v6  ;;  %5260 = vmatprep.subr.bf16.mxu0 %v5774_v7  ;;  %v5816_v6 = vld [vmem:[%s7412_s1 + $0x528] sm:$0xff]  }
  0x94   : > { %5282 = vmatprep.subr.bf16.mxu1 %v5775_v8  ;;  %v5817_v7 = vld [vmem:[%s7412_s1 + $0x5a8] sm:$0xff]   ;;  %v5818_v8 = vld [vmem:[%s7412_s1 + $0x570] sm:$0xff]  }
  0x96   : > { %5261 = vmatpush3.bf16.msra.mxu0 %v5776_v9  ;;  %v5819_v9 = vld [vmem:[%s7412_s1 + $0x5f0] sm:$0xff]  }
  0x97   : > { %5283 = vmatpush3.bf16.msra.mxu1 %v5777_v10  ;;  %5262 = vmatprep.subr.bf16.mxu0 %v5778_v11  ;;  %v5820_v10 = vld [vmem:[%s7412_s1 + $0x530] sm:$0xff]  }
  0x98   : > { %5284 = vmatprep.subr.bf16.mxu1 %v5779_v12  ;;  %v5821_v11 = vld [vmem:[%s7412_s1 + $0x5b0] sm:$0xff]   ;;  %v5822_v12 = vld [vmem:[%s7412_s1 + $0x578] sm:$0xff]  }
  0x9a   : > { %5263 = vmatpush3.bf16.msra.mxu0 %v5780_v13  ;;  %v5823_v13 = vld [vmem:[%s7412_s1 + $0x5f8] sm:$0xff]  }
  0x9b   : > { %5285 = vmatpush3.bf16.msra.mxu1 %v5781_v14  ;;  %5264 = vmatprep.subr.bf16.mxu0 %v5782_v16  ;;  %v316_v14 = vrot.slane %v6630_v30, %v6292_v15  ;;  %v324_v16 = vrot.slane %v6630_v30, %v6298_v17  ;;  %v5833_v30 = vld [vmem:[%s7412_s1 + $0x688] sm:$0xff]  }
  0x9c   : > { %5286 = vmatprep.subr.bf16.mxu1 %v5783_v18  ;;  %v5824_v18 = vld [vmem:[%s7412_s1 + $0x538] sm:$0xff]  }
  0x9e   : > { %5265 = vmatpush3.bf16.msra.mxu0 %v5784_v19  ;;  %v5825_v19 = vld [vmem:[%s7412_s1 + $0x5b8] sm:$0xff]  }
  0x9f   : > { %5287 = vmatpush3.bf16.msra.mxu1 %v5785_v20  ;;  %5266 = vmatprep.subr.bf16.mxu0 %v5786_v21  ;;  %v5826_v20 = vld [vmem:[%s7412_s1 + $0x640] sm:$0xff]   ;;  %v493_v21 = vpack.c.bf16 %v316_v14, %v316_v14  ;;  %v5863_v14 = vld [vmem:[%s7412_s1 + $0x7c8] sm:$0xff]  }
  0xa0   : > { %5288 = vmatprep.subr.bf16.mxu1 %v5787_v22  ;;  %v495_v22 = vpack.c.bf16 %v324_v16, %v324_v16  ;;  %v5864_v16 = vld [vmem:[%s7412_s1 + $0x708] sm:$0xff]  }
  0xa2   : > { %5267 = vmatpush3.bf16.msra.mxu0 %v5788_v23  ;;  %v5827_v23 = vld [vmem:[%s7412_s1 + $0x6c0] sm:$0xff]  }
  0xa3   : > { %5289 = vmatpush3.bf16.msra.mxu1 %v5789_v24  ;;  %5268 = vmatprep.subr.bf16.mxu0 %v5790_v25  ;;  %v5828_v24 = vld [vmem:[%s7412_s1 + $0x600] sm:$0xff]  }
  0xa4   : > { %5290 = vmatprep.subr.bf16.mxu1 %v5791_v26  ;;  %v5829_v25 = vld [vmem:[%s7412_s1 + $0x680] sm:$0xff]   ;;  %v5830_v26 = vld [vmem:[%s7412_s1 + $0x648] sm:$0xff]  }
  0xa6   : > { %5269 = vmatpush3.bf16.msra.mxu0 %v5792_v27  ;;  %v5831_v27 = vld [vmem:[%s7412_s1 + $0x6c8] sm:$0xff]  }
  0xa7   : > { %5291 = vmatpush3.bf16.msra.mxu1 %v5793_v28  ;;  %5298 = vmatprep.subr.bf16.mxu0 %v5794_v40  ;;  %v5832_v28 = vld [vmem:[%s7412_s1 + $0x608] sm:$0xff]   ;;  %v5838_v40 = vld [vmem:[%s7412_s1 + $0x658] sm:$0xff]  }
  0xa8   : > { %5320 = vmatprep.subr.bf16.mxu1 %v5795_v41  ;;  %v5839_v41 = vld [vmem:[%s7412_s1 + $0x6d8] sm:$0xff]  }
  0xa9   : > { %3947 = vmatmul.mubr.bf16.vlgmr.msra.gmra.mrb[16].mxu0 %v489_v46  ;;  %v5844_v46 = vld [vmem:[%s7412_s1 + $0x620] sm:$0xff]  }
  0xaa   : > { %3987 = vmatmul.mubr.bf16.vlgmr.msra.gmra.mrb[16].mxu1 %v491_v48  ;;  %5299 = vmatpush3.bf16.msra.mxu0 %v5796_v47  ;;  %v5845_v47 = vld [vmem:[%s7412_s1 + $0x6a0] sm:$0xff]   ;;  %v5846_v48 = vld [vmem:[%s7412_s1 + $0x668] sm:$0xff]  }
  0xab   : > { %5321 = vmatpush3.bf16.msra.mxu1 %v5797_v49  ;;  %5300 = vmatprep.subr.bf16.mxu0 %v5798_v50  ;;  %v5847_v49 = vld [vmem:[%s7412_s1 + $0x6e8] sm:$0xff]  }
  0xac   : > { %5322 = vmatprep.subr.bf16.mxu1 %v5799_v53  ;;  %4026 = vmatprep.mubr.bf16.mxu0 %v494_v51  ;;  %v5848_v50 = vld [vmem:[%s7412_s1 + $0x628] sm:$0xff]   ;;  %v5851_v53 = vld [vmem:[%s7412_s1 + $0x6f0] sm:$0xff]  }
  0xad   : > { %4066 = vmatprep.mubr.bf16.mxu1 %v496_v52  ;;  %v5849_v51 = vld [vmem:[%s7412_s1 + $0x6a8] sm:$0xff]   ;;  %v5850_v52 = vld [vmem:[%s7412_s1 + $0x670] sm:$0xff]  }
  0xae   : > { %5301 = vmatpush3.bf16.msra.mxu0 %v5800_v54  ;;  %v5852_v54 = vld [vmem:[%s7412_s1 + $0x630] sm:$0xff]  }
  0xaf   : > { %5323 = vmatpush3.bf16.msra.mxu1 %v5801_v55  ;;  %5302 = vmatprep.subr.bf16.mxu0 %v5802_v56  ;;  %v5853_v55 = vld [vmem:[%s7412_s1 + $0x6b0] sm:$0xff]   ;;  %v5854_v56 = vld [vmem:[%s7412_s1 + $0x678] sm:$0xff]  }
  0xb0   : > { %5324 = vmatprep.subr.bf16.mxu1 %v5803_v57  ;;  %v5855_v57 = vld [vmem:[%s7412_s1 + $0x6f8] sm:$0xff]  }
  0xb2   : > { %5303 = vmatpush3.bf16.msra.mxu0 %v5804_v58  ;;  %v5856_v58 = vld [vmem:[%s7412_s1 + $0x638] sm:$0xff]  }
  0xb3   : > { %5325 = vmatpush3.bf16.msra.mxu1 %v5805_v59  ;;  %5304 = vmatprep.subr.bf16.mxu0 %v5806_v60  ;;  %v5857_v59 = vld [vmem:[%s7412_s1 + $0x6b8] sm:$0xff]  }
  0xb4   : > { %5326 = vmatprep.subr.bf16.mxu1 %v5807_v61  ;;  %v6841_v60 = vld [vmem:[%s6187_s11 + $0x18] sm:$0xff] }
  0xb5   : > { %v336_v61 = vrot.slane %v6841_v60, %v6161_v29 }
  0xb6   : > { %5305 = vmatpush3.bf16.msra.mxu0 %v5808_v62  ;;  %v344_v62 = vrot.slane %v6841_v60, %v6167_v31 }
  0xb7   : > { %5327 = vmatpush3.bf16.msra.mxu1 %v5809_v63  ;;  %5306 = vmatprep.subr.bf16.mxu0 %v5810_v0  ;;  %v332_v63 = vrot.slane %v6841_v60, %v6173_v33  ;;  %v340_v0 = vrot.slane %v6841_v60, %v6179_v35 }
  0xb8   : > { %5328 = vmatprep.subr.bf16.mxu1 %v5811_v1  ;;  %v5858_v1 = vld [vmem:[%s7412_s1 + $0x740] sm:$0xff]  }
  0xba   : > { %5307 = vmatpush3.bf16.msra.mxu0 %v5812_v2  ;;  %v5859_v2 = vld [vmem:[%s7412_s1 + $0x7c0] sm:$0xff]  }
  0xbb   : > { %5329 = vmatpush3.bf16.msra.mxu1 %v5813_v3  ;;  %5308 = vmatprep.subr.bf16.mxu0 %v5814_v4  ;;  %v352_v3 = vrot.slane %v6841_v60, %v6190_v37  ;;  %v360_v4 = vrot.slane %v6841_v60, %v6196_v39 }
  0xbc   : > { %5330 = vmatprep.subr.bf16.mxu1 %v5815_v5  ;;  %v498_v5 = vpack.c.bf16 %v336_v61, %v336_v61  ;;  %v356_v61 = vrot.slane %v6841_v60, %v6298_v17 }
  0xbe   : > { %5309 = vmatpush3.bf16.msra.mxu0 %v5816_v6  ;;  %v500_v6 = vpack.c.bf16 %v344_v62, %v344_v62  ;;  %v5887_v62 = vld [vmem:[%s7412_s1 + $0x7f8] sm:$0xff]  }
  0xbf   : > { %5331 = vmatpush3.bf16.msra.mxu1 %v5817_v7  ;;  %5310 = vmatprep.subr.bf16.mxu0 %v5818_v8  ;;  %v497_v7 = vpack.c.bf16 %v332_v63, %v332_v63  ;;  %v499_v8 = vpack.c.bf16 %v340_v0, %v340_v0  ;;  %v5888_v63 = vld [vmem:[%s7412_s1 + $0x738] sm:$0xff]  }
  0xc0   : > { %5332 = vmatprep.subr.bf16.mxu1 %v5819_v9  ;;  %v5860_v9 = vld [vmem:[%s7412_s1 + $0x700] sm:$0xff]   ;;  %v5889_v0 = vld [vmem:[%s7412_s1 + $0x7b8] sm:$0xff]  }
  0xc2   : > { %5311 = vmatpush3.bf16.msra.mxu0 %v5820_v10  ;;  %v5861_v10 = vld [vmem:[%s7412_s1 + $0x780] sm:$0xff]  }
  0xc3   : > { %5333 = vmatpush3.bf16.msra.mxu1 %v5821_v11  ;;  %5312 = vmatprep.subr.bf16.mxu0 %v5822_v12  ;;  %v5862_v11 = vld [vmem:[%s7412_s1 + $0x748] sm:$0xff]   ;;  %v502_v12 = vpack.c.bf16 %v352_v3, %v352_v3  ;;  %v5891_v3 = vld [vmem:[%s7412_s1 + $0x8c0] sm:$0xff]  }
  0xc4   : > { %5334 = vmatprep.subr.bf16.mxu1 %v5823_v13  ;;  %v504_v13 = vpack.c.bf16 %v360_v4, %v360_v4  ;;  %v5892_v4 = vld [vmem:[%s7412_s1 + $0x800] sm:$0xff]  }
  0xc6   : > { %5313 = vmatpush3.bf16.msra.mxu0 %v5824_v18  ;;  %v5865_v18 = vld [vmem:[%s7412_s1 + $0x788] sm:$0xff]  }
  0xc7   : > { %5335 = vmatpush3.bf16.msra.mxu1 %v5825_v19  ;;  %5342 = vmatprep.subr.bf16.mxu0 %v5826_v20  ;;  %v5866_v19 = vld [vmem:[%s7412_s1 + $0x750] sm:$0xff]  }
  0xc8   : > { %5364 = vmatprep.subr.bf16.mxu1 %v5827_v23  ;;  %v5867_v20 = vld [vmem:[%s7412_s1 + $0x7d0] sm:$0xff]   ;;  %v5870_v23 = vld [vmem:[%s7412_s1 + $0x758] sm:$0xff]  }
  0xc9   : > { %4027 = vmatmul.mubr.bf16.vlgmr.msra.gmra.mrb[20].mxu0 %v493_v21  ;;  %v5868_v21 = vld [vmem:[%s7412_s1 + $0x710] sm:$0xff]  }
  0xca   : > { %4067 = vmatmul.mubr.bf16.vlgmr.msra.gmra.mrb[20].mxu1 %v495_v22  ;;  %5343 = vmatpush3.bf16.msra.mxu0 %v5828_v24  ;;  %v5869_v22 = vld [vmem:[%s7412_s1 + $0x790] sm:$0xff]   ;;  %v5871_v24 = vld [vmem:[%s7412_s1 + $0x7d8] sm:$0xff]  }
  0xcb   : > { %5365 = vmatpush3.bf16.msra.mxu1 %v5829_v25  ;;  %5344 = vmatprep.subr.bf16.mxu0 %v5830_v26  ;;  %v5872_v25 = vld [vmem:[%s7412_s1 + $0x718] sm:$0xff]  }
  0xcc   : > { %5366 = vmatprep.subr.bf16.mxu1 %v5831_v27  ;;  %4106 = vmatprep.mubr.bf16.mxu0 %v498_v5  ;;  %v5873_v26 = vld [vmem:[%s7412_s1 + $0x798] sm:$0xff]   ;;  %v5874_v27 = vld [vmem:[%s7412_s1 + $0x760] sm:$0xff]  }
  0xcd   : > { %4146 = vmatprep.mubr.bf16.mxu1 %v500_v6  ;;  %v5893_v5 = vld [vmem:[%s7412_s1 + $0x880] sm:$0xff]   ;;  %v5894_v6 = vld [vmem:[%s7412_s1 + $0x848] sm:$0xff]  }
  0xce   : > { %5345 = vmatpush3.bf16.msra.mxu0 %v5832_v28  ;;  %v5875_v28 = vld [vmem:[%s7412_s1 + $0x7e0] sm:$0xff]  }
  0xcf   : > { %5367 = vmatpush3.bf16.msra.mxu1 %v5833_v30  ;;  %5346 = vmatprep.subr.bf16.mxu0 %v5834_v32  ;;  %v5876_v30 = vld [vmem:[%s7412_s1 + $0x720] sm:$0xff]  }
  0xd0   : > { %5368 = vmatprep.subr.bf16.mxu1 %v5835_v34  ;;  %v5877_v32 = vld [vmem:[%s7412_s1 + $0x7a0] sm:$0xff]   ;;  %v5878_v34 = vld [vmem:[%s7412_s1 + $0x768] sm:$0xff]  }
  0xd2   : > { %5347 = vmatpush3.bf16.msra.mxu0 %v5836_v36  ;;  %v5879_v36 = vld [vmem:[%s7412_s1 + $0x7e8] sm:$0xff]  }
  0xd3   : > { %5369 = vmatpush3.bf16.msra.mxu1 %v5837_v38  ;;  %5348 = vmatprep.subr.bf16.mxu0 %v5838_v40  ;;  %v1289_v38 = vld [vmem:[%s7413_s2] sm:$0x1]  ;;  %v5880_v40 = vld [vmem:[%s7412_s1 + $0x728] sm:$0xff]  }
  0xd4   : > { %5370 = vmatprep.subr.bf16.mxu1 %v5839_v41 }
  0xd6   : > { %5349 = vmatpush3.bf16.msra.mxu0 %v5840_v42 }
  0xd7   : > { %5371 = vmatpush3.bf16.msra.mxu1 %v5841_v43  ;;  %5350 = vmatprep.subr.bf16.mxu0 %v5842_v44  ;;  %v5881_v43 = vld [vmem:[%s7412_s1 + $0x7a8] sm:$0xff]   ;;  %v5882_v44 = vld [vmem:[%s7412_s1 + $0x770] sm:$0xff]  }
  0xd8   : > { %5372 = vmatprep.subr.bf16.mxu1 %v5843_v45 }
  0xda   : > { %5351 = vmatpush3.bf16.msra.mxu0 %v5844_v46 }
  0xdb   : > { %5373 = vmatpush3.bf16.msra.mxu1 %v5845_v47  ;;  %5352 = vmatprep.subr.bf16.mxu0 %v5846_v48 }
  0xdc   : > { %5374 = vmatprep.subr.bf16.mxu1 %v5847_v49 }
  0xde   : > { %5353 = vmatpush3.bf16.msra.mxu0 %v5848_v50 }
  0xdf   : > { %5375 = vmatpush3.bf16.msra.mxu1 %v5849_v51  ;;  %5354 = vmatprep.subr.bf16.mxu0 %v5850_v52 }
  0xe0   : > { %5376 = vmatprep.subr.bf16.mxu1 %v5851_v53  ;;  %v5883_v53 = vld [vmem:[%s7412_s1 + $0x7f0] sm:$0xff]  }
  0xe2   : > { %5355 = vmatpush3.bf16.msra.mxu0 %v5852_v54  ;;  %v5884_v54 = vld [vmem:[%s7412_s1 + $0x730] sm:$0xff]  }
  0xe3   : > { %5377 = vmatpush3.bf16.msra.mxu1 %v5853_v55  ;;  %5356 = vmatprep.subr.bf16.mxu0 %v5854_v56  ;;  %v5885_v56 = vld [vmem:[%s7412_s1 + $0x7b0] sm:$0xff]  }
  0xe4   : > { %5378 = vmatprep.subr.bf16.mxu1 %v5855_v57 }
  0xe6   : > { %5357 = vmatpush3.bf16.msra.mxu0 %v5856_v58  ;;  %v5886_v58 = vld [vmem:[%s7412_s1 + $0x778] sm:$0xff]  }
  0xe7   : > { %5379 = vmatpush3.bf16.msra.mxu1 %v5857_v59  ;;  %5386 = vmatprep.subr.bf16.mxu0 %v5858_v1  ;;  %v348_v59 = vrot.slane %v6841_v60, %v6292_v15  ;;  %v5890_v60 = vld [vmem:[%s7412_s1 + $0x840] sm:$0xff]  }
  0xe8   : > { %5408 = vmatprep.subr.bf16.mxu1 %v5859_v2  ;;  %v503_v2 = vpack.c.bf16 %v356_v61, %v356_v61  ;;  %v5923_v61 = vld [vmem:[%s7412_s1 + $0x9c0] sm:$0xff]  }
  0xe9   : > { %4107 = vmatmul.mubr.bf16.vlgmr.msra.gmra.mrb[24].mxu0 %v497_v7  ;;  %v501_v1 = vpack.c.bf16 %v348_v59, %v348_v59  ;;  %v5895_v7 = vld [vmem:[%s7412_s1 + $0x8c8] sm:$0xff]  }
  0xea   : > { %4147 = vmatmul.mubr.bf16.vlgmr.msra.gmra.mrb[24].mxu1 %v499_v8  ;;  %5387 = vmatpush3.bf16.msra.mxu0 %v5860_v9  ;;  %v5896_v8 = vld [vmem:[%s7412_s1 + $0x808] sm:$0xff]  }
  0xeb   : > { %5409 = vmatpush3.bf16.msra.mxu1 %v5861_v10  ;;  %5388 = vmatprep.subr.bf16.mxu0 %v5862_v11  ;;  %v5897_v9 = vld [vmem:[%s7412_s1 + $0x888] sm:$0xff]   ;;  %v5898_v10 = vld [vmem:[%s7412_s1 + $0x850] sm:$0xff]  }
  0xec   : > { %5410 = vmatprep.subr.bf16.mxu1 %v5863_v14  ;;  %4186 = vmatprep.mubr.bf16.mxu0 %v502_v12  ;;  %v5899_v11 = vld [vmem:[%s7412_s1 + $0x8d0] sm:$0xff]   ;;  %v5902_v14 = vld [vmem:[%s7412_s1 + $0x858] sm:$0xff]  }
  0xed   : > { %4226 = vmatprep.mubr.bf16.mxu1 %v504_v13  ;;  %v5900_v12 = vld [vmem:[%s7412_s1 + $0x810] sm:$0xff]  }
  0xee   : > { %5389 = vmatpush3.bf16.msra.mxu0 %v5864_v16  ;;  %v5901_v13 = vld [vmem:[%s7412_s1 + $0x890] sm:$0xff]   ;;  %v5903_v16 = vld [vmem:[%s7412_s1 + $0x8d8] sm:$0xff]  }
  0xef   : > { %5411 = vmatpush3.bf16.msra.mxu1 %v5865_v18  ;;  %5390 = vmatprep.subr.bf16.mxu0 %v5866_v19  ;;  %v5904_v18 = vld [vmem:[%s7412_s1 + $0x818] sm:$0xff]  }
  0xf0   : > { %5412 = vmatprep.subr.bf16.mxu1 %v5867_v20  ;;  %v5905_v19 = vld [vmem:[%s7412_s1 + $0x898] sm:$0xff]   ;;  %v5906_v20 = vld [vmem:[%s7412_s1 + $0x860] sm:$0xff]  }
  0xf2   : > { %5391 = vmatpush3.bf16.msra.mxu0 %v5868_v21  ;;  %v5907_v21 = vld [vmem:[%s7412_s1 + $0x8e0] sm:$0xff]  }
  0xf3   : > { %5413 = vmatpush3.bf16.msra.mxu1 %v5869_v22  ;;  %5392 = vmatprep.subr.bf16.mxu0 %v5870_v23  ;;  %v5908_v22 = vld [vmem:[%s7412_s1 + $0x820] sm:$0xff]  }
  0xf4   : > { %5414 = vmatprep.subr.bf16.mxu1 %v5871_v24  ;;  %v5909_v23 = vld [vmem:[%s7412_s1 + $0x8a0] sm:$0xff]   ;;  %v5910_v24 = vld [vmem:[%s7412_s1 + $0x868] sm:$0xff]  }
  0xf6   : > { %5393 = vmatpush3.bf16.msra.mxu0 %v5872_v25  ;;  %v5911_v25 = vld [vmem:[%s7412_s1 + $0x8e8] sm:$0xff]  }
  0xf7   : > { %5415 = vmatpush3.bf16.msra.mxu1 %v5873_v26  ;;  %5394 = vmatprep.subr.bf16.mxu0 %v5874_v27 }
  0xf8   : > { %5416 = vmatprep.subr.bf16.mxu1 %v5875_v28  ;;  %v5912_v28 = vld [vmem:[%s7412_s1 + $0x828] sm:$0xff]  }
  0xfa   : > { %5395 = vmatpush3.bf16.msra.mxu0 %v5876_v30  ;;  %v5913_v30 = vld [vmem:[%s7412_s1 + $0x8a8] sm:$0xff]  }
  0xfb   : > { %5417 = vmatpush3.bf16.msra.mxu1 %v5877_v32  ;;  %5396 = vmatprep.subr.bf16.mxu0 %v5878_v34 }
  0xfc   : > { %v5094_v41 = vpop.f32.mrb[0].mxu0  ;;  %5418 = vmatprep.subr.bf16.mxu1 %v5879_v36 }
  0xfd   : > { %v5116_v42 = vpop.f32.mrb[0].mxu1  ;;  %v5095_v45 = vpop.f32.mrb[1].mxu0 }
  0xfe   : > { %v5117_v46 = vpop.f32.mrb[1].mxu1  ;;  %v5096_v47 = vadd.f32 %v5095_v45, %v5094_v41  ;;  %v5097_v49 = vpop.f32.mrb[2].mxu0  ;;  %5397 = vmatpush3.bf16.msra.mxu0 %v5880_v40 }
  0xff   : > { %v5118_v48 = vadd.f32 %v5117_v46, %v5116_v42  ;;  %v5119_v50 = vpop.f32.mrb[2].mxu1  ;;  %5419 = vmatpush3.bf16.msra.mxu1 %v5881_v43  ;;  %v5098_v51 = vpop.f32.mrb[3].mxu0  ;;  %5398 = vmatprep.subr.bf16.mxu0 %v5882_v44  ;;  %v5914_v42 = vld [vmem:[%s7412_s1 + $0x870] sm:$0xff]  }
 0x100   : > { %v5120_v52 = vpop.f32.mrb[3].mxu1  ;;  %v3629_v55 = vadd.f32 %v5096_v47, %v1289_v38  ;;  %5420 = vmatprep.subr.bf16.mxu1 %v5883_v53  ;;  %v5915_v43 = vld [vmem:[%s7412_s1 + $0x8f0] sm:$0xff]   ;;  %v5918_v50 = vld [vmem:[%s7412_s1 + $0x878] sm:$0xff]  }
 0x101   : > { %v5916_v47 = vld [vmem:[%s7412_s1 + $0x830] sm:$0xff]   ;;  %v5919_v51 = vld [vmem:[%s7412_s1 + $0x8f8] sm:$0xff]  }
 0x102   : > { %v6942_v57 = vadd.f32 %v5118_v48, %v3629_v55  ;;  %5399 = vmatpush3.bf16.msra.mxu0 %v5884_v54  ;;  %v5917_v48 = vld [vmem:[%s7412_s1 + $0x8b0] sm:$0xff]   ;;  %v5920_v52 = vld [vmem:[%s7412_s1 + $0x838] sm:$0xff]   ;;  %v7060_v54 = vld [vmem:[%s6187_s11 + $0x20] sm:$0xff] }
 0x103   : > { %5421 = vmatpush3.bf16.msra.mxu1 %v5885_v56  ;;  %5400 = vmatprep.subr.bf16.mxu0 %v5886_v58  ;;  %v5921_v53 = vld [vmem:[%s7412_s1 + $0x8b8] sm:$0xff]   ;;  %v368_v55 = vrot.slane %v7060_v54, %v6161_v29  ;;  %v376_v56 = vrot.slane %v7060_v54, %v6167_v31  ;;  %v5922_v58 = vld [vmem:[%s7412_s1 + $0x940] sm:$0xff]   ;;  %v372_v59 = vrot.slane %v7060_v54, %v6179_v35 }
 0x104   : > { %5422 = vmatprep.subr.bf16.mxu1 %v5887_v62  ;;  %v384_v62 = vrot.slane %v7060_v54, %v6190_v37 }
 0x106   : > { %5401 = vmatpush3.bf16.msra.mxu0 %v5888_v63  ;;  %v392_v63 = vrot.slane %v7060_v54, %v6196_v39 }
 0x107   : > { %5423 = vmatpush3.bf16.msra.mxu1 %v5889_v0  ;;  %5430 = vmatprep.subr.bf16.mxu0 %v5890_v60  ;;  %v506_v0 = vpack.c.bf16 %v368_v55, %v368_v55  ;;  %v5924_v60 = vld [vmem:[%s7412_s1 + $0x900] sm:$0xff]   ;;  %v388_v55 = vrot.slane %v7060_v54, %v6298_v17 }
 0x108   : > { %5452 = vmatprep.subr.bf16.mxu1 %v5891_v3  ;;  %v507_v3 = vpack.c.bf16 %v372_v59, %v372_v59 }
 0x109   : > { %4187 = vmatmul.mubr.bf16.vlgmr.msra.gmra.mrb[28].mxu0 %v501_v1  ;;  %v508_v1 = vpack.c.bf16 %v376_v56, %v376_v56  ;;  %v5952_v56 = vld [vmem:[%s7412_s1 + $0x938] sm:$0xff]  }
 0x10a   : > { %4227 = vmatmul.mubr.bf16.vlgmr.msra.gmra.mrb[28].mxu1 %v503_v2  ;;  %5431 = vmatpush3.bf16.msra.mxu0 %v5892_v4  ;;  %v5925_v4 = vld [vmem:[%s7412_s1 + $0x980] sm:$0xff]  }
 0x10b   : > { %5453 = vmatpush3.bf16.msra.mxu1 %v5893_v5  ;;  %5432 = vmatprep.subr.bf16.mxu0 %v5894_v6  ;;  %v5926_v5 = vld [vmem:[%s7412_s1 + $0x948] sm:$0xff]   ;;  %v510_v6 = vpack.c.bf16 %v384_v62, %v384_v62  ;;  %v5956_v62 = vld [vmem:[%s7412_s1 + $0xa00] sm:$0xff]  }
 0x10c   : > { %5454 = vmatprep.subr.bf16.mxu1 %v5895_v7  ;;  %4266 = vmatprep.mubr.bf16.mxu0 %v506_v0  ;;  %v512_v7 = vpack.c.bf16 %v392_v63, %v392_v63  ;;  %v5957_v63 = vld [vmem:[%s7412_s1 + $0xa80] sm:$0xff]   ;;  %v5958_v0 = vld [vmem:[%s7412_s1 + $0xa48] sm:$0xff]  }
 0x10d   : > { %4306 = vmatprep.mubr.bf16.mxu1 %v508_v1  ;;  %v5959_v1 = vld [vmem:[%s7412_s1 + $0xac8] sm:$0xff]  }
 0x10e   : > { %5433 = vmatpush3.bf16.msra.mxu0 %v5896_v8  ;;  %v5927_v8 = vld [vmem:[%s7412_s1 + $0x9c8] sm:$0xff]  }
 0x10f   : > { %5455 = vmatpush3.bf16.msra.mxu1 %v5897_v9  ;;  %5434 = vmatprep.subr.bf16.mxu0 %v5898_v10  ;;  %v5928_v9 = vld [vmem:[%s7412_s1 + $0x908] sm:$0xff]  }
 0x110   : > { %5456 = vmatprep.subr.bf16.mxu1 %v5899_v11  ;;  %v5929_v10 = vld [vmem:[%s7412_s1 + $0x988] sm:$0xff]   ;;  %v5930_v11 = vld [vmem:[%s7412_s1 + $0x950] sm:$0xff]  }
 0x112   : > { %5435 = vmatpush3.bf16.msra.mxu0 %v5900_v12  ;;  %v5931_v12 = vld [vmem:[%s7412_s1 + $0x9d0] sm:$0xff]  }
 0x113   : > { %5457 = vmatpush3.bf16.msra.mxu1 %v5901_v13  ;;  %5436 = vmatprep.subr.bf16.mxu0 %v5902_v14  ;;  %v5932_v13 = vld [vmem:[%s7412_s1 + $0x910] sm:$0xff]  }
 0x114   : > { %5458 = vmatprep.subr.bf16.mxu1 %v5903_v16  ;;  %v5933_v14 = vld [vmem:[%s7412_s1 + $0x990] sm:$0xff]   ;;  %v5934_v16 = vld [vmem:[%s7412_s1 + $0x958] sm:$0xff]  }
 0x116   : > { %5437 = vmatpush3.bf16.msra.mxu0 %v5904_v18  ;;  %v5935_v18 = vld [vmem:[%s7412_s1 + $0x9d8] sm:$0xff]  }
 0x117   : > { %5459 = vmatpush3.bf16.msra.mxu1 %v5905_v19  ;;  %5438 = vmatprep.subr.bf16.mxu0 %v5906_v20  ;;  %v5936_v19 = vld [vmem:[%s7412_s1 + $0x918] sm:$0xff]  }
 0x118   : > { %5460 = vmatprep.subr.bf16.mxu1 %v5907_v21  ;;  %v5937_v20 = vld [vmem:[%s7412_s1 + $0x998] sm:$0xff]   ;;  %v5938_v21 = vld [vmem:[%s7412_s1 + $0x960] sm:$0xff]  }
 0x11a   : > { %5439 = vmatpush3.bf16.msra.mxu0 %v5908_v22  ;;  %v5939_v22 = vld [vmem:[%s7412_s1 + $0x9e0] sm:$0xff]  }
 0x11b   : > { %5461 = vmatpush3.bf16.msra.mxu1 %v5909_v23  ;;  %5440 = vmatprep.subr.bf16.mxu0 %v5910_v24  ;;  %v5940_v23 = vld [vmem:[%s7412_s1 + $0x920] sm:$0xff]  }
 0x11c   : > { %v5138_v26 = vpop.f32.mrb[4].mxu0  ;;  %5462 = vmatprep.subr.bf16.mxu1 %v5911_v25  ;;  %v5941_v24 = vld [vmem:[%s7412_s1 + $0x9a0] sm:$0xff]   ;;  %v5942_v25 = vld [vmem:[%s7412_s1 + $0x968] sm:$0xff]  }
 0x11d   : > { %v5160_v27 = vpop.f32.mrb[4].mxu1  ;;  %v5139_v32 = vpop.f32.mrb[5].mxu0 }
 0x11e   : > { %v5161_v34 = vpop.f32.mrb[5].mxu1  ;;  %v5140_v36 = vadd.f32 %v5139_v32, %v5138_v26  ;;  %v5141_v40 = vpop.f32.mrb[6].mxu0  ;;  %5441 = vmatpush3.bf16.msra.mxu0 %v5912_v28  ;;  %v5943_v28 = vld [vmem:[%s7412_s1 + $0x9e8] sm:$0xff]  }
 0x11f   : > { %v5162_v38 = vadd.f32 %v5161_v34, %v5160_v27  ;;  %v5163_v41 = vpop.f32.mrb[6].mxu1  ;;  %5463 = vmatpush3.bf16.msra.mxu1 %v5913_v30  ;;  %v5142_v44 = vpop.f32.mrb[7].mxu0  ;;  %5442 = vmatprep.subr.bf16.mxu0 %v5914_v42  ;;  %v5944_v30 = vld [vmem:[%s7412_s1 + $0x928] sm:$0xff]  }
 0x120   : > { %v5164_v45 = vpop.f32.mrb[7].mxu1  ;;  %v3709_v46 = vadd.f32 %v5140_v36, %v6942_v57  ;;  %5464 = vmatprep.subr.bf16.mxu1 %v5915_v43  ;;  %v364_v57 = vrot.slane %v7060_v54, %v6173_v33  ;;  %v5945_v42 = vld [vmem:[%s7412_s1 + $0x9a8] sm:$0xff]   ;;  %v5946_v43 = vld [vmem:[%s7412_s1 + $0x970] sm:$0xff]  }
 0x122   : > { %v7045_v49 = vadd.f32 %v5162_v38, %v3709_v46  ;;  %5443 = vmatpush3.bf16.msra.mxu0 %v5916_v47  ;;  %v505_v2 = vpack.c.bf16 %v364_v57, %v364_v57  ;;  %v5947_v47 = vld [vmem:[%s7412_s1 + $0x9f0] sm:$0xff]   ;;  %v5953_v57 = vld [vmem:[%s7412_s1 + $0x9b8] sm:$0xff]  }
 0x123   : > { %5465 = vmatpush3.bf16.msra.mxu1 %v5917_v48  ;;  %5444 = vmatprep.subr.bf16.mxu0 %v5918_v50  ;;  %v5948_v48 = vld [vmem:[%s7412_s1 + $0x930] sm:$0xff]  }
 0x124   : > { %5466 = vmatprep.subr.bf16.mxu1 %v5919_v51  ;;  %v5949_v51 = vld [vmem:[%s7412_s1 + $0x9b0] sm:$0xff]  }
 0x126   : > { %5445 = vmatpush3.bf16.msra.mxu0 %v5920_v52  ;;  %v5951_v52 = vld [vmem:[%s7412_s1 + $0x9f8] sm:$0xff]  }
 0x127   : > { %5467 = vmatpush3.bf16.msra.mxu1 %v5921_v53  ;;  %5474 = vmatprep.subr.bf16.mxu0 %v5922_v58  ;;  %v380_v53 = vrot.slane %v7060_v54, %v6292_v15  ;;  %v5954_v58 = vld [vmem:[%s7412_s1 + $0xa40] sm:$0xff]  }
 0x128   : > { %5496 = vmatprep.subr.bf16.mxu1 %v5923_v61  ;;  %v511_v61 = vpack.c.bf16 %v388_v55, %v388_v55  ;;  %v5955_v54 = vld [vmem:[%s7412_s1 + $0xac0] sm:$0xff]  }
 0x129   : > { %4267 = vmatmul.mubr.bf16.vlgmr.msra.gmra.mrb[32].mxu0 %v505_v2  ;;  %v509_v59 = vpack.c.bf16 %v380_v53, %v380_v53  ;;  %v5960_v2 = vld [vmem:[%s7412_s1 + $0xa08] sm:$0xff]   ;;  %v5987_v53 = vld [vmem:[%s7412_s1 + $0xbc0] sm:$0xff]  }
 0x12a   : > { %4307 = vmatmul.mubr.bf16.vlgmr.msra.gmra.mrb[32].mxu1 %v507_v3  ;;  %5475 = vmatpush3.bf16.msra.mxu0 %v5924_v60  ;;  %v5961_v60 = vld [vmem:[%s7412_s1 + $0xa88] sm:$0xff]   ;;  %v5962_v3 = vld [vmem:[%s7412_s1 + $0xa50] sm:$0xff]  }
 0x12b   : > { %5497 = vmatpush3.bf16.msra.mxu1 %v5925_v4  ;;  %5476 = vmatprep.subr.bf16.mxu0 %v5926_v5  ;;  %v5963_v4 = vld [vmem:[%s7412_s1 + $0xad0] sm:$0xff]  }
 0x12c   : > { %5498 = vmatprep.subr.bf16.mxu1 %v5927_v8  ;;  %4346 = vmatprep.mubr.bf16.mxu0 %v510_v6  ;;  %v5964_v5 = vld [vmem:[%s7412_s1 + $0xa10] sm:$0xff]   ;;  %v5967_v8 = vld [vmem:[%s7412_s1 + $0xad8] sm:$0xff]  }
 0x12d   : > { %4386 = vmatprep.mubr.bf16.mxu1 %v512_v7  ;;  %v5965_v6 = vld [vmem:[%s7412_s1 + $0xa90] sm:$0xff]   ;;  %v5966_v7 = vld [vmem:[%s7412_s1 + $0xa58] sm:$0xff]  }
 0x12e   : > { %5477 = vmatpush3.bf16.msra.mxu0 %v5928_v9  ;;  %v5968_v9 = vld [vmem:[%s7412_s1 + $0xa18] sm:$0xff]  }
 0x12f   : > { %5499 = vmatpush3.bf16.msra.mxu1 %v5929_v10  ;;  %5478 = vmatprep.subr.bf16.mxu0 %v5930_v11  ;;  %v5969_v10 = vld [vmem:[%s7412_s1 + $0xa98] sm:$0xff]   ;;  %v5970_v11 = vld [vmem:[%s7412_s1 + $0xa60] sm:$0xff]  }
 0x130   : > { %5500 = vmatprep.subr.bf16.mxu1 %v5931_v12  ;;  %v5971_v12 = vld [vmem:[%s7412_s1 + $0xae0] sm:$0xff]  }
 0x132   : > { %5479 = vmatpush3.bf16.msra.mxu0 %v5932_v13  ;;  %v5972_v13 = vld [vmem:[%s7412_s1 + $0xa20] sm:$0xff]  }
 0x133   : > { %5501 = vmatpush3.bf16.msra.mxu1 %v5933_v14  ;;  %5480 = vmatprep.subr.bf16.mxu0 %v5934_v16  ;;  %v5973_v14 = vld [vmem:[%s7412_s1 + $0xaa0] sm:$0xff]   ;;  %v5974_v16 = vld [vmem:[%s7412_s1 + $0xa68] sm:$0xff]  }
 0x134   : > { %5502 = vmatprep.subr.bf16.mxu1 %v5935_v18 }
 0x136   : > { %5481 = vmatpush3.bf16.msra.mxu0 %v5936_v19 }
 0x137   : > { %5503 = vmatpush3.bf16.msra.mxu1 %v5937_v20  ;;  %5482 = vmatprep.subr.bf16.mxu0 %v5938_v21 }
 0x138   : > { %5504 = vmatprep.subr.bf16.mxu1 %v5939_v22  ;;  %v5975_v22 = vld [vmem:[%s7412_s1 + $0xae8] sm:$0xff]  }
 0x13a   : > { %5483 = vmatpush3.bf16.msra.mxu0 %v5940_v23  ;;  %v5976_v23 = vld [vmem:[%s7412_s1 + $0xa28] sm:$0xff]  }
 0x13b   : > { %5505 = vmatpush3.bf16.msra.mxu1 %v5941_v24  ;;  %5484 = vmatprep.subr.bf16.mxu0 %v5942_v25 }
 0x13c   : > { %v5182_v26 = vpop.f32.mrb[8].mxu0  ;;  %5506 = vmatprep.subr.bf16.mxu1 %v5943_v28  ;;  %v5977_v28 = vld [vmem:[%s7412_s1 + $0xaa8] sm:$0xff]  }
 0x13d   : > { %v5204_v27 = vpop.f32.mrb[8].mxu1  ;;  %v5183_v32 = vpop.f32.mrb[9].mxu0 }
 0x13e   : > { %v5205_v34 = vpop.f32.mrb[9].mxu1  ;;  %v5184_v36 = vadd.f32 %v5183_v32, %v5182_v26  ;;  %v5185_v40 = vpop.f32.mrb[10].mxu0  ;;  %5485 = vmatpush3.bf16.msra.mxu0 %v5944_v30 }
 0x13f   : > { %v5206_v38 = vadd.f32 %v5205_v34, %v5204_v27  ;;  %v5207_v41 = vpop.f32.mrb[10].mxu1  ;;  %v5186_v44 = vpop.f32.mrb[11].mxu0  ;;  %5507 = vmatpush3.bf16.msra.mxu1 %v5945_v42  ;;  %5486 = vmatprep.subr.bf16.mxu0 %v5946_v43  ;;  %v5978_v34 = vld [vmem:[%s7412_s1 + $0xa70] sm:$0xff]   ;;  %v5982_v43 = vld [vmem:[%s7412_s1 + $0xa78] sm:$0xff]  }
 0x140   : > { %v5208_v45 = vpop.f32.mrb[11].mxu1  ;;  %v3789_v46 = vadd.f32 %v5184_v36, %v7045_v49  ;;  %5508 = vmatprep.subr.bf16.mxu1 %v5947_v47  ;;  %v5950_v49 = vld [vmem:[%s7412_s1 + $0x978] sm:$0xff]   ;;  %v5980_v41 = vld [vmem:[%s7412_s1 + $0xa30] sm:$0xff]   ;;  %v7277_v47 = vld [vmem:[%s6187_s11 + $0x28] sm:$0xff]  ;;  %s219_s11 = scalar_lea.vmem %s7416_s5, %s7418_s21 }
 0x141   : > { %v5981_v42 = vld [vmem:[%s7412_s1 + $0xab0] sm:$0xff]   ;;  %v5983_v44 = vld [vmem:[%s7412_s1 + $0xaf8] sm:$0xff]  }
 0x142   : > { %v7156_v50 = vadd.f32 %v5206_v38, %v3789_v46  ;;  %5487 = vmatpush3.bf16.msra.mxu0 %v5948_v48  ;;  %v5979_v38 = vld [vmem:[%s7412_s1 + $0xaf0] sm:$0xff]   ;;  %v5984_v45 = vld [vmem:[%s7412_s1 + $0xa38] sm:$0xff]   ;;  %v400_v48 = vrot.slane %v7277_v47, %v6161_v29  ;;  %v416_v29 = vrot.slane %v7277_v47, %v6190_v37  ;;  %v5990_v37 = vld [vmem:[%s7412_s1 + $0xb48] sm:$0xff]  }
 0x143   : > { %5509 = vmatpush3.bf16.msra.mxu1 %v5949_v51  ;;  %5488 = vmatprep.subr.bf16.mxu0 %v5950_v49  ;;  %v5985_v46 = vld [vmem:[%s7412_s1 + $0xab8] sm:$0xff]   ;;  %v396_v51 = vrot.slane %v7277_v47, %v6173_v33  ;;  %v404_v49 = vrot.slane %v7277_v47, %v6179_v35 }
 0x144   : > { %5510 = vmatprep.subr.bf16.mxu1 %v5951_v52  ;;  %v5986_v52 = vld [vmem:[%s7412_s1 + $0xb40] sm:$0xff]   ;;  %v514_v33 = vpack.c.bf16 %v400_v48, %v400_v48 }
 0x145   : > { %v515_v35 = vpack.c.bf16 %v404_v49, %v404_v49 }
 0x146   : > { %5489 = vmatpush3.bf16.msra.mxu0 %v5952_v56  ;;  %v513_v56 = vpack.c.bf16 %v396_v51, %v396_v51 }
 0x147   : > { %5511 = vmatpush3.bf16.msra.mxu1 %v5953_v57  ;;  %5518 = vmatprep.subr.bf16.mxu0 %v5954_v58  ;;  %v5988_v57 = vld [vmem:[%s7412_s1 + $0xb00] sm:$0xff]  }
 0x148   : > { %5540 = vmatprep.subr.bf16.mxu1 %v5955_v54  ;;  %v5989_v58 = vld [vmem:[%s7412_s1 + $0xb80] sm:$0xff]   ;;  %v5992_v54 = vld [vmem:[%s7412_s1 + $0xb08] sm:$0xff]  }
 0x149   : > { %4347 = vmatmul.mubr.bf16.vlgmr.msra.gmra.mrb[36].mxu0 %v509_v59 }
 0x14a   : > { %4387 = vmatmul.mubr.bf16.vlgmr.msra.gmra.mrb[36].mxu1 %v511_v61  ;;  %5519 = vmatpush3.bf16.msra.mxu0 %v5956_v62  ;;  %v5991_v61 = vld [vmem:[%s7412_s1 + $0xbc8] sm:$0xff]  }
 0x14b   : > { %5541 = vmatpush3.bf16.msra.mxu1 %v5957_v63  ;;  %5520 = vmatprep.subr.bf16.mxu0 %v5958_v0  ;;  %v5993_v62 = vld [vmem:[%s7412_s1 + $0xb88] sm:$0xff]   ;;  %v5994_v63 = vld [vmem:[%s7412_s1 + $0xb50] sm:$0xff]  }
 0x14c   : > { %5542 = vmatprep.subr.bf16.mxu1 %v5959_v1  ;;  %4426 = vmatprep.mubr.bf16.mxu0 %v514_v33  ;;  %v5995_v0 = vld [vmem:[%s7412_s1 + $0xbd0] sm:$0xff]  }
 0x14d   : > { %v5996_v1 = vld [vmem:[%s7412_s1 + $0xb10] sm:$0xff]  }
 0x14e   : > { %5521 = vmatpush3.bf16.msra.mxu0 %v5960_v2  ;;  %v5997_v2 = vld [vmem:[%s7412_s1 + $0xb90] sm:$0xff]  }
 0x14f   : > { %5543 = vmatpush3.bf16.msra.mxu1 %v5961_v60  ;;  %5522 = vmatprep.subr.bf16.mxu0 %v5962_v3  ;;  %v5998_v60 = vld [vmem:[%s7412_s1 + $0xb58] sm:$0xff]  }
 0x150   : > { %5544 = vmatprep.subr.bf16.mxu1 %v5963_v4  ;;  %v5999_v3 = vld [vmem:[%s7412_s1 + $0xbd8] sm:$0xff]  }
 0x151   : > { %v6000_v4 = vld [vmem:[%s7412_s1 + $0xb18] sm:$0xff]  }
 0x152   : > { %5523 = vmatpush3.bf16.msra.mxu0 %v5964_v5  ;;  %v6001_v5 = vld [vmem:[%s7412_s1 + $0xb98] sm:$0xff]  }
 0x153   : > { %5545 = vmatpush3.bf16.msra.mxu1 %v5965_v6  ;;  %5524 = vmatprep.subr.bf16.mxu0 %v5966_v7  ;;  %v6002_v6 = vld [vmem:[%s7412_s1 + $0xb60] sm:$0xff]  }
 0x154   : > { %5546 = vmatprep.subr.bf16.mxu1 %v5967_v8  ;;  %v6003_v7 = vld [vmem:[%s7412_s1 + $0xbe0] sm:$0xff]  }
 0x155   : > { %v6004_v8 = vld [vmem:[%s7412_s1 + $0xb20] sm:$0xff]  }
 0x156   : > { %5525 = vmatpush3.bf16.msra.mxu0 %v5968_v9  ;;  %v6005_v9 = vld [vmem:[%s7412_s1 + $0xba0] sm:$0xff]  }
 0x157   : > { %5547 = vmatpush3.bf16.msra.mxu1 %v5969_v10  ;;  %5526 = vmatprep.subr.bf16.mxu0 %v5970_v11 }
 0x158   : > { %5548 = vmatprep.subr.bf16.mxu1 %v5971_v12 }
 0x15a   : > { %5527 = vmatpush3.bf16.msra.mxu0 %v5972_v13 }
 0x15b   : > { %5549 = vmatpush3.bf16.msra.mxu1 %v5973_v14  ;;  %5528 = vmatprep.subr.bf16.mxu0 %v5974_v16  ;;  %v6006_v14 = vld [vmem:[%s7412_s1 + $0xb68] sm:$0xff]  }
 0x15c   : > { %v5226_v18 = vpop.f32.mrb[12].mxu0  ;;  %5550 = vmatprep.subr.bf16.mxu1 %v5975_v22  ;;  %v6007_v16 = vld [vmem:[%s7412_s1 + $0xbe8] sm:$0xff]  }
 0x15d   : > { %v5248_v19 = vpop.f32.mrb[12].mxu1  ;;  %v5227_v20 = vpop.f32.mrb[13].mxu0  ;;  %v6008_v22 = vld [vmem:[%s7412_s1 + $0xb28] sm:$0xff]  }
 0x15e   : > { %v5249_v21 = vpop.f32.mrb[13].mxu1  ;;  %v5228_v24 = vadd.f32 %v5227_v20, %v5226_v18  ;;  %v5229_v26 = vpop.f32.mrb[14].mxu0  ;;  %5529 = vmatpush3.bf16.msra.mxu0 %v5976_v23 }
 0x15f   : > { %v5250_v25 = vadd.f32 %v5249_v21, %v5248_v19  ;;  %v5251_v27 = vpop.f32.mrb[14].mxu1  ;;  %v5230_v30 = vpop.f32.mrb[15].mxu0  ;;  %5551 = vmatpush3.bf16.msra.mxu1 %v5977_v28  ;;  %5530 = vmatprep.subr.bf16.mxu0 %v5978_v34  ;;  %v6013_v34 = vld [vmem:[%s7412_s1 + $0xbb0] sm:$0xff]  }
 0x160   : > { %v5252_v32 = vpop.f32.mrb[15].mxu1  ;;  %v3869_v36 = vadd.f32 %v5228_v24, %v7156_v50  ;;  %5552 = vmatprep.subr.bf16.mxu1 %v5979_v38  ;;  %v408_v50 = vrot.slane %v7277_v47, %v6167_v31  ;;  %v424_v31 = vrot.slane %v7277_v47, %v6196_v39  ;;  %v518_v39 = vpack.c.bf16 %v416_v29, %v416_v29  ;;  %v6010_v27 = vld [vmem:[%s7412_s1 + $0xb70] sm:$0xff]  }
 0x161   : > { %v6011_v30 = vld [vmem:[%s7412_s1 + $0xbf0] sm:$0xff]   ;;  %v412_v38 = vrot.slane %v7277_v47, %v6292_v15 }
 0x162   : > { %v7256_v40 = vadd.f32 %v5250_v25, %v3869_v36  ;;  %5531 = vmatpush3.bf16.msra.mxu0 %v5980_v41  ;;  %v516_v55 = vpack.c.bf16 %v408_v50, %v408_v50  ;;  %v520_v59 = vpack.c.bf16 %v424_v31, %v424_v31  ;;  %v6009_v25 = vld [vmem:[%s7412_s1 + $0xba8] sm:$0xff]   ;;  %v6012_v32 = vld [vmem:[%s7412_s1 + $0xb30] sm:$0xff]   ;;  %v6014_v36 = vld [vmem:[%s7412_s1 + $0xb78] sm:$0xff]  }
 0x163   : > { %5553 = vmatpush3.bf16.msra.mxu1 %v5981_v42  ;;  %5532 = vmatprep.subr.bf16.mxu0 %v5982_v43  ;;  %v6015_v41 = vld [vmem:[%s7412_s1 + $0xbf8] sm:$0xff]   ;;  %v517_v15 = vpack.c.bf16 %v412_v38, %v412_v38 }
 0x164   : > { %5554 = vmatprep.subr.bf16.mxu1 %v5983_v44  ;;  %4466 = vmatprep.mubr.bf16.mxu1 %v516_v55  ;;  %v6016_v42 = vld [vmem:[%s7412_s1 + $0xb38] sm:$0xff]  }
 0x165   : > { %v6017_v43 = vld [vmem:[%s7412_s1 + $0xbb8] sm:$0xff]  }
 0x166   : > { %5533 = vmatpush3.bf16.msra.mxu0 %v5984_v45 }
 0x167   : > { %5555 = vmatpush3.bf16.msra.mxu1 %v5985_v46  ;;  %5562 = vmatprep.subr.bf16.mxu0 %v5986_v52 }
 0x168   : > { %5584 = vmatprep.subr.bf16.mxu1 %v5987_v53 }
 0x169   : > { %4427 = vmatmul.mubr.bf16.vlgmr.msra.gmra.mrb[40].mxu0 %v513_v56 }
 0x16a   : > { %4467 = vmatmul.mubr.bf16.vlgmr.msra.gmra.mrb[40].mxu1 %v515_v35  ;;  %5563 = vmatpush3.bf16.msra.mxu0 %v5988_v57 }
 0x16b   : > { %5585 = vmatpush3.bf16.msra.mxu1 %v5989_v58  ;;  %5564 = vmatprep.subr.bf16.mxu0 %v5990_v37 }
 0x16c   : > { %5586 = vmatprep.subr.bf16.mxu1 %v5991_v61  ;;  %4506 = vmatprep.mubr.bf16.mxu0 %v518_v39 }
 0x16d   : > { %4546 = vmatprep.mubr.bf16.mxu1 %v520_v59 }
 0x16e   : > { %5565 = vmatpush3.bf16.msra.mxu0 %v5992_v54 }
 0x16f   : > { %5587 = vmatpush3.bf16.msra.mxu1 %v5993_v62  ;;  %5566 = vmatprep.subr.bf16.mxu0 %v5994_v63  ;;  %v6018_v63 = vld [vmem:[%s7414_s3] sm:$0xff]  }
 0x170   : > { %5588 = vmatprep.subr.bf16.mxu1 %v5995_v0  ;;  %v6030_v0 = vmov 0.0  }
 0x172   : > { %5567 = vmatpush3.bf16.msra.mxu0 %v5996_v1 }
 0x173   : > { %5589 = vmatpush3.bf16.msra.mxu1 %v5997_v2  ;;  %5568 = vmatprep.subr.bf16.mxu0 %v5998_v60 }
 0x174   : > { %5590 = vmatprep.subr.bf16.mxu1 %v5999_v3 }
 0x176   : > { %5569 = vmatpush3.bf16.msra.mxu0 %v6000_v4 }
 0x177   : > { %5591 = vmatpush3.bf16.msra.mxu1 %v6001_v5  ;;  %5570 = vmatprep.subr.bf16.mxu0 %v6002_v6 }
 0x178   : > { %5592 = vmatprep.subr.bf16.mxu1 %v6003_v7 }
 0x17a   : > { %5571 = vmatpush3.bf16.msra.mxu0 %v6004_v8  ;;  %v6019_v8 = vld [vmem:[%s7414_s3 + $0x8] sm:$0xff]  }
 0x17b   : > { %5593 = vmatpush3.bf16.msra.mxu1 %v6005_v9  ;;  %5572 = vmatprep.subr.bf16.mxu0 %v6006_v14  ;;  %v6021_v14 = vld [vmem:[%s7414_s3 + $0x18] sm:$0xff]  }
 0x17c   : > { %v5270_v10 = vpop.f32.mrb[16].mxu0  ;;  %5594 = vmatprep.subr.bf16.mxu1 %v6007_v16 }
 0x17d   : > { %v5292_v11 = vpop.f32.mrb[16].mxu1  ;;  %v5271_v12 = vpop.f32.mrb[17].mxu0 }
 0x17e   : > { %v5293_v13 = vpop.f32.mrb[17].mxu1  ;;  %v5272_v18 = vadd.f32 %v5271_v12, %v5270_v10  ;;  %v5273_v20 = vpop.f32.mrb[18].mxu0  ;;  %5573 = vmatpush3.bf16.msra.mxu0 %v6008_v22 }
 0x17f   : > { %v5294_v19 = vadd.f32 %v5293_v13, %v5292_v11  ;;  %v5295_v21 = vpop.f32.mrb[18].mxu1  ;;  %v5274_v23 = vpop.f32.mrb[19].mxu0  ;;  %5595 = vmatpush3.bf16.msra.mxu1 %v6009_v25  ;;  %5574 = vmatprep.subr.bf16.mxu0 %v6010_v27  ;;  %v6020_v13 = vld [vmem:[%s7414_s3 + $0x10] sm:$0xff]  }
 0x180   : > { %v3949_v24 = vadd.f32 %v5272_v18, %v7256_v40  ;;  %v5296_v26 = vpop.f32.mrb[19].mxu1  ;;  %5596 = vmatprep.subr.bf16.mxu1 %v6011_v30  ;;  %v420_v40 = vrot.slane %v7277_v47, %v6298_v17 }
 0x182   : > { %v3989_v28 = vadd.f32 %v5294_v19, %v3949_v24  ;;  %5575 = vmatpush3.bf16.msra.mxu0 %v6012_v32  ;;  %v519_v44 = vpack.c.bf16 %v420_v40, %v420_v40 }
 0x183   : > { %5597 = vmatpush3.bf16.msra.mxu1 %v6013_v34  ;;  %5576 = vmatprep.subr.bf16.mxu0 %v6014_v36 }
 0x184   : > { %5598 = vmatprep.subr.bf16.mxu1 %v6015_v41 }
 0x186   : > { %5577 = vmatpush3.bf16.msra.mxu0 %v6016_v42 }
 0x187   : > { %5599 = vmatpush3.bf16.msra.mxu1 %v6017_v43  ;;  %5611 = vmatprep.subr.bf16.mxu0 %v6030_v0 }
 0x189   : > { %4507 = vmatmul.mubr.bf16.vlgmr.msra.gmra.mrb[44].mxu0 %v517_v15 }
 0x18a   : > { %4547 = vmatmul.mubr.bf16.vlgmr.msra.gmra.mrb[44].mxu1 %v519_v44  ;;  %5612 = vmatpush3.bf16.msra.mxu0 %v6018_v63 }
 0x18b   : > { %5613 = vmatprep.subr.bf16.mxu0 %v6030_v0  ;;  %5619 = vmatprep.mubr.msk.bf16.mxu0 %vm6031_vm0, %v6030_v0 }
 0x18e   : > { %5614 = vmatpush3.bf16.msra.mxu0 %v6019_v8 }
 0x18f   : > { %5615 = vmatprep.subr.bf16.mxu0 %v6030_v0 }
 0x192   : > { %5616 = vmatpush3.bf16.msra.mxu0 %v6020_v13 }
 0x193   : > { %5617 = vmatprep.subr.bf16.mxu0 %v6030_v0 }
 0x196   : > { %5618 = vmatpush3.bf16.msra.mxu0 %v6021_v14 }
 0x19c   : > { %v5314_v17 = vpop.f32.mrb[20].mxu0 }
 0x19d   : > { %v5336_v45 = vpop.f32.mrb[20].mxu1  ;;  %v5315_v46 = vpop.f32.mrb[21].mxu0 }
 0x19e   : > { %v5337_v47 = vpop.f32.mrb[21].mxu1  ;;  %v5316_v48 = vadd.f32 %v5315_v46, %v5314_v17  ;;  %v5317_v51 = vpop.f32.mrb[22].mxu0 }
 0x19f   : > { %v5338_v50 = vadd.f32 %v5337_v47, %v5336_v45  ;;  %v5339_v49 = vpop.f32.mrb[22].mxu1  ;;  %v5318_v52 = vpop.f32.mrb[23].mxu0 }
 0x1a0   : > { %v5340_v53 = vpop.f32.mrb[23].mxu1  ;;  %v4029_v29 = vadd.f32 %v5316_v48, %v3989_v28 }
 0x1a2   : > { %v4069_v31 = vadd.f32 %v5338_v50, %v4029_v29 }
 0x1bc   : > { %v5358_v33 = vpop.f32.mrb[24].mxu0 }
 0x1bd   : > { %v5380_v55 = vpop.f32.mrb[24].mxu1  ;;  %v5359_v56 = vpop.f32.mrb[25].mxu0 }
 0x1be   : > { %v5381_v35 = vpop.f32.mrb[25].mxu1  ;;  %v5360_v57 = vadd.f32 %v5359_v56, %v5358_v33  ;;  %v5361_v37 = vpop.f32.mrb[26].mxu0 }
 0x1bf   : > { %v5382_v58 = vadd.f32 %v5381_v35, %v5380_v55  ;;  %v5383_v39 = vpop.f32.mrb[26].mxu1  ;;  %v5362_v59 = vpop.f32.mrb[27].mxu0 }
 0x1c0   : > { %v5384_v61 = vpop.f32.mrb[27].mxu1  ;;  %v4109_v54 = vadd.f32 %v5360_v57, %v4069_v31 }
 0x1c2   : > { %v4149_v62 = vadd.f32 %v5382_v58, %v4109_v54 }
 0x1dc   : > { %v5402_v1 = vpop.f32.mrb[28].mxu0 }
 0x1dd   : > { %v5424_v2 = vpop.f32.mrb[28].mxu1  ;;  %v5403_v60 = vpop.f32.mrb[29].mxu0 }
 0x1de   : > { %v5425_v3 = vpop.f32.mrb[29].mxu1  ;;  %v5404_v4 = vadd.f32 %v5403_v60, %v5402_v1  ;;  %v5405_v6 = vpop.f32.mrb[30].mxu0 }
 0x1df   : > { %v5426_v5 = vadd.f32 %v5425_v3, %v5424_v2  ;;  %v5427_v7 = vpop.f32.mrb[30].mxu1  ;;  %v5406_v9 = vpop.f32.mrb[31].mxu0  ;;  %v4564_v2 = vld [vmem:[#allocation2] sm:$0x1] }
 0x1e0   : > { %v5428_v10 = vpop.f32.mrb[31].mxu1  ;;  %v4189_v11 = vadd.f32 %v5404_v4, %v4149_v62 }
 0x1e2   : > { %v4229_v12 = vadd.f32 %v5426_v5, %v4189_v11 }
 0x1fc   : > { %v5446_v16 = vpop.f32.mrb[32].mxu0 }
 0x1fd   : > { %v5468_v18 = vpop.f32.mrb[32].mxu1  ;;  %v5447_v19 = vpop.f32.mrb[33].mxu0 }
 0x1fe   : > { %v5469_v20 = vpop.f32.mrb[33].mxu1  ;;  %v5448_v21 = vadd.f32 %v5447_v19, %v5446_v16  ;;  %v5449_v23 = vpop.f32.mrb[34].mxu0 }
 0x1ff   : > { %v5470_v22 = vadd.f32 %v5469_v20, %v5468_v18  ;;  %v5471_v24 = vpop.f32.mrb[34].mxu1  ;;  %v5450_v25 = vpop.f32.mrb[35].mxu0 }
 0x200   : > { %v5472_v26 = vpop.f32.mrb[35].mxu1  ;;  %v4269_v27 = vadd.f32 %v5448_v21, %v4229_v12 }
 0x202   : > { %v4309_v28 = vadd.f32 %v5470_v22, %v4269_v27 }
 0x21c   : > { %v5490_v30 = vpop.f32.mrb[36].mxu0 }
 0x21d   : > { %v5512_v32 = vpop.f32.mrb[36].mxu1  ;;  %v5491_v34 = vpop.f32.mrb[37].mxu0 }
 0x21e   : > { %v5513_v36 = vpop.f32.mrb[37].mxu1  ;;  %v5492_v38 = vadd.f32 %v5491_v34, %v5490_v30  ;;  %v5493_v41 = vpop.f32.mrb[38].mxu0 }
 0x21f   : > { %v5514_v40 = vadd.f32 %v5513_v36, %v5512_v32  ;;  %v5515_v42 = vpop.f32.mrb[38].mxu1  ;;  %v5494_v43 = vpop.f32.mrb[39].mxu0 }
 0x220   : > { %v5516_v15 = vpop.f32.mrb[39].mxu1  ;;  %v4349_v44 = vadd.f32 %v5492_v38, %v4309_v28 }
 0x222   : > { %v4389_v17 = vadd.f32 %v5514_v40, %v4349_v44 }
 0x23c   : > { %v5534_v45 = vpop.f32.mrb[40].mxu0 }
 0x23d   : > { %v5556_v46 = vpop.f32.mrb[40].mxu1  ;;  %v5535_v47 = vpop.f32.mrb[41].mxu0 }
 0x23e   : > { %v5557_v48 = vpop.f32.mrb[41].mxu1  ;;  %v5536_v50 = vadd.f32 %v5535_v47, %v5534_v45  ;;  %v5537_v49 = vpop.f32.mrb[42].mxu0 }
 0x23f   : > { %v5558_v51 = vadd.f32 %v5557_v48, %v5556_v46  ;;  %v5559_v52 = vpop.f32.mrb[42].mxu1  ;;  %v5538_v53 = vpop.f32.mrb[43].mxu0 }
 0x240   : > { %v5560_v29 = vpop.f32.mrb[43].mxu1  ;;  %v4429_v31 = vadd.f32 %v5536_v50, %v4389_v17 }
 0x242   : > { %v4469_v33 = vadd.f32 %v5558_v51, %v4429_v31 }
 0x25c   : > { %v5578_v55 = vpop.f32.mrb[44].mxu0 }
 0x25d   : > { %v5600_v56 = vpop.f32.mrb[44].mxu1  ;;  %v5579_v35 = vpop.f32.mrb[45].mxu0 }
 0x25e   : > { %v5601_v57 = vpop.f32.mrb[45].mxu1  ;;  %v5580_v58 = vadd.f32 %v5579_v35, %v5578_v55  ;;  %v5581_v39 = vpop.f32.mrb[46].mxu0 }
 0x25f   : > { %v5602_v37 = vadd.f32 %v5601_v57, %v5600_v56  ;;  %v5603_v59 = vpop.f32.mrb[46].mxu1  ;;  %v5582_v61 = vpop.f32.mrb[47].mxu0 }
 0x260   : > { %v5604_v54 = vpop.f32.mrb[47].mxu1  ;;  %v4509_v62 = vadd.f32 %v5580_v58, %v4469_v33 }
 0x262   : > { %v4549_v63 = vadd.f32 %v5602_v37, %v4509_v62 }
 0x264   : > { %v4554_v0 = vmax.f32 %v4549_v63, 0.0 }
 0x266   : > { %v4555_v1 = vpack.c.bf16 %v4554_v0, %v4554_v0 }
 0x268   : > { %5620 = vmatmul.mubr.msk.bf16.vlgmr.msra.gmra.mrb[48].mxu0 %vm4589_vm1, %v4555_v1 }
 0x33b   : > { %v4627_v60 = vpop.f32.mrb[48].mxu0 }
 0x33c   : > { %v4628_v3 = vadd.f32 %v4627_v60, %v4564_v2  ;;  %v5621_v4 = vpop.f32.mrb[49].mxu0 }
 0x33d   : > { %v4630_v5 = vpop.f32.mrb[50].mxu0 }
 0x33e   : > { %4634 = vst.msk [vmem:[%s219_s11] sm:$0x1] %vm4633_vm2, %v4628_v3  ;;  %v5622_v6 = vpop.f32.mrb[51].mxu0 }
 0x33f PF: > { %s17_s20 = sadd.s32 1, %s6028_s20  }
 0x340   : > { %p14_p4 = scmp.ge.s32.totalorder %s17_s20, 4  }
 0x342   :  { %16 = sbr.rel (!%p14_p4) target bundleno = 3 (0x3), region = 70 }

</bundles_post_ra>
